<compile_context>
chip_gen: v7x
topology: tpu7x:2x2x1
jax: 0.10.0
libtpu: 0.0.40
codegen_flags: <defaults>
</compile_context>

<pallas_src>
import jax
import jax.numpy as jnp
from jax.experimental import pallas as pl
from jax.experimental.pallas import tpu as pltpu

D = 8
W = 256
IN_XYZ = 63
IN_DIR = 27
SKIPS = (4,)
IN_TOTAL = IN_XYZ + IN_DIR

XYZ_PAD = 64      # 63 -> 64   (lane-aligned xyz input / weight K)
DIR_PAD = 32      # 27 -> 32   (lane-aligned dir input / weight K)
OUT_PAD = 128     # lane-dense output block; cols 0..2 = rgb, col 3 = sigma
SIGMA_COL = 3


def _layer_dims():
    """(in, out) for every Linear, in the order parameters are passed."""
    dims = []
    for i in range(D):
        if i == 0:
            dims.append((IN_XYZ, W))
        elif i in SKIPS:
            dims.append((W + IN_XYZ, W))
        else:
            dims.append((W, W))
    dims.append((W, W))                 # xyz_encoding_final
    dims.append((W + IN_DIR, W // 2))   # dir_encoding
    dims.append((W, 1))                 # sigma
    dims.append((W // 2, 3))            # rgb
    return dims


def init_params(key):
    """Deterministic init matching PyTorch nn.Linear default U[-1/sqrt(fan_in), +]."""
    dims = _layer_dims()
    keys = jax.random.split(key, 2 * len(dims))
    params = []
    for j, (din, dout) in enumerate(dims):
        bound = 1.0 / float(din) ** 0.5
        w = jax.random.uniform(keys[2 * j], (din, dout), jnp.float32, -bound, bound)
        b = jax.random.uniform(keys[2 * j + 1], (1, dout), jnp.float32, -bound, bound)
        params += [w, b]
    return params


def prepare_params(params, compute_dtype=jnp.bfloat16):
    """Split / zero-pad / cast the (in, out) weights for the kernel.

    - skip layer -> (xyz-part, h-part): two lane-aligned matmuls, no concat.
    - dir_encoding -> (final-part, dir-part): same trick.
    - sigma / rgb heads are padded into a 128-lane output block (sigma in
      col SIGMA_COL, rgb in cols 0..2) so the epilogue is one dense store.
    Weights are cast to compute_dtype (bf16 by default: MXU-native); biases
    stay f32 and are added onto the f32 matmul accumulators.
    """
    p = list(params)
    cd = compute_dtype

    def wb(j):
        return p[2 * j], p[2 * j + 1]

    def cast_w(w):
        return w.astype(cd)

    def cast_b(b):
        return jnp.asarray(b, jnp.float32).reshape(1, -1)

    trunk = []
    for i in range(D):
        w, b = wb(i)
        if i == 0:
            trunk.append(cast_w(jnp.pad(w, ((0, XYZ_PAD - IN_XYZ), (0, 0)))))
            trunk.append(cast_b(b))
        elif i in SKIPS:
            # concat([xyz, h]) @ w  ==  xyz @ w[:63] + h @ w[63:]
            trunk.append(cast_w(jnp.pad(w[:IN_XYZ], ((0, XYZ_PAD - IN_XYZ), (0, 0)))))
            trunk.append(cast_w(w[IN_XYZ:]))
            trunk.append(cast_b(b))
        else:
            trunk.append(cast_w(w))
            trunk.append(cast_b(b))

    wf, bf_ = wb(D)       # xyz_encoding_final
    wd, bd = wb(D + 1)    # dir_encoding
    ws, bs = wb(D + 2)    # sigma
    wr, br = wb(D + 3)    # rgb

    final = [cast_w(wf), cast_b(bf_)]
    dir_enc = [
        cast_w(wd[:W]),                                           # final part
        cast_w(jnp.pad(wd[W:], ((0, DIR_PAD - IN_DIR), (0, 0)))),  # dir part
        cast_b(bd),
    ]
    ws_pad = jnp.zeros((W, OUT_PAD), jnp.float32).at[:, SIGMA_COL:SIGMA_COL + 1].set(ws)
    bs_pad = jnp.zeros((1, OUT_PAD), jnp.float32).at[:, SIGMA_COL:SIGMA_COL + 1].set(
        jnp.asarray(bs, jnp.float32).reshape(1, -1))
    wr_pad = jnp.zeros((W // 2, OUT_PAD), jnp.float32).at[:, :3].set(wr)
    br_pad = jnp.zeros((1, OUT_PAD), jnp.float32).at[:, :3].set(
        jnp.asarray(br, jnp.float32).reshape(1, -1))

    return {
        "trunk": trunk,                     # 17 arrays
        "final": final,                     # 2
        "dir": dir_enc,                     # 3
        "sigma": [cast_w(ws_pad), bs_pad],  # 2
        "rgb": [cast_w(wr_pad), br_pad],    # 2
    }


def _dot(a, w):
    # Cast activation to the weight dtype (bf16 -> MXU-native), accumulate f32.
    return jnp.dot(a.astype(w.dtype), w, preferred_element_type=jnp.float32)


def _trunk(xyz, nxt):
    """D-layer xyz encoder.  ReLU / bias math stays in f32."""
    h = jnp.maximum(_dot(xyz, nxt()) + nxt(), 0.0)
    for i in range(1, D):
        if i in SKIPS:
            wx, wh, b = nxt(), nxt(), nxt()
            h = jnp.maximum(_dot(xyz, wx) + _dot(h, wh) + b, 0.0)
        else:
            w, b = nxt(), nxt()
            h = jnp.maximum(_dot(h, w) + b, 0.0)
    return h


def _nerf_full_kernel(xyz_ref, dir_ref, *refs):
    out_ref = refs[-1]
    it = iter(refs[:-1])
    nxt = lambda: next(it)[...]

    xyz = xyz_ref[...]
    dirs = dir_ref[...]

    h = _trunk(xyz, nxt)

    wf, bf_ = nxt(), nxt()
    wdf, wdd, bd = nxt(), nxt(), nxt()
    ws, bs = nxt(), nxt()
    wr, br = nxt(), nxt()

    # sigma head: only column SIGMA_COL of ws/bs is non-zero -> sigma lands in
    # col SIGMA_COL, all other columns are exactly 0.
    sigma_p = _dot(h, ws) + bs                                    # (tb, 128)
    final = _dot(h, wf) + bf_                                     # (tb, W)
    d = jnp.maximum(_dot(final, wdf) + _dot(dirs, wdd) + bd, 0.0)  # (tb, W//2)
    rgb_lin = _dot(d, wr) + br                                    # (tb, 128), cols 0..2 real
    rgb = rgb_lin * jax.nn.sigmoid(rgb_lin)                       # SiLU; padded cols: SiLU(0)=0

    # [r, g, b, sigma, 0, ..., 0] -- single lane-dense store.
    out_ref[...] = (rgb + sigma_p).astype(out_ref.dtype)


def _nerf_sigma_kernel(xyz_ref, *refs):
    out_ref = refs[-1]
    it = iter(refs[:-1])
    nxt = lambda: next(it)[...]
    h = _trunk(xyz_ref[...], nxt)
    ws, bs = nxt(), nxt()
    out_ref[...] = (_dot(h, ws) + bs).astype(out_ref.dtype)


def nerf_forward(x, params, *, sigma_only=False, tb=256, compute_dtype=jnp.bfloat16):
    """Pallas NeRF forward.  Returns (B, 4) [rgb, sigma] or (B, 1) sigma."""
    assert tb % 8 == 0, "batch tile must be a multiple of 8"
    B = x.shape[0]
    B_pad = -(-B // tb) * tb
    pad_b = B_pad - B

    prep = prepare_params(params, compute_dtype)

    xyz_in = jnp.pad(x[:, :IN_XYZ],
                     ((0, pad_b), (0, XYZ_PAD - IN_XYZ))).astype(compute_dtype)

    grid = (B_pad // tb,)
    xyz_spec = pl.BlockSpec((tb, XYZ_PAD), lambda i: (i, 0))
    out_spec = pl.BlockSpec((tb, OUT_PAD), lambda i: (i, 0))

    def pspec(p):
        # all prepared params are 2-D; block == full array, grid-invariant
        # (the pipeline skips re-DMA of blocks whose index does not change).
        return pl.BlockSpec(p.shape, lambda i: (0, 0))

    compiler_params = pltpu.CompilerParams(
        dimension_semantics=("parallel",),
        vmem_limit_bytes=48 * 1024 * 1024,
    )

    if sigma_only:
        # Dedicated kernel: trunk + sigma head only (skips final/dir/rgb work).
        flat = prep["trunk"] + prep["sigma"]
        out = pl.pallas_call(
            _nerf_sigma_kernel,
            out_shape=jax.ShapeDtypeStruct((B_pad, OUT_PAD), jnp.float32),
            grid_spec=pltpu.PrefetchScalarGridSpec(
                num_scalar_prefetch=0,
                grid=grid,
                in_specs=[xyz_spec] + [pspec(p) for p in flat],
                out_specs=out_spec,
            ),
            compiler_params=compiler_params,
        )(xyz_in, *flat)
        return out[:B, SIGMA_COL:SIGMA_COL + 1]

    dir_in = jnp.pad(x[:, IN_XYZ:IN_XYZ + IN_DIR],
                     ((0, pad_b), (0, DIR_PAD - IN_DIR))).astype(compute_dtype)
    dir_spec = pl.BlockSpec((tb, DIR_PAD), lambda i: (i, 0))

    flat = (prep["trunk"] + prep["final"] + prep["dir"]
            + prep["sigma"] + prep["rgb"])
    out = pl.pallas_call(
        _nerf_full_kernel,
        out_shape=jax.ShapeDtypeStruct((B_pad, OUT_PAD), jnp.float32),
        grid_spec=pltpu.PrefetchScalarGridSpec(
            num_scalar_prefetch=0,
            grid=grid,
            in_specs=[xyz_spec, dir_spec] + [pspec(p) for p in flat],
            out_specs=out_spec,
        ),
        compiler_params=compiler_params,
    )(xyz_in, dir_in, *flat)
    return out[:B, :4]


def nerf_reference(x, params, *, sigma_only=False):
    """Pure-JAX f32 reference replicating the PyTorch forward."""
    if sigma_only:
        xyz = x
    else:
        xyz, dirs = x[:, :IN_XYZ], x[:, IN_XYZ:]
    p = list(params)
    h = xyz
    for i in range(D):
        w, b = p[2 * i], p[2 * i + 1]
        if i in SKIPS:
            h = jnp.concatenate([xyz, h], axis=-1)
        h = jnp.maximum(h @ w + b, 0.0)
    wf, bf_ = p[16], p[17]
    wd, bd = p[18], p[19]
    ws, bs = p[20], p[21]
    wr, br = p[22], p[23]
    sigma = h @ ws + bs
    if sigma_only:
        return sigma
    final = h @ wf + bf_
    d = jnp.maximum(jnp.concatenate([final, dirs], axis=-1) @ wd + bd, 0.0)
    rgb_lin = d @ wr + br
    rgb = rgb_lin * jax.nn.sigmoid(rgb_lin)   # nn.SiLU in the PyTorch module
    return jnp.concatenate([rgb, sigma], axis=-1)


if __name__ == "__main__":
    key = jax.random.PRNGKey(0)
    pkey, xkey = jax.random.split(key)
    params = init_params(pkey)

    B = 128
    x = jax.random.normal(xkey, (B, IN_TOTAL), jnp.float32)

    ref = nerf_reference(x, params)

    # f32 compute path: tight check against the pure-JAX reference.
    out_f32 = jax.block_until_ready(
        nerf_forward(x, params, compute_dtype=jnp.float32))
    assert out_f32.shape == (B, 4), out_f32.shape
    assert jnp.allclose(out_f32, ref, atol=1e-3, rtol=1e-3), float(
        jnp.max(jnp.abs(out_f32 - ref)))

    # bf16 compute path (default, MXU-native): loose check.
    out_bf16 = jax.block_until_ready(nerf_forward(x, params))
    assert out_bf16.shape == (B, 4), out_bf16.shape
    assert jnp.allclose(out_bf16, ref, atol=1e-1, rtol=1e-1), float(
        jnp.max(jnp.abs(out_bf16 - ref)))

    # sigma_only path (dedicated trunk + sigma kernel).
    sigma_ref = nerf_reference(x[:, :IN_XYZ], params, sigma_only=True)
    sigma_f32 = jax.block_until_ready(
        nerf_forward(x[:, :IN_XYZ], params, sigma_only=True,
                     compute_dtype=jnp.float32))
    assert sigma_f32.shape == (B, 1), sigma_f32.shape
    assert jnp.allclose(sigma_f32, sigma_ref, atol=1e-3, rtol=1e-3)
    sigma_bf16 = jax.block_until_ready(
        nerf_forward(x[:, :IN_XYZ], params, sigma_only=True))
    assert jnp.allclose(sigma_bf16, sigma_ref, atol=1e-1, rtol=1e-1)

    print("KERNEL_OK")
</pallas_src>

<mosaic_0001>
module attributes {stable_mosaic.version = 11 : i64} {
  func.func @_nerf_full_kernel(%arg0: i32, %arg1: memref<256x64xf32, #tpu.memory_space<vmem>>, %arg2: memref<256x32xf32, #tpu.memory_space<vmem>>, %arg3: memref<64x256xf32, #tpu.memory_space<vmem>>, %arg4: memref<1x256xf32, #tpu.memory_space<vmem>>, %arg5: memref<256x256xf32, #tpu.memory_space<vmem>>, %arg6: memref<1x256xf32, #tpu.memory_space<vmem>>, %arg7: memref<256x256xf32, #tpu.memory_space<vmem>>, %arg8: memref<1x256xf32, #tpu.memory_space<vmem>>, %arg9: memref<256x256xf32, #tpu.memory_space<vmem>>, %arg10: memref<1x256xf32, #tpu.memory_space<vmem>>, %arg11: memref<64x256xf32, #tpu.memory_space<vmem>>, %arg12: memref<256x256xf32, #tpu.memory_space<vmem>>, %arg13: memref<1x256xf32, #tpu.memory_space<vmem>>, %arg14: memref<256x256xf32, #tpu.memory_space<vmem>>, %arg15: memref<1x256xf32, #tpu.memory_space<vmem>>, %arg16: memref<256x256xf32, #tpu.memory_space<vmem>>, %arg17: memref<1x256xf32, #tpu.memory_space<vmem>>, %arg18: memref<256x256xf32, #tpu.memory_space<vmem>>, %arg19: memref<1x256xf32, #tpu.memory_space<vmem>>, %arg20: memref<256x256xf32, #tpu.memory_space<vmem>>, %arg21: memref<1x256xf32, #tpu.memory_space<vmem>>, %arg22: memref<256x128xf32, #tpu.memory_space<vmem>>, %arg23: memref<32x128xf32, #tpu.memory_space<vmem>>, %arg24: memref<1x128xf32, #tpu.memory_space<vmem>>, %arg25: memref<256x128xf32, #tpu.memory_space<vmem>>, %arg26: memref<1x128xf32, #tpu.memory_space<vmem>>, %arg27: memref<128x128xf32, #tpu.memory_space<vmem>>, %arg28: memref<1x128xf32, #tpu.memory_space<vmem>>, %arg29: memref<256x128xf32, #tpu.memory_space<vmem>>) attributes {dimension_semantics = [#tpu.dimension_semantics<parallel>], iteration_bounds = array<i64: 1>, scalar_prefetch = 0 : i64, scratch_operands = 0 : i64, tpu.core_type = #tpu.core_type<tc>, window_params = [{transform_indices = @transform_0, window_bounds = array<i64: 256, 64>}, {transform_indices = @transform_1, window_bounds = array<i64: 256, 32>}, {pipeline_mode = #tpu.pipeline_mode<synchronous>, transform_indices = @transform_2, window_bounds = array<i64: 64, 256>}, {pipeline_mode = #tpu.pipeline_mode<synchronous>, transform_indices = @transform_3, window_bounds = array<i64: 1, 256>}, {pipeline_mode = #tpu.pipeline_mode<synchronous>, transform_indices = @transform_4, window_bounds = array<i64: 256, 256>}, {pipeline_mode = #tpu.pipeline_mode<synchronous>, transform_indices = @transform_5, window_bounds = array<i64: 1, 256>}, {pipeline_mode = #tpu.pipeline_mode<synchronous>, transform_indices = @transform_6, window_bounds = array<i64: 256, 256>}, {pipeline_mode = #tpu.pipeline_mode<synchronous>, transform_indices = @transform_7, window_bounds = array<i64: 1, 256>}, {pipeline_mode = #tpu.pipeline_mode<synchronous>, transform_indices = @transform_8, window_bounds = array<i64: 256, 256>}, {pipeline_mode = #tpu.pipeline_mode<synchronous>, transform_indices = @transform_9, window_bounds = array<i64: 1, 256>}, {pipeline_mode = #tpu.pipeline_mode<synchronous>, transform_indices = @transform_10, window_bounds = array<i64: 64, 256>}, {pipeline_mode = #tpu.pipeline_mode<synchronous>, transform_indices = @transform_11, window_bounds = array<i64: 256, 256>}, {pipeline_mode = #tpu.pipeline_mode<synchronous>, transform_indices = @transform_12, window_bounds = array<i64: 1, 256>}, {pipeline_mode = #tpu.pipeline_mode<synchronous>, transform_indices = @transform_13, window_bounds = array<i64: 256, 256>}, {pipeline_mode = #tpu.pipeline_mode<synchronous>, transform_indices = @transform_14, window_bounds = array<i64: 1, 256>}, {pipeline_mode = #tpu.pipeline_mode<synchronous>, transform_indices = @transform_15, window_bounds = array<i64: 256, 256>}, {pipeline_mode = #tpu.pipeline_mode<synchronous>, transform_indices = @transform_16, window_bounds = array<i64: 1, 256>}, {pipeline_mode = #tpu.pipeline_mode<synchronous>, transform_indices = @transform_17, window_bounds = array<i64: 256, 256>}, {pipeline_mode = #tpu.pipeline_mode<synchronous>, transform_indices = @transform_18, window_bounds = array<i64: 1, 256>}, {pipeline_mode = #tpu.pipeline_mode<synchronous>, transform_indices = @transform_19, window_bounds = array<i64: 256, 256>}, {pipeline_mode = #tpu.pipeline_mode<synchronous>, transform_indices = @transform_20, window_bounds = array<i64: 1, 256>}, {pipeline_mode = #tpu.pipeline_mode<synchronous>, transform_indices = @transform_21, window_bounds = array<i64: 256, 128>}, {pipeline_mode = #tpu.pipeline_mode<synchronous>, transform_indices = @transform_22, window_bounds = array<i64: 32, 128>}, {pipeline_mode = #tpu.pipeline_mode<synchronous>, transform_indices = @transform_23, window_bounds = array<i64: 1, 128>}, {pipeline_mode = #tpu.pipeline_mode<synchronous>, transform_indices = @transform_24, window_bounds = array<i64: 256, 128>}, {pipeline_mode = #tpu.pipeline_mode<synchronous>, transform_indices = @transform_25, window_bounds = array<i64: 1, 128>}, {pipeline_mode = #tpu.pipeline_mode<synchronous>, transform_indices = @transform_26, window_bounds = array<i64: 128, 128>}, {pipeline_mode = #tpu.pipeline_mode<synchronous>, transform_indices = @transform_27, window_bounds = array<i64: 1, 128>}, {transform_indices = @transform_28, window_bounds = array<i64: 256, 128>}]} {
    %c0 = arith.constant 0 : index
    %c0_0 = arith.constant 0 : index
    %0 = vector.load %arg1[%c0, %c0_0] : memref<256x64xf32, #tpu.memory_space<vmem>>, vector<256x64xf32>
    %c0_1 = arith.constant 0 : index
    %c0_2 = arith.constant 0 : index
    %1 = vector.load %arg2[%c0_1, %c0_2] : memref<256x32xf32, #tpu.memory_space<vmem>>, vector<256x32xf32>
    %c0_3 = arith.constant 0 : index
    %c0_4 = arith.constant 0 : index
    %2 = vector.load %arg3[%c0_3, %c0_4] : memref<64x256xf32, #tpu.memory_space<vmem>>, vector<64x256xf32>
    %cst = arith.constant dense<0.000000e+00> : vector<256x256xf32>
    %3 = tpu.matmul %0, %2, %cst {dimension_numbers = #tpu.dot_dimension_numbers<[1], [0], [0], [1], [0, 0, 1, 1], [], []>} : vector<256x64xf32>, vector<64x256xf32>, vector<256x256xf32> -> vector<256x256xf32>
    %c0_5 = arith.constant 0 : index
    %c0_6 = arith.constant 0 : index
    %4 = vector.load %arg4[%c0_5, %c0_6] : memref<1x256xf32, #tpu.memory_space<vmem>>, vector<1x256xf32>
    %5 = vector.broadcast %4 : vector<1x256xf32> to vector<256x256xf32>
    %6 = arith.addf %3, %5 : vector<256x256xf32>
    %cst_7 = arith.constant 0.000000e+00 : f32
    %7 = vector.broadcast %cst_7 : f32 to vector<256x256xf32>
    %8 = arith.maximumf %6, %7 : vector<256x256xf32>
    %c0_8 = arith.constant 0 : index
    %c0_9 = arith.constant 0 : index
    %9 = vector.load %arg5[%c0_8, %c0_9] : memref<256x256xf32, #tpu.memory_space<vmem>>, vector<256x256xf32>
    %c0_10 = arith.constant 0 : index
    %c0_11 = arith.constant 0 : index
    %10 = vector.load %arg6[%c0_10, %c0_11] : memref<1x256xf32, #tpu.memory_space<vmem>>, vector<1x256xf32>
    %cst_12 = arith.constant dense<0.000000e+00> : vector<256x256xf32>
    %11 = tpu.matmul %8, %9, %cst_12 {dimension_numbers = #tpu.dot_dimension_numbers<[1], [0], [0], [1], [0, 0, 1, 1], [], []>} : vector<256x256xf32>, vector<256x256xf32>, vector<256x256xf32> -> vector<256x256xf32>
    %12 = vector.broadcast %10 : vector<1x256xf32> to vector<256x256xf32>
    %13 = arith.addf %11, %12 : vector<256x256xf32>
    %cst_13 = arith.constant 0.000000e+00 : f32
    %14 = vector.broadcast %cst_13 : f32 to vector<256x256xf32>
    %15 = arith.maximumf %13, %14 : vector<256x256xf32>
    %c0_14 = arith.constant 0 : index
    %c0_15 = arith.constant 0 : index
    %16 = vector.load %arg7[%c0_14, %c0_15] : memref<256x256xf32, #tpu.memory_space<vmem>>, vector<256x256xf32>
    %c0_16 = arith.constant 0 : index
    %c0_17 = arith.constant 0 : index
    %17 = vector.load %arg8[%c0_16, %c0_17] : memref<1x256xf32, #tpu.memory_space<vmem>>, vector<1x256xf32>
    %cst_18 = arith.constant dense<0.000000e+00> : vector<256x256xf32>
    %18 = tpu.matmul %15, %16, %cst_18 {dimension_numbers = #tpu.dot_dimension_numbers<[1], [0], [0], [1], [0, 0, 1, 1], [], []>} : vector<256x256xf32>, vector<256x256xf32>, vector<256x256xf32> -> vector<256x256xf32>
    %19 = vector.broadcast %17 : vector<1x256xf32> to vector<256x256xf32>
    %20 = arith.addf %18, %19 : vector<256x256xf32>
    %cst_19 = arith.constant 0.000000e+00 : f32
    %21 = vector.broadcast %cst_19 : f32 to vector<256x256xf32>
    %22 = arith.maximumf %20, %21 : vector<256x256xf32>
    %c0_20 = arith.constant 0 : index
    %c0_21 = arith.constant 0 : index
    %23 = vector.load %arg9[%c0_20, %c0_21] : memref<256x256xf32, #tpu.memory_space<vmem>>, vector<256x256xf32>
    %c0_22 = arith.constant 0 : index
    %c0_23 = arith.constant 0 : index
    %24 = vector.load %arg10[%c0_22, %c0_23] : memref<1x256xf32, #tpu.memory_space<vmem>>, vector<1x256xf32>
    %cst_24 = arith.constant dense<0.000000e+00> : vector<256x256xf32>
    %25 = tpu.matmul %22, %23, %cst_24 {dimension_numbers = #tpu.dot_dimension_numbers<[1], [0], [0], [1], [0, 0, 1, 1], [], []>} : vector<256x256xf32>, vector<256x256xf32>, vector<256x256xf32> -> vector<256x256xf32>
    %26 = vector.broadcast %24 : vector<1x256xf32> to vector<256x256xf32>
    %27 = arith.addf %25, %26 : vector<256x256xf32>
    %cst_25 = arith.constant 0.000000e+00 : f32
    %28 = vector.broadcast %cst_25 : f32 to vector<256x256xf32>
    %29 = arith.maximumf %27, %28 : vector<256x256xf32>
    %c0_26 = arith.constant 0 : index
    %c0_27 = arith.constant 0 : index
    %30 = vector.load %arg11[%c0_26, %c0_27] : memref<64x256xf32, #tpu.memory_space<vmem>>, vector<64x256xf32>
    %c0_28 = arith.constant 0 : index
    %c0_29 = arith.constant 0 : index
    %31 = vector.load %arg12[%c0_28, %c0_29] : memref<256x256xf32, #tpu.memory_space<vmem>>, vector<256x256xf32>
    %c0_30 = arith.constant 0 : index
    %c0_31 = arith.constant 0 : index
    %32 = vector.load %arg13[%c0_30, %c0_31] : memref<1x256xf32, #tpu.memory_space<vmem>>, vector<1x256xf32>
    %cst_32 = arith.constant dense<0.000000e+00> : vector<256x256xf32>
    %33 = tpu.matmul %0, %30, %cst_32 {dimension_numbers = #tpu.dot_dimension_numbers<[1], [0], [0], [1], [0, 0, 1, 1], [], []>} : vector<256x64xf32>, vector<64x256xf32>, vector<256x256xf32> -> vector<256x256xf32>
    %cst_33 = arith.constant dense<0.000000e+00> : vector<256x256xf32>
    %34 = tpu.matmul %29, %31, %cst_33 {dimension_numbers = #tpu.dot_dimension_numbers<[1], [0], [0], [1], [0, 0, 1, 1], [], []>} : vector<256x256xf32>, vector<256x256xf32>, vector<256x256xf32> -> vector<256x256xf32>
    %35 = arith.addf %33, %34 : vector<256x256xf32>
    %36 = vector.broadcast %32 : vector<1x256xf32> to vector<256x256xf32>
    %37 = arith.addf %35, %36 : vector<256x256xf32>
    %cst_34 = arith.constant 0.000000e+00 : f32
    %38 = vector.broadcast %cst_34 : f32 to vector<256x256xf32>
    %39 = arith.maximumf %37, %38 : vector<256x256xf32>
    %c0_35 = arith.constant 0 : index
    %c0_36 = arith.constant 0 : index
    %40 = vector.load %arg14[%c0_35, %c0_36] : memref<256x256xf32, #tpu.memory_space<vmem>>, vector<256x256xf32>
    %c0_37 = arith.constant 0 : index
    %c0_38 = arith.constant 0 : index
    %41 = vector.load %arg15[%c0_37, %c0_38] : memref<1x256xf32, #tpu.memory_space<vmem>>, vector<1x256xf32>
    %cst_39 = arith.constant dense<0.000000e+00> : vector<256x256xf32>
    %42 = tpu.matmul %39, %40, %cst_39 {dimension_numbers = #tpu.dot_dimension_numbers<[1], [0], [0], [1], [0, 0, 1, 1], [], []>} : vector<256x256xf32>, vector<256x256xf32>, vector<256x256xf32> -> vector<256x256xf32>
    %43 = vector.broadcast %41 : vector<1x256xf32> to vector<256x256xf32>
    %44 = arith.addf %42, %43 : vector<256x256xf32>
    %cst_40 = arith.constant 0.000000e+00 : f32
    %45 = vector.broadcast %cst_40 : f32 to vector<256x256xf32>
    %46 = arith.maximumf %44, %45 : vector<256x256xf32>
    %c0_41 = arith.constant 0 : index
    %c0_42 = arith.constant 0 : index
    %47 = vector.load %arg16[%c0_41, %c0_42] : memref<256x256xf32, #tpu.memory_space<vmem>>, vector<256x256xf32>
    %c0_43 = arith.constant 0 : index
    %c0_44 = arith.constant 0 : index
    %48 = vector.load %arg17[%c0_43, %c0_44] : memref<1x256xf32, #tpu.memory_space<vmem>>, vector<1x256xf32>
    %cst_45 = arith.constant dense<0.000000e+00> : vector<256x256xf32>
    %49 = tpu.matmul %46, %47, %cst_45 {dimension_numbers = #tpu.dot_dimension_numbers<[1], [0], [0], [1], [0, 0, 1, 1], [], []>} : vector<256x256xf32>, vector<256x256xf32>, vector<256x256xf32> -> vector<256x256xf32>
    %50 = vector.broadcast %48 : vector<1x256xf32> to vector<256x256xf32>
    %51 = arith.addf %49, %50 : vector<256x256xf32>
    %cst_46 = arith.constant 0.000000e+00 : f32
    %52 = vector.broadcast %cst_46 : f32 to vector<256x256xf32>
    %53 = arith.maximumf %51, %52 : vector<256x256xf32>
    %c0_47 = arith.constant 0 : index
    %c0_48 = arith.constant 0 : index
    %54 = vector.load %arg18[%c0_47, %c0_48] : memref<256x256xf32, #tpu.memory_space<vmem>>, vector<256x256xf32>
    %c0_49 = arith.constant 0 : index
    %c0_50 = arith.constant 0 : index
    %55 = vector.load %arg19[%c0_49, %c0_50] : memref<1x256xf32, #tpu.memory_space<vmem>>, vector<1x256xf32>
    %cst_51 = arith.constant dense<0.000000e+00> : vector<256x256xf32>
    %56 = tpu.matmul %53, %54, %cst_51 {dimension_numbers = #tpu.dot_dimension_numbers<[1], [0], [0], [1], [0, 0, 1, 1], [], []>} : vector<256x256xf32>, vector<256x256xf32>, vector<256x256xf32> -> vector<256x256xf32>
    %57 = vector.broadcast %55 : vector<1x256xf32> to vector<256x256xf32>
    %58 = arith.addf %56, %57 : vector<256x256xf32>
    %cst_52 = arith.constant 0.000000e+00 : f32
    %59 = vector.broadcast %cst_52 : f32 to vector<256x256xf32>
    %60 = arith.maximumf %58, %59 : vector<256x256xf32>
    %c0_53 = arith.constant 0 : index
    %c0_54 = arith.constant 0 : index
    %61 = vector.load %arg20[%c0_53, %c0_54] : memref<256x256xf32, #tpu.memory_space<vmem>>, vector<256x256xf32>
    %c0_55 = arith.constant 0 : index
    %c0_56 = arith.constant 0 : index
    %62 = vector.load %arg21[%c0_55, %c0_56] : memref<1x256xf32, #tpu.memory_space<vmem>>, vector<1x256xf32>
    %c0_57 = arith.constant 0 : index
    %c0_58 = arith.constant 0 : index
    %63 = vector.load %arg22[%c0_57, %c0_58] : memref<256x128xf32, #tpu.memory_space<vmem>>, vector<256x128xf32>
    %c0_59 = arith.constant 0 : index
    %c0_60 = arith.constant 0 : index
    %64 = vector.load %arg23[%c0_59, %c0_60] : memref<32x128xf32, #tpu.memory_space<vmem>>, vector<32x128xf32>
    %c0_61 = arith.constant 0 : index
    %c0_62 = arith.constant 0 : index
    %65 = vector.load %arg24[%c0_61, %c0_62] : memref<1x128xf32, #tpu.memory_space<vmem>>, vector<1x128xf32>
    %c0_63 = arith.constant 0 : index
    %c0_64 = arith.constant 0 : index
    %66 = vector.load %arg25[%c0_63, %c0_64] : memref<256x128xf32, #tpu.memory_space<vmem>>, vector<256x128xf32>
    %c0_65 = arith.constant 0 : index
    %c0_66 = arith.constant 0 : index
    %67 = vector.load %arg26[%c0_65, %c0_66] : memref<1x128xf32, #tpu.memory_space<vmem>>, vector<1x128xf32>
    %c0_67 = arith.constant 0 : index
    %c0_68 = arith.constant 0 : index
    %68 = vector.load %arg27[%c0_67, %c0_68] : memref<128x128xf32, #tpu.memory_space<vmem>>, vector<128x128xf32>
    %c0_69 = arith.constant 0 : index
    %c0_70 = arith.constant 0 : index
    %69 = vector.load %arg28[%c0_69, %c0_70] : memref<1x128xf32, #tpu.memory_space<vmem>>, vector<1x128xf32>
    %cst_71 = arith.constant dense<0.000000e+00> : vector<256x128xf32>
    %70 = tpu.matmul %60, %66, %cst_71 {dimension_numbers = #tpu.dot_dimension_numbers<[1], [0], [0], [1], [0, 0, 1, 1], [], []>} : vector<256x256xf32>, vector<256x128xf32>, vector<256x128xf32> -> vector<256x128xf32>
    %71 = vector.broadcast %67 : vector<1x128xf32> to vector<256x128xf32>
    %72 = arith.addf %70, %71 : vector<256x128xf32>
    %cst_72 = arith.constant dense<0.000000e+00> : vector<256x256xf32>
    %73 = tpu.matmul %60, %61, %cst_72 {dimension_numbers = #tpu.dot_dimension_numbers<[1], [0], [0], [1], [0, 0, 1, 1], [], []>} : vector<256x256xf32>, vector<256x256xf32>, vector<256x256xf32> -> vector<256x256xf32>
    %74 = vector.broadcast %62 : vector<1x256xf32> to vector<256x256xf32>
    %75 = arith.addf %73, %74 : vector<256x256xf32>
    %cst_73 = arith.constant dense<0.000000e+00> : vector<256x128xf32>
    %76 = tpu.matmul %75, %63, %cst_73 {dimension_numbers = #tpu.dot_dimension_numbers<[1], [0], [0], [1], [0, 0, 1, 1], [], []>} : vector<256x256xf32>, vector<256x128xf32>, vector<256x128xf32> -> vector<256x128xf32>
    %cst_74 = arith.constant dense<0.000000e+00> : vector<256x128xf32>
    %77 = tpu.matmul %1, %64, %cst_74 {dimension_numbers = #tpu.dot_dimension_numbers<[1], [0], [0], [1], [0, 0, 1, 1], [], []>} : vector<256x32xf32>, vector<32x128xf32>, vector<256x128xf32> -> vector<256x128xf32>
    %78 = arith.addf %76, %77 : vector<256x128xf32>
    %79 = vector.broadcast %65 : vector<1x128xf32> to vector<256x128xf32>
    %80 = arith.addf %78, %79 : vector<256x128xf32>
    %cst_75 = arith.constant 0.000000e+00 : f32
    %81 = vector.broadcast %cst_75 : f32 to vector<256x128xf32>
    %82 = arith.maximumf %80, %81 : vector<256x128xf32>
    %cst_76 = arith.constant dense<0.000000e+00> : vector<256x128xf32>
    %83 = tpu.matmul %82, %68, %cst_76 {dimension_numbers = #tpu.dot_dimension_numbers<[1], [0], [0], [1], [0, 0, 1, 1], [], []>} : vector<256x128xf32>, vector<128x128xf32>, vector<256x128xf32> -> vector<256x128xf32>
    %84 = vector.broadcast %69 : vector<1x128xf32> to vector<256x128xf32>
    %85 = arith.addf %83, %84 : vector<256x128xf32>
    %86 = arith.negf %85 : vector<256x128xf32>
    %87 = math.exp %86 : vector<256x128xf32>
    %cst_77 = arith.constant 1.000000e+00 : f32
    %88 = vector.broadcast %cst_77 : f32 to vector<256x128xf32>
    %89 = arith.addf %88, %87 : vector<256x128xf32>
    %90 = arith.divf %88, %89 : vector<256x128xf32>
    %91 = arith.mulf %85, %90 : vector<256x128xf32>
    %92 = arith.addf %91, %72 : vector<256x128xf32>
    %c0_78 = arith.constant 0 : index
    %c0_79 = arith.constant 0 : index
    %93 = vector.load %arg29[%c0_78, %c0_79] : memref<256x128xf32, #tpu.memory_space<vmem>>, vector<256x128xf32>
    tpu.vector_store %arg29[%c0_78, %c0_79], %92 {strides = array<i32>} : memref<256x128xf32, #tpu.memory_space<vmem>>, vector<256x128xf32>,
    return
  }
  func.func @transform_0(%arg0: i32) -> (i32, i32) {
    %c0_i32 = arith.constant 0 : i32
    %c0_i32_0 = arith.constant 0 : i32
    return %arg0, %c0_i32 : i32, i32
  }
  func.func @transform_1(%arg0: i32) -> (i32, i32) {
    %c0_i32 = arith.constant 0 : i32
    %c0_i32_0 = arith.constant 0 : i32
    return %arg0, %c0_i32 : i32, i32
  }
  func.func @transform_2(%arg0: i32) -> (i32, i32) {
    %c0_i32 = arith.constant 0 : i32
    %c0_i32_0 = arith.constant 0 : i32
    %c0_i32_1 = arith.constant 0 : i32
    return %c0_i32, %c0_i32_0 : i32, i32
  }
  func.func @transform_3(%arg0: i32) -> (i32, i32) {
    %c0_i32 = arith.constant 0 : i32
    %c0_i32_0 = arith.constant 0 : i32
    %c0_i32_1 = arith.constant 0 : i32
    return %c0_i32, %c0_i32_0 : i32, i32
  }
  func.func @transform_4(%arg0: i32) -> (i32, i32) {
    %c0_i32 = arith.constant 0 : i32
    %c0_i32_0 = arith.constant 0 : i32
    %c0_i32_1 = arith.constant 0 : i32
    return %c0_i32, %c0_i32_0 : i32, i32
  }
  func.func @transform_5(%arg0: i32) -> (i32, i32) {
    %c0_i32 = arith.constant 0 : i32
    %c0_i32_0 = arith.constant 0 : i32
    %c0_i32_1 = arith.constant 0 : i32
    return %c0_i32, %c0_i32_0 : i32, i32
  }
  func.func @transform_6(%arg0: i32) -> (i32, i32) {
    %c0_i32 = arith.constant 0 : i32
    %c0_i32_0 = arith.constant 0 : i32
    %c0_i32_1 = arith.constant 0 : i32
    return %c0_i32, %c0_i32_0 : i32, i32
  }
  func.func @transform_7(%arg0: i32) -> (i32, i32) {
    %c0_i32 = arith.constant 0 : i32
    %c0_i32_0 = arith.constant 0 : i32
    %c0_i32_1 = arith.constant 0 : i32
    return %c0_i32, %c0_i32_0 : i32, i32
  }
  func.func @transform_8(%arg0: i32) -> (i32, i32) {
    %c0_i32 = arith.constant 0 : i32
    %c0_i32_0 = arith.constant 0 : i32
    %c0_i32_1 = arith.constant 0 : i32
    return %c0_i32, %c0_i32_0 : i32, i32
  }
  func.func @transform_9(%arg0: i32) -> (i32, i32) {
    %c0_i32 = arith.constant 0 : i32
    %c0_i32_0 = arith.constant 0 : i32
    %c0_i32_1 = arith.constant 0 : i32
    return %c0_i32, %c0_i32_0 : i32, i32
  }
  func.func @transform_10(%arg0: i32) -> (i32, i32) {
    %c0_i32 = arith.constant 0 : i32
    %c0_i32_0 = arith.constant 0 : i32
    %c0_i32_1 = arith.constant 0 : i32
    return %c0_i32, %c0_i32_0 : i32, i32
  }
  func.func @transform_11(%arg0: i32) -> (i32, i32) {
    %c0_i32 = arith.constant 0 : i32
    %c0_i32_0 = arith.constant 0 : i32
    %c0_i32_1 = arith.constant 0 : i32
    return %c0_i32, %c0_i32_0 : i32, i32
  }
  func.func @transform_12(%arg0: i32) -> (i32, i32) {
    %c0_i32 = arith.constant 0 : i32
    %c0_i32_0 = arith.constant 0 : i32
    %c0_i32_1 = arith.constant 0 : i32
    return %c0_i32, %c0_i32_0 : i32, i32
  }
  func.func @transform_13(%arg0: i32) -> (i32, i32) {
    %c0_i32 = arith.constant 0 : i32
    %c0_i32_0 = arith.constant 0 : i32
    %c0_i32_1 = arith.constant 0 : i32
    return %c0_i32, %c0_i32_0 : i32, i32
  }
  func.func @transform_14(%arg0: i32) -> (i32, i32) {
    %c0_i32 = arith.constant 0 : i32
    %c0_i32_0 = arith.constant 0 : i32
    %c0_i32_1 = arith.constant 0 : i32
    return %c0_i32, %c0_i32_0 : i32, i32
  }
  func.func @transform_15(%arg0: i32) -> (i32, i32) {
    %c0_i32 = arith.constant 0 : i32
    %c0_i32_0 = arith.constant 0 : i32
    %c0_i32_1 = arith.constant 0 : i32
    return %c0_i32, %c0_i32_0 : i32, i32
  }
  func.func @transform_16(%arg0: i32) -> (i32, i32) {
    %c0_i32 = arith.constant 0 : i32
    %c0_i32_0 = arith.constant 0 : i32
    %c0_i32_1 = arith.constant 0 : i32
    return %c0_i32, %c0_i32_0 : i32, i32
  }
  func.func @transform_17(%arg0: i32) -> (i32, i32) {
    %c0_i32 = arith.constant 0 : i32
    %c0_i32_0 = arith.constant 0 : i32
    %c0_i32_1 = arith.constant 0 : i32
    return %c0_i32, %c0_i32_0 : i32, i32
  }
  func.func @transform_18(%arg0: i32) -> (i32, i32) {
    %c0_i32 = arith.constant 0 : i32
    %c0_i32_0 = arith.constant 0 : i32
    %c0_i32_1 = arith.constant 0 : i32
    return %c0_i32, %c0_i32_0 : i32, i32
  }
  func.func @transform_19(%arg0: i32) -> (i32, i32) {
    %c0_i32 = arith.constant 0 : i32
    %c0_i32_0 = arith.constant 0 : i32
    %c0_i32_1 = arith.constant 0 : i32
    return %c0_i32, %c0_i32_0 : i32, i32
  }
  func.func @transform_20(%arg0: i32) -> (i32, i32) {
    %c0_i32 = arith.constant 0 : i32
    %c0_i32_0 = arith.constant 0 : i32
    %c0_i32_1 = arith.constant 0 : i32
    return %c0_i32, %c0_i32_0 : i32, i32
  }
  func.func @transform_21(%arg0: i32) -> (i32, i32) {
    %c0_i32 = arith.constant 0 : i32
    %c0_i32_0 = arith.constant 0 : i32
    %c0_i32_1 = arith.constant 0 : i32
    return %c0_i32, %c0_i32_0 : i32, i32
  }
  func.func @transform_22(%arg0: i32) -> (i32, i32) {
    %c0_i32 = arith.constant 0 : i32
    %c0_i32_0 = arith.constant 0 : i32
    %c0_i32_1 = arith.constant 0 : i32
    return %c0_i32, %c0_i32_0 : i32, i32
  }
  func.func @transform_23(%arg0: i32) -> (i32, i32) {
    %c0_i32 = arith.constant 0 : i32
    %c0_i32_0 = arith.constant 0 : i32
    %c0_i32_1 = arith.constant 0 : i32
    return %c0_i32, %c0_i32_0 : i32, i32
  }
  func.func @transform_24(%arg0: i32) -> (i32, i32) {
    %c0_i32 = arith.constant 0 : i32
    %c0_i32_0 = arith.constant 0 : i32
    %c0_i32_1 = arith.constant 0 : i32
    return %c0_i32, %c0_i32_0 : i32, i32
  }
  func.func @transform_25(%arg0: i32) -> (i32, i32) {
    %c0_i32 = arith.constant 0 : i32
    %c0_i32_0 = arith.constant 0 : i32
    %c0_i32_1 = arith.constant 0 : i32
    return %c0_i32, %c0_i32_0 : i32, i32
  }
  func.func @transform_26(%arg0: i32) -> (i32, i32) {
    %c0_i32 = arith.constant 0 : i32
    %c0_i32_0 = arith.constant 0 : i32
    %c0_i32_1 = arith.constant 0 : i32
    return %c0_i32, %c0_i32_0 : i32, i32
  }
  func.func @transform_27(%arg0: i32) -> (i32, i32) {
    %c0_i32 = arith.constant 0 : i32
    %c0_i32_0 = arith.constant 0 : i32
    %c0_i32_1 = arith.constant 0 : i32
    return %c0_i32, %c0_i32_0 : i32, i32
  }
  func.func @transform_28(%arg0: i32) -> (i32, i32) {
    %c0_i32 = arith.constant 0 : i32
    %c0_i32_0 = arith.constant 0 : i32
    return %arg0, %c0_i32 : i32, i32
  }
}

</mosaic_0001>

<bundles_post_ra>
// kernel: tpu_custom_call.1
= control target key start
LH: loop header
LB: loop body
LE: loop exit
PB: predicated region body
PF: predicated region fallthrough
CT: control target
= control target key end

     0   :  { %s9750_s0 = inlined_call_operand.vmem [shape: f32[256,64], index: 0, kind: input, shape index: {}]   ;;  %s9751_s1 = inlined_call_operand.vmem [shape: f32[256,32], index: 1, kind: input, shape index: {}]   ;;  %s9752_s2 = inlined_call_operand.hbm [shape: f32[64,256], index: 2, kind: input, shape index: {}]   ;;  %s9753_s3 = inlined_call_operand.vmem [shape: f32[1,256], index: 3, kind: input, shape index: {}]   ;;  %s9754_s4 = inlined_call_operand.vmem [shape: f32[256,256], index: 4, kind: input, shape index: {}]   ;;  %s9755_s5 = inlined_call_operand.vmem [shape: f32[1,256], index: 5, kind: input, shape index: {}]   ;;  %s9756_s6 = inlined_call_operand.hbm [shape: f32[256,256], index: 6, kind: input, shape index: {}]   ;;  %s9757_s7 = inlined_call_operand.vmem [shape: f32[1,256], index: 7, kind: input, shape index: {}]   ;;  %s9758_s8 = inlined_call_operand.hbm [shape: f32[256,256], index: 8, kind: input, shape index: {}]   ;;  %s9759_s9 = inlined_call_operand.hbm [shape: f32[1,256], index: 9, kind: input, shape index: {}]   ;;  %s9760_s10 = inlined_call_operand.hbm [shape: f32[64,256], index: 10, kind: input, shape index: {}]   ;;  %s9761_s11 = inlined_call_operand.hbm [shape: f32[256,256], index: 11, kind: input, shape index: {}]   ;;  %s9762_s12 = inlined_call_operand.hbm [shape: f32[1,256], index: 12, kind: input, shape index: {}]   ;;  %s9763_s13 = inlined_call_operand.hbm [shape: f32[256,256], index: 13, kind: input, shape index: {}]   ;;  %s9764_s14 = inlined_call_operand.hbm [shape: f32[1,256], index: 14, kind: input, shape index: {}]   ;;  %s9765_s15 = inlined_call_operand.hbm [shape: f32[256,256], index: 15, kind: input, shape index: {}]   ;;  %s9766_s16 = inlined_call_operand.hbm [shape: f32[1,256], index: 16, kind: input, shape index: {}]   ;;  %s9767_s17 = inlined_call_operand.hbm [shape: f32[256,256], index: 17, kind: input, shape index: {}]   ;;  %s9768_s18 = inlined_call_operand.hbm [shape: f32[1,256], index: 18, kind: input, shape index: {}]   ;;  %s9769_s19 = inlined_call_operand.hbm [shape: f32[256,256], index: 19, kind: input, shape index: {}]   ;;  %s9770_s20 = inlined_call_operand.hbm [shape: f32[1,256], index: 20, kind: input, shape index: {}]   ;;  %s9771_s21 = inlined_call_operand.vmem [shape: f32[256,128], index: 21, kind: input, shape index: {}]   ;;  %s9772_s22 = inlined_call_operand.hbm [shape: f32[32,128], index: 22, kind: input, shape index: {}]   ;;  %s9773_s23 = inlined_call_operand.vmem [shape: f32[1,128], index: 23, kind: input, shape index: {}]   ;;  %s9774_s24 = inlined_call_operand.hbm [shape: f32[256,128], index: 24, kind: input, shape index: {}]   ;;  %s9775_s25 = inlined_call_operand.vmem [shape: f32[1,128], index: 25, kind: input, shape index: {}]   ;;  %s9776_s26 = inlined_call_operand.hbm [shape: f32[128,128], index: 26, kind: input, shape index: {}]   ;;  %s9777_s27 = inlined_call_operand.vmem [shape: f32[1,128], index: 27, kind: input, shape index: {}]   ;;  %s9778_s28 = inlined_call_operand.hbm [shape: f32[256,128], index: 28, kind: output, shape index: {}]  }
   0x1   :  { %9794 = sst [smem:[#allocation60_spill]] %s9750_s0 }
   0x2   :  { %9795 = sst [smem:[#allocation61_spill]] %s9751_s1 }
   0x3   :  { %9796 = sst [smem:[#allocation62_spill]] %s9752_s2 }
   0x4   :  { %9797 = sst [smem:[#allocation63_spill]] %s9753_s3 }
   0x5   :  { %9798 = sst [smem:[#allocation64_spill]] %s9754_s4 }
   0x6   :  { %9799 = sst [smem:[#allocation65_spill]] %s9755_s5 }
   0x7   :  { %9800 = sst [smem:[#allocation66_spill]] %s9756_s6 }
   0x8   :  { %9801 = sst [smem:[#allocation67_spill]] %s9757_s7 }
   0x9   :  { %9802 = sst [smem:[#allocation68_spill]] %s9758_s8 }
   0xa   :  { %9803 = sst [smem:[#allocation69_spill]] %s9759_s9 }
   0xb   :  { %9804 = sst [smem:[#allocation70_spill]] %s9760_s10 }
   0xc   :  { %9805 = sst [smem:[#allocation71_spill]] %s9761_s11 }
   0xd   :  { %9806 = sst [smem:[#allocation72_spill]] %s9762_s12 }
   0xe   :  { %9807 = sst [smem:[#allocation73_spill]] %s9778_s28 }
   0xf   :  { %33 = vsyncpa [#allocation3], 0 }
  0x10   :  { %34 = vsyncpa [#allocation6], 0 }
  0x11   :  { %35 = vsyncpa [#allocation9], 0 }
  0x12   :  { %36 = vsyncpa [#allocation12], 0 }
  0x13   :  { %37 = vsyncpa [#allocation15], 0 }
  0x14   :  { %38 = vsyncpa [#allocation18], 0 }
  0x15   :  { %39 = vsyncpa [#allocation21], 0 }
  0x16   :  { %40 = vsyncpa [#allocation24], 0 }
  0x17   :  { %41 = vsyncpa [#allocation27], 0 }
  0x18   :  { %42 = vsyncpa [#allocation30], 0 }
  0x19   :  { %43 = vsyncpa [#allocation4], 0  ;;  %s7481_s8 = smov [#allocation5]   ;;  %s7482_s9 = smov [#allocation8]  }
  0x1a   :  { %s71_s5 = sshll.u32 %s7481_s8, 4  ;;  %s98_s30 = sshll.u32 %s7482_s9, 4  ;;  %s72_s5 = int_to_ptr.vmem [resolvable:$true] %s71_s5  ;;  %s99_s30 = int_to_ptr.vmem [resolvable:$true] %s98_s30 }
  0x1b   :  { %s9808_s10 = sld [smem:[#allocation66_spill]] }
  0x21   :  { %s7041_s0 = scalar_lea.hbm %s9808_s10, 8192 }
  0x22   :  { %p7042_p0 = scmp.ne.s32.totalorder %s9808_s10, %s7041_s0  ;;  %p7045_p1 = scmp.lt.u32.totalorder %s7041_s0, %s9808_s10 }
  0x24   :  { %p7047_p2 = pnand %p7045_p1, %p7042_p0 }
  0x26   :  { %7050 = shalt.err (!%p7047_p2)
}
  0x27   :  { %s7051_s12 = scalar_lea.vmem %s72_s5, 8192  ;;  %p7056_p4 = scmp.lt.s32.totalorder %s72_s5, %s72_s5 }
  0x28   :  { %p7052_p3 = scmp.ne.s32.totalorder %s72_s5, %s7051_s12  ;;  %p7057_p5 = scmp.lt.s32.totalorder %s7051_s12, %s7051_s12 }
  0x2a   :  { %p7058_p6 = por %p7057_p5, %p7056_p4 }
  0x2c   :  { %p7059_p7 = pnand %p7058_p6, %p7052_p3 }
  0x2e   :  { %7062 = shalt.err (!%p7059_p7)
}
  0x2f   :  { %s9790_s1 = smov 256   ;;  %s9792_s4 = smov 16  }
  0x30   :  { %77 = dma.hbm_to_vmem [thread:$0]  %s9808_s10, 8192, %s72_s5, [#allocation6], %s9790_s1, %s9790_s1, %s9792_s4  }
  0x31   :  { %s9809_s0 = sld [smem:[#allocation69_spill]] }
  0x37   :  { %s7063_s11 = scalar_lea.hbm %s9809_s0, 32 }
  0x38   :  { %p7064_p8 = scmp.ne.s32.totalorder %s9809_s0, %s7063_s11  ;;  %p7067_p9 = scmp.lt.u32.totalorder %s7063_s11, %s9809_s0 }
  0x3a   :  { %p7069_p10 = pnand %p7067_p9, %p7064_p8 }
  0x3c   :  { %7072 = shalt.err (!%p7069_p10)
}
  0x3d   :  { %s7073_s28 = scalar_lea.vmem %s99_s30, 32  ;;  %p7078_p12 = scmp.lt.s32.totalorder %s99_s30, %s99_s30 }
  0x3e   :  { %p7074_p11 = scmp.ne.s32.totalorder %s99_s30, %s7073_s28  ;;  %p7079_p13 = scmp.lt.s32.totalorder %s7073_s28, %s7073_s28 }
  0x40   :  { %p7080_p0 = por %p7079_p13, %p7078_p12 }
  0x42   :  { %p7081_p1 = pnand %p7080_p0, %p7074_p11 }
  0x44   :  { %7084 = shalt.err (!%p7081_p1)
}
  0x45   :  { %101 = dma.hbm_to_vmem [thread:$0]  %s9809_s0, 32, %s99_s30, [#allocation9]  }
  0x46   :  { %s7485_s8 = smov [#allocation11]   ;;  %s7486_s3 = smov [#allocation14]  }
  0x47   :  { %s119_s9 = sshll.u32 %s7485_s8, 4  ;;  %s141_s6 = sshll.u32 %s7486_s3, 4  ;;  %s120_s9 = int_to_ptr.vmem [resolvable:$true] %s119_s9  ;;  %s7678_s6 = int_to_ptr.vmem [resolvable:$true] %s141_s6 }
  0x48   :  { %s9810_s2 = sld [smem:[#allocation71_spill]] }
  0x4e   :  { %s7085_s7 = scalar_lea.hbm %s9810_s2, 8192 }
  0x4f   :  { %p7086_p2 = scmp.ne.s32.totalorder %s9810_s2, %s7085_s7  ;;  %p7089_p3 = scmp.lt.u32.totalorder %s7085_s7, %s9810_s2 }
  0x51   :  { %p7091_p4 = pnand %p7089_p3, %p7086_p2 }
  0x53   :  { %7094 = shalt.err (!%p7091_p4)
}
  0x54   :  { %s7095_s30 = scalar_lea.vmem %s120_s9, 8192  ;;  %p7100_p6 = scmp.lt.s32.totalorder %s120_s9, %s120_s9 }
  0x55   :  { %p7096_p5 = scmp.ne.s32.totalorder %s120_s9, %s7095_s30  ;;  %p7101_p7 = scmp.lt.s32.totalorder %s7095_s30, %s7095_s30 }
  0x57   :  { %p7102_p8 = por %p7101_p7, %p7100_p6 }
  0x59   :  { %p7103_p9 = pnand %p7102_p8, %p7096_p5 }
  0x5b   :  { %7106 = shalt.err (!%p7103_p9)
}
  0x5c   :  { %s9811_s0 = smov 16   ;;  %s9812_s5 = smov 256  }
  0x5d   :  { %125 = dma.hbm_to_vmem [thread:$0]  %s9810_s2, 8192, %s120_s9, [#allocation12], %s9812_s5, %s9812_s5, %s9811_s0  }
  0x5e   :  { %s7107_s1 = scalar_lea.hbm %s9763_s13, 8192 }
  0x5f   :  { %p7108_p10 = scmp.ne.s32.totalorder %s9763_s13, %s7107_s1  ;;  %p7111_p11 = scmp.lt.u32.totalorder %s7107_s1, %s9763_s13 }
  0x61   :  { %p7113_p12 = pnand %p7111_p11, %p7108_p10 }
  0x63   :  { %7116 = shalt.err (!%p7113_p12)
}
  0x64   :  { %s7117_s28 = scalar_lea.vmem %s7678_s6, 8192  ;;  %p7122_p0 = scmp.lt.s32.totalorder %s7678_s6, %s7678_s6 }
  0x65   :  { %p7118_p13 = scmp.ne.s32.totalorder %s7678_s6, %s7117_s28  ;;  %p7123_p1 = scmp.lt.s32.totalorder %s7117_s28, %s7117_s28 }
  0x67   :  { %p7124_p2 = por %p7123_p1, %p7122_p0 }
  0x69   :  { %p7125_p3 = pnand %p7124_p2, %p7118_p13 }
  0x6b   :  { %7128 = shalt.err (!%p7125_p3)
}
  0x6c   :  { %147 = dma.hbm_to_vmem [thread:$0]  %s9763_s13, 8192, %s7678_s6, [#allocation15], %s9812_s5, %s9812_s5, %s9811_s0  }
  0x6d   :  { %s7487_s30 = smov [#allocation17]   ;;  %s7488_s8 = smov [#allocation20]  }
  0x6e   :  { %s163_s10 = sshll.u32 %s7487_s30, 4  ;;  %s185_s3 = sshll.u32 %s7488_s8, 4  ;;  %s164_s10 = int_to_ptr.vmem [resolvable:$true] %s163_s10  ;;  %s7715_s3 = int_to_ptr.vmem [resolvable:$true] %s185_s3 }
  0x6f   :  { %s7129_s4 = scalar_lea.hbm %s9765_s15, 8192 }
  0x70   :  { %p7130_p4 = scmp.ne.s32.totalorder %s9765_s15, %s7129_s4  ;;  %p7133_p5 = scmp.lt.u32.totalorder %s7129_s4, %s9765_s15 }
  0x72   :  { %p7135_p6 = pnand %p7133_p5, %p7130_p4 }
  0x74   :  { %7138 = shalt.err (!%p7135_p6)
}
  0x75   :  { %s7139_s13 = scalar_lea.vmem %s164_s10, 8192  ;;  %p7144_p8 = scmp.lt.s32.totalorder %s164_s10, %s164_s10 }
  0x76   :  { %p7140_p7 = scmp.ne.s32.totalorder %s164_s10, %s7139_s13  ;;  %p7145_p9 = scmp.lt.s32.totalorder %s7139_s13, %s7139_s13 }
  0x78   :  { %p7146_p10 = por %p7145_p9, %p7144_p8 }
  0x7a   :  { %p7147_p11 = pnand %p7146_p10, %p7140_p7 }
  0x7c   :  { %7150 = shalt.err (!%p7147_p11)
}
  0x7d   :  { %169 = dma.hbm_to_vmem [thread:$0]  %s9765_s15, 8192, %s164_s10, [#allocation18], %s9812_s5, %s9812_s5, %s9811_s0  }
  0x7e   :  { %s7151_s8 = scalar_lea.hbm %s9767_s17, 8192 }
  0x7f   :  { %p7152_p12 = scmp.ne.s32.totalorder %s9767_s17, %s7151_s8  ;;  %p7155_p13 = scmp.lt.u32.totalorder %s7151_s8, %s9767_s17 }
  0x81   :  { %p7157_p0 = pnand %p7155_p13, %p7152_p12 }
  0x83   :  { %7160 = shalt.err (!%p7157_p0)
}
  0x84   :  { %s7161_s7 = scalar_lea.vmem %s7715_s3, 8192  ;;  %p7166_p2 = scmp.lt.s32.totalorder %s7715_s3, %s7715_s3 }
  0x85   :  { %p7162_p1 = scmp.ne.s32.totalorder %s7715_s3, %s7161_s7  ;;  %p7167_p3 = scmp.lt.s32.totalorder %s7161_s7, %s7161_s7 }
  0x87   :  { %p7168_p4 = por %p7167_p3, %p7166_p2 }
  0x89   :  { %p7169_p5 = pnand %p7168_p4, %p7162_p1 }
  0x8b   :  { %7172 = shalt.err (!%p7169_p5)
}
  0x8c   :  { %191 = dma.hbm_to_vmem [thread:$0]  %s9767_s17, 8192, %s7715_s3, [#allocation21], %s9812_s5, %s9812_s5, %s9811_s0  }
  0x8d   :  { %s7489_s12 = smov [#allocation23]   ;;  %s7490_s13 = smov [#allocation26]  }
  0x8e   :  { %s207_s28 = sshll.u32 %s7489_s12, 4  ;;  %s231_s6 = sshll.u32 %s7490_s13, 4  ;;  %s208_s28 = int_to_ptr.vmem [resolvable:$true] %s207_s28  ;;  %s7752_s6 = int_to_ptr.vmem [resolvable:$true] %s231_s6 }
  0x8f   :  { %s7173_s30 = scalar_lea.hbm %s9769_s19, 8192 }
  0x90   :  { %p7174_p6 = scmp.ne.s32.totalorder %s9769_s19, %s7173_s30  ;;  %p7177_p7 = scmp.lt.u32.totalorder %s7173_s30, %s9769_s19 }
  0x92   :  { %p7179_p8 = pnand %p7177_p7, %p7174_p6 }
  0x94   :  { %7182 = shalt.err (!%p7179_p8)
}
  0x95   :  { %s7183_s17 = scalar_lea.vmem %s208_s28, 8192  ;;  %p7188_p10 = scmp.lt.s32.totalorder %s208_s28, %s208_s28 }
  0x96   :  { %p7184_p9 = scmp.ne.s32.totalorder %s208_s28, %s7183_s17  ;;  %p7189_p11 = scmp.lt.s32.totalorder %s7183_s17, %s7183_s17 }
  0x98   :  { %p7190_p12 = por %p7189_p11, %p7188_p10 }
  0x9a   :  { %p7191_p13 = pnand %p7190_p12, %p7184_p9 }
  0x9c   :  { %7194 = shalt.err (!%p7191_p13)
}
  0x9d   :  { %213 = dma.hbm_to_vmem [thread:$0]  %s9769_s19, 8192, %s208_s28, [#allocation24], %s9812_s5, %s9812_s5, %s9811_s0  }
  0x9e   :  { %s7195_s10 = scalar_lea.hbm %s9772_s22, 512 }
  0x9f   :  { %p7196_p0 = scmp.ne.s32.totalorder %s9772_s22, %s7195_s10  ;;  %p7199_p1 = scmp.lt.u32.totalorder %s7195_s10, %s9772_s22 }
  0xa1   :  { %p7201_p2 = pnand %p7199_p1, %p7196_p0 }
  0xa3   :  { %7204 = shalt.err (!%p7201_p2)
}
  0xa4   :  { %s7205_s30 = scalar_lea.vmem %s7752_s6, 512  ;;  %p7210_p4 = scmp.lt.s32.totalorder %s7752_s6, %s7752_s6 }
  0xa5   :  { %p7206_p3 = scmp.ne.s32.totalorder %s7752_s6, %s7205_s30  ;;  %p7211_p5 = scmp.lt.s32.totalorder %s7205_s30, %s7205_s30 }
  0xa7   :  { %p7212_p6 = por %p7211_p5, %p7210_p4 }
  0xa9   :  { %p7213_p7 = pnand %p7212_p6, %p7206_p3 }
  0xab   :  { %7216 = shalt.err (!%p7213_p7)
}
  0xac   :  { %s7491_s19 = smov 128   ;;  %s7492_s28 = smov 8  }
  0xad   :  { %237 = dma.hbm_to_vmem [thread:$0]  %s9772_s22, 512, %s7752_s6, [#allocation27], %s7491_s19, %s7491_s19, %s7492_s28  }
  0xae   :  { %s7493_s1 = smov [#allocation2]   ;;  %s7494_s17 = smov [#allocation7]  }
  0xaf   :  { %s53_s4 = sshll.u32 %s7493_s1, 4  ;;  %s85_s3 = sshll.u32 %s7494_s17, 4  ;;  %s54_s4 = int_to_ptr.vmem [resolvable:$true] %s53_s4  ;;  %s7789_s3 = int_to_ptr.vmem [resolvable:$true] %s85_s3 }
  0xb0   :  { %s9813_s15 = sld [smem:[#allocation62_spill]] }
  0xb6   :  { %s7217_s10 = scalar_lea.hbm %s9813_s15, 2048 }
  0xb7   :  { %p7218_p8 = scmp.ne.s32.totalorder %s9813_s15, %s7217_s10  ;;  %p7221_p9 = scmp.lt.u32.totalorder %s7217_s10, %s9813_s15 }
  0xb9   :  { %p7223_p10 = pnand %p7221_p9, %p7218_p8 }
  0xbb   :  { %7226 = shalt.err (!%p7223_p10)
}
  0xbc   :  { %s7227_s22 = scalar_lea.vmem %s54_s4, 2048  ;;  %p7232_p12 = scmp.lt.s32.totalorder %s54_s4, %s54_s4 }
  0xbd   :  { %p7228_p11 = scmp.ne.s32.totalorder %s54_s4, %s7227_s22  ;;  %p7233_p13 = scmp.lt.s32.totalorder %s7227_s22, %s7227_s22 }
  0xbf   :  { %p7234_p0 = por %p7233_p13, %p7232_p12 }
  0xc1   :  { %p7235_p1 = pnand %p7234_p0, %p7228_p11 }
  0xc3   :  { %7238 = shalt.err (!%p7235_p1)
}
  0xc4   :  { %59 = dma.hbm_to_vmem [thread:$0]  %s9813_s15, 2048, %s54_s4, [#allocation3], %s9812_s5, %s9812_s5, %s9811_s0  }
  0xc5   :  { %s9814_s1 = sld [smem:[#allocation68_spill]] }
  0xcb   :  { %s7239_s17 = scalar_lea.hbm %s9814_s1, 8192 }
  0xcc   :  { %p7240_p2 = scmp.ne.s32.totalorder %s9814_s1, %s7239_s17  ;;  %p7243_p3 = scmp.lt.u32.totalorder %s7239_s17, %s9814_s1 }
  0xce   :  { %p7245_p4 = pnand %p7243_p3, %p7240_p2 }
  0xd0   :  { %7248 = shalt.err (!%p7245_p4)
}
  0xd1   :  { %s7249_s13 = scalar_lea.vmem %s7789_s3, 8192  ;;  %p7254_p6 = scmp.lt.s32.totalorder %s7789_s3, %s7789_s3 }
  0xd2   :  { %p7250_p5 = scmp.ne.s32.totalorder %s7789_s3, %s7249_s13  ;;  %p7255_p7 = scmp.lt.s32.totalorder %s7249_s13, %s7249_s13 }
  0xd4   :  { %p7256_p8 = por %p7255_p7, %p7254_p6 }
  0xd6   :  { %p7257_p9 = pnand %p7256_p8, %p7250_p5 }
  0xd8   :  { %7260 = shalt.err (!%p7257_p9)
}
  0xd9   :  { %91 = dma.hbm_to_vmem [thread:$0]  %s9814_s1, 8192, %s7789_s3, [#allocation6], %s9812_s5, %s9812_s5, %s9811_s0  }
  0xda   :  { %s7495_s9 = smov [#allocation10]   ;;  %s7496_s22 = smov [#allocation13]  }
  0xdb   :  { %s107_s2 = sshll.u32 %s7495_s9, 4  ;;  %s132_s6 = sshll.u32 %s7496_s22, 4  ;;  %s108_s2 = int_to_ptr.vmem [resolvable:$true] %s107_s2  ;;  %s133_s6 = int_to_ptr.vmem [resolvable:$true] %s132_s6 }
  0xdc   :  { %s9815_s11 = sld [smem:[#allocation70_spill]] }
  0xe2   :  { %s7261_s17 = scalar_lea.hbm %s9815_s11, 2048 }
  0xe3   :  { %p7262_p10 = scmp.ne.s32.totalorder %s9815_s11, %s7261_s17  ;;  %p7265_p11 = scmp.lt.u32.totalorder %s7261_s17, %s9815_s11 }
  0xe5   :  { %p7267_p12 = pnand %p7265_p11, %p7262_p10 }
  0xe7   :  { %7270 = shalt.err (!%p7267_p12)
}
  0xe8   :  { %s7271_s3 = scalar_lea.vmem %s108_s2, 2048  ;;  %p7276_p0 = scmp.lt.s32.totalorder %s108_s2, %s108_s2 }
  0xe9   :  { %p7272_p13 = scmp.ne.s32.totalorder %s108_s2, %s7271_s3  ;;  %p7277_p1 = scmp.lt.s32.totalorder %s7271_s3, %s7271_s3 }
  0xeb   :  { %p7278_p2 = por %p7277_p1, %p7276_p0 }
  0xed   :  { %p7279_p3 = pnand %p7278_p2, %p7272_p13 }
  0xef   :  { %7282 = shalt.err (!%p7279_p3)
}
  0xf0   :  { %113 = dma.hbm_to_vmem [thread:$0]  %s9815_s11, 2048, %s108_s2, [#allocation9], %s9812_s5, %s9812_s5, %s9811_s0  }
  0xf1   :  { %s9816_s9 = sld [smem:[#allocation72_spill]] }
  0xf7   :  { %s7283_s22 = scalar_lea.hbm %s9816_s9, 32 }
  0xf8   :  { %p7284_p4 = scmp.ne.s32.totalorder %s9816_s9, %s7283_s22  ;;  %p7287_p5 = scmp.lt.u32.totalorder %s7283_s22, %s9816_s9 }
  0xfa   :  { %p7289_p6 = pnand %p7287_p5, %p7284_p4 }
  0xfc   :  { %7292 = shalt.err (!%p7289_p6)
}
  0xfd   :  { %s7293_s7 = scalar_lea.vmem %s133_s6, 32  ;;  %p7298_p8 = scmp.lt.s32.totalorder %s133_s6, %s133_s6 }
  0xfe   :  { %p7294_p7 = scmp.ne.s32.totalorder %s133_s6, %s7293_s7  ;;  %p7299_p9 = scmp.lt.s32.totalorder %s7293_s7, %s7293_s7 }
 0x100   :  { %p7300_p10 = por %p7299_p9, %p7298_p8 }
 0x102   :  { %p7301_p11 = pnand %p7300_p10, %p7294_p7 }
 0x104   :  { %7304 = shalt.err (!%p7301_p11)
}
 0x105   :  { %135 = dma.hbm_to_vmem [thread:$0]  %s9816_s9, 32, %s133_s6, [#allocation12]  }
 0x106   :  { %s7497_s2 = smov [#allocation16]   ;;  %s7498_s10 = smov [#allocation19]  }
 0x107   :  { %s154_s11 = sshll.u32 %s7497_s2, 4  ;;  %s176_s12 = sshll.u32 %s7498_s10, 4  ;;  %s155_s11 = int_to_ptr.vmem [resolvable:$true] %s154_s11  ;;  %s177_s12 = int_to_ptr.vmem [resolvable:$true] %s176_s12 }
 0x108   :  { %s7305_s13 = scalar_lea.hbm %s9764_s14, 32 }
 0x109   :  { %p7306_p12 = scmp.ne.s32.totalorder %s9764_s14, %s7305_s13  ;;  %p7309_p13 = scmp.lt.u32.totalorder %s7305_s13, %s9764_s14 }
 0x10b   :  { %p7311_p0 = pnand %p7309_p13, %p7306_p12 }
 0x10d   :  { %7314 = shalt.err (!%p7311_p0)
}
 0x10e   :  { %s7315_s6 = scalar_lea.vmem %s155_s11, 32  ;;  %p7320_p2 = scmp.lt.s32.totalorder %s155_s11, %s155_s11 }
 0x10f   :  { %p7316_p1 = scmp.ne.s32.totalorder %s155_s11, %s7315_s6  ;;  %p7321_p3 = scmp.lt.s32.totalorder %s7315_s6, %s7315_s6 }
 0x111   :  { %p7322_p4 = por %p7321_p3, %p7320_p2 }
 0x113   :  { %p7323_p5 = pnand %p7322_p4, %p7316_p1 }
 0x115   :  { %7326 = shalt.err (!%p7323_p5)
}
 0x116   :  { %157 = dma.hbm_to_vmem [thread:$0]  %s9764_s14, 32, %s155_s11, [#allocation15]  }
 0x117   :  { %s7327_s7 = scalar_lea.hbm %s9766_s16, 32 }
 0x118   :  { %p7328_p6 = scmp.ne.s32.totalorder %s9766_s16, %s7327_s7  ;;  %p7331_p7 = scmp.lt.u32.totalorder %s7327_s7, %s9766_s16 }
 0x11a   :  { %p7333_p8 = pnand %p7331_p7, %p7328_p6 }
 0x11c   :  { %7336 = shalt.err (!%p7333_p8)
}
 0x11d   :  { %s7337_s3 = scalar_lea.vmem %s177_s12, 32  ;;  %p7342_p10 = scmp.lt.s32.totalorder %s177_s12, %s177_s12 }
 0x11e   :  { %p7338_p9 = scmp.ne.s32.totalorder %s177_s12, %s7337_s3  ;;  %p7343_p11 = scmp.lt.s32.totalorder %s7337_s3, %s7337_s3 }
 0x120   :  { %p7344_p12 = por %p7343_p11, %p7342_p10 }
 0x122   :  { %p7345_p13 = pnand %p7344_p12, %p7338_p9 }
 0x124   :  { %7348 = shalt.err (!%p7345_p13)
}
 0x125   :  { %179 = dma.hbm_to_vmem [thread:$0]  %s9766_s16, 32, %s177_s12, [#allocation18]  }
 0x126   :  { %s7499_s1 = smov [#allocation22]   ;;  %s7500_s4 = smov [#allocation25]  }
 0x127   :  { %s198_s13 = sshll.u32 %s7499_s1, 4  ;;  %s220_s15 = sshll.u32 %s7500_s4, 4  ;;  %s199_s13 = int_to_ptr.vmem [resolvable:$true] %s198_s13  ;;  %s221_s15 = int_to_ptr.vmem [resolvable:$true] %s220_s15 }
 0x128   :  { %s7349_s6 = scalar_lea.hbm %s9768_s18, 32 }
 0x129   :  { %p7350_p0 = scmp.ne.s32.totalorder %s9768_s18, %s7349_s6  ;;  %p7353_p1 = scmp.lt.u32.totalorder %s7349_s6, %s9768_s18 }
 0x12b   :  { %p7355_p2 = pnand %p7353_p1, %p7350_p0 }
 0x12d   :  { %7358 = shalt.err (!%p7355_p2)
}
 0x12e   :  { %s7359_s16 = scalar_lea.vmem %s199_s13, 32  ;;  %p7364_p4 = scmp.lt.s32.totalorder %s199_s13, %s199_s13 }
 0x12f   :  { %p7360_p3 = scmp.ne.s32.totalorder %s199_s13, %s7359_s16  ;;  %p7365_p5 = scmp.lt.s32.totalorder %s7359_s16, %s7359_s16 }
 0x131   :  { %p7366_p6 = por %p7365_p5, %p7364_p4 }
 0x133   :  { %p7367_p7 = pnand %p7366_p6, %p7360_p3 }
 0x135   :  { %7370 = shalt.err (!%p7367_p7)
}
 0x136   :  { %201 = dma.hbm_to_vmem [thread:$0]  %s9768_s18, 32, %s199_s13, [#allocation21]  }
 0x137   :  { %s7371_s2 = scalar_lea.hbm %s9770_s20, 32 }
 0x138   :  { %p7372_p8 = scmp.ne.s32.totalorder %s9770_s20, %s7371_s2  ;;  %p7375_p9 = scmp.lt.u32.totalorder %s7371_s2, %s9770_s20 }
 0x13a   :  { %p7377_p10 = pnand %p7375_p9, %p7372_p8 }
 0x13c   :  { %7380 = shalt.err (!%p7377_p10)
}
 0x13d   :  { %s7381_s1 = scalar_lea.vmem %s221_s15, 32  ;;  %p7386_p12 = scmp.lt.s32.totalorder %s221_s15, %s221_s15 }
 0x13e   :  { %p7382_p11 = scmp.ne.s32.totalorder %s221_s15, %s7381_s1  ;;  %p7387_p13 = scmp.lt.s32.totalorder %s7381_s1, %s7381_s1 }
 0x140   :  { %p7388_p0 = por %p7387_p13, %p7386_p12 }
 0x142   :  { %p7389_p1 = pnand %p7388_p0, %p7382_p11 }
 0x144   :  { %7392 = shalt.err (!%p7389_p1)
}
 0x145   :  { %223 = dma.hbm_to_vmem [thread:$0]  %s9770_s20, 32, %s221_s15, [#allocation24]  }
 0x146   :  { %s7501_s4 = smov [#allocation28]   ;;  %s7502_s30 = smov [#allocation29]  }
 0x147   :  { %s245_s22 = sshll.u32 %s7501_s4, 4  ;;  %s259_s6 = sshll.u32 %s7502_s30, 4  ;;  %s246_s22 = int_to_ptr.vmem [resolvable:$true] %s245_s22  ;;  %s7901_s6 = int_to_ptr.vmem [resolvable:$true] %s259_s6 }
 0x148   :  { %s7393_s17 = scalar_lea.hbm %s9774_s24, 4096 }
 0x149   :  { %p7394_p2 = scmp.ne.s32.totalorder %s9774_s24, %s7393_s17  ;;  %p7397_p3 = scmp.lt.u32.totalorder %s7393_s17, %s9774_s24 }
 0x14b   :  { %p7399_p4 = pnand %p7397_p3, %p7394_p2 }
 0x14d   :  { %7402 = shalt.err (!%p7399_p4)
}
 0x14e   :  { %s7403_s20 = scalar_lea.vmem %s246_s22, 4096  ;;  %p7408_p6 = scmp.lt.s32.totalorder %s246_s22, %s246_s22 }
 0x14f   :  { %p7404_p5 = scmp.ne.s32.totalorder %s246_s22, %s7403_s20  ;;  %p7409_p7 = scmp.lt.s32.totalorder %s7403_s20, %s7403_s20 }
 0x151   :  { %p7410_p8 = por %p7409_p7, %p7408_p6 }
 0x153   :  { %p7411_p9 = pnand %p7410_p8, %p7404_p5 }
 0x155   :  { %7414 = shalt.err (!%p7411_p9)
}
 0x156   :  { %251 = dma.hbm_to_vmem [thread:$0]  %s9774_s24, 4096, %s246_s22, [#allocation27], %s7491_s19, %s7491_s19, %s7492_s28  }
 0x157   :  { %s7415_s10 = scalar_lea.hbm %s9776_s26, 2048 }
 0x158   :  { %p7416_p10 = scmp.ne.s32.totalorder %s9776_s26, %s7415_s10  ;;  %p7419_p11 = scmp.lt.u32.totalorder %s7415_s10, %s9776_s26 }
 0x15a   :  { %p7421_p12 = pnand %p7419_p11, %p7416_p10 }
 0x15c   :  { %7424 = shalt.err (!%p7421_p12)
}
 0x15d   :  { %s7425_s18 = scalar_lea.vmem %s7901_s6, 2048  ;;  %p7430_p0 = scmp.lt.s32.totalorder %s7901_s6, %s7901_s6 }
 0x15e   :  { %p7426_p13 = scmp.ne.s32.totalorder %s7901_s6, %s7425_s18  ;;  %p7431_p1 = scmp.lt.s32.totalorder %s7425_s18, %s7425_s18 }
 0x160   :  { %p7432_p2 = por %p7431_p1, %p7430_p0 }
 0x162   :  { %p7433_p3 = pnand %p7432_p2, %p7426_p13 }
 0x164   :  { %7436 = shalt.err (!%p7433_p3)
}
 0x165   :  { %265 = dma.hbm_to_vmem [thread:$0]  %s9776_s26, 2048, %s7901_s6, [#allocation30], %s7491_s19, %s7491_s19, %s7492_s28  }
 0x166   :  { %7459 = dma.done.wait [#allocation3], 2048  }
 0x167   :  { %7460 = vsyncadd [#allocation3], 4294965248 }
 0x168   :  { %7461 = dma.done.wait [#allocation6], 16384  }
 0x169   :  { %7462 = vsyncadd [#allocation6], 4294950912 }
 0x16a   :  { %7463 = dma.done.wait [#allocation9], 2080  }
 0x16b   :  { %7464 = vsyncadd [#allocation9], 4294965216 }
 0x16c   :  { %7465 = dma.done.wait [#allocation12], 8224  }
 0x16d   :  { %7466 = vsyncadd [#allocation12], 4294959072 }
 0x16e   :  { %7467 = dma.done.wait [#allocation15], 8224  }
 0x16f   :  { %7468 = vsyncadd [#allocation15], 4294959072 }
 0x170   :  { %7469 = dma.done.wait [#allocation18], 8224  }
 0x171   :  { %7470 = vsyncadd [#allocation18], 4294959072 }
 0x172   :  { %7471 = dma.done.wait [#allocation21], 8224  }
 0x173   :  { %7472 = vsyncadd [#allocation21], 4294959072 }
 0x174   :  { %7473 = dma.done.wait [#allocation24], 8224  }
 0x175   :  { %7474 = vsyncadd [#allocation24], 4294959072 }
 0x176   :  { %7475 = dma.done.wait [#allocation27], 4608  }
 0x177   :  { %7476 = vsyncadd [#allocation27], 4294962688 }
 0x178   :  { %7477 = dma.done.wait [#allocation30], 2048  }
 0x179   :  { %7478 = vsyncadd [#allocation30], 4294965248  ;;  %v7503_v0 = vmov 0.0   ;;  %v387_v1 = vld [vmem:[#allocation2 + $0x8] sm:$0xff]  ;;  %v389_v2 = vld [vmem:[#allocation2 + $0x18] sm:$0xff]  ;;  %s9817_s22 = sld [smem:[#allocation60_spill]] }
 0x17a   :  { %575 = vmatprep.mubr.f32.mxu0 %v7503_v0  ;;  %v386_v3 = vld [vmem:[#allocation2] sm:$0xff]  ;;  %v6112_v4 = vpack.c.bf16 %v389_v2, %v387_v1  ;;  %v388_v5 = vld [vmem:[#allocation2 + $0x10] sm:$0xff]  ;;  %v391_v6 = vld [vmem:[#allocation2 + $0x28] sm:$0xff]  ;;  %vm414_vm0 = vcmask 523264   ;;  %s9818_s9 = sld [smem:[#allocation64_spill]]  ;;  %s9819_s7 = sld [smem:[#allocation63_spill]] }
 0x17b   :  { %v393_v7 = vld [vmem:[#allocation2 + $0x38] sm:$0xff]  ;;  %v6114_v8 = vpack.c.bf16 %v388_v5, %v386_v3  ;;  %v390_v10 = vld [vmem:[#allocation2 + $0x20] sm:$0xff]  ;;  %v392_v11 = vld [vmem:[#allocation2 + $0x30] sm:$0xff]  ;;  %s9820_s0 = sld [smem:[#allocation65_spill]]  ;;  %vm4599_vm1 = vcmask 261120  }
 0x17c   :  { %v6116_v9 = vpack.c.bf16 %v393_v7, %v391_v6  ;;  %v395_v12 = vld [vmem:[#allocation2 + $0x48] sm:$0xff]  ;;  %6113 = vmatprep.subr.bf16.mxu0 %v6112_v4  ;;  %v397_v13 = vld [vmem:[#allocation2 + $0x58] sm:$0xff]  ;;  %v6118_v14 = vpack.c.bf16 %v392_v11, %v390_v10  ;;  %v394_v16 = vld [vmem:[#allocation2 + $0x40] sm:$0xff] }
 0x17d   :  { %6115 = vmatpush1.bf16.msra.mxu0 %v6114_v8  ;;  %v6120_v15 = vpack.c.bf16 %v397_v13, %v395_v12  ;;  %v396_v17 = vld [vmem:[#allocation2 + $0x50] sm:$0xff]  ;;  %v399_v18 = vld [vmem:[#allocation2 + $0x68] sm:$0xff]  ;;  %v401_v19 = vld [vmem:[#allocation2 + $0x78] sm:$0xff] }
 0x17e   :  { %6117 = vmatprep.subr.bf16.mxu0 %v6116_v9  ;;  %v6122_v20 = vpack.c.bf16 %v396_v17, %v394_v16  ;;  %v6124_v21 = vpack.c.bf16 %v401_v19, %v399_v18  ;;  %v398_v22 = vld [vmem:[#allocation2 + $0x60] sm:$0xff]  ;;  %v400_v23 = vld [vmem:[#allocation2 + $0x70] sm:$0xff] }
 0x17f   :  { %v6126_v24 = vpack.c.bf16 %v400_v23, %v398_v22  ;;  %v322_v25 = vld [vmem:[%s9817_s22] sm:$0xff]  ;;  %v323_v39 = vld [vmem:[%s9817_s22 + $0x8] sm:$0xff]  ;;  %v324_v46 = vld [vmem:[%s9817_s22 + $0x10] sm:$0xff] }
 0x180   :  { %v833_v26 = vld [vmem:[%s9818_s9 + $0x8] sm:$0xff]  ;;  %v835_v27 = vld [vmem:[%s9818_s9 + $0x18] sm:$0xff]  ;;  %v832_v28 = vld [vmem:[%s9818_s9] sm:$0xff] }
 0x181   :  { %6119 = vmatpush1.bf16.msra.mxu0 %v6118_v14  ;;  %v6128_v29 = vpack.c.bf16 %v835_v27, %v833_v26  ;;  %v834_v30 = vld [vmem:[%s9818_s9 + $0x10] sm:$0xff]  ;;  %v837_v31 = vld [vmem:[%s9818_s9 + $0x28] sm:$0xff]  ;;  %v839_v32 = vld [vmem:[%s9818_s9 + $0x38] sm:$0xff] }
 0x182   :  { %6121 = vmatprep.subr.bf16.mxu0 %v6120_v15  ;;  %v6130_v33 = vpack.c.bf16 %v834_v30, %v832_v28  ;;  %v6132_v34 = vpack.c.bf16 %v839_v32, %v837_v31  ;;  %v836_v35 = vld [vmem:[%s9818_s9 + $0x20] sm:$0xff]  ;;  %v838_v36 = vld [vmem:[%s9818_s9 + $0x30] sm:$0xff]  ;;  %v841_v37 = vld [vmem:[%s9818_s9 + $0x48] sm:$0xff] }
 0x183   :  { %6129 = vmatprep.subr.bf16.mxu1 %v6128_v29  ;;  %v843_v38 = vld [vmem:[%s9818_s9 + $0x58] sm:$0xff]  ;;  %v6134_v40 = vpack.c.bf16 %v838_v36, %v836_v35  ;;  %v840_v42 = vld [vmem:[%s9818_s9 + $0x40] sm:$0xff]  ;;  %v842_v43 = vld [vmem:[%s9818_s9 + $0x50] sm:$0xff] }
 0x184   :  { %6131 = vmatpush1.bf16.msra.mxu1 %v6130_v33  ;;  %v6136_v41 = vpack.c.bf16 %v843_v38, %v841_v37  ;;  %v845_v44 = vld [vmem:[%s9818_s9 + $0x68] sm:$0xff]  ;;  %v847_v45 = vld [vmem:[%s9818_s9 + $0x78] sm:$0xff]  ;;  %v6138_v47 = vpack.c.bf16 %v842_v43, %v840_v42  ;;  %v844_v49 = vld [vmem:[%s9818_s9 + $0x60] sm:$0xff] }
 0x185   :  { %6123 = vmatpush1.bf16.msra.mxu0 %v6122_v20  ;;  %6133 = vmatprep.subr.bf16.mxu1 %v6132_v34  ;;  %v6140_v48 = vpack.c.bf16 %v847_v45, %v845_v44  ;;  %v846_v50 = vld [vmem:[%s9818_s9 + $0x70] sm:$0xff]  ;;  %v849_v51 = vld [vmem:[%s9818_s9 + $0x88] sm:$0xff]  ;;  %v851_v52 = vld [vmem:[%s9818_s9 + $0x98] sm:$0xff] }
 0x186   :  { %6125 = vmatprep.subr.bf16.mxu0 %v6124_v21  ;;  %v325_v53 = vld [vmem:[%s9817_s22 + $0x18] sm:$0xff]  ;;  %v6142_v54 = vpack.c.bf16 %v846_v50, %v844_v49  ;;  %v6144_v55 = vpack.c.bf16 %v851_v52, %v849_v51  ;;  %v848_v56 = vld [vmem:[%s9818_s9 + $0x80] sm:$0xff]  ;;  %v850_v57 = vld [vmem:[%s9818_s9 + $0x90] sm:$0xff] }
 0x187   :  { %v853_v58 = vld [vmem:[%s9818_s9 + $0xa8] sm:$0xff]  ;;  %v855_v59 = vld [vmem:[%s9818_s9 + $0xb8] sm:$0xff]  ;;  %v326_v60 = vld [vmem:[%s9817_s22 + $0x20] sm:$0xff]  ;;  %v6146_v61 = vpack.c.bf16 %v850_v57, %v848_v56 }
 0x188   :  { %6135 = vmatpush1.bf16.msra.mxu1 %v6134_v40  ;;  %v6148_v62 = vpack.c.bf16 %v855_v59, %v853_v58  ;;  %v852_v63 = vld [vmem:[%s9818_s9 + $0xa0] sm:$0xff]  ;;  %v854_v1 = vld [vmem:[%s9818_s9 + $0xb0] sm:$0xff]  ;;  %v857_v2 = vld [vmem:[%s9818_s9 + $0xc8] sm:$0xff] }
 0x189   :  { %6127 = vmatpush1.bf16.msra.mxu0 %v6126_v24  ;;  %6137 = vmatprep.subr.bf16.mxu1 %v6136_v41  ;;  %v859_v3 = vld [vmem:[%s9818_s9 + $0xd8] sm:$0xff]  ;;  %v327_v4 = vld [vmem:[%s9817_s22 + $0x28] sm:$0xff]  ;;  %v6150_v5 = vpack.c.bf16 %v854_v1, %v852_v63  ;;  %v856_v7 = vld [vmem:[%s9818_s9 + $0xc0] sm:$0xff] }
 0x18a   :  { %v6152_v6 = vpack.c.bf16 %v859_v3, %v857_v2  ;;  %v858_v8 = vld [vmem:[%s9818_s9 + $0xd0] sm:$0xff]  ;;  %v861_v9 = vld [vmem:[%s9818_s9 + $0xe8] sm:$0xff]  ;;  %v863_v10 = vld [vmem:[%s9818_s9 + $0xf8] sm:$0xff] }
 0x18b   :  { %v328_v11 = vld [vmem:[%s9817_s22 + $0x30] sm:$0xff]  ;;  %v6154_v12 = vpack.c.bf16 %v858_v8, %v856_v7  ;;  %v6156_v13 = vpack.c.bf16 %v863_v10, %v861_v9  ;;  %v860_v14 = vld [vmem:[%s9818_s9 + $0xe0] sm:$0xff]  ;;  %v865_v16 = vld [vmem:[%s9818_s9 + $0x108] sm:$0xff] }
 0x18c   :  { %5761 = vmatmul.mubr.msk.f32.vlgmr.msra.gmra.mrb[0].mxu0 %vm414_vm0, %v322_v25  ;;  %6139 = vmatpush1.bf16.msra.mxu1 %v6138_v47  ;;  %v862_v15 = vld [vmem:[%s9818_s9 + $0xf0] sm:$0xff]  ;;  %v867_v17 = vld [vmem:[%s9818_s9 + $0x118] sm:$0xff]  ;;  %v864_v21 = vld [vmem:[%s9818_s9 + $0x100] sm:$0xff] }
 0x18d   :  { %581 = vmatprep.mubr.f32.mxu0 %v7503_v0  ;;  %6141 = vmatprep.subr.bf16.mxu1 %v6140_v48  ;;  %v329_v18 = vld [vmem:[%s9817_s22 + $0x38] sm:$0xff]  ;;  %v6158_v19 = vpack.c.bf16 %v862_v15, %v860_v14  ;;  %v6160_v20 = vpack.c.bf16 %v867_v17, %v865_v16  ;;  %v866_v22 = vld [vmem:[%s9818_s9 + $0x110] sm:$0xff]  ;;  %v869_v23 = vld [vmem:[%s9818_s9 + $0x128] sm:$0xff] }
 0x18e   :  { %v871_v24 = vld [vmem:[%s9818_s9 + $0x138] sm:$0xff]  ;;  %v330_v25 = vld [vmem:[%s9817_s22 + $0x40] sm:$0xff]  ;;  %v6162_v26 = vpack.c.bf16 %v866_v22, %v864_v21  ;;  %v870_v29 = vld [vmem:[%s9818_s9 + $0x130] sm:$0xff] }
 0x18f   :  { %v6164_v27 = vpack.c.bf16 %v871_v24, %v869_v23  ;;  %v868_v28 = vld [vmem:[%s9818_s9 + $0x120] sm:$0xff]  ;;  %v873_v30 = vld [vmem:[%s9818_s9 + $0x148] sm:$0xff]  ;;  %v875_v31 = vld [vmem:[%s9818_s9 + $0x158] sm:$0xff] }
 0x190   :  { %5762 = vmatmul.mubr.msk.f32.gmra.mrb[2].mxu0 %vm414_vm0, %v323_v39  ;;  %6143 = vmatpush1.bf16.msra.mxu1 %v6142_v54  ;;  %v331_v32 = vld [vmem:[%s9817_s22 + $0x48] sm:$0xff]  ;;  %v6166_v33 = vpack.c.bf16 %v870_v29, %v868_v28  ;;  %v6168_v34 = vpack.c.bf16 %v875_v31, %v873_v30  ;;  %v872_v35 = vld [vmem:[%s9818_s9 + $0x140] sm:$0xff]  ;;  %v874_v36 = vld [vmem:[%s9818_s9 + $0x150] sm:$0xff] }
 0x191   :  { %587 = vmatprep.mubr.f32.mxu0 %v7503_v0  ;;  %6145 = vmatprep.subr.bf16.mxu1 %v6144_v55  ;;  %v877_v37 = vld [vmem:[%s9818_s9 + $0x168] sm:$0xff]  ;;  %v879_v38 = vld [vmem:[%s9818_s9 + $0x178] sm:$0xff]  ;;  %v332_v39 = vld [vmem:[%s9817_s22 + $0x50] sm:$0xff]  ;;  %v6170_v40 = vpack.c.bf16 %v874_v36, %v872_v35 }
 0x192   :  { %v6172_v41 = vpack.c.bf16 %v879_v38, %v877_v37  ;;  %v876_v42 = vld [vmem:[%s9818_s9 + $0x160] sm:$0xff]  ;;  %v878_v43 = vld [vmem:[%s9818_s9 + $0x170] sm:$0xff]  ;;  %v881_v44 = vld [vmem:[%s9818_s9 + $0x188] sm:$0xff] }
 0x193   :  { %v883_v45 = vld [vmem:[%s9818_s9 + $0x198] sm:$0xff]  ;;  %v6174_v47 = vpack.c.bf16 %v878_v43, %v876_v42  ;;  %v880_v49 = vld [vmem:[%s9818_s9 + $0x180] sm:$0xff]  ;;  %v882_v50 = vld [vmem:[%s9818_s9 + $0x190] sm:$0xff] }
 0x194   :  { %5763 = vmatmul.mubr.msk.f32.gmra.mrb[4].mxu0 %vm414_vm0, %v324_v46  ;;  %6147 = vmatpush1.bf16.msra.mxu1 %v6146_v61  ;;  %v333_v46 = vld [vmem:[%s9817_s22 + $0x58] sm:$0xff]  ;;  %v6176_v48 = vpack.c.bf16 %v883_v45, %v881_v44  ;;  %v885_v51 = vld [vmem:[%s9818_s9 + $0x1a8] sm:$0xff]  ;;  %v6178_v54 = vpack.c.bf16 %v882_v50, %v880_v49  ;;  %v884_v56 = vld [vmem:[%s9818_s9 + $0x1a0] sm:$0xff] }
 0x195   :  { %593 = vmatprep.mubr.f32.mxu0 %v7503_v0  ;;  %6149 = vmatprep.subr.bf16.mxu1 %v6148_v62  ;;  %v887_v52 = vld [vmem:[%s9818_s9 + $0x1b8] sm:$0xff]  ;;  %v886_v57 = vld [vmem:[%s9818_s9 + $0x1b0] sm:$0xff]  ;;  %v889_v58 = vld [vmem:[%s9818_s9 + $0x1c8] sm:$0xff] }
 0x196   :  { %v6180_v55 = vpack.c.bf16 %v887_v52, %v885_v51  ;;  %v891_v59 = vld [vmem:[%s9818_s9 + $0x1d8] sm:$0xff]  ;;  %v6182_v61 = vpack.c.bf16 %v886_v57, %v884_v56  ;;  %v336_v63 = vld [vmem:[%s9817_s22 + $0x70] sm:$0xff]  ;;  %v338_v2 = vld [vmem:[%s9817_s22 + $0x80] sm:$0xff] }
 0x197   :  { %v6184_v62 = vpack.c.bf16 %v891_v59, %v889_v58  ;;  %v337_v1 = vld [vmem:[%s9817_s22 + $0x78] sm:$0xff]  ;;  %v339_v3 = vld [vmem:[%s9817_s22 + $0x88] sm:$0xff]  ;;  %v888_v7 = vld [vmem:[%s9818_s9 + $0x1c0] sm:$0xff] }
 0x198   :  { %5764 = vmatmul.mubr.msk.f32.gmra.mrb[6].mxu0 %vm414_vm0, %v325_v53  ;;  %6151 = vmatpush1.bf16.msra.mxu1 %v6150_v5  ;;  %v334_v53 = vld [vmem:[%s9817_s22 + $0x60] sm:$0xff]  ;;  %v341_v5 = vld [vmem:[%s9817_s22 + $0x98] sm:$0xff]  ;;  %v890_v8 = vld [vmem:[%s9818_s9 + $0x1d0] sm:$0xff] }
 0x199   :  { %599 = vmatprep.mubr.f32.mxu0 %v7503_v0  ;;  %6153 = vmatprep.subr.bf16.mxu1 %v6152_v6  ;;  %v342_v6 = vld [vmem:[%s9817_s22 + $0xa0] sm:$0xff]  ;;  %v343_v9 = vld [vmem:[%s9817_s22 + $0xa8] sm:$0xff]  ;;  %v6186_v10 = vpack.c.bf16 %v890_v8, %v888_v7  ;;  %v894_v15 = vld [vmem:[%s9818_s9 + $0x1f0] sm:$0xff] }
 0x19a   :  { %v892_v14 = vld [vmem:[%s9818_s9 + $0x1e0] sm:$0xff]  ;;  %v344_v16 = vld [vmem:[%s9817_s22 + $0xb0] sm:$0xff]  ;;  %v349_v22 = vld [vmem:[%s9817_s22 + $0xd8] sm:$0xff] }
 0x19b   :  { %v6190_v17 = vpack.c.bf16 %v894_v15, %v892_v14  ;;  %v348_v21 = vld [vmem:[%s9817_s22 + $0xd0] sm:$0xff]  ;;  %v350_v23 = vld [vmem:[%s9817_s22 + $0xe0] sm:$0xff]  ;;  %v351_v24 = vld [vmem:[%s9817_s22 + $0xe8] sm:$0xff] }
 0x19c   :  { %5765 = vmatmul.mubr.msk.f32.gmra.mrb[8].mxu0 %vm414_vm0, %v326_v60  ;;  %6155 = vmatpush1.bf16.msra.mxu1 %v6154_v12  ;;  %v335_v60 = vld [vmem:[%s9817_s22 + $0x68] sm:$0xff]  ;;  %v895_v12 = vld [vmem:[%s9818_s9 + $0x1f8] sm:$0xff]  ;;  %v1229_v30 = vld [vmem:[#allocation5] sm:$0xff] }
 0x19d   :  { %605 = vmatprep.mubr.f32.mxu0 %v7503_v0  ;;  %6157 = vmatprep.subr.bf16.mxu1 %v6156_v13  ;;  %v1232_v28 = vld [vmem:[#allocation5 + $0x18] sm:$0xff]  ;;  %v1231_v31 = vld [vmem:[#allocation5 + $0x10] sm:$0xff]  ;;  %v1233_v36 = vld [vmem:[#allocation5 + $0x20] sm:$0xff] }
 0x19e   :  { %v1235_v37 = vld [vmem:[#allocation5 + $0x30] sm:$0xff]  ;;  %v1237_v43 = vld [vmem:[#allocation5 + $0x40] sm:$0xff]  ;;  %v1244_v49 = vld [vmem:[#allocation5 + $0x78] sm:$0xff] }
 0x19f   :  { %v6198_v38 = vpack.c.bf16 %v1235_v37, %v1233_v36  ;;  %v1239_v44 = vld [vmem:[#allocation5 + $0x50] sm:$0xff]  ;;  %v402_v50 = vld [vmem:[%s9819_s7] sm:$0x3]  ;;  %v1246_v58 = vld [vmem:[#allocation5 + $0x88] sm:$0xff]  ;;  %s9822_s7 = sld [smem:[#allocation61_spill]] }
 0x1a0   :  { %5766 = vmatmul.mubr.msk.f32.gmra.mrb[10].mxu0 %vm414_vm0, %v327_v4  ;;  %6159 = vmatpush1.bf16.msra.mxu1 %v6158_v19  ;;  %v340_v4 = vld [vmem:[%s9817_s22 + $0x90] sm:$0xff]  ;;  %v346_v19 = vld [vmem:[%s9817_s22 + $0xc0] sm:$0xff]  ;;  %v6202_v45 = vpack.c.bf16 %v1239_v44, %v1237_v43  ;;  %v1248_v59 = vld [vmem:[#allocation5 + $0x98] sm:$0xff] }
 0x1a1   :  { %611 = vmatprep.mubr.f32.mxu0 %v7503_v0  ;;  %6161 = vmatprep.subr.bf16.mxu1 %v6160_v20  ;;  %v347_v20 = vld [vmem:[%s9817_s22 + $0xc8] sm:$0xff]  ;;  %v1249_v7 = vld [vmem:[#allocation5 + $0xa0] sm:$0xff] }
 0x1a4   :  { %5767 = vmatmul.mubr.msk.f32.gmra.mrb[12].mxu0 %vm414_vm0, %v328_v11  ;;  %6163 = vmatpush1.bf16.msra.mxu1 %v6162_v26  ;;  %v893_v11 = vld [vmem:[%s9818_s9 + $0x1e8] sm:$0xff]  ;;  %v353_v26 = vld [vmem:[%s9817_s22 + $0xf8] sm:$0xff]  ;;  %s9821_s9 = sld [smem:[#allocation67_spill]] }
 0x1a5   :  { %617 = vmatprep.mubr.f32.mxu0 %v7503_v0  ;;  %6165 = vmatprep.subr.bf16.mxu1 %v6164_v27  ;;  %v6188_v13 = vpack.c.bf16 %v895_v12, %v893_v11  ;;  %v1230_v27 = vld [vmem:[#allocation5 + $0x8] sm:$0xff]  ;;  %v1251_v11 = vld [vmem:[#allocation5 + $0xb0] sm:$0xff] }
 0x1a6   :  { %v6192_v29 = vpack.c.bf16 %v1232_v28, %v1230_v27  ;;  %v1254_v12 = vld [vmem:[#allocation5 + $0xc8] sm:$0xff]  ;;  %v1257_v28 = vld [vmem:[#allocation5 + $0xe0] sm:$0xff] }
 0x1a8   :  { %5768 = vmatmul.mubr.msk.f32.gmra.mrb[14].mxu0 %vm414_vm0, %v329_v18  ;;  %6167 = vmatpush1.bf16.msra.mxu1 %v6166_v33  ;;  %v345_v18 = vld [vmem:[%s9817_s22 + $0xb8] sm:$0xff]  ;;  %v1234_v33 = vld [vmem:[#allocation5 + $0x28] sm:$0xff] }
 0x1a9   :  { %623 = vmatprep.mubr.f32.mxu0 %v7503_v0  ;;  %6169 = vmatprep.subr.bf16.mxu1 %v6168_v34  ;;  %v1236_v34 = vld [vmem:[#allocation5 + $0x38] sm:$0xff] }
 0x1aa   :  { %6193 = vmatprep.subr.bf16.mxu0 %v6192_v29  ;;  %v6196_v35 = vpack.c.bf16 %v1236_v34, %v1234_v33  ;;  %v1259_v29 = vld [vmem:[#allocation5 + $0xf0] sm:$0xff]  ;;  %v1262_v33 = vld [vmem:[#allocation5 + $0x108] sm:$0xff]  ;;  %v1264_v34 = vld [vmem:[#allocation5 + $0x118] sm:$0xff] }
 0x1ab   :  { %v6222_v36 = vpack.c.bf16 %v1259_v29, %v1257_v28  ;;  %v1277_v29 = vld [vmem:[#allocation5 + $0x180] sm:$0xff] }
 0x1ac   :  { %5769 = vmatmul.mubr.msk.f32.gmra.mrb[16].mxu0 %vm414_vm0, %v330_v25  ;;  %6171 = vmatpush1.bf16.msra.mxu1 %v6170_v40  ;;  %v352_v25 = vld [vmem:[%s9817_s22 + $0xf0] sm:$0xff]  ;;  %v1238_v40 = vld [vmem:[#allocation5 + $0x48] sm:$0xff] }
 0x1ad   :  { %629 = vmatprep.mubr.f32.mxu0 %v7503_v0  ;;  %6173 = vmatprep.subr.bf16.mxu1 %v6172_v41  ;;  %v1240_v41 = vld [vmem:[#allocation5 + $0x58] sm:$0xff] }
 0x1ae   :  { %v6200_v42 = vpack.c.bf16 %v1240_v41, %v1238_v40  ;;  %v1261_v40 = vld [vmem:[#allocation5 + $0x100] sm:$0xff]  ;;  %v1263_v41 = vld [vmem:[#allocation5 + $0x110] sm:$0xff] }
 0x1b0   :  { %5770 = vmatmul.mubr.msk.f32.gmra.mrb[18].mxu0 %vm414_vm0, %v331_v32  ;;  %6175 = vmatpush1.bf16.msra.mxu1 %v6174_v47  ;;  %v6194_v32 = vpack.c.bf16 %v1231_v31, %v1229_v30 }
 0x1b1   :  { %635 = vmatprep.mubr.f32.mxu0 %v7503_v0  ;;  %6177 = vmatprep.subr.bf16.mxu1 %v6176_v48  ;;  %v1242_v48 = vld [vmem:[#allocation5 + $0x68] sm:$0xff] }
 0x1b2   :  { %6195 = vmatpush1.bf16.msra.mxu0 %v6194_v32  ;;  %v6204_v52 = vpack.c.bf16 %v1244_v49, %v1242_v48  ;;  %v6226_v49 = vpack.c.bf16 %v1263_v41, %v1261_v40  ;;  %v1281_v41 = vld [vmem:[#allocation5 + $0x1a0] sm:$0xff] }
 0x1b3   :  { %6197 = vmatprep.subr.bf16.mxu0 %v6196_v35 }
 0x1b4   :  { %5771 = vmatmul.mubr.msk.f32.gmra.mrb[20].mxu0 %vm414_vm0, %v332_v39  ;;  %6179 = vmatpush1.bf16.msra.mxu1 %v6178_v54  ;;  %v404_v39 = vlaneseq  ;;  %v1243_v54 = vld [vmem:[#allocation5 + $0x70] sm:$0xff] }
 0x1b5   :  { %641 = vmatprep.mubr.f32.mxu0 %v7503_v0  ;;  %6181 = vmatprep.subr.bf16.mxu1 %v6180_v55 }
 0x1b6   :  { %6199 = vmatpush1.bf16.msra.mxu0 %v6198_v38 }
 0x1b7   :  { %6201 = vmatprep.subr.bf16.mxu0 %v6200_v42 }
 0x1b8   :  { %5772 = vmatmul.mubr.msk.f32.gmra.mrb[22].mxu0 %vm414_vm0, %v333_v46  ;;  %6183 = vmatpush1.bf16.msra.mxu1 %v6182_v61  ;;  %v405_v46 = vshrl.u32 %v404_v39, 7  ;;  %v6224_v39 = vpack.c.bf16 %v1264_v34, %v1262_v33  ;;  %v1282_v34 = vld [vmem:[#allocation5 + $0x1a8] sm:$0xff] }
 0x1b9   :  { %647 = vmatprep.mubr.f32.mxu0 %v7503_v0  ;;  %6185 = vmatprep.subr.bf16.mxu1 %v6184_v62  ;;  %v6208_v62 = vpack.c.bf16 %v1248_v59, %v1246_v58 }
 0x1ba   :  { %6203 = vmatpush1.bf16.msra.mxu0 %v6202_v45  ;;  %v8290_v47 = vsub.s32 0, %v405_v46  ;;  %v8295_v51 = vsub.s32 1, %v405_v46  ;;  %v1266_v45 = vld [vmem:[#allocation5 + $0x128] sm:$0xff]  ;;  %v1268_v46 = vld [vmem:[#allocation5 + $0x138] sm:$0xff] }
 0x1bb   :  { %6205 = vmatprep.subr.bf16.mxu0 %v6204_v52 }
 0x1bc   :  { %5773 = vmatmul.mubr.msk.f32.gmra.mrb[24].mxu0 %vm414_vm0, %v334_v53  ;;  %6187 = vmatpush1.bf16.msra.mxu1 %v6186_v10  ;;  %v1241_v53 = vld [vmem:[#allocation5 + $0x60] sm:$0xff]  ;;  %v8298_v56 = vrot.slane %v402_v50, %v8290_v47  ;;  %v8301_v57 = vrot.slane %v402_v50, %v8295_v51 }
 0x1bd   :  { %653 = vmatprep.mubr.f32.mxu0 %v7503_v0  ;;  %6189 = vmatprep.subr.bf16.mxu1 %v6188_v13  ;;  %v6206_v55 = vpack.c.bf16 %v1243_v54, %v1241_v53  ;;  %v1256_v13 = vld [vmem:[#allocation5 + $0xd8] sm:$0xff]  ;;  %v6228_v53 = vpack.c.bf16 %v1268_v46, %v1266_v45  ;;  %v1265_v54 = vld [vmem:[#allocation5 + $0x120] sm:$0xff]  ;;  %v1286_v46 = vld [vmem:[#allocation5 + $0x1c8] sm:$0xff] }
 0x1bf   :  { %6207 = vmatpush1.bf16.msra.mxu0 %v6206_v55  ;;  %v1267_v55 = vld [vmem:[#allocation5 + $0x130] sm:$0xff] }
 0x1c0   :  { %5774 = vmatmul.mubr.msk.f32.gmra.mrb[26].mxu0 %vm414_vm0, %v335_v60  ;;  %6191 = vmatpush1.bf16.msra.mxu1 %v6190_v17  ;;  %v1245_v60 = vld [vmem:[#allocation5 + $0x80] sm:$0xff]  ;;  %v6214_v17 = vpack.c.bf16 %v1251_v11, %v1249_v7  ;;  %v1276_v11 = vld [vmem:[#allocation5 + $0x178] sm:$0xff] }
 0x1c1   :  { %659 = vmatprep.mubr.f32.mxu0 %v7503_v0  ;;  %6209 = vmatprep.subr.bf16.mxu0 %v6208_v62  ;;  %v1272_v62 = vld [vmem:[#allocation5 + $0x158] sm:$0xff] }
 0x1c4   :  { %5775 = vmatmul.mubr.msk.f32.gmra.mrb[28].mxu0 %vm414_vm0, %v336_v63  ;;  %v1247_v63 = vld [vmem:[#allocation5 + $0x90] sm:$0xff] }
 0x1c5   :  { %665 = vmatprep.mubr.f32.mxu0 %v7503_v0 }
 0x1c8   :  { %5776 = vmatmul.mubr.msk.f32.gmra.mrb[30].mxu0 %vm414_vm0, %v337_v1 }
 0x1c9   :  { %671 = vmatprep.mubr.f32.mxu0 %v7503_v0 }
 0x1cc   :  { %5777 = vmatmul.mubr.msk.f32.gmra.mrb[32].mxu0 %vm414_vm0, %v338_v2 }
 0x1cd   :  { %677 = vmatprep.mubr.f32.mxu0 %v7503_v0 }
 0x1d0   :  { %5778 = vmatmul.mubr.msk.f32.gmra.mrb[34].mxu0 %vm414_vm0, %v339_v3  ;;  %v6210_v3 = vpack.c.bf16 %v1247_v63, %v1245_v60 }
 0x1d1   :  { %683 = vmatprep.mubr.f32.mxu0 %v7503_v0 }
 0x1d2   :  { %6211 = vmatpush1.bf16.msra.mxu0 %v6210_v3 }
 0x1d4   :  { %5779 = vmatmul.mubr.msk.f32.gmra.mrb[36].mxu0 %vm414_vm0, %v340_v4 }
 0x1d5   :  { %689 = vmatprep.mubr.f32.mxu0 %v7503_v0 }
 0x1d8   :  { %5780 = vmatmul.mubr.msk.f32.gmra.mrb[38].mxu0 %vm414_vm0, %v341_v5  ;;  %v1250_v5 = vld [vmem:[#allocation5 + $0xa8] sm:$0xff] }
 0x1d9   :  { %695 = vmatprep.mubr.f32.mxu0 %v7503_v0 }
 0x1dc   :  { %5781 = vmatmul.mubr.msk.f32.gmra.mrb[40].mxu0 %vm414_vm0, %v342_v6  ;;  %v1252_v6 = vld [vmem:[#allocation5 + $0xb8] sm:$0xff] }
 0x1dd   :  { %701 = vmatprep.mubr.f32.mxu0 %v7503_v0  ;;  %v6212_v10 = vpack.c.bf16 %v1252_v6, %v1250_v5  ;;  %v1269_v5 = vld [vmem:[#allocation5 + $0x140] sm:$0xff]  ;;  %v1271_v6 = vld [vmem:[#allocation5 + $0x150] sm:$0xff] }
 0x1df   :  { %6213 = vmatprep.subr.bf16.mxu0 %v6212_v10  ;;  %v1274_v10 = vld [vmem:[#allocation5 + $0x168] sm:$0xff] }
 0x1e0   :  { %5782 = vmatmul.mubr.msk.f32.gmra.mrb[42].mxu0 %vm414_vm0, %v343_v9 }
 0x1e1   :  { %707 = vmatprep.mubr.f32.mxu0 %v7503_v0  ;;  %6215 = vmatpush1.bf16.msra.mxu0 %v6214_v17  ;;  %v1273_v17 = vld [vmem:[#allocation5 + $0x160] sm:$0xff] }
 0x1e4   :  { %5783 = vmatmul.mubr.msk.f32.gmra.mrb[44].mxu0 %vm414_vm0, %v344_v16 }
 0x1e5   :  { %713 = vmatprep.mubr.f32.mxu0 %v7503_v0 }
 0x1e8   :  { %5784 = vmatmul.mubr.msk.f32.gmra.mrb[46].mxu0 %vm414_vm0, %v345_v18  ;;  %v6216_v18 = vpack.c.bf16 %v1256_v13, %v1254_v12  ;;  %v6234_v13 = vpack.c.bf16 %v1271_v6, %v1269_v5  ;;  %v1289_v6 = vld [vmem:[#allocation5 + $0x1e0] sm:$0xff] }
 0x1e9   :  { %719 = vmatprep.mubr.f32.mxu0 %v7503_v0 }
 0x1ea   :  { %6217 = vmatprep.subr.bf16.mxu0 %v6216_v18  ;;  %v1275_v18 = vld [vmem:[#allocation5 + $0x170] sm:$0xff] }
 0x1ec   :  { %5785 = vmatmul.mubr.msk.f32.gmra.mrb[48].mxu0 %vm414_vm0, %v346_v19  ;;  %v1253_v19 = vld [vmem:[#allocation5 + $0xc0] sm:$0xff] }
 0x1ed   :  { %725 = vmatprep.mubr.f32.mxu0 %v7503_v0 }
 0x1f0   :  { %5786 = vmatmul.mubr.msk.f32.gmra.mrb[50].mxu0 %vm414_vm0, %v347_v20  ;;  %v1255_v20 = vld [vmem:[#allocation5 + $0xd0] sm:$0xff] }
 0x1f1   :  { %731 = vmatprep.mubr.f32.mxu0 %v7503_v0 }
 0x1f4   :  { %5787 = vmatmul.mubr.msk.f32.gmra.mrb[52].mxu0 %vm414_vm0, %v348_v21  ;;  %v1258_v21 = vld [vmem:[#allocation5 + $0xe8] sm:$0xff] }
 0x1f5   :  { %737 = vmatprep.mubr.f32.mxu0 %v7503_v0 }
 0x1f8   :  { %5788 = vmatmul.mubr.msk.f32.gmra.mrb[54].mxu0 %vm414_vm0, %v349_v22 }
 0x1f9   :  { %743 = vmatprep.mubr.f32.mxu0 %v7503_v0 }
 0x1fc   :  { %5789 = vmatmul.mubr.msk.f32.gmra.mrb[56].mxu0 %vm414_vm0, %v350_v23  ;;  %v1260_v23 = vld [vmem:[#allocation5 + $0xf8] sm:$0xff] }
 0x1fd   :  { %749 = vmatprep.mubr.f32.mxu0 %v7503_v0  ;;  %v6220_v27 = vpack.c.bf16 %v1260_v23, %v1258_v21  ;;  %v1280_v23 = vld [vmem:[#allocation5 + $0x198] sm:$0xff] }
 0x200   :  { %5790 = vmatmul.mubr.msk.f32.gmra.mrb[58].mxu0 %vm414_vm0, %v351_v24  ;;  %v6218_v24 = vpack.c.bf16 %v1255_v20, %v1253_v19 }
 0x201   :  { %755 = vmatprep.mubr.f32.mxu0 %v7503_v0 }
 0x202   :  { %6219 = vmatpush1.bf16.msra.mxu0 %v6218_v24 }
 0x203   :  { %6221 = vmatprep.subr.bf16.mxu0 %v6220_v27 }
 0x204   :  { %5791 = vmatmul.mubr.msk.f32.gmra.mrb[60].mxu0 %vm414_vm0, %v352_v25 }
 0x205   :  { %761 = vmatprep.mubr.f32.mxu0 %v7503_v0 }
 0x206   :  { %6223 = vmatpush1.bf16.msra.mxu0 %v6222_v36 }
 0x207   :  { %6225 = vmatprep.subr.bf16.mxu0 %v6224_v39 }
 0x208   :  { %5792 = vmatmul.mubr.msk.f32.gmra.mrb[62].mxu0 %vm414_vm0, %v353_v26 }
 0x20a   :  { %6227 = vmatpush1.bf16.msra.mxu0 %v6226_v49 }
 0x20b   :  { %6229 = vmatprep.subr.bf16.mxu0 %v6228_v53 }
 0x25f   :  { %v577_v61 = vpop.f32.mrb[0].mxu0 }
 0x260   :  { %v578_v1 = vadd.f32 %v577_v61, %v8298_v56  ;;  %v579_v2 = vpop.f32.mrb[1].mxu0  ;;  %v1270_v61 = vld [vmem:[#allocation5 + $0x148] sm:$0xff] }
 0x261   :  { %v580_v4 = vadd.f32 %v579_v2, %v8301_v57 }
 0x262   :  { %v768_v16 = vmax.f32 %v578_v1, 0.0  ;;  %v6230_v1 = vpack.c.bf16 %v1267_v55, %v1265_v54  ;;  %v1285_v55 = vld [vmem:[#allocation5 + $0x1c0] sm:$0xff] }
 0x263   :  { %v583_v8 = vpop.f32.mrb[2].mxu0  ;;  %v769_v9 = vmax.f32 %v580_v4, 0.0  ;;  %v6232_v4 = vpack.c.bf16 %v1272_v62, %v1270_v61  ;;  %v1290_v62 = vld [vmem:[#allocation5 + $0x1e8] sm:$0xff] }
 0x264   :  { %v584_v14 = vadd.f32 %v583_v8, %v8298_v56  ;;  %v585_v15 = vpop.f32.mrb[3].mxu0  ;;  %6231 = vmatpush1.bf16.msra.mxu0 %v6230_v1 }
 0x265   :  { %v586_v22 = vadd.f32 %v585_v15, %v8301_v57  ;;  %972 = vmatprep.mubr.f32.mxu1 %v769_v9  ;;  %6233 = vmatprep.subr.bf16.mxu0 %v6232_v4 }
 0x266   :  { %973 = vmatmul.mubr.f32.vlgmr.msra.gmra.mrb[0].mxu1 %v768_v16  ;;  %v770_v32 = vmax.f32 %v584_v14, 0.0  ;;  %v6236_v16 = vpack.c.bf16 %v1276_v11, %v1274_v10 }
 0x267   :  { %v589_v25 = vpop.f32.mrb[4].mxu0  ;;  %v771_v26 = vmax.f32 %v586_v22, 0.0  ;;  %v1278_v22 = vld [vmem:[#allocation5 + $0x188] sm:$0xff] }
 0x268   :  { %v590_v30 = vadd.f32 %v589_v25, %v8298_v56  ;;  %v591_v31 = vpop.f32.mrb[5].mxu0  ;;  %6235 = vmatpush1.bf16.msra.mxu0 %v6234_v13  ;;  %v6238_v25 = vpack.c.bf16 %v1275_v18, %v1273_v17  ;;  %v6240_v28 = vpack.c.bf16 %v1280_v23, %v1278_v22 }
 0x269   :  { %v592_v35 = vadd.f32 %v591_v31, %v8301_v57  ;;  %978 = vmatprep.mubr.f32.mxu1 %v771_v26  ;;  %6237 = vmatprep.subr.bf16.mxu0 %v6236_v16 }
 0x26a   :  { %979 = vmatmul.mubr.f32.gmra.mrb[2].mxu1 %v770_v32  ;;  %v772_v44 = vmax.f32 %v590_v30, 0.0  ;;  %v1279_v30 = vld [vmem:[#allocation5 + $0x190] sm:$0xff] }
 0x26b   :  { %v595_v37 = vpop.f32.mrb[6].mxu0  ;;  %v773_v38 = vmax.f32 %v592_v35, 0.0  ;;  %v1284_v35 = vld [vmem:[#allocation5 + $0x1b8] sm:$0xff] }
 0x26c   :  { %v596_v42 = vadd.f32 %v595_v37, %v8298_v56  ;;  %v597_v43 = vpop.f32.mrb[7].mxu0  ;;  %6239 = vmatpush1.bf16.msra.mxu0 %v6238_v25  ;;  %v6242_v37 = vpack.c.bf16 %v1279_v30, %v1277_v29  ;;  %v6244_v40 = vpack.c.bf16 %v1284_v35, %v1282_v34 }
 0x26d   :  { %v598_v48 = vadd.f32 %v597_v43, %v8301_v57  ;;  %984 = vmatprep.mubr.f32.mxu1 %v773_v38  ;;  %6241 = vmatprep.subr.bf16.mxu0 %v6240_v28 }
 0x26e   :  { %985 = vmatmul.mubr.f32.gmra.mrb[4].mxu1 %v772_v44  ;;  %v774_v60 = vmax.f32 %v596_v42, 0.0  ;;  %v1283_v42 = vld [vmem:[#allocation5 + $0x1b0] sm:$0xff] }
 0x26f   :  { %v601_v50 = vpop.f32.mrb[8].mxu0  ;;  %v775_v52 = vmax.f32 %v598_v48, 0.0  ;;  %v1288_v48 = vld [vmem:[#allocation5 + $0x1d8] sm:$0xff] }
 0x270   :  { %v602_v58 = vadd.f32 %v601_v50, %v8298_v56  ;;  %v603_v59 = vpop.f32.mrb[9].mxu0  ;;  %6243 = vmatpush1.bf16.msra.mxu0 %v6242_v37  ;;  %v6246_v50 = vpack.c.bf16 %v1283_v42, %v1281_v41  ;;  %v6248_v54 = vpack.c.bf16 %v1288_v48, %v1286_v46 }
 0x271   :  { %v604_v63 = vadd.f32 %v603_v59, %v8301_v57  ;;  %990 = vmatprep.mubr.f32.mxu1 %v775_v52  ;;  %6245 = vmatprep.subr.bf16.mxu0 %v6244_v40 }
 0x272   :  { %991 = vmatmul.mubr.f32.gmra.mrb[6].mxu1 %v774_v60  ;;  %v776_v9 = vmax.f32 %v602_v58, 0.0  ;;  %v1287_v58 = vld [vmem:[#allocation5 + $0x1d0] sm:$0xff] }
 0x273   :  { %v607_v2 = vpop.f32.mrb[10].mxu0  ;;  %v777_v3 = vmax.f32 %v604_v63, 0.0  ;;  %v1292_v63 = vld [vmem:[#allocation5 + $0x1f8] sm:$0xff] }
 0x274   :  { %v608_v7 = vadd.f32 %v607_v2, %v8298_v56  ;;  %v609_v8 = vpop.f32.mrb[11].mxu0  ;;  %6247 = vmatpush1.bf16.msra.mxu0 %v6246_v50  ;;  %v6250_v2 = vpack.c.bf16 %v1287_v58, %v1285_v55  ;;  %v6252_v5 = vpack.c.bf16 %v1292_v63, %v1290_v62 }
 0x275   :  { %v610_v12 = vadd.f32 %v609_v8, %v8301_v57  ;;  %996 = vmatprep.mubr.f32.mxu1 %v777_v3  ;;  %6249 = vmatprep.subr.bf16.mxu0 %v6248_v54 }
 0x276   :  { %997 = vmatmul.mubr.f32.gmra.mrb[8].mxu1 %v776_v9  ;;  %v778_v21 = vmax.f32 %v608_v7, 0.0  ;;  %v1291_v7 = vld [vmem:[#allocation5 + $0x1f0] sm:$0xff] }
 0x277   :  { %v613_v14 = vpop.f32.mrb[12].mxu0  ;;  %v779_v15 = vmax.f32 %v610_v12, 0.0  ;;  %v6254_v12 = vpack.c.bf16 %v1291_v7, %v1289_v6 }
 0x278   :  { %v614_v19 = vadd.f32 %v613_v14, %v8298_v56  ;;  %v615_v20 = vpop.f32.mrb[13].mxu0  ;;  %6251 = vmatpush1.bf16.msra.mxu0 %v6250_v2 }
 0x279   :  { %v616_v24 = vadd.f32 %v615_v20, %v8301_v57  ;;  %1002 = vmatprep.mubr.f32.mxu1 %v779_v15  ;;  %6253 = vmatprep.subr.bf16.mxu0 %v6252_v5 }
 0x27a   :  { %1003 = vmatmul.mubr.f32.gmra.mrb[10].mxu1 %v778_v21  ;;  %v780_v33 = vmax.f32 %v614_v19, 0.0 }
 0x27b   :  { %v619_v26 = vpop.f32.mrb[14].mxu0  ;;  %v781_v27 = vmax.f32 %v616_v24, 0.0 }
 0x27c   :  { %v620_v31 = vadd.f32 %v619_v26, %v8298_v56  ;;  %v621_v32 = vpop.f32.mrb[15].mxu0  ;;  %6255 = vmatpush1.bf16.msra.mxu0 %v6254_v12 }
 0x27d   :  { %v622_v36 = vadd.f32 %v621_v32, %v8301_v57  ;;  %1008 = vmatprep.mubr.f32.mxu1 %v781_v27 }
 0x27e   :  { %1009 = vmatmul.mubr.f32.gmra.mrb[12].mxu1 %v780_v33  ;;  %v782_v45 = vmax.f32 %v620_v31, 0.0 }
 0x27f   :  { %v625_v38 = vpop.f32.mrb[16].mxu0  ;;  %v783_v39 = vmax.f32 %v622_v36, 0.0 }
 0x280   :  { %v626_v43 = vadd.f32 %v625_v38, %v8298_v56  ;;  %v627_v44 = vpop.f32.mrb[17].mxu0 }
 0x281   :  { %v628_v49 = vadd.f32 %v627_v44, %v8301_v57  ;;  %1014 = vmatprep.mubr.f32.mxu1 %v783_v39 }
 0x282   :  { %1015 = vmatmul.mubr.f32.gmra.mrb[14].mxu1 %v782_v45  ;;  %v784_v61 = vmax.f32 %v626_v43, 0.0 }
 0x283   :  { %v631_v52 = vpop.f32.mrb[18].mxu0  ;;  %v785_v53 = vmax.f32 %v628_v49, 0.0 }
 0x284   :  { %v632_v59 = vadd.f32 %v631_v52, %v8298_v56  ;;  %v633_v60 = vpop.f32.mrb[19].mxu0 }
 0x285   :  { %v634_v1 = vadd.f32 %v633_v60, %v8301_v57  ;;  %1020 = vmatprep.mubr.f32.mxu1 %v785_v53 }
 0x286   :  { %1021 = vmatmul.mubr.f32.gmra.mrb[16].mxu1 %v784_v61  ;;  %v786_v10 = vmax.f32 %v632_v59, 0.0 }
 0x287   :  { %v637_v3 = vpop.f32.mrb[20].mxu0  ;;  %v787_v4 = vmax.f32 %v634_v1, 0.0 }
 0x288   :  { %v638_v8 = vadd.f32 %v637_v3, %v8298_v56  ;;  %v639_v9 = vpop.f32.mrb[21].mxu0 }
 0x289   :  { %v640_v11 = vadd.f32 %v639_v9, %v8301_v57  ;;  %1026 = vmatprep.mubr.f32.mxu1 %v787_v4 }
 0x28a   :  { %1027 = vmatmul.mubr.f32.gmra.mrb[18].mxu1 %v786_v10  ;;  %v788_v17 = vmax.f32 %v638_v8, 0.0 }
 0x28b   :  { %v643_v13 = vpop.f32.mrb[22].mxu0  ;;  %v789_v14 = vmax.f32 %v640_v11, 0.0 }
 0x28c   :  { %v644_v15 = vadd.f32 %v643_v13, %v8298_v56  ;;  %v645_v16 = vpop.f32.mrb[23].mxu0 }
 0x28d   :  { %v646_v18 = vadd.f32 %v645_v16, %v8301_v57  ;;  %1032 = vmatprep.mubr.f32.mxu1 %v789_v14 }
 0x28e   :  { %1033 = vmatmul.mubr.f32.gmra.mrb[20].mxu1 %v788_v17  ;;  %v790_v23 = vmax.f32 %v644_v15, 0.0 }
 0x28f   :  { %v649_v19 = vpop.f32.mrb[24].mxu0  ;;  %v791_v20 = vmax.f32 %v646_v18, 0.0 }
 0x290   :  { %v650_v21 = vadd.f32 %v649_v19, %v8298_v56  ;;  %v651_v22 = vpop.f32.mrb[25].mxu0 }
 0x291   :  { %v652_v24 = vadd.f32 %v651_v22, %v8301_v57  ;;  %1038 = vmatprep.mubr.f32.mxu1 %v791_v20 }
 0x292   :  { %1039 = vmatmul.mubr.f32.gmra.mrb[22].mxu1 %v790_v23  ;;  %v792_v29 = vmax.f32 %v650_v21, 0.0 }
 0x293   :  { %v655_v25 = vpop.f32.mrb[26].mxu0  ;;  %v793_v26 = vmax.f32 %v652_v24, 0.0 }
 0x294   :  { %v656_v27 = vadd.f32 %v655_v25, %v8298_v56  ;;  %v657_v28 = vpop.f32.mrb[27].mxu0 }
 0x295   :  { %v658_v30 = vadd.f32 %v657_v28, %v8301_v57  ;;  %1044 = vmatprep.mubr.f32.mxu1 %v793_v26 }
 0x296   :  { %1045 = vmatmul.mubr.f32.gmra.mrb[24].mxu1 %v792_v29  ;;  %v794_v35 = vmax.f32 %v656_v27, 0.0 }
 0x297   :  { %v661_v31 = vpop.f32.mrb[28].mxu0  ;;  %v795_v32 = vmax.f32 %v658_v30, 0.0 }
 0x298   :  { %v662_v33 = vadd.f32 %v661_v31, %v8298_v56  ;;  %v663_v34 = vpop.f32.mrb[29].mxu0 }
 0x299   :  { %v664_v36 = vadd.f32 %v663_v34, %v8301_v57  ;;  %1050 = vmatprep.mubr.f32.mxu1 %v795_v32 }
 0x29a   :  { %1051 = vmatmul.mubr.f32.gmra.mrb[26].mxu1 %v794_v35  ;;  %v796_v41 = vmax.f32 %v662_v33, 0.0 }
 0x29b   :  { %v667_v37 = vpop.f32.mrb[30].mxu0  ;;  %v797_v38 = vmax.f32 %v664_v36, 0.0 }
 0x29c   :  { %v668_v39 = vadd.f32 %v667_v37, %v8298_v56  ;;  %v669_v40 = vpop.f32.mrb[31].mxu0 }
 0x29d   :  { %v670_v42 = vadd.f32 %v669_v40, %v8301_v57  ;;  %1056 = vmatprep.mubr.f32.mxu1 %v797_v38 }
 0x29e   :  { %1057 = vmatmul.mubr.f32.gmra.mrb[28].mxu1 %v796_v41  ;;  %v798_v48 = vmax.f32 %v668_v39, 0.0 }
 0x29f   :  { %v673_v43 = vpop.f32.mrb[32].mxu0  ;;  %v799_v44 = vmax.f32 %v670_v42, 0.0 }
 0x2a0   :  { %v674_v45 = vadd.f32 %v673_v43, %v8298_v56  ;;  %v675_v46 = vpop.f32.mrb[33].mxu0 }
 0x2a1   :  { %v676_v49 = vadd.f32 %v675_v46, %v8301_v57  ;;  %1062 = vmatprep.mubr.f32.mxu1 %v799_v44 }
 0x2a2   :  { %1063 = vmatmul.mubr.f32.gmra.mrb[30].mxu1 %v798_v48  ;;  %v800_v55 = vmax.f32 %v674_v45, 0.0 }
 0x2a3   :  { %v679_v50 = vpop.f32.mrb[34].mxu0  ;;  %v801_v52 = vmax.f32 %v676_v49, 0.0 }
 0x2a4   :  { %v680_v53 = vadd.f32 %v679_v50, %v8298_v56  ;;  %v681_v54 = vpop.f32.mrb[35].mxu0 }
 0x2a5   :  { %v682_v58 = vadd.f32 %v681_v54, %v8301_v57  ;;  %1068 = vmatprep.mubr.f32.mxu1 %v801_v52 }
 0x2a6   :  { %1069 = vmatmul.mubr.f32.gmra.mrb[32].mxu1 %v800_v55  ;;  %v802_v63 = vmax.f32 %v680_v53, 0.0 }
 0x2a7   :  { %v685_v59 = vpop.f32.mrb[36].mxu0  ;;  %v803_v60 = vmax.f32 %v682_v58, 0.0 }
 0x2a8   :  { %v686_v61 = vadd.f32 %v685_v59, %v8298_v56  ;;  %v687_v62 = vpop.f32.mrb[37].mxu0 }
 0x2a9   :  { %v688_v1 = vadd.f32 %v687_v62, %v8301_v57  ;;  %1074 = vmatprep.mubr.f32.mxu1 %v803_v60 }
 0x2aa   :  { %1075 = vmatmul.mubr.f32.gmra.mrb[34].mxu1 %v802_v63  ;;  %v804_v6 = vmax.f32 %v686_v61, 0.0 }
 0x2ab   :  { %v691_v2 = vpop.f32.mrb[38].mxu0  ;;  %v805_v3 = vmax.f32 %v688_v1, 0.0 }
 0x2ac   :  { %v692_v4 = vadd.f32 %v691_v2, %v8298_v56  ;;  %v693_v5 = vpop.f32.mrb[39].mxu0 }
 0x2ad   :  { %v694_v7 = vadd.f32 %v693_v5, %v8301_v57  ;;  %1080 = vmatprep.mubr.f32.mxu1 %v805_v3 }
 0x2ae   :  { %1081 = vmatmul.mubr.f32.gmra.mrb[36].mxu1 %v804_v6  ;;  %v806_v12 = vmax.f32 %v692_v4, 0.0 }
 0x2af   :  { %v697_v8 = vpop.f32.mrb[40].mxu0  ;;  %v807_v9 = vmax.f32 %v694_v7, 0.0 }
 0x2b0   :  { %v698_v10 = vadd.f32 %v697_v8, %v8298_v56  ;;  %v699_v11 = vpop.f32.mrb[41].mxu0 }
 0x2b1   :  { %v700_v13 = vadd.f32 %v699_v11, %v8301_v57  ;;  %1086 = vmatprep.mubr.f32.mxu1 %v807_v9 }
 0x2b2   :  { %1087 = vmatmul.mubr.f32.gmra.mrb[38].mxu1 %v806_v12  ;;  %v808_v18 = vmax.f32 %v698_v10, 0.0 }
 0x2b3   :  { %v703_v14 = vpop.f32.mrb[42].mxu0  ;;  %v809_v15 = vmax.f32 %v700_v13, 0.0 }
 0x2b4   :  { %v704_v16 = vadd.f32 %v703_v14, %v8298_v56  ;;  %v705_v17 = vpop.f32.mrb[43].mxu0 }
 0x2b5   :  { %v706_v19 = vadd.f32 %v705_v17, %v8301_v57  ;;  %1092 = vmatprep.mubr.f32.mxu1 %v809_v15 }
 0x2b6   :  { %1093 = vmatmul.mubr.f32.gmra.mrb[40].mxu1 %v808_v18  ;;  %v810_v24 = vmax.f32 %v704_v16, 0.0 }
 0x2b7   :  { %v709_v20 = vpop.f32.mrb[44].mxu0  ;;  %v811_v21 = vmax.f32 %v706_v19, 0.0 }
 0x2b8   :  { %v710_v22 = vadd.f32 %v709_v20, %v8298_v56  ;;  %v711_v23 = vpop.f32.mrb[45].mxu0 }
 0x2b9   :  { %v712_v25 = vadd.f32 %v711_v23, %v8301_v57  ;;  %1098 = vmatprep.mubr.f32.mxu1 %v811_v21  ;;  %v1627_v23 = vld [vmem:[#allocation7 + $0x8] sm:$0xff] }
 0x2ba   :  { %1099 = vmatmul.mubr.f32.gmra.mrb[42].mxu1 %v810_v24  ;;  %v812_v30 = vmax.f32 %v710_v22, 0.0  ;;  %v1629_v24 = vld [vmem:[#allocation7 + $0x18] sm:$0xff] }
 0x2bb   :  { %v715_v26 = vpop.f32.mrb[46].mxu0  ;;  %v813_v27 = vmax.f32 %v712_v25, 0.0  ;;  %v6256_v25 = vpack.c.bf16 %v1629_v24, %v1627_v23  ;;  %v1656_v23 = vld [vmem:[#allocation7 + $0xf0] sm:$0xff] }
 0x2bc   :  { %v716_v28 = vadd.f32 %v715_v26, %v8298_v56  ;;  %v717_v29 = vpop.f32.mrb[47].mxu0  ;;  %v1626_v26 = vld [vmem:[#allocation7] sm:$0xff] }
 0x2bd   :  { %v718_v31 = vadd.f32 %v717_v29, %v8301_v57  ;;  %1104 = vmatprep.mubr.f32.mxu1 %v813_v27  ;;  %v1628_v27 = vld [vmem:[#allocation7 + $0x10] sm:$0xff]  ;;  %6257 = vmatprep.subr.bf16.mxu1 %v6256_v25  ;;  %v1631_v29 = vld [vmem:[#allocation7 + $0x28] sm:$0xff] }
 0x2be   :  { %1105 = vmatmul.mubr.f32.gmra.mrb[44].mxu1 %v812_v30  ;;  %v814_v36 = vmax.f32 %v716_v28, 0.0  ;;  %v6258_v28 = vpack.c.bf16 %v1628_v27, %v1626_v26  ;;  %v1659_v27 = vld [vmem:[#allocation7 + $0x108] sm:$0xff] }
 0x2bf   :  { %v721_v32 = vpop.f32.mrb[48].mxu0  ;;  %v815_v33 = vmax.f32 %v718_v31, 0.0  ;;  %v1630_v31 = vld [vmem:[#allocation7 + $0x20] sm:$0xff] }
 0x2c0   :  { %v722_v34 = vadd.f32 %v721_v32, %v8298_v56  ;;  %v723_v35 = vpop.f32.mrb[49].mxu0  ;;  %6259 = vmatpush1.bf16.msra.mxu1 %v6258_v28  ;;  %v1632_v32 = vld [vmem:[#allocation7 + $0x30] sm:$0xff]  ;;  %v1661_v28 = vld [vmem:[#allocation7 + $0x118] sm:$0xff] }
 0x2c1   :  { %v724_v37 = vadd.f32 %v723_v35, %v8301_v57  ;;  %1110 = vmatprep.mubr.f32.mxu1 %v815_v33  ;;  %v1635_v33 = vld [vmem:[#allocation7 + $0x48] sm:$0xff] }
 0x2c2   :  { %1111 = vmatmul.mubr.f32.gmra.mrb[46].mxu1 %v814_v36  ;;  %v816_v42 = vmax.f32 %v722_v34, 0.0  ;;  %v1637_v34 = vld [vmem:[#allocation7 + $0x58] sm:$0xff]  ;;  %v1634_v36 = vld [vmem:[#allocation7 + $0x40] sm:$0xff] }
 0x2c3   :  { %v727_v38 = vpop.f32.mrb[50].mxu0  ;;  %v817_v39 = vmax.f32 %v724_v37, 0.0  ;;  %v6264_v35 = vpack.c.bf16 %v1637_v34, %v1635_v33  ;;  %v1636_v37 = vld [vmem:[#allocation7 + $0x50] sm:$0xff] }
 0x2c4   :  { %v728_v40 = vadd.f32 %v727_v38, %v8298_v56  ;;  %v729_v41 = vpop.f32.mrb[51].mxu0  ;;  %v6266_v38 = vpack.c.bf16 %v1636_v37, %v1634_v36  ;;  %v1660_v33 = vld [vmem:[#allocation7 + $0x110] sm:$0xff]  ;;  %v1663_v37 = vld [vmem:[#allocation7 + $0x128] sm:$0xff] }
 0x2c5   :  { %v730_v43 = vadd.f32 %v729_v41, %v8301_v57  ;;  %1116 = vmatprep.mubr.f32.mxu1 %v817_v39  ;;  %v1639_v39 = vld [vmem:[#allocation7 + $0x68] sm:$0xff]  ;;  %v896_v41 = vld [vmem:[%s9820_s0] sm:$0x3] }
 0x2c6   :  { %1117 = vmatmul.mubr.f32.gmra.mrb[48].mxu1 %v816_v42  ;;  %v818_v49 = vmax.f32 %v728_v40, 0.0  ;;  %v1641_v40 = vld [vmem:[#allocation7 + $0x78] sm:$0xff] }
 0x2c7   :  { %v733_v44 = vpop.f32.mrb[52].mxu0  ;;  %v819_v45 = vmax.f32 %v730_v43, 0.0  ;;  %v6268_v42 = vpack.c.bf16 %v1641_v40, %v1639_v39  ;;  %v1638_v43 = vld [vmem:[#allocation7 + $0x60] sm:$0xff] }
 0x2c8   :  { %v734_v46 = vadd.f32 %v733_v44, %v8298_v56  ;;  %v735_v48 = vpop.f32.mrb[53].mxu0  ;;  %v1640_v44 = vld [vmem:[#allocation7 + $0x70] sm:$0xff] }
 0x2c9   :  { %v736_v50 = vadd.f32 %v735_v48, %v8301_v57  ;;  %1122 = vmatprep.mubr.f32.mxu1 %v819_v45  ;;  %v6270_v45 = vpack.c.bf16 %v1640_v44, %v1638_v43  ;;  %v8374_v48 = vrot.slane %v896_v41, %v8295_v51  ;;  %v1662_v44 = vld [vmem:[#allocation7 + $0x120] sm:$0xff] }
 0x2ca   :  { %1123 = vmatmul.mubr.f32.gmra.mrb[50].mxu1 %v818_v49  ;;  %v820_v58 = vmax.f32 %v734_v46, 0.0  ;;  %v8371_v46 = vrot.slane %v896_v41, %v8290_v47  ;;  %v1643_v49 = vld [vmem:[#allocation7 + $0x88] sm:$0xff] }
 0x2cb   :  { %v739_v52 = vpop.f32.mrb[54].mxu0  ;;  %v821_v53 = vmax.f32 %v736_v50, 0.0  ;;  %v1645_v50 = vld [vmem:[#allocation7 + $0x98] sm:$0xff] }
 0x2cc   :  { %v740_v54 = vadd.f32 %v739_v52, %v8298_v56  ;;  %v741_v55 = vpop.f32.mrb[55].mxu0  ;;  %v1642_v52 = vld [vmem:[#allocation7 + $0x80] sm:$0xff] }
 0x2cd   :  { %v742_v59 = vadd.f32 %v741_v55, %v8301_v57  ;;  %1128 = vmatprep.mubr.f32.mxu1 %v821_v53  ;;  %v1644_v55 = vld [vmem:[#allocation7 + $0x90] sm:$0xff] }
 0x2ce   :  { %1129 = vmatmul.mubr.f32.gmra.mrb[52].mxu1 %v820_v58  ;;  %v822_v1 = vmax.f32 %v740_v54, 0.0  ;;  %v6272_v54 = vpack.c.bf16 %v1645_v50, %v1643_v49 }
 0x2cf   :  { %v745_v60 = vpop.f32.mrb[56].mxu0  ;;  %v823_v61 = vmax.f32 %v742_v59, 0.0 }
 0x2d0   :  { %v746_v62 = vadd.f32 %v745_v60, %v8298_v56  ;;  %v747_v63 = vpop.f32.mrb[57].mxu0  ;;  %v6274_v60 = vpack.c.bf16 %v1644_v55, %v1642_v52 }
 0x2d1   :  { %v748_v2 = vadd.f32 %v747_v63, %v8301_v57  ;;  %1134 = vmatprep.mubr.f32.mxu1 %v823_v61  ;;  %v1649_v63 = vld [vmem:[#allocation7 + $0xb8] sm:$0xff] }
 0x2d2   :  { %1135 = vmatmul.mubr.f32.gmra.mrb[54].mxu1 %v822_v1  ;;  %v824_v7 = vmax.f32 %v746_v62, 0.0  ;;  %v1647_v62 = vld [vmem:[#allocation7 + $0xa8] sm:$0xff]  ;;  %v1646_v1 = vld [vmem:[#allocation7 + $0xa0] sm:$0xff] }
 0x2d3   :  { %v751_v3 = vpop.f32.mrb[58].mxu0  ;;  %v825_v4 = vmax.f32 %v748_v2, 0.0 }
 0x2d4   :  { %v752_v5 = vadd.f32 %v751_v3, %v8298_v56  ;;  %v753_v6 = vpop.f32.mrb[59].mxu0 }
 0x2d5   :  { %v754_v8 = vadd.f32 %v753_v6, %v8301_v57  ;;  %1140 = vmatprep.mubr.f32.mxu1 %v825_v4  ;;  %v6276_v4 = vpack.c.bf16 %v1649_v63, %v1647_v62  ;;  %v1651_v6 = vld [vmem:[#allocation7 + $0xc8] sm:$0xff]  ;;  %v1666_v62 = vld [vmem:[#allocation7 + $0x140] sm:$0xff]  ;;  %v1668_v63 = vld [vmem:[#allocation7 + $0x150] sm:$0xff] }
 0x2d6   :  { %1141 = vmatmul.mubr.f32.gmra.mrb[56].mxu1 %v824_v7  ;;  %v826_v13 = vmax.f32 %v752_v5, 0.0  ;;  %v1648_v5 = vld [vmem:[#allocation7 + $0xb0] sm:$0xff]  ;;  %v1653_v7 = vld [vmem:[#allocation7 + $0xd8] sm:$0xff] }
 0x2d7   :  { %v757_v9 = vpop.f32.mrb[60].mxu0  ;;  %v827_v10 = vmax.f32 %v754_v8, 0.0 }
 0x2d8   :  { %v758_v11 = vadd.f32 %v757_v9, %v8298_v56  ;;  %v759_v12 = vpop.f32.mrb[61].mxu0 }
 0x2d9   :  { %v760_v14 = vadd.f32 %v759_v12, %v8301_v57  ;;  %1146 = vmatprep.mubr.f32.mxu1 %v827_v10  ;;  %v6280_v12 = vpack.c.bf16 %v1653_v7, %v1651_v6  ;;  %v6298_v7 = vpack.c.bf16 %v1668_v63, %v1666_v62  ;;  %v1686_v63 = vld [vmem:[#allocation7 + $0x1e0] sm:$0xff] }
 0x2da   :  { %1147 = vmatmul.mubr.f32.gmra.mrb[58].mxu1 %v826_v13  ;;  %v828_v19 = vmax.f32 %v758_v11, 0.0  ;;  %v6278_v11 = vpack.c.bf16 %v1648_v5, %v1646_v1  ;;  %v1650_v13 = vld [vmem:[#allocation7 + $0xc0] sm:$0xff]  ;;  %v1673_v5 = vld [vmem:[#allocation7 + $0x178] sm:$0xff] }
 0x2db   :  { %v763_v15 = vpop.f32.mrb[62].mxu0  ;;  %v829_v16 = vmax.f32 %v760_v14, 0.0  ;;  %v1652_v14 = vld [vmem:[#allocation7 + $0xd0] sm:$0xff] }
 0x2dc   :  { %v764_v17 = vadd.f32 %v763_v15, %v8298_v56  ;;  %v765_v18 = vpop.f32.mrb[63].mxu0  ;;  %v1633_v56 = vld [vmem:[#allocation7 + $0x38] sm:$0xff]  ;;  %v1655_v15 = vld [vmem:[#allocation7 + $0xe8] sm:$0xff] }
 0x2dd   :  { %v766_v20 = vadd.f32 %v765_v18, %v8301_v57  ;;  %1152 = vmatprep.mubr.f32.mxu1 %v829_v16  ;;  %v6260_v30 = vpack.c.bf16 %v1633_v56, %v1631_v29  ;;  %v6262_v57 = vpack.c.bf16 %v1632_v32, %v1630_v31  ;;  %v6282_v18 = vpack.c.bf16 %v1652_v14, %v1650_v13 }
 0x2de   :  { %1153 = vmatmul.mubr.f32.gmra.mrb[60].mxu1 %v828_v19  ;;  %v830_v22 = vmax.f32 %v764_v17, 0.0  ;;  %v1657_v17 = vld [vmem:[#allocation7 + $0xf8] sm:$0xff]  ;;  %v6288_v32 = vpack.c.bf16 %v1661_v28, %v1659_v27  ;;  %v1679_v28 = vld [vmem:[#allocation7 + $0x1a8] sm:$0xff] }
 0x2df   :  { %v831_v21 = vmax.f32 %v766_v20, 0.0  ;;  %6261 = vmatprep.subr.bf16.mxu1 %v6260_v30 }
 0x2e0   :  { %6263 = vmatpush1.bf16.msra.mxu1 %v6262_v57  ;;  %v1658_v57 = vld [vmem:[#allocation7 + $0x100] sm:$0xff] }
 0x2e1   :  { %1158 = vmatprep.mubr.f32.mxu1 %v831_v21  ;;  %6265 = vmatprep.subr.bf16.mxu1 %v6264_v35  ;;  %v6284_v21 = vpack.c.bf16 %v1657_v17, %v1655_v15  ;;  %v6290_v40 = vpack.c.bf16 %v1660_v33, %v1658_v57  ;;  %v1677_v17 = vld [vmem:[#allocation7 + $0x198] sm:$0xff]  ;;  %v1678_v33 = vld [vmem:[#allocation7 + $0x1a0] sm:$0xff] }
 0x2e2   :  { %1159 = vmatmul.mubr.f32.gmra.mrb[62].mxu1 %v830_v22  ;;  %v1654_v22 = vld [vmem:[#allocation7 + $0xe0] sm:$0xff] }
 0x2e3   :  { %v6286_v56 = vpack.c.bf16 %v1656_v23, %v1654_v22  ;;  %v1674_v23 = vld [vmem:[#allocation7 + $0x180] sm:$0xff] }
 0x2e4   :  { %6267 = vmatpush1.bf16.msra.mxu1 %v6266_v38  ;;  %v1665_v38 = vld [vmem:[#allocation7 + $0x138] sm:$0xff] }
 0x2e5   :  { %6269 = vmatprep.subr.bf16.mxu1 %v6268_v42  ;;  %v6292_v43 = vpack.c.bf16 %v1665_v38, %v1663_v37  ;;  %v1683_v38 = vld [vmem:[#allocation7 + $0x1c8] sm:$0xff] }
 0x2e8   :  { %6271 = vmatpush1.bf16.msra.mxu1 %v6270_v45  ;;  %v1664_v45 = vld [vmem:[#allocation7 + $0x130] sm:$0xff] }
 0x2e9   :  { %6273 = vmatprep.subr.bf16.mxu1 %v6272_v54  ;;  %v1669_v54 = vld [vmem:[#allocation7 + $0x158] sm:$0xff] }
 0x2ec   :  { %6275 = vmatpush1.bf16.msra.mxu1 %v6274_v60 }
 0x2ed   :  { %6277 = vmatprep.subr.bf16.mxu1 %v6276_v4  ;;  %v1671_v4 = vld [vmem:[#allocation7 + $0x168] sm:$0xff] }
 0x2f0   :  { %6279 = vmatpush1.bf16.msra.mxu1 %v6278_v11  ;;  %v1670_v11 = vld [vmem:[#allocation7 + $0x160] sm:$0xff] }
 0x2f1   :  { %6281 = vmatprep.subr.bf16.mxu1 %v6280_v12  ;;  %v1672_v12 = vld [vmem:[#allocation7 + $0x170] sm:$0xff] }
 0x2f4   :  { %6283 = vmatpush1.bf16.msra.mxu1 %v6282_v18 }
 0x2f5   :  { %6285 = vmatprep.subr.bf16.mxu1 %v6284_v21 }
 0x2f8   :  { %6287 = vmatpush1.bf16.msra.mxu1 %v6286_v56 }
 0x2f9   :  { %6289 = vmatprep.subr.bf16.mxu1 %v6288_v32 }
 0x2fc   :  { %6291 = vmatpush1.bf16.msra.mxu1 %v6290_v40 }
 0x2fd   :  { %6293 = vmatprep.subr.bf16.mxu1 %v6292_v43 }
 0x339   :  { %v974_v53 = vpop.f32.mrb[0].mxu1 }
 0x33a   :  { %v975_v58 = vadd.f32 %v974_v53, %v8371_v46  ;;  %v976_v59 = vpop.f32.mrb[1].mxu1  ;;  %v1667_v53 = vld [vmem:[#allocation7 + $0x148] sm:$0xff] }
 0x33b   :  { %v977_v61 = vadd.f32 %v976_v59, %v8374_v48 }
 0x33c   :  { %v1165_v8 = vmax.f32 %v975_v58, 0.0  ;;  %v6294_v58 = vpack.c.bf16 %v1664_v45, %v1662_v44  ;;  %v1682_v45 = vld [vmem:[#allocation7 + $0x1c0] sm:$0xff] }
 0x33d   :  { %v980_v2 = vpop.f32.mrb[2].mxu1  ;;  %v1166_v3 = vmax.f32 %v977_v61, 0.0  ;;  %v6296_v61 = vpack.c.bf16 %v1669_v54, %v1667_v53  ;;  %v1687_v54 = vld [vmem:[#allocation7 + $0x1e8] sm:$0xff] }
 0x33e   :  { %v981_v9 = vadd.f32 %v980_v2, %v8371_v46  ;;  %v982_v10 = vpop.f32.mrb[3].mxu1  ;;  %6295 = vmatpush1.bf16.msra.mxu1 %v6294_v58 }
 0x33f   :  { %v983_v16 = vadd.f32 %v982_v10, %v8374_v48  ;;  %1369 = vmatprep.mubr.f32.mxu0 %v1166_v3  ;;  %6297 = vmatprep.subr.bf16.mxu1 %v6296_v61  ;;  %v6300_v10 = vpack.c.bf16 %v1673_v5, %v1671_v4 }
 0x340   :  { %1370 = vmatmul.mubr.f32.vlgmr.msra.gmra.mrb[64].mxu0 %v1165_v8  ;;  %v1167_v26 = vmax.f32 %v981_v9, 0.0 }
 0x341   :  { %v986_v19 = vpop.f32.mrb[4].mxu1  ;;  %v1168_v20 = vmax.f32 %v983_v16, 0.0  ;;  %v1675_v16 = vld [vmem:[#allocation7 + $0x188] sm:$0xff] }
 0x342   :  { %v987_v24 = vadd.f32 %v986_v19, %v8371_v46  ;;  %v988_v25 = vpop.f32.mrb[5].mxu1  ;;  %6299 = vmatpush1.bf16.msra.mxu1 %v6298_v7  ;;  %v6302_v19 = vpack.c.bf16 %v1672_v12, %v1670_v11  ;;  %v6304_v22 = vpack.c.bf16 %v1677_v17, %v1675_v16 }
 0x343   :  { %v989_v29 = vadd.f32 %v988_v25, %v8374_v48  ;;  %1375 = vmatprep.mubr.f32.mxu0 %v1168_v20  ;;  %6301 = vmatprep.subr.bf16.mxu1 %v6300_v10 }
 0x344   :  { %1376 = vmatmul.mubr.f32.gmra.mrb[66].mxu0 %v1167_v26  ;;  %v1169_v36 = vmax.f32 %v987_v24, 0.0  ;;  %v1676_v24 = vld [vmem:[#allocation7 + $0x190] sm:$0xff] }
 0x345   :  { %v992_v30 = vpop.f32.mrb[6].mxu1  ;;  %v1170_v31 = vmax.f32 %v989_v29, 0.0  ;;  %v1681_v29 = vld [vmem:[#allocation7 + $0x1b8] sm:$0xff] }
 0x346   :  { %v993_v34 = vadd.f32 %v992_v30, %v8371_v46  ;;  %v994_v35 = vpop.f32.mrb[7].mxu1  ;;  %6303 = vmatpush1.bf16.msra.mxu1 %v6302_v19  ;;  %v6306_v30 = vpack.c.bf16 %v1676_v24, %v1674_v23  ;;  %v6308_v57 = vpack.c.bf16 %v1681_v29, %v1679_v28 }
 0x347   :  { %v995_v39 = vadd.f32 %v994_v35, %v8374_v48  ;;  %1381 = vmatprep.mubr.f32.mxu0 %v1170_v31  ;;  %6305 = vmatprep.subr.bf16.mxu1 %v6304_v22 }
 0x348   :  { %1382 = vmatmul.mubr.f32.gmra.mrb[68].mxu0 %v1169_v36  ;;  %v1171_v52 = vmax.f32 %v993_v34, 0.0  ;;  %v1680_v34 = vld [vmem:[#allocation7 + $0x1b0] sm:$0xff] }
 0x349   :  { %v998_v41 = vpop.f32.mrb[8].mxu1  ;;  %v1172_v42 = vmax.f32 %v995_v39, 0.0  ;;  %v1685_v39 = vld [vmem:[#allocation7 + $0x1d8] sm:$0xff] }
 0x34a   :  { %v999_v49 = vadd.f32 %v998_v41, %v8371_v46  ;;  %v1000_v50 = vpop.f32.mrb[9].mxu1  ;;  %6307 = vmatpush1.bf16.msra.mxu1 %v6306_v30  ;;  %v6310_v41 = vpack.c.bf16 %v1680_v34, %v1678_v33  ;;  %v6312_v44 = vpack.c.bf16 %v1685_v39, %v1683_v38 }
 0x34b   :  { %v1001_v55 = vadd.f32 %v1000_v50, %v8374_v48  ;;  %1387 = vmatprep.mubr.f32.mxu0 %v1172_v42  ;;  %6309 = vmatprep.subr.bf16.mxu1 %v6308_v57 }
 0x34c   :  { %1388 = vmatmul.mubr.f32.gmra.mrb[70].mxu0 %v1171_v52  ;;  %v1173_v3 = vmax.f32 %v999_v49, 0.0  ;;  %v1684_v49 = vld [vmem:[#allocation7 + $0x1d0] sm:$0xff] }
 0x34d   :  { %v1004_v59 = vpop.f32.mrb[10].mxu1  ;;  %v1174_v60 = vmax.f32 %v1001_v55, 0.0  ;;  %v1689_v55 = vld [vmem:[#allocation7 + $0x1f8] sm:$0xff] }
 0x34e   :  { %v1005_v1 = vadd.f32 %v1004_v59, %v8371_v46  ;;  %v1006_v2 = vpop.f32.mrb[11].mxu1  ;;  %6311 = vmatpush1.bf16.msra.mxu1 %v6310_v41  ;;  %v6314_v59 = vpack.c.bf16 %v1684_v49, %v1682_v45  ;;  %v6316_v62 = vpack.c.bf16 %v1689_v55, %v1687_v54 }
 0x34f   :  { %v1007_v6 = vadd.f32 %v1006_v2, %v8374_v48  ;;  %1393 = vmatprep.mubr.f32.mxu0 %v1174_v60  ;;  %6313 = vmatprep.subr.bf16.mxu1 %v6312_v44 }
 0x350   :  { %1394 = vmatmul.mubr.f32.gmra.mrb[72].mxu0 %v1173_v3  ;;  %v1175_v15 = vmax.f32 %v1005_v1, 0.0  ;;  %v1688_v1 = vld [vmem:[#allocation7 + $0x1f0] sm:$0xff] }
 0x351   :  { %v1010_v8 = vpop.f32.mrb[12].mxu1  ;;  %v1176_v9 = vmax.f32 %v1007_v6, 0.0  ;;  %v6318_v6 = vpack.c.bf16 %v1688_v1, %v1686_v63 }
 0x352   :  { %v1011_v13 = vadd.f32 %v1010_v8, %v8371_v46  ;;  %v1012_v14 = vpop.f32.mrb[13].mxu1  ;;  %6315 = vmatpush1.bf16.msra.mxu1 %v6314_v59 }
 0x353   :  { %v1013_v18 = vadd.f32 %v1012_v14, %v8374_v48  ;;  %1399 = vmatprep.mubr.f32.mxu0 %v1176_v9  ;;  %6317 = vmatprep.subr.bf16.mxu1 %v6316_v62 }
 0x354   :  { %1400 = vmatmul.mubr.f32.gmra.mrb[74].mxu0 %v1175_v15  ;;  %v1177_v27 = vmax.f32 %v1011_v13, 0.0 }
 0x355   :  { %v1016_v20 = vpop.f32.mrb[14].mxu1  ;;  %v1178_v21 = vmax.f32 %v1013_v18, 0.0 }
 0x356   :  { %v1017_v25 = vadd.f32 %v1016_v20, %v8371_v46  ;;  %v1018_v26 = vpop.f32.mrb[15].mxu1  ;;  %6319 = vmatpush1.bf16.msra.mxu1 %v6318_v6 }
 0x357   :  { %v1019_v56 = vadd.f32 %v1018_v26, %v8374_v48  ;;  %1405 = vmatprep.mubr.f32.mxu0 %v1178_v21 }
 0x358   :  { %1406 = vmatmul.mubr.f32.gmra.mrb[76].mxu0 %v1177_v27  ;;  %v1179_v37 = vmax.f32 %v1017_v25, 0.0 }
 0x359   :  { %v1022_v31 = vpop.f32.mrb[16].mxu1  ;;  %v1180_v32 = vmax.f32 %v1019_v56, 0.0 }
 0x35a   :  { %v1023_v35 = vadd.f32 %v1022_v31, %v8371_v46  ;;  %v1024_v36 = vpop.f32.mrb[17].mxu1 }
 0x35b   :  { %v1025_v40 = vadd.f32 %v1024_v36, %v8374_v48  ;;  %1411 = vmatprep.mubr.f32.mxu0 %v1180_v32 }
 0x35c   :  { %1412 = vmatmul.mubr.f32.gmra.mrb[78].mxu0 %v1179_v37  ;;  %v1181_v53 = vmax.f32 %v1023_v35, 0.0 }
 0x35d   :  { %v1028_v42 = vpop.f32.mrb[18].mxu1  ;;  %v1182_v43 = vmax.f32 %v1025_v40, 0.0 }
 0x35e   :  { %v1029_v50 = vadd.f32 %v1028_v42, %v8371_v46  ;;  %v1030_v52 = vpop.f32.mrb[19].mxu1 }
 0x35f   :  { %v1031_v58 = vadd.f32 %v1030_v52, %v8374_v48  ;;  %1417 = vmatprep.mubr.f32.mxu0 %v1182_v43 }
 0x360   :  { %1418 = vmatmul.mubr.f32.gmra.mrb[80].mxu0 %v1181_v53  ;;  %v1183_v4 = vmax.f32 %v1029_v50, 0.0 }
 0x361   :  { %v1034_v60 = vpop.f32.mrb[20].mxu1  ;;  %v1184_v61 = vmax.f32 %v1031_v58, 0.0 }
 0x362   :  { %v1035_v2 = vadd.f32 %v1034_v60, %v8371_v46  ;;  %v1036_v3 = vpop.f32.mrb[21].mxu1 }
 0x363   :  { %v1037_v5 = vadd.f32 %v1036_v3, %v8374_v48  ;;  %1423 = vmatprep.mubr.f32.mxu0 %v1184_v61 }
 0x364   :  { %1424 = vmatmul.mubr.f32.gmra.mrb[82].mxu0 %v1183_v4  ;;  %v1185_v11 = vmax.f32 %v1035_v2, 0.0 }
 0x365   :  { %v1040_v7 = vpop.f32.mrb[22].mxu1  ;;  %v1186_v8 = vmax.f32 %v1037_v5, 0.0 }
 0x366   :  { %v1041_v9 = vadd.f32 %v1040_v7, %v8371_v46  ;;  %v1042_v10 = vpop.f32.mrb[23].mxu1 }
 0x367   :  { %v1043_v12 = vadd.f32 %v1042_v10, %v8374_v48  ;;  %1429 = vmatprep.mubr.f32.mxu0 %v1186_v8 }
 0x368   :  { %1430 = vmatmul.mubr.f32.gmra.mrb[84].mxu0 %v1185_v11  ;;  %v1187_v17 = vmax.f32 %v1041_v9, 0.0 }
 0x369   :  { %v1046_v13 = vpop.f32.mrb[24].mxu1  ;;  %v1188_v14 = vmax.f32 %v1043_v12, 0.0 }
 0x36a   :  { %v1047_v15 = vadd.f32 %v1046_v13, %v8371_v46  ;;  %v1048_v16 = vpop.f32.mrb[25].mxu1 }
 0x36b   :  { %v1049_v18 = vadd.f32 %v1048_v16, %v8374_v48  ;;  %1435 = vmatprep.mubr.f32.mxu0 %v1188_v14 }
 0x36c   :  { %1436 = vmatmul.mubr.f32.gmra.mrb[86].mxu0 %v1187_v17  ;;  %v1189_v23 = vmax.f32 %v1047_v15, 0.0 }
 0x36d   :  { %v1052_v19 = vpop.f32.mrb[26].mxu1  ;;  %v1190_v20 = vmax.f32 %v1049_v18, 0.0 }
 0x36e   :  { %v1053_v21 = vadd.f32 %v1052_v19, %v8371_v46  ;;  %v1054_v22 = vpop.f32.mrb[27].mxu1 }
 0x36f   :  { %v1055_v24 = vadd.f32 %v1054_v22, %v8374_v48  ;;  %1441 = vmatprep.mubr.f32.mxu0 %v1190_v20 }
 0x370   :  { %1442 = vmatmul.mubr.f32.gmra.mrb[88].mxu0 %v1189_v23  ;;  %v1191_v29 = vmax.f32 %v1053_v21, 0.0 }
 0x371   :  { %v1058_v25 = vpop.f32.mrb[28].mxu1  ;;  %v1192_v26 = vmax.f32 %v1055_v24, 0.0 }
 0x372   :  { %v1059_v27 = vadd.f32 %v1058_v25, %v8371_v46  ;;  %v1060_v28 = vpop.f32.mrb[29].mxu1 }
 0x373   :  { %v1061_v56 = vadd.f32 %v1060_v28, %v8374_v48  ;;  %1447 = vmatprep.mubr.f32.mxu0 %v1192_v26 }
 0x374   :  { %1448 = vmatmul.mubr.f32.gmra.mrb[90].mxu0 %v1191_v29  ;;  %v1193_v33 = vmax.f32 %v1059_v27, 0.0 }
 0x375   :  { %v1064_v30 = vpop.f32.mrb[30].mxu1  ;;  %v1194_v31 = vmax.f32 %v1061_v56, 0.0 }
 0x376   :  { %v1065_v32 = vadd.f32 %v1064_v30, %v8371_v46  ;;  %v1066_v57 = vpop.f32.mrb[31].mxu1 }
 0x377   :  { %v1067_v34 = vadd.f32 %v1066_v57, %v8374_v48  ;;  %1453 = vmatprep.mubr.f32.mxu0 %v1194_v31 }
 0x378   :  { %1454 = vmatmul.mubr.f32.gmra.mrb[92].mxu0 %v1193_v33  ;;  %v1195_v39 = vmax.f32 %v1065_v32, 0.0 }
 0x379   :  { %v1070_v35 = vpop.f32.mrb[32].mxu1  ;;  %v1196_v36 = vmax.f32 %v1067_v34, 0.0 }
 0x37a   :  { %v1071_v37 = vadd.f32 %v1070_v35, %v8371_v46  ;;  %v1072_v38 = vpop.f32.mrb[33].mxu1 }
 0x37b   :  { %v1073_v40 = vadd.f32 %v1072_v38, %v8374_v48  ;;  %1459 = vmatprep.mubr.f32.mxu0 %v1196_v36 }
 0x37c   :  { %1460 = vmatmul.mubr.f32.gmra.mrb[94].mxu0 %v1195_v39  ;;  %v1197_v45 = vmax.f32 %v1071_v37, 0.0 }
 0x37d   :  { %v1076_v41 = vpop.f32.mrb[34].mxu1  ;;  %v1198_v42 = vmax.f32 %v1073_v40, 0.0 }
 0x37e   :  { %v1077_v43 = vadd.f32 %v1076_v41, %v8371_v46  ;;  %v1078_v44 = vpop.f32.mrb[35].mxu1 }
 0x37f   :  { %v1079_v49 = vadd.f32 %v1078_v44, %v8374_v48  ;;  %1465 = vmatprep.mubr.f32.mxu0 %v1198_v42 }
 0x380   :  { %1466 = vmatmul.mubr.f32.gmra.mrb[96].mxu0 %v1197_v45  ;;  %v1199_v55 = vmax.f32 %v1077_v43, 0.0 }
 0x381   :  { %v1082_v50 = vpop.f32.mrb[36].mxu1  ;;  %v1200_v52 = vmax.f32 %v1079_v49, 0.0 }
 0x382   :  { %v1083_v53 = vadd.f32 %v1082_v50, %v8371_v46  ;;  %v1084_v54 = vpop.f32.mrb[37].mxu1 }
 0x383   :  { %v1085_v58 = vadd.f32 %v1084_v54, %v8374_v48  ;;  %1471 = vmatprep.mubr.f32.mxu0 %v1200_v52 }
 0x384   :  { %1472 = vmatmul.mubr.f32.gmra.mrb[98].mxu0 %v1199_v55  ;;  %v1201_v63 = vmax.f32 %v1083_v53, 0.0 }
 0x385   :  { %v1088_v59 = vpop.f32.mrb[38].mxu1  ;;  %v1202_v60 = vmax.f32 %v1085_v58, 0.0 }
 0x386   :  { %v1089_v61 = vadd.f32 %v1088_v59, %v8371_v46  ;;  %v1090_v62 = vpop.f32.mrb[39].mxu1 }
 0x387   :  { %v1091_v1 = vadd.f32 %v1090_v62, %v8374_v48  ;;  %1477 = vmatprep.mubr.f32.mxu0 %v1202_v60 }
 0x388   :  { %1478 = vmatmul.mubr.f32.gmra.mrb[100].mxu0 %v1201_v63  ;;  %v1203_v6 = vmax.f32 %v1089_v61, 0.0 }
 0x389   :  { %v1094_v2 = vpop.f32.mrb[40].mxu1  ;;  %v1204_v3 = vmax.f32 %v1091_v1, 0.0 }
 0x38a   :  { %v1095_v4 = vadd.f32 %v1094_v2, %v8371_v46  ;;  %v1096_v5 = vpop.f32.mrb[41].mxu1 }
 0x38b   :  { %v1097_v7 = vadd.f32 %v1096_v5, %v8374_v48  ;;  %1483 = vmatprep.mubr.f32.mxu0 %v1204_v3 }
 0x38c   :  { %1484 = vmatmul.mubr.f32.gmra.mrb[102].mxu0 %v1203_v6  ;;  %v1205_v12 = vmax.f32 %v1095_v4, 0.0 }
 0x38d   :  { %v1100_v8 = vpop.f32.mrb[42].mxu1  ;;  %v1206_v9 = vmax.f32 %v1097_v7, 0.0 }
 0x38e   :  { %v1101_v10 = vadd.f32 %v1100_v8, %v8371_v46  ;;  %v1102_v11 = vpop.f32.mrb[43].mxu1 }
 0x38f   :  { %v1103_v13 = vadd.f32 %v1102_v11, %v8374_v48  ;;  %1489 = vmatprep.mubr.f32.mxu0 %v1206_v9 }
 0x390   :  { %1490 = vmatmul.mubr.f32.gmra.mrb[104].mxu0 %v1205_v12  ;;  %v1207_v18 = vmax.f32 %v1101_v10, 0.0 }
 0x391   :  { %v1106_v14 = vpop.f32.mrb[44].mxu1  ;;  %v1208_v15 = vmax.f32 %v1103_v13, 0.0 }
 0x392   :  { %v1107_v16 = vadd.f32 %v1106_v14, %v8371_v46  ;;  %v1108_v17 = vpop.f32.mrb[45].mxu1 }
 0x393   :  { %v1109_v19 = vadd.f32 %v1108_v17, %v8374_v48  ;;  %1495 = vmatprep.mubr.f32.mxu0 %v1208_v15  ;;  %v2040_v17 = vld [vmem:[#allocation11 + $0x8] sm:$0xff] }
 0x394   :  { %1496 = vmatmul.mubr.f32.gmra.mrb[106].mxu0 %v1207_v18  ;;  %v1209_v24 = vmax.f32 %v1107_v16, 0.0  ;;  %v2042_v18 = vld [vmem:[#allocation11 + $0x18] sm:$0xff] }
 0x395   :  { %v1112_v20 = vpop.f32.mrb[46].mxu1  ;;  %v1210_v21 = vmax.f32 %v1109_v19, 0.0  ;;  %v6320_v19 = vpack.c.bf16 %v2042_v18, %v2040_v17 }
 0x396   :  { %v1113_v22 = vadd.f32 %v1112_v20, %v8371_v46  ;;  %v1114_v23 = vpop.f32.mrb[47].mxu1  ;;  %v2039_v20 = vld [vmem:[#allocation11] sm:$0xff] }
 0x397   :  { %v1115_v25 = vadd.f32 %v1114_v23, %v8374_v48  ;;  %1501 = vmatprep.mubr.f32.mxu0 %v1210_v21  ;;  %v2041_v21 = vld [vmem:[#allocation11 + $0x10] sm:$0xff]  ;;  %6321 = vmatprep.subr.bf16.mxu0 %v6320_v19  ;;  %v2044_v23 = vld [vmem:[#allocation11 + $0x28] sm:$0xff]  ;;  %v2067_v19 = vld [vmem:[#allocation11 + $0xe0] sm:$0xff] }
 0x398   :  { %1502 = vmatmul.mubr.f32.gmra.mrb[108].mxu0 %v1209_v24  ;;  %v1211_v56 = vmax.f32 %v1113_v22, 0.0  ;;  %v6322_v22 = vpack.c.bf16 %v2041_v21, %v2039_v20  ;;  %v2069_v20 = vld [vmem:[#allocation11 + $0xf0] sm:$0xff] }
 0x399   :  { %v1118_v26 = vpop.f32.mrb[48].mxu1  ;;  %v1212_v27 = vmax.f32 %v1115_v25, 0.0  ;;  %v2043_v25 = vld [vmem:[#allocation11 + $0x20] sm:$0xff] }
 0x39a   :  { %v1119_v28 = vadd.f32 %v1118_v26, %v8371_v46  ;;  %v1120_v29 = vpop.f32.mrb[49].mxu1  ;;  %6323 = vmatpush1.bf16.msra.mxu0 %v6322_v22  ;;  %v2045_v26 = vld [vmem:[#allocation11 + $0x30] sm:$0xff]  ;;  %v2072_v22 = vld [vmem:[#allocation11 + $0x108] sm:$0xff] }
 0x39b   :  { %v1121_v30 = vadd.f32 %v1120_v29, %v8374_v48  ;;  %1507 = vmatprep.mubr.f32.mxu0 %v1212_v27  ;;  %v2048_v27 = vld [vmem:[#allocation11 + $0x48] sm:$0xff] }
 0x39c   :  { %1508 = vmatmul.mubr.f32.gmra.mrb[110].mxu0 %v1211_v56  ;;  %v1213_v34 = vmax.f32 %v1119_v28, 0.0  ;;  %v2050_v28 = vld [vmem:[#allocation11 + $0x58] sm:$0xff]  ;;  %v2047_v56 = vld [vmem:[#allocation11 + $0x40] sm:$0xff] }
 0x39d   :  { %v1124_v31 = vpop.f32.mrb[50].mxu1  ;;  %v1214_v32 = vmax.f32 %v1121_v30, 0.0  ;;  %v6328_v29 = vpack.c.bf16 %v2050_v28, %v2048_v27  ;;  %v2049_v30 = vld [vmem:[#allocation11 + $0x50] sm:$0xff] }
 0x39e   :  { %v1125_v57 = vadd.f32 %v1124_v31, %v8371_v46  ;;  %v1126_v33 = vpop.f32.mrb[51].mxu1  ;;  %v6330_v31 = vpack.c.bf16 %v2049_v30, %v2047_v56  ;;  %v2073_v56 = vld [vmem:[#allocation11 + $0x110] sm:$0xff] }
 0x39f   :  { %v1127_v35 = vadd.f32 %v1126_v33, %v8374_v48  ;;  %1513 = vmatprep.mubr.f32.mxu0 %v1214_v32  ;;  %v1293_v32 = vld [vmem:[%s9821_s9] sm:$0x3] }
 0x3a0   :  { %1514 = vmatmul.mubr.f32.gmra.mrb[112].mxu0 %v1213_v34  ;;  %v1215_v40 = vmax.f32 %v1125_v57, 0.0  ;;  %v2052_v57 = vld [vmem:[#allocation11 + $0x68] sm:$0xff]  ;;  %v2054_v33 = vld [vmem:[#allocation11 + $0x78] sm:$0xff] }
 0x3a1   :  { %v1130_v36 = vpop.f32.mrb[52].mxu1  ;;  %v1216_v37 = vmax.f32 %v1127_v35, 0.0  ;;  %v6332_v34 = vpack.c.bf16 %v2054_v33, %v2052_v57  ;;  %v2051_v35 = vld [vmem:[#allocation11 + $0x60] sm:$0xff] }
 0x3a2   :  { %v1131_v38 = vadd.f32 %v1130_v36, %v8371_v46  ;;  %v1132_v39 = vpop.f32.mrb[53].mxu1  ;;  %v2053_v36 = vld [vmem:[#allocation11 + $0x70] sm:$0xff] }
 0x3a3   :  { %v1133_v41 = vadd.f32 %v1132_v39, %v8374_v48  ;;  %1519 = vmatprep.mubr.f32.mxu0 %v1216_v37  ;;  %v8444_v37 = vrot.slane %v1293_v32, %v8290_v47  ;;  %v8447_v39 = vrot.slane %v1293_v32, %v8295_v51  ;;  %v2078_v32 = vld [vmem:[#allocation11 + $0x138] sm:$0xff] }
 0x3a4   :  { %1520 = vmatmul.mubr.f32.gmra.mrb[114].mxu0 %v1215_v40  ;;  %v1217_v49 = vmax.f32 %v1131_v38, 0.0  ;;  %v6334_v38 = vpack.c.bf16 %v2053_v36, %v2051_v35 }
 0x3a5   :  { %v1136_v42 = vpop.f32.mrb[54].mxu1  ;;  %v1218_v43 = vmax.f32 %v1133_v41, 0.0  ;;  %v2056_v41 = vld [vmem:[#allocation11 + $0x88] sm:$0xff] }
 0x3a6   :  { %v1137_v44 = vadd.f32 %v1136_v42, %v8371_v46  ;;  %v1138_v45 = vpop.f32.mrb[55].mxu1  ;;  %v2058_v42 = vld [vmem:[#allocation11 + $0x98] sm:$0xff] }
 0x3a7   :  { %v1139_v50 = vadd.f32 %v1138_v45, %v8374_v48  ;;  %1525 = vmatprep.mubr.f32.mxu0 %v1218_v43  ;;  %v2055_v43 = vld [vmem:[#allocation11 + $0x80] sm:$0xff] }
 0x3a8   :  { %1526 = vmatmul.mubr.f32.gmra.mrb[116].mxu0 %v1217_v49  ;;  %v1219_v58 = vmax.f32 %v1137_v44, 0.0  ;;  %v6336_v49 = vpack.c.bf16 %v2058_v42, %v2056_v41  ;;  %v2075_v41 = vld [vmem:[#allocation11 + $0x120] sm:$0xff]  ;;  %v2077_v42 = vld [vmem:[#allocation11 + $0x130] sm:$0xff] }
 0x3a9   :  { %v1142_v52 = vpop.f32.mrb[56].mxu1  ;;  %v1220_v53 = vmax.f32 %v1139_v50, 0.0  ;;  %v2057_v50 = vld [vmem:[#allocation11 + $0x90] sm:$0xff] }
 0x3aa   :  { %v1143_v54 = vadd.f32 %v1142_v52, %v8371_v46  ;;  %v1144_v55 = vpop.f32.mrb[57].mxu1 }
 0x3ab   :  { %v1145_v59 = vadd.f32 %v1144_v55, %v8374_v48  ;;  %1531 = vmatprep.mubr.f32.mxu0 %v1220_v53  ;;  %v6338_v53 = vpack.c.bf16 %v2057_v50, %v2055_v43  ;;  %v2062_v55 = vld [vmem:[#allocation11 + $0xb8] sm:$0xff] }
 0x3ac   :  { %1532 = vmatmul.mubr.f32.gmra.mrb[118].mxu0 %v1219_v58  ;;  %v1221_v1 = vmax.f32 %v1143_v54, 0.0  ;;  %v2060_v54 = vld [vmem:[#allocation11 + $0xa8] sm:$0xff]  ;;  %v2059_v58 = vld [vmem:[#allocation11 + $0xa0] sm:$0xff] }
 0x3ad   :  { %v1148_v60 = vpop.f32.mrb[58].mxu1  ;;  %v1222_v61 = vmax.f32 %v1145_v59, 0.0 }
 0x3ae   :  { %v1149_v62 = vadd.f32 %v1148_v60, %v8371_v46  ;;  %v1150_v63 = vpop.f32.mrb[59].mxu1 }
 0x3af   :  { %v1151_v2 = vadd.f32 %v1150_v63, %v8374_v48  ;;  %1537 = vmatprep.mubr.f32.mxu0 %v1222_v61  ;;  %v6340_v61 = vpack.c.bf16 %v2062_v55, %v2060_v54  ;;  %v2064_v63 = vld [vmem:[#allocation11 + $0xc8] sm:$0xff] }
 0x3b0   :  { %1538 = vmatmul.mubr.f32.gmra.mrb[120].mxu0 %v1221_v1  ;;  %v1223_v7 = vmax.f32 %v1149_v62, 0.0  ;;  %v2061_v62 = vld [vmem:[#allocation11 + $0xb0] sm:$0xff]  ;;  %v2066_v1 = vld [vmem:[#allocation11 + $0xd8] sm:$0xff] }
 0x3b1   :  { %v1154_v3 = vpop.f32.mrb[60].mxu1  ;;  %v1224_v4 = vmax.f32 %v1151_v2, 0.0 }
 0x3b2   :  { %v1155_v5 = vadd.f32 %v1154_v3, %v8371_v46  ;;  %v1156_v6 = vpop.f32.mrb[61].mxu1 }
 0x3b3   :  { %v1157_v8 = vadd.f32 %v1156_v6, %v8374_v48  ;;  %1543 = vmatprep.mubr.f32.mxu0 %v1224_v4  ;;  %v6344_v6 = vpack.c.bf16 %v2066_v1, %v2064_v63  ;;  %v2086_v63 = vld [vmem:[#allocation11 + $0x178] sm:$0xff] }
 0x3b4   :  { %1544 = vmatmul.mubr.f32.gmra.mrb[122].mxu0 %v1223_v7  ;;  %v1225_v13 = vmax.f32 %v1155_v5, 0.0  ;;  %v6342_v5 = vpack.c.bf16 %v2061_v62, %v2059_v58  ;;  %v2063_v7 = vld [vmem:[#allocation11 + $0xc0] sm:$0xff]  ;;  %v2084_v62 = vld [vmem:[#allocation11 + $0x168] sm:$0xff] }
 0x3b5   :  { %v1160_v9 = vpop.f32.mrb[62].mxu1  ;;  %v1226_v10 = vmax.f32 %v1157_v8, 0.0  ;;  %v2065_v8 = vld [vmem:[#allocation11 + $0xd0] sm:$0xff] }
 0x3b6   :  { %v1161_v11 = vadd.f32 %v1160_v9, %v8371_v46  ;;  %v1162_v12 = vpop.f32.mrb[63].mxu1  ;;  %v2046_v46 = vld [vmem:[#allocation11 + $0x38] sm:$0xff] }
 0x3b7   :  { %v1163_v14 = vadd.f32 %v1162_v12, %v8374_v48  ;;  %1549 = vmatprep.mubr.f32.mxu0 %v1226_v10  ;;  %v6324_v24 = vpack.c.bf16 %v2046_v46, %v2044_v23  ;;  %v6326_v48 = vpack.c.bf16 %v2045_v26, %v2043_v25  ;;  %v2068_v10 = vld [vmem:[#allocation11 + $0xe8] sm:$0xff]  ;;  %v2074_v23 = vld [vmem:[#allocation11 + $0x118] sm:$0xff]  ;;  %v6350_v25 = vpack.c.bf16 %v2069_v20, %v2067_v19  ;;  %v2087_v20 = vld [vmem:[#allocation11 + $0x180] sm:$0xff] }
 0x3b8   :  { %1550 = vmatmul.mubr.f32.gmra.mrb[124].mxu0 %v1225_v13  ;;  %v1227_v16 = vmax.f32 %v1161_v11, 0.0  ;;  %v2070_v11 = vld [vmem:[#allocation11 + $0xf8] sm:$0xff]  ;;  %v6352_v28 = vpack.c.bf16 %v2074_v23, %v2072_v22  ;;  %v2092_v23 = vld [vmem:[#allocation11 + $0x1a8] sm:$0xff] }
 0x3b9   :  { %v1228_v15 = vmax.f32 %v1163_v14, 0.0  ;;  %6325 = vmatprep.subr.bf16.mxu0 %v6324_v24  ;;  %v6346_v14 = vpack.c.bf16 %v2065_v8, %v2063_v7  ;;  %v6348_v18 = vpack.c.bf16 %v2070_v11, %v2068_v10  ;;  %v6364_v7 = vpack.c.bf16 %v2086_v63, %v2084_v62  ;;  %v2083_v8 = vld [vmem:[#allocation11 + $0x160] sm:$0xff]  ;;  %v2088_v11 = vld [vmem:[#allocation11 + $0x188] sm:$0xff] }
 0x3ba   :  { %6327 = vmatpush1.bf16.msra.mxu0 %v6326_v48 }
 0x3bb   :  { %1555 = vmatprep.mubr.f32.mxu0 %v1228_v15  ;;  %6329 = vmatprep.subr.bf16.mxu0 %v6328_v29  ;;  %v2071_v29 = vld [vmem:[#allocation11 + $0x100] sm:$0xff] }
 0x3bc   :  { %1556 = vmatmul.mubr.f32.gmra.mrb[126].mxu0 %v1227_v16 }
 0x3be   :  { %6331 = vmatpush1.bf16.msra.mxu0 %v6330_v31  ;;  %v2076_v31 = vld [vmem:[#allocation11 + $0x128] sm:$0xff] }
 0x3bf   :  { %6333 = vmatprep.subr.bf16.mxu0 %v6332_v34  ;;  %v6354_v34 = vpack.c.bf16 %v2073_v56, %v2071_v29  ;;  %v2091_v56 = vld [vmem:[#allocation11 + $0x1a0] sm:$0xff] }
 0x3c2   :  { %6335 = vmatpush1.bf16.msra.mxu0 %v6334_v38 }
 0x3c3   :  { %6337 = vmatprep.subr.bf16.mxu0 %v6336_v49 }
 0x3c6   :  { %6339 = vmatpush1.bf16.msra.mxu0 %v6338_v53 }
 0x3c7   :  { %6341 = vmatprep.subr.bf16.mxu0 %v6340_v61 }
 0x3ca   :  { %6343 = vmatpush1.bf16.msra.mxu0 %v6342_v5 }
 0x3cb   :  { %6345 = vmatprep.subr.bf16.mxu0 %v6344_v6 }
 0x3ce   :  { %6347 = vmatpush1.bf16.msra.mxu0 %v6346_v14 }
 0x3cf   :  { %6349 = vmatprep.subr.bf16.mxu0 %v6348_v18 }
 0x3d2   :  { %6351 = vmatpush1.bf16.msra.mxu0 %v6350_v25 }
 0x3d3   :  { %6353 = vmatprep.subr.bf16.mxu0 %v6352_v28 }
 0x3d6   :  { %6355 = vmatpush1.bf16.msra.mxu0 %v6354_v34 }
 0x413   :  { %v1371_v40 = vpop.f32.mrb[64].mxu0 }
 0x414   :  { %v1372_v44 = vadd.f32 %v1371_v40, %v8444_v37  ;;  %v1373_v45 = vpop.f32.mrb[65].mxu0  ;;  %v6356_v40 = vpack.c.bf16 %v2078_v32, %v2076_v31  ;;  %v2096_v32 = vld [vmem:[#allocation11 + $0x1c8] sm:$0xff] }
 0x415   :  { %v1374_v52 = vadd.f32 %v1373_v45, %v8447_v39  ;;  %v2082_v45 = vld [vmem:[#allocation11 + $0x158] sm:$0xff] }
 0x416   :  { %v1562_v2 = vmax.f32 %v1372_v44, 0.0  ;;  %v2080_v44 = vld [vmem:[#allocation11 + $0x148] sm:$0xff]  ;;  %6357 = vmatprep.subr.bf16.mxu0 %v6356_v40 }
 0x417   :  { %v1377_v59 = vpop.f32.mrb[66].mxu0  ;;  %v1563_v60 = vmax.f32 %v1374_v52, 0.0  ;;  %v6358_v52 = vpack.c.bf16 %v2077_v42, %v2075_v41  ;;  %v6360_v58 = vpack.c.bf16 %v2082_v45, %v2080_v44  ;;  %v2095_v42 = vld [vmem:[#allocation11 + $0x1c0] sm:$0xff]  ;;  %v2100_v45 = vld [vmem:[#allocation11 + $0x1e8] sm:$0xff] }
 0x418   :  { %v1378_v3 = vadd.f32 %v1377_v59, %v8444_v37  ;;  %v1379_v4 = vpop.f32.mrb[67].mxu0  ;;  %v2079_v59 = vld [vmem:[#allocation11 + $0x140] sm:$0xff] }
 0x419   :  { %v1380_v9 = vadd.f32 %v1379_v4, %v8447_v39  ;;  %1766 = vmatprep.mubr.f32.mxu1 %v1563_v60  ;;  %v2081_v60 = vld [vmem:[#allocation11 + $0x150] sm:$0xff]  ;;  %6359 = vmatpush1.bf16.msra.mxu0 %v6358_v52 }
 0x41a   :  { %1767 = vmatmul.mubr.f32.vlgmr.msra.gmra.mrb[64].mxu1 %v1562_v2  ;;  %v1564_v17 = vmax.f32 %v1378_v3, 0.0  ;;  %v6362_v3 = vpack.c.bf16 %v2081_v60, %v2079_v59  ;;  %6361 = vmatprep.subr.bf16.mxu0 %v6360_v58  ;;  %v2099_v60 = vld [vmem:[#allocation11 + $0x1e0] sm:$0xff] }
 0x41b   :  { %v1383_v12 = vpop.f32.mrb[68].mxu0  ;;  %v1565_v13 = vmax.f32 %v1380_v9, 0.0  ;;  %v2085_v9 = vld [vmem:[#allocation11 + $0x170] sm:$0xff] }
 0x41c   :  { %v1384_v15 = vadd.f32 %v1383_v12, %v8444_v37  ;;  %v1385_v16 = vpop.f32.mrb[69].mxu0  ;;  %v2090_v12 = vld [vmem:[#allocation11 + $0x198] sm:$0xff] }
 0x41d   :  { %v1386_v21 = vadd.f32 %v1385_v16, %v8447_v39  ;;  %1772 = vmatprep.mubr.f32.mxu1 %v1565_v13  ;;  %6363 = vmatpush1.bf16.msra.mxu0 %v6362_v3  ;;  %v6368_v19 = vpack.c.bf16 %v2090_v12, %v2088_v11 }
 0x41e   :  { %1773 = vmatmul.mubr.f32.gmra.mrb[66].mxu1 %v1564_v17  ;;  %v1566_v27 = vmax.f32 %v1384_v15, 0.0  ;;  %v6366_v15 = vpack.c.bf16 %v2085_v9, %v2083_v8  ;;  %6365 = vmatprep.subr.bf16.mxu0 %v6364_v7 }
 0x41f   :  { %v1389_v46 = vpop.f32.mrb[70].mxu0  ;;  %v1567_v24 = vmax.f32 %v1386_v21, 0.0  ;;  %v2089_v21 = vld [vmem:[#allocation11 + $0x190] sm:$0xff] }
 0x420   :  { %v1390_v26 = vadd.f32 %v1389_v46, %v8444_v37  ;;  %v1391_v48 = vpop.f32.mrb[71].mxu0  ;;  %v2094_v46 = vld [vmem:[#allocation11 + $0x1b8] sm:$0xff] }
 0x421   :  { %v1392_v30 = vadd.f32 %v1391_v48, %v8447_v39  ;;  %1778 = vmatprep.mubr.f32.mxu1 %v1567_v24  ;;  %6367 = vmatpush1.bf16.msra.mxu0 %v6366_v15  ;;  %v6372_v29 = vpack.c.bf16 %v2094_v46, %v2092_v23 }
 0x422   :  { %1779 = vmatmul.mubr.f32.gmra.mrb[68].mxu1 %v1566_v27  ;;  %v1568_v38 = vmax.f32 %v1390_v26, 0.0  ;;  %v6370_v26 = vpack.c.bf16 %v2089_v21, %v2087_v20  ;;  %6369 = vmatprep.subr.bf16.mxu0 %v6368_v19 }
 0x423   :  { %v1395_v57 = vpop.f32.mrb[72].mxu0  ;;  %v1569_v33 = vmax.f32 %v1392_v30, 0.0  ;;  %v2093_v30 = vld [vmem:[#allocation11 + $0x1b0] sm:$0xff] }
 0x424   :  { %v1396_v35 = vadd.f32 %v1395_v57, %v8444_v37  ;;  %v1397_v36 = vpop.f32.mrb[73].mxu0  ;;  %v2098_v57 = vld [vmem:[#allocation11 + $0x1d8] sm:$0xff] }
 0x425   :  { %v1398_v43 = vadd.f32 %v1397_v36, %v8447_v39  ;;  %1784 = vmatprep.mubr.f32.mxu1 %v1569_v33  ;;  %6371 = vmatpush1.bf16.msra.mxu0 %v6370_v26  ;;  %v6376_v41 = vpack.c.bf16 %v2098_v57, %v2096_v32 }
 0x426   :  { %1785 = vmatmul.mubr.f32.gmra.mrb[70].mxu1 %v1568_v38  ;;  %v1570_v55 = vmax.f32 %v1396_v35, 0.0  ;;  %v6374_v35 = vpack.c.bf16 %v2093_v30, %v2091_v56  ;;  %6373 = vmatprep.subr.bf16.mxu0 %v6372_v29 }
 0x427   :  { %v1401_v49 = vpop.f32.mrb[74].mxu0  ;;  %v1571_v50 = vmax.f32 %v1398_v43, 0.0  ;;  %v2097_v43 = vld [vmem:[#allocation11 + $0x1d0] sm:$0xff] }
 0x428   :  { %v1402_v53 = vadd.f32 %v1401_v49, %v8444_v37  ;;  %v1403_v54 = vpop.f32.mrb[75].mxu0  ;;  %v2102_v49 = vld [vmem:[#allocation11 + $0x1f8] sm:$0xff] }
 0x429   :  { %v1404_v61 = vadd.f32 %v1403_v54, %v8447_v39  ;;  %1790 = vmatprep.mubr.f32.mxu1 %v1571_v50  ;;  %6375 = vmatpush1.bf16.msra.mxu0 %v6374_v35  ;;  %v6380_v59 = vpack.c.bf16 %v2102_v49, %v2100_v45 }
 0x42a   :  { %1791 = vmatmul.mubr.f32.gmra.mrb[72].mxu1 %v1570_v55  ;;  %v1572_v6 = vmax.f32 %v1402_v53, 0.0  ;;  %v6378_v53 = vpack.c.bf16 %v2097_v43, %v2095_v42  ;;  %6377 = vmatprep.subr.bf16.mxu0 %v6376_v41 }
 0x42b   :  { %v1407_v1 = vpop.f32.mrb[76].mxu0  ;;  %v1573_v2 = vmax.f32 %v1404_v61, 0.0  ;;  %v2101_v61 = vld [vmem:[#allocation11 + $0x1f0] sm:$0xff] }
 0x42c   :  { %v1408_v4 = vadd.f32 %v1407_v1, %v8444_v37  ;;  %v1409_v5 = vpop.f32.mrb[77].mxu0 }
 0x42d   :  { %v1410_v10 = vadd.f32 %v1409_v5, %v8447_v39  ;;  %1796 = vmatprep.mubr.f32.mxu1 %v1573_v2  ;;  %6379 = vmatpush1.bf16.msra.mxu0 %v6378_v53  ;;  %v6382_v2 = vpack.c.bf16 %v2101_v61, %v2099_v60 }
 0x42e   :  { %1797 = vmatmul.mubr.f32.gmra.mrb[74].mxu1 %v1572_v6  ;;  %v1574_v18 = vmax.f32 %v1408_v4, 0.0  ;;  %6381 = vmatprep.subr.bf16.mxu0 %v6380_v59 }
 0x42f   :  { %v1413_v13 = vpop.f32.mrb[78].mxu0  ;;  %v1575_v14 = vmax.f32 %v1410_v10, 0.0 }
 0x430   :  { %v1414_v16 = vadd.f32 %v1413_v13, %v8444_v37  ;;  %v1415_v17 = vpop.f32.mrb[79].mxu0 }
 0x431   :  { %v1416_v22 = vadd.f32 %v1415_v17, %v8447_v39  ;;  %1802 = vmatprep.mubr.f32.mxu1 %v1575_v14  ;;  %6383 = vmatpush1.bf16.msra.mxu0 %v6382_v2 }
 0x432   :  { %1803 = vmatmul.mubr.f32.gmra.mrb[76].mxu1 %v1574_v18  ;;  %v1576_v28 = vmax.f32 %v1414_v16, 0.0 }
 0x433   :  { %v1419_v24 = vpop.f32.mrb[80].mxu0  ;;  %v1577_v25 = vmax.f32 %v1416_v22, 0.0 }
 0x434   :  { %v1420_v48 = vadd.f32 %v1419_v24, %v8444_v37  ;;  %v1421_v27 = vpop.f32.mrb[81].mxu0 }
 0x435   :  { %v1422_v31 = vadd.f32 %v1421_v27, %v8447_v39  ;;  %1808 = vmatprep.mubr.f32.mxu1 %v1577_v25 }
 0x436   :  { %1809 = vmatmul.mubr.f32.gmra.mrb[78].mxu1 %v1576_v28  ;;  %v1578_v40 = vmax.f32 %v1420_v48, 0.0 }
 0x437   :  { %v1425_v33 = vpop.f32.mrb[82].mxu0  ;;  %v1579_v34 = vmax.f32 %v1422_v31, 0.0 }
 0x438   :  { %v1426_v36 = vadd.f32 %v1425_v33, %v8444_v37  ;;  %v1427_v38 = vpop.f32.mrb[83].mxu0 }
 0x439   :  { %v1428_v44 = vadd.f32 %v1427_v38, %v8447_v39  ;;  %1814 = vmatprep.mubr.f32.mxu1 %v1579_v34 }
 0x43a   :  { %1815 = vmatmul.mubr.f32.gmra.mrb[80].mxu1 %v1578_v40  ;;  %v1580_v58 = vmax.f32 %v1426_v36, 0.0 }
 0x43b   :  { %v1431_v50 = vpop.f32.mrb[84].mxu0  ;;  %v1581_v52 = vmax.f32 %v1428_v44, 0.0 }
 0x43c   :  { %v1432_v54 = vadd.f32 %v1431_v50, %v8444_v37  ;;  %v1433_v55 = vpop.f32.mrb[85].mxu0 }
 0x43d   :  { %v1434_v62 = vadd.f32 %v1433_v55, %v8447_v39  ;;  %1820 = vmatprep.mubr.f32.mxu1 %v1581_v52 }
 0x43e   :  { %1821 = vmatmul.mubr.f32.gmra.mrb[82].mxu1 %v1580_v58  ;;  %v1582_v5 = vmax.f32 %v1432_v54, 0.0 }
 0x43f   :  { %v1437_v63 = vpop.f32.mrb[86].mxu0  ;;  %v1583_v1 = vmax.f32 %v1434_v62, 0.0 }
 0x440   :  { %v1438_v3 = vadd.f32 %v1437_v63, %v8444_v37  ;;  %v1439_v4 = vpop.f32.mrb[87].mxu0 }
 0x441   :  { %v1440_v6 = vadd.f32 %v1439_v4, %v8447_v39  ;;  %1826 = vmatprep.mubr.f32.mxu1 %v1583_v1 }
 0x442   :  { %1827 = vmatmul.mubr.f32.gmra.mrb[84].mxu1 %v1582_v5  ;;  %v1584_v11 = vmax.f32 %v1438_v3, 0.0 }
 0x443   :  { %v1443_v7 = vpop.f32.mrb[88].mxu0  ;;  %v1585_v8 = vmax.f32 %v1440_v6, 0.0 }
 0x444   :  { %v1444_v9 = vadd.f32 %v1443_v7, %v8444_v37  ;;  %v1445_v10 = vpop.f32.mrb[89].mxu0 }
 0x445   :  { %v1446_v12 = vadd.f32 %v1445_v10, %v8447_v39  ;;  %1832 = vmatprep.mubr.f32.mxu1 %v1585_v8 }
 0x446   :  { %1833 = vmatmul.mubr.f32.gmra.mrb[86].mxu1 %v1584_v11  ;;  %v1586_v17 = vmax.f32 %v1444_v9, 0.0 }
 0x447   :  { %v1449_v13 = vpop.f32.mrb[90].mxu0  ;;  %v1587_v14 = vmax.f32 %v1446_v12, 0.0 }
 0x448   :  { %v1450_v15 = vadd.f32 %v1449_v13, %v8444_v37  ;;  %v1451_v16 = vpop.f32.mrb[91].mxu0 }
 0x449   :  { %v1452_v18 = vadd.f32 %v1451_v16, %v8447_v39  ;;  %1838 = vmatprep.mubr.f32.mxu1 %v1587_v14 }
 0x44a   :  { %1839 = vmatmul.mubr.f32.gmra.mrb[88].mxu1 %v1586_v17  ;;  %v1588_v23 = vmax.f32 %v1450_v15, 0.0 }
 0x44b   :  { %v1455_v19 = vpop.f32.mrb[92].mxu0  ;;  %v1589_v20 = vmax.f32 %v1452_v18, 0.0 }
 0x44c   :  { %v1456_v21 = vadd.f32 %v1455_v19, %v8444_v37  ;;  %v1457_v22 = vpop.f32.mrb[93].mxu0 }
 0x44d   :  { %v1458_v46 = vadd.f32 %v1457_v22, %v8447_v39  ;;  %1844 = vmatprep.mubr.f32.mxu1 %v1589_v20  ;;  %v2024_v22 = vld [vmem:[#allocation10 + $0x8] sm:$0xff] }
 0x44e   :  { %1845 = vmatmul.mubr.f32.gmra.mrb[90].mxu1 %v1588_v23  ;;  %v1590_v27 = vmax.f32 %v1456_v21, 0.0  ;;  %v2026_v23 = vld [vmem:[#allocation10 + $0x18] sm:$0xff] }
 0x44f   :  { %v1461_v24 = vpop.f32.mrb[94].mxu0  ;;  %v1591_v25 = vmax.f32 %v1458_v46, 0.0 }
 0x450   :  { %v1462_v26 = vadd.f32 %v1461_v24, %v8444_v37  ;;  %v1463_v48 = vpop.f32.mrb[95].mxu0 }
 0x451   :  { %v1464_v28 = vadd.f32 %v1463_v48, %v8447_v39  ;;  %1850 = vmatprep.mubr.f32.mxu1 %v1591_v25 }
 0x452   :  { %1851 = vmatmul.mubr.f32.gmra.mrb[92].mxu1 %v1590_v27  ;;  %v1592_v32 = vmax.f32 %v1462_v26, 0.0  ;;  %v6384_v26 = vpack.c.bf16 %v2026_v23, %v2024_v22  ;;  %v2030_v22 = vld [vmem:[#allocation10 + $0x38] sm:$0xff] }
 0x453   :  { %v1467_v29 = vpop.f32.mrb[96].mxu0  ;;  %v1593_v56 = vmax.f32 %v1464_v28, 0.0 }
 0x454   :  { %v1468_v30 = vadd.f32 %v1467_v29, %v8444_v37  ;;  %v1469_v31 = vpop.f32.mrb[97].mxu0  ;;  %6385 = vmatprep.subr.bf16.mxu0 %v6384_v26 }
 0x455   :  { %v1470_v57 = vadd.f32 %v1469_v31, %v8447_v39  ;;  %1856 = vmatprep.mubr.f32.mxu1 %v1593_v56 }
 0x456   :  { %1857 = vmatmul.mubr.f32.gmra.mrb[94].mxu1 %v1592_v32  ;;  %v1594_v35 = vmax.f32 %v1468_v30, 0.0 }
 0x457   :  { %v1595_v33 = vmax.f32 %v1470_v57, 0.0  ;;  %v1473_v34 = vpop.f32.mrb[98].mxu0 }
 0x458   :  { %v1474_v36 = vadd.f32 %v1473_v34, %v8444_v37  ;;  %v1475_v38 = vpop.f32.mrb[99].mxu0 }
 0x459   :  { %v1476_v40 = vadd.f32 %v1475_v38, %v8447_v39  ;;  %1862 = vmatprep.mubr.f32.mxu1 %v1595_v33 }
 0x45a   :  { %1863 = vmatmul.mubr.f32.gmra.mrb[96].mxu1 %v1594_v35  ;;  %v1596_v43 = vmax.f32 %v1474_v36, 0.0 }
 0x45b   :  { %v1597_v41 = vmax.f32 %v1476_v40, 0.0  ;;  %v1479_v42 = vpop.f32.mrb[100].mxu0 }
 0x45c   :  { %v1480_v44 = vadd.f32 %v1479_v42, %v8444_v37  ;;  %v1481_v45 = vpop.f32.mrb[101].mxu0 }
 0x45d   :  { %v1482_v49 = vadd.f32 %v1481_v45, %v8447_v39  ;;  %1868 = vmatprep.mubr.f32.mxu1 %v1597_v41 }
 0x45e   :  { %1869 = vmatmul.mubr.f32.gmra.mrb[98].mxu1 %v1596_v43  ;;  %v1598_v53 = vmax.f32 %v1480_v44, 0.0 }
 0x45f   :  { %v1599_v50 = vmax.f32 %v1482_v49, 0.0  ;;  %v1485_v52 = vpop.f32.mrb[102].mxu0 }
 0x460   :  { %v1486_v54 = vadd.f32 %v1485_v52, %v8444_v37  ;;  %v1487_v55 = vpop.f32.mrb[103].mxu0 }
 0x461   :  { %v1488_v58 = vadd.f32 %v1487_v55, %v8447_v39  ;;  %1874 = vmatprep.mubr.f32.mxu1 %v1599_v50 }
 0x462   :  { %1875 = vmatmul.mubr.f32.gmra.mrb[100].mxu1 %v1598_v53  ;;  %v1600_v61 = vmax.f32 %v1486_v54, 0.0 }
 0x463   :  { %v1601_v59 = vmax.f32 %v1488_v58, 0.0  ;;  %v1491_v60 = vpop.f32.mrb[104].mxu0 }
 0x464   :  { %v1492_v62 = vadd.f32 %v1491_v60, %v8444_v37  ;;  %v1493_v63 = vpop.f32.mrb[105].mxu0 }
 0x465   :  { %v1494_v1 = vadd.f32 %v1493_v63, %v8447_v39  ;;  %1880 = vmatprep.mubr.f32.mxu1 %v1601_v59 }
 0x466   :  { %1881 = vmatmul.mubr.f32.gmra.mrb[102].mxu1 %v1600_v61  ;;  %v1602_v4 = vmax.f32 %v1492_v62, 0.0 }
 0x467   :  { %v1603_v2 = vmax.f32 %v1494_v1, 0.0  ;;  %v1497_v3 = vpop.f32.mrb[106].mxu0 }
 0x468   :  { %v1498_v5 = vadd.f32 %v1497_v3, %v8444_v37  ;;  %v1499_v6 = vpop.f32.mrb[107].mxu0 }
 0x469   :  { %v1500_v7 = vadd.f32 %v1499_v6, %v8447_v39  ;;  %1886 = vmatprep.mubr.f32.mxu1 %v1603_v2 }
 0x46a   :  { %1887 = vmatmul.mubr.f32.gmra.mrb[104].mxu1 %v1602_v4  ;;  %v1604_v10 = vmax.f32 %v1498_v5, 0.0 }
 0x46b   :  { %v1605_v8 = vmax.f32 %v1500_v7, 0.0  ;;  %v1503_v9 = vpop.f32.mrb[108].mxu0 }
 0x46c   :  { %v1504_v11 = vadd.f32 %v1503_v9, %v8444_v37  ;;  %v1505_v12 = vpop.f32.mrb[109].mxu0 }
 0x46d   :  { %v1506_v13 = vadd.f32 %v1505_v12, %v8447_v39  ;;  %1892 = vmatprep.mubr.f32.mxu1 %v1605_v8 }
 0x46e   :  { %1893 = vmatmul.mubr.f32.gmra.mrb[106].mxu1 %v1604_v10  ;;  %v1606_v16 = vmax.f32 %v1504_v11, 0.0 }
 0x46f   :  { %v1607_v14 = vmax.f32 %v1506_v13, 0.0  ;;  %v1509_v15 = vpop.f32.mrb[110].mxu0 }
 0x470   :  { %v1510_v17 = vadd.f32 %v1509_v15, %v8444_v37  ;;  %v1511_v18 = vpop.f32.mrb[111].mxu0 }
 0x471   :  { %v1512_v19 = vadd.f32 %v1511_v18, %v8447_v39  ;;  %1898 = vmatprep.mubr.f32.mxu1 %v1607_v14  ;;  %v1690_v14 = vld [vmem:[#allocation8] sm:$0x3] }
 0x472   :  { %1899 = vmatmul.mubr.f32.gmra.mrb[108].mxu1 %v1606_v16  ;;  %v1608_v46 = vmax.f32 %v1510_v17, 0.0  ;;  %v8514_v15 = vrot.slane %v1690_v14, %v8290_v47  ;;  %v8517_v16 = vrot.slane %v1690_v14, %v8295_v51 }
 0x473   :  { %v1609_v20 = vmax.f32 %v1512_v19, 0.0  ;;  %v1515_v21 = vpop.f32.mrb[112].mxu0  ;;  %v2023_v19 = vld [vmem:[#allocation10] sm:$0xff] }
 0x474   :  { %v1516_v24 = vadd.f32 %v1515_v21, %v8444_v37  ;;  %v1517_v25 = vpop.f32.mrb[113].mxu0  ;;  %v2028_v21 = vld [vmem:[#allocation10 + $0x28] sm:$0xff] }
 0x475   :  { %v1518_v48 = vadd.f32 %v1517_v25, %v8447_v39  ;;  %1904 = vmatprep.mubr.f32.mxu1 %v1609_v20  ;;  %v2025_v20 = vld [vmem:[#allocation10 + $0x10] sm:$0xff] }
 0x476   :  { %1905 = vmatmul.mubr.f32.gmra.mrb[110].mxu1 %v1608_v46  ;;  %v1610_v29 = vmax.f32 %v1516_v24, 0.0  ;;  %v6386_v24 = vpack.c.bf16 %v2025_v20, %v2023_v19 }
 0x477   :  { %v1611_v27 = vmax.f32 %v1518_v48, 0.0  ;;  %v1521_v28 = vpop.f32.mrb[114].mxu0 }
 0x478   :  { %v1522_v56 = vadd.f32 %v1521_v28, %v8444_v37  ;;  %v1523_v30 = vpop.f32.mrb[115].mxu0  ;;  %v2027_v28 = vld [vmem:[#allocation10 + $0x20] sm:$0xff] }
 0x479   :  { %v1524_v31 = vadd.f32 %v1523_v30, %v8447_v39  ;;  %1910 = vmatprep.mubr.f32.mxu1 %v1611_v27  ;;  %v6388_v27 = vpack.c.bf16 %v2030_v22, %v2028_v21  ;;  %v2032_v30 = vld [vmem:[#allocation10 + $0x48] sm:$0xff] }
 0x47a   :  { %1911 = vmatmul.mubr.f32.gmra.mrb[112].mxu1 %v1610_v29  ;;  %v1612_v33 = vmax.f32 %v1522_v56, 0.0  ;;  %v2029_v29 = vld [vmem:[#allocation10 + $0x30] sm:$0xff] }
 0x47b   :  { %v1613_v32 = vmax.f32 %v1524_v31, 0.0  ;;  %v1527_v57 = vpop.f32.mrb[116].mxu0  ;;  %v2034_v31 = vld [vmem:[#allocation10 + $0x58] sm:$0xff] }
 0x47c   :  { %v1528_v34 = vadd.f32 %v1527_v57, %v8444_v37  ;;  %v1529_v35 = vpop.f32.mrb[117].mxu0 }
 0x47d   :  { %v1530_v36 = vadd.f32 %v1529_v35, %v8447_v39  ;;  %1916 = vmatprep.mubr.f32.mxu1 %v1613_v32 }
 0x47e   :  { %1917 = vmatmul.mubr.f32.gmra.mrb[114].mxu1 %v1612_v33  ;;  %v1614_v41 = vmax.f32 %v1528_v34, 0.0  ;;  %v6390_v33 = vpack.c.bf16 %v2029_v29, %v2027_v28 }
 0x47f   :  { %v1615_v38 = vmax.f32 %v1530_v36, 0.0  ;;  %v1533_v40 = vpop.f32.mrb[118].mxu0 }
 0x480   :  { %v1534_v42 = vadd.f32 %v1533_v40, %v8444_v37  ;;  %v1535_v43 = vpop.f32.mrb[119].mxu0  ;;  %v2031_v40 = vld [vmem:[#allocation10 + $0x40] sm:$0xff] }
 0x481   :  { %v1536_v44 = vadd.f32 %v1535_v43, %v8447_v39  ;;  %1922 = vmatprep.mubr.f32.mxu1 %v1615_v38  ;;  %v6392_v38 = vpack.c.bf16 %v2034_v31, %v2032_v30  ;;  %v2036_v43 = vld [vmem:[#allocation10 + $0x68] sm:$0xff] }
 0x482   :  { %1923 = vmatmul.mubr.f32.gmra.mrb[116].mxu1 %v1614_v41  ;;  %v1616_v50 = vmax.f32 %v1534_v42, 0.0  ;;  %v2033_v41 = vld [vmem:[#allocation10 + $0x50] sm:$0xff] }
 0x483   :  { %v1617_v45 = vmax.f32 %v1536_v44, 0.0  ;;  %v1539_v49 = vpop.f32.mrb[120].mxu0  ;;  %v2038_v44 = vld [vmem:[#allocation10 + $0x78] sm:$0xff] }
 0x484   :  { %v1540_v52 = vadd.f32 %v1539_v49, %v8444_v37  ;;  %v1541_v53 = vpop.f32.mrb[121].mxu0 }
 0x485   :  { %v1542_v54 = vadd.f32 %v1541_v53, %v8447_v39  ;;  %1928 = vmatprep.mubr.f32.mxu1 %v1617_v45 }
 0x486   :  { %1929 = vmatmul.mubr.f32.gmra.mrb[118].mxu1 %v1616_v50  ;;  %v1618_v59 = vmax.f32 %v1540_v52, 0.0  ;;  %v6394_v50 = vpack.c.bf16 %v2033_v41, %v2031_v40 }
 0x487   :  { %v1619_v55 = vmax.f32 %v1542_v54, 0.0  ;;  %v1545_v58 = vpop.f32.mrb[122].mxu0 }
 0x488   :  { %v1546_v60 = vadd.f32 %v1545_v58, %v8444_v37  ;;  %v1547_v61 = vpop.f32.mrb[123].mxu0  ;;  %v2035_v58 = vld [vmem:[#allocation10 + $0x60] sm:$0xff] }
 0x489   :  { %v1548_v62 = vadd.f32 %v1547_v61, %v8447_v39  ;;  %1934 = vmatprep.mubr.f32.mxu1 %v1619_v55  ;;  %v6396_v55 = vpack.c.bf16 %v2038_v44, %v2036_v43 }
 0x48a   :  { %1935 = vmatmul.mubr.f32.gmra.mrb[120].mxu1 %v1618_v59  ;;  %v1620_v2 = vmax.f32 %v1546_v60, 0.0  ;;  %v2037_v59 = vld [vmem:[#allocation10 + $0x70] sm:$0xff] }
 0x48b   :  { %v1621_v63 = vmax.f32 %v1548_v62, 0.0  ;;  %v1551_v1 = vpop.f32.mrb[124].mxu0 }
 0x48c   :  { %v1552_v3 = vadd.f32 %v1551_v1, %v8444_v37  ;;  %v1553_v4 = vpop.f32.mrb[125].mxu0 }
 0x48d   :  { %v1554_v5 = vadd.f32 %v1553_v4, %v8447_v39  ;;  %1940 = vmatprep.mubr.f32.mxu1 %v1621_v63  ;;  %v6398_v63 = vpack.c.bf16 %v2037_v59, %v2035_v58 }
 0x48e   :  { %1941 = vmatmul.mubr.f32.gmra.mrb[122].mxu1 %v1620_v2  ;;  %v1622_v8 = vmax.f32 %v1552_v3, 0.0 }
 0x48f   :  { %v1623_v6 = vmax.f32 %v1554_v5, 0.0  ;;  %v1557_v7 = vpop.f32.mrb[126].mxu0 }
 0x490   :  { %v1558_v9 = vadd.f32 %v1557_v7, %v8444_v37  ;;  %v1559_v10 = vpop.f32.mrb[127].mxu0 }
 0x491   :  { %v1560_v11 = vadd.f32 %v1559_v10, %v8447_v39  ;;  %1946 = vmatprep.mubr.f32.mxu1 %v1623_v6 }
 0x492   :  { %1947 = vmatmul.mubr.f32.gmra.mrb[124].mxu1 %v1622_v8  ;;  %v1624_v13 = vmax.f32 %v1558_v9, 0.0 }
 0x493   :  { %v1625_v12 = vmax.f32 %v1560_v11, 0.0 }
 0x495   :  { %1952 = vmatprep.mubr.f32.mxu1 %v1625_v12 }
 0x496   :  { %1953 = vmatmul.mubr.f32.gmra.mrb[126].mxu1 %v1624_v13 }
 0x4ed   :  { %v1768_v17 = vpop.f32.mrb[64].mxu1 }
 0x4ee   :  { %v1769_v18 = vadd.f32 %v1768_v17, %v8514_v15  ;;  %v1770_v37 = vpop.f32.mrb[65].mxu1 }
 0x4ef   :  { %v1771_v39 = vadd.f32 %v1770_v37, %v8517_v16 }
 0x4f0   :  { %v1959_v25 = vmax.f32 %v1769_v18, 0.0 }
 0x4f1   :  { %v1774_v23 = vpop.f32.mrb[66].mxu1  ;;  %v1960_v46 = vmax.f32 %v1771_v39, 0.0 }
 0x4f2   :  { %v1775_v26 = vadd.f32 %v1774_v23, %v8514_v15  ;;  %v1776_v48 = vpop.f32.mrb[67].mxu1 }
 0x4f3   :  { %v1777_v56 = vadd.f32 %v1776_v48, %v8517_v16  ;;  %2168 = vmatprep.mubr.f32.mxu0 %v1960_v46 }
 0x4f4   :  { %2169 = vmatmul.mubr.f32.vlgmr.msra.gmra.mrb[128].mxu0 %v1959_v25  ;;  %v1961_v36 = vmax.f32 %v1775_v26, 0.0 }
 0x4f5   :  { %6387 = vmatpush1.bf16.msra.mxu0 %v6386_v24  ;;  %v1780_v32 = vpop.f32.mrb[68].mxu1  ;;  %v1962_v57 = vmax.f32 %v1777_v56, 0.0 }
 0x4f6   :  { %v1781_v34 = vadd.f32 %v1780_v32, %v8514_v15  ;;  %v1782_v35 = vpop.f32.mrb[69].mxu1  ;;  %6389 = vmatprep.subr.bf16.mxu0 %v6388_v27 }
 0x4f7   :  { %v1783_v42 = vadd.f32 %v1782_v35, %v8517_v16  ;;  %2174 = vmatprep.mubr.f32.mxu0 %v1962_v57 }
 0x4f8   :  { %2175 = vmatmul.mubr.f32.gmra.mrb[130].mxu0 %v1961_v36  ;;  %v1963_v54 = vmax.f32 %v1781_v34, 0.0 }
 0x4f9   :  { %v1786_v45 = vpop.f32.mrb[70].mxu1  ;;  %v1964_v49 = vmax.f32 %v1783_v42, 0.0  ;;  %6391 = vmatpush1.bf16.msra.mxu0 %v6390_v33 }
 0x4fa   :  { %v1787_v52 = vadd.f32 %v1786_v45, %v8514_v15  ;;  %v1788_v53 = vpop.f32.mrb[71].mxu1  ;;  %6393 = vmatprep.subr.bf16.mxu0 %v6392_v38 }
 0x4fb   :  { %v1789_v60 = vadd.f32 %v1788_v53, %v8517_v16  ;;  %2180 = vmatprep.mubr.f32.mxu0 %v1964_v49 }
 0x4fc   :  { %2181 = vmatmul.mubr.f32.gmra.mrb[132].mxu0 %v1963_v54  ;;  %v1965_v3 = vmax.f32 %v1787_v52, 0.0 }
 0x4fd   :  { %v1792_v61 = vpop.f32.mrb[72].mxu1  ;;  %v1966_v62 = vmax.f32 %v1789_v60, 0.0  ;;  %6395 = vmatpush1.bf16.msra.mxu0 %v6394_v50 }
 0x4fe   :  { %v1793_v1 = vadd.f32 %v1792_v61, %v8514_v15  ;;  %v1794_v2 = vpop.f32.mrb[73].mxu1  ;;  %6397 = vmatprep.subr.bf16.mxu0 %v6396_v55 }
 0x4ff   :  { %v1795_v4 = vadd.f32 %v1794_v2, %v8517_v16  ;;  %2186 = vmatprep.mubr.f32.mxu0 %v1966_v62 }
 0x500   :  { %2187 = vmatmul.mubr.f32.gmra.mrb[134].mxu0 %v1965_v3  ;;  %v1967_v9 = vmax.f32 %v1793_v1, 0.0 }
 0x501   :  { %v1798_v5 = vpop.f32.mrb[74].mxu1  ;;  %v1968_v6 = vmax.f32 %v1795_v4, 0.0  ;;  %6399 = vmatpush1.bf16.msra.mxu0 %v6398_v63 }
 0x502   :  { %v1799_v7 = vadd.f32 %v1798_v5, %v8514_v15  ;;  %v1800_v8 = vpop.f32.mrb[75].mxu1 }
 0x503   :  { %v1801_v10 = vadd.f32 %v1800_v8, %v8517_v16  ;;  %2192 = vmatprep.mubr.f32.mxu0 %v1968_v6 }
 0x504   :  { %2193 = vmatmul.mubr.f32.gmra.mrb[136].mxu0 %v1967_v9  ;;  %v1969_v17 = vmax.f32 %v1799_v7, 0.0 }
 0x505   :  { %v1804_v11 = vpop.f32.mrb[76].mxu1  ;;  %v1970_v12 = vmax.f32 %v1801_v10, 0.0 }
 0x506   :  { %v1805_v13 = vadd.f32 %v1804_v11, %v8514_v15  ;;  %v1806_v14 = vpop.f32.mrb[77].mxu1 }
 0x507   :  { %v1807_v18 = vadd.f32 %v1806_v14, %v8517_v16  ;;  %2198 = vmatprep.mubr.f32.mxu0 %v1970_v12 }
 0x508   :  { %2199 = vmatmul.mubr.f32.gmra.mrb[138].mxu0 %v1969_v17  ;;  %v1971_v21 = vmax.f32 %v1805_v13, 0.0 }
 0x509   :  { %v1810_v37 = vpop.f32.mrb[78].mxu1  ;;  %v1972_v19 = vmax.f32 %v1807_v18, 0.0 }
 0x50a   :  { %v1811_v20 = vadd.f32 %v1810_v37, %v8514_v15  ;;  %v1812_v39 = vpop.f32.mrb[79].mxu1 }
 0x50b   :  { %v1813_v22 = vadd.f32 %v1812_v39, %v8517_v16  ;;  %2204 = vmatprep.mubr.f32.mxu0 %v1972_v19 }
 0x50c   :  { %2205 = vmatmul.mubr.f32.gmra.mrb[140].mxu0 %v1971_v21  ;;  %v1973_v26 = vmax.f32 %v1811_v20, 0.0 }
 0x50d   :  { %v1816_v23 = vpop.f32.mrb[80].mxu1  ;;  %v1974_v46 = vmax.f32 %v1813_v22, 0.0 }
 0x50e   :  { %v1817_v24 = vadd.f32 %v1816_v23, %v8514_v15  ;;  %v1818_v25 = vpop.f32.mrb[81].mxu1 }
 0x50f   :  { %v1819_v48 = vadd.f32 %v1818_v25, %v8517_v16  ;;  %2210 = vmatprep.mubr.f32.mxu0 %v1974_v46 }
 0x510   :  { %2211 = vmatmul.mubr.f32.gmra.mrb[142].mxu0 %v1973_v26  ;;  %v1975_v30 = vmax.f32 %v1817_v24, 0.0 }
 0x511   :  { %v1822_v27 = vpop.f32.mrb[82].mxu1  ;;  %v1976_v28 = vmax.f32 %v1819_v48, 0.0 }
 0x512   :  { %v1823_v29 = vadd.f32 %v1822_v27, %v8514_v15  ;;  %v1824_v56 = vpop.f32.mrb[83].mxu1 }
 0x513   :  { %v1825_v31 = vadd.f32 %v1824_v56, %v8517_v16  ;;  %2216 = vmatprep.mubr.f32.mxu0 %v1976_v28 }
 0x514   :  { %2217 = vmatmul.mubr.f32.gmra.mrb[144].mxu0 %v1975_v30  ;;  %v1977_v35 = vmax.f32 %v1823_v29, 0.0 }
 0x515   :  { %v1828_v32 = vpop.f32.mrb[84].mxu1  ;;  %v1978_v57 = vmax.f32 %v1825_v31, 0.0 }
 0x516   :  { %v1829_v33 = vadd.f32 %v1828_v32, %v8514_v15  ;;  %v1830_v34 = vpop.f32.mrb[85].mxu1 }
 0x517   :  { %v1831_v36 = vadd.f32 %v1830_v34, %v8517_v16  ;;  %2222 = vmatprep.mubr.f32.mxu0 %v1978_v57 }
 0x518   :  { %2223 = vmatmul.mubr.f32.gmra.mrb[146].mxu0 %v1977_v35  ;;  %v1979_v43 = vmax.f32 %v1829_v33, 0.0 }
 0x519   :  { %v1834_v38 = vpop.f32.mrb[86].mxu1  ;;  %v1980_v40 = vmax.f32 %v1831_v36, 0.0 }
 0x51a   :  { %v1835_v41 = vadd.f32 %v1834_v38, %v8514_v15  ;;  %v1836_v42 = vpop.f32.mrb[87].mxu1 }
 0x51b   :  { %v1837_v44 = vadd.f32 %v1836_v42, %v8517_v16  ;;  %2228 = vmatprep.mubr.f32.mxu0 %v1980_v40 }
 0x51c   :  { %2229 = vmatmul.mubr.f32.gmra.mrb[148].mxu0 %v1979_v43  ;;  %v1981_v53 = vmax.f32 %v1835_v41, 0.0 }
 0x51d   :  { %v1840_v45 = vpop.f32.mrb[88].mxu1  ;;  %v1982_v49 = vmax.f32 %v1837_v44, 0.0 }
 0x51e   :  { %v1841_v50 = vadd.f32 %v1840_v45, %v8514_v15  ;;  %v1842_v52 = vpop.f32.mrb[89].mxu1 }
 0x51f   :  { %v1843_v54 = vadd.f32 %v1842_v52, %v8517_v16  ;;  %2234 = vmatprep.mubr.f32.mxu0 %v1982_v49 }
 0x520   :  { %2235 = vmatmul.mubr.f32.gmra.mrb[150].mxu0 %v1981_v53  ;;  %v1983_v61 = vmax.f32 %v1841_v50, 0.0 }
 0x521   :  { %v1846_v55 = vpop.f32.mrb[90].mxu1  ;;  %v1984_v58 = vmax.f32 %v1843_v54, 0.0 }
 0x522   :  { %v1847_v59 = vadd.f32 %v1846_v55, %v8514_v15  ;;  %v1848_v60 = vpop.f32.mrb[91].mxu1 }
 0x523   :  { %v1849_v62 = vadd.f32 %v1848_v60, %v8517_v16  ;;  %2240 = vmatprep.mubr.f32.mxu0 %v1984_v58 }
 0x524   :  { %2241 = vmatmul.mubr.f32.gmra.mrb[152].mxu0 %v1983_v61  ;;  %v1985_v4 = vmax.f32 %v1847_v59, 0.0 }
 0x525   :  { %v1852_v63 = vpop.f32.mrb[92].mxu1  ;;  %v1986_v1 = vmax.f32 %v1849_v62, 0.0 }
 0x526   :  { %v1853_v2 = vadd.f32 %v1852_v63, %v8514_v15  ;;  %v1854_v3 = vpop.f32.mrb[93].mxu1 }
 0x527   :  { %v1855_v5 = vadd.f32 %v1854_v3, %v8517_v16  ;;  %2246 = vmatprep.mubr.f32.mxu0 %v1986_v1  ;;  %v2758_v1 = vld [vmem:[#allocation14 + $0x8] sm:$0xff]  ;;  %v2757_v3 = vld [vmem:[#allocation14] sm:$0xff] }
 0x528   :  { %2247 = vmatmul.mubr.f32.gmra.mrb[154].mxu0 %v1985_v4  ;;  %v1987_v10 = vmax.f32 %v1853_v2, 0.0  ;;  %v2760_v2 = vld [vmem:[#allocation14 + $0x18] sm:$0xff] }
 0x529   :  { %v1858_v6 = vpop.f32.mrb[94].mxu1  ;;  %v1988_v7 = vmax.f32 %v1855_v5, 0.0 }
 0x52a   :  { %v1859_v8 = vadd.f32 %v1858_v6, %v8514_v15  ;;  %v1860_v9 = vpop.f32.mrb[95].mxu1  ;;  %v6400_v6 = vpack.c.bf16 %v2760_v2, %v2758_v1  ;;  %v2771_v2 = vld [vmem:[#allocation14 + $0x70] sm:$0xff] }
 0x52b   :  { %v1861_v11 = vadd.f32 %v1860_v9, %v8517_v16  ;;  %2252 = vmatprep.mubr.f32.mxu0 %v1988_v7  ;;  %v2759_v7 = vld [vmem:[#allocation14 + $0x10] sm:$0xff] }
 0x52c   :  { %2253 = vmatmul.mubr.f32.gmra.mrb[156].mxu0 %v1987_v10  ;;  %v1989_v18 = vmax.f32 %v1859_v8, 0.0  ;;  %6401 = vmatprep.subr.bf16.mxu1 %v6400_v6 }
 0x52d   :  { %v1864_v12 = vpop.f32.mrb[96].mxu1  ;;  %v1990_v13 = vmax.f32 %v1861_v11, 0.0  ;;  %v6402_v11 = vpack.c.bf16 %v2759_v7, %v2757_v3 }
 0x52e   :  { %v1865_v14 = vadd.f32 %v1864_v12, %v8514_v15  ;;  %v1866_v17 = vpop.f32.mrb[97].mxu1 }
 0x52f   :  { %v1867_v37 = vadd.f32 %v1866_v17, %v8517_v16  ;;  %2258 = vmatprep.mubr.f32.mxu0 %v1990_v13  ;;  %6403 = vmatpush1.bf16.msra.mxu1 %v6402_v11 }
 0x530   :  { %2259 = vmatmul.mubr.f32.gmra.mrb[158].mxu0 %v1989_v18  ;;  %v1991_v22 = vmax.f32 %v1865_v14, 0.0 }
 0x531   :  { %v1870_v19 = vpop.f32.mrb[98].mxu1  ;;  %v1992_v20 = vmax.f32 %v1867_v37, 0.0 }
 0x532   :  { %v1871_v39 = vadd.f32 %v1870_v19, %v8514_v15  ;;  %v1872_v21 = vpop.f32.mrb[99].mxu1 }
 0x533   :  { %v1873_v23 = vadd.f32 %v1872_v21, %v8517_v16  ;;  %2264 = vmatprep.mubr.f32.mxu0 %v1992_v20  ;;  %v2762_v20 = vld [vmem:[#allocation14 + $0x28] sm:$0xff]  ;;  %v2761_v21 = vld [vmem:[#allocation14 + $0x20] sm:$0xff] }
 0x534   :  { %2265 = vmatmul.mubr.f32.gmra.mrb[160].mxu0 %v1991_v22  ;;  %v1993_v48 = vmax.f32 %v1871_v39, 0.0  ;;  %v2764_v39 = vld [vmem:[#allocation14 + $0x38] sm:$0xff] }
 0x535   :  { %v1876_v46 = vpop.f32.mrb[100].mxu1  ;;  %v1994_v24 = vmax.f32 %v1873_v23, 0.0 }
 0x536   :  { %v1877_v25 = vadd.f32 %v1876_v46, %v8514_v15  ;;  %v1878_v26 = vpop.f32.mrb[101].mxu1  ;;  %v6404_v46 = vpack.c.bf16 %v2764_v39, %v2762_v20  ;;  %v2775_v20 = vld [vmem:[#allocation14 + $0x90] sm:$0xff] }
 0x537   :  { %v1879_v27 = vadd.f32 %v1878_v26, %v8517_v16  ;;  %2270 = vmatprep.mubr.f32.mxu0 %v1994_v24  ;;  %v2763_v24 = vld [vmem:[#allocation14 + $0x30] sm:$0xff] }
 0x538   :  { %2271 = vmatmul.mubr.f32.gmra.mrb[162].mxu0 %v1993_v48  ;;  %v1995_v31 = vmax.f32 %v1877_v25, 0.0  ;;  %6405 = vmatprep.subr.bf16.mxu1 %v6404_v46  ;;  %v2779_v46 = vld [vmem:[#allocation14 + $0xb0] sm:$0xff] }
 0x539   :  { %v1882_v28 = vpop.f32.mrb[102].mxu1  ;;  %v1996_v29 = vmax.f32 %v1879_v27, 0.0  ;;  %v6406_v27 = vpack.c.bf16 %v2763_v24, %v2761_v21  ;;  %v2782_v24 = vld [vmem:[#allocation14 + $0xc8] sm:$0xff] }
 0x53a   :  { %v1883_v56 = vadd.f32 %v1882_v28, %v8514_v15  ;;  %v1884_v30 = vpop.f32.mrb[103].mxu1 }
 0x53b   :  { %v1885_v32 = vadd.f32 %v1884_v30, %v8517_v16  ;;  %2276 = vmatprep.mubr.f32.mxu0 %v1996_v29  ;;  %6407 = vmatpush1.bf16.msra.mxu1 %v6406_v27  ;;  %v2781_v27 = vld [vmem:[#allocation14 + $0xc0] sm:$0xff] }
 0x53c   :  { %2277 = vmatmul.mubr.f32.gmra.mrb[164].mxu0 %v1995_v31  ;;  %v1997_v36 = vmax.f32 %v1883_v56, 0.0 }
 0x53d   :  { %v1888_v57 = vpop.f32.mrb[104].mxu1  ;;  %v1998_v33 = vmax.f32 %v1885_v32, 0.0 }
 0x53e   :  { %v1889_v34 = vadd.f32 %v1888_v57, %v8514_v15  ;;  %v1890_v35 = vpop.f32.mrb[105].mxu1 }
 0x53f   :  { %v1891_v38 = vadd.f32 %v1890_v35, %v8517_v16  ;;  %2282 = vmatprep.mubr.f32.mxu0 %v1998_v33  ;;  %v2766_v33 = vld [vmem:[#allocation14 + $0x48] sm:$0xff]  ;;  %v2765_v35 = vld [vmem:[#allocation14 + $0x40] sm:$0xff] }
 0x540   :  { %2283 = vmatmul.mubr.f32.gmra.mrb[166].mxu0 %v1997_v36  ;;  %v1999_v44 = vmax.f32 %v1889_v34, 0.0  ;;  %v2768_v34 = vld [vmem:[#allocation14 + $0x58] sm:$0xff] }
 0x541   :  { %v1894_v40 = vpop.f32.mrb[106].mxu1  ;;  %v2000_v41 = vmax.f32 %v1891_v38, 0.0 }
 0x542   :  { %v1895_v42 = vadd.f32 %v1894_v40, %v8514_v15  ;;  %v1896_v43 = vpop.f32.mrb[107].mxu1  ;;  %v6408_v40 = vpack.c.bf16 %v2768_v34, %v2766_v33  ;;  %v2787_v33 = vld [vmem:[#allocation14 + $0xf0] sm:$0xff]  ;;  %v2790_v34 = vld [vmem:[#allocation14 + $0x108] sm:$0xff] }
 0x543   :  { %v1897_v45 = vadd.f32 %v1896_v43, %v8517_v16  ;;  %2288 = vmatprep.mubr.f32.mxu0 %v2000_v41  ;;  %v2767_v41 = vld [vmem:[#allocation14 + $0x50] sm:$0xff] }
 0x544   :  { %2289 = vmatmul.mubr.f32.gmra.mrb[168].mxu0 %v1999_v44  ;;  %v2001_v54 = vmax.f32 %v1895_v42, 0.0  ;;  %6409 = vmatprep.subr.bf16.mxu1 %v6408_v40 }
 0x545   :  { %v1900_v49 = vpop.f32.mrb[108].mxu1  ;;  %v2002_v50 = vmax.f32 %v1897_v45, 0.0  ;;  %v6410_v45 = vpack.c.bf16 %v2767_v41, %v2765_v35  ;;  %v2792_v35 = vld [vmem:[#allocation14 + $0x118] sm:$0xff]  ;;  %v2789_v41 = vld [vmem:[#allocation14 + $0x100] sm:$0xff] }
 0x546   :  { %v1901_v52 = vadd.f32 %v1900_v49, %v8514_v15  ;;  %v1902_v53 = vpop.f32.mrb[109].mxu1  ;;  %v6432_v40 = vpack.c.bf16 %v2792_v35, %v2790_v34  ;;  %v7022_v34 = vld [vmem:[%s9817_s22 + $0x68] sm:$0xff]  ;;  %v7023_v35 = vld [vmem:[%s9817_s22 + $0x70] sm:$0xff] }
 0x547   :  { %v1903_v55 = vadd.f32 %v1902_v53, %v8517_v16  ;;  %2294 = vmatprep.mubr.f32.mxu0 %v2002_v50  ;;  %6411 = vmatpush1.bf16.msra.mxu1 %v6410_v45  ;;  %v7011_v45 = vld [vmem:[%s9817_s22 + $0x10] sm:$0xff] }
 0x548   :  { %2295 = vmatmul.mubr.f32.gmra.mrb[170].mxu0 %v2001_v54  ;;  %v2003_v62 = vmax.f32 %v1901_v52, 0.0 }
 0x549   :  { %v1906_v58 = vpop.f32.mrb[110].mxu1  ;;  %v2004_v59 = vmax.f32 %v1903_v55, 0.0 }
 0x54a   :  { %v1907_v60 = vadd.f32 %v1906_v58, %v8514_v15  ;;  %v1908_v61 = vpop.f32.mrb[111].mxu1 }
 0x54b   :  { %v1909_v63 = vadd.f32 %v1908_v61, %v8517_v16  ;;  %2300 = vmatprep.mubr.f32.mxu0 %v2004_v59  ;;  %v2770_v59 = vld [vmem:[#allocation14 + $0x68] sm:$0xff]  ;;  %v2769_v61 = vld [vmem:[#allocation14 + $0x60] sm:$0xff] }
 0x54c   :  { %2301 = vmatmul.mubr.f32.gmra.mrb[172].mxu0 %v2003_v62  ;;  %v2005_v10 = vmax.f32 %v1907_v60, 0.0  ;;  %v2772_v60 = vld [vmem:[#allocation14 + $0x78] sm:$0xff]  ;;  %v6414_v6 = vpack.c.bf16 %v2771_v2, %v2769_v61  ;;  %v2797_v61 = vld [vmem:[#allocation14 + $0x140] sm:$0xff] }
 0x54d   :  { %v1912_v4 = vpop.f32.mrb[112].mxu1  ;;  %v2006_v5 = vmax.f32 %v1909_v63, 0.0  ;;  %v6412_v1 = vpack.c.bf16 %v2772_v60, %v2770_v59  ;;  %v7013_v2 = vld [vmem:[%s9817_s22 + $0x20] sm:$0xff] }
 0x54e   :  { %v1913_v8 = vadd.f32 %v1912_v4, %v8514_v15  ;;  %v1914_v9 = vpop.f32.mrb[113].mxu1 }
 0x54f   :  { %v1915_v12 = vadd.f32 %v1914_v9, %v8517_v16  ;;  %2306 = vmatprep.mubr.f32.mxu0 %v2006_v5  ;;  %6413 = vmatprep.subr.bf16.mxu1 %v6412_v1  ;;  %v2804_v1 = vld [vmem:[#allocation14 + $0x178] sm:$0xff] }
 0x550   :  { %2307 = vmatmul.mubr.f32.gmra.mrb[174].mxu0 %v2005_v10  ;;  %v2007_v37 = vmax.f32 %v1913_v8, 0.0  ;;  %6415 = vmatpush1.bf16.msra.mxu1 %v6414_v6  ;;  %v2803_v6 = vld [vmem:[#allocation14 + $0x170] sm:$0xff] }
 0x551   :  { %v1918_v13 = vpop.f32.mrb[114].mxu1  ;;  %v2008_v14 = vmax.f32 %v1915_v12, 0.0 }
 0x552   :  { %v1919_v17 = vadd.f32 %v1918_v13, %v8514_v15  ;;  %v1920_v18 = vpop.f32.mrb[115].mxu1 }
 0x553   :  { %v1921_v19 = vadd.f32 %v1920_v18, %v8517_v16  ;;  %2312 = vmatprep.mubr.f32.mxu0 %v2008_v14  ;;  %v2774_v14 = vld [vmem:[#allocation14 + $0x88] sm:$0xff]  ;;  %v2773_v18 = vld [vmem:[#allocation14 + $0x80] sm:$0xff] }
 0x554   :  { %2313 = vmatmul.mubr.f32.gmra.mrb[176].mxu0 %v2007_v37  ;;  %v2009_v48 = vmax.f32 %v1919_v17, 0.0  ;;  %v2776_v17 = vld [vmem:[#allocation14 + $0x98] sm:$0xff]  ;;  %v6418_v21 = vpack.c.bf16 %v2775_v20, %v2773_v18  ;;  %v7015_v18 = vld [vmem:[%s9817_s22 + $0x30] sm:$0xff]  ;;  %v2809_v20 = vld [vmem:[#allocation14 + $0x1a0] sm:$0xff] }
 0x555   :  { %v1924_v22 = vpop.f32.mrb[116].mxu1  ;;  %v2010_v23 = vmax.f32 %v1921_v19, 0.0  ;;  %v6416_v19 = vpack.c.bf16 %v2776_v17, %v2774_v14  ;;  %v2810_v14 = vld [vmem:[#allocation14 + $0x1a8] sm:$0xff]  ;;  %v2812_v17 = vld [vmem:[#allocation14 + $0x1b8] sm:$0xff] }
 0x556   :  { %v1925_v25 = vadd.f32 %v1924_v22, %v8514_v15  ;;  %v1926_v26 = vpop.f32.mrb[117].mxu1  ;;  %v2778_v22 = vld [vmem:[#allocation14 + $0xa8] sm:$0xff] }
 0x557   :  { %v1927_v28 = vadd.f32 %v1926_v26, %v8517_v16  ;;  %2318 = vmatprep.mubr.f32.mxu0 %v2010_v23  ;;  %6417 = vmatprep.subr.bf16.mxu1 %v6416_v19  ;;  %v2777_v23 = vld [vmem:[#allocation14 + $0xa0] sm:$0xff]  ;;  %v6452_v19 = vpack.c.bf16 %v2812_v17, %v2810_v14 }
 0x558   :  { %2319 = vmatmul.mubr.f32.gmra.mrb[178].mxu0 %v2009_v48  ;;  %v2011_v32 = vmax.f32 %v1925_v25, 0.0  ;;  %6419 = vmatpush1.bf16.msra.mxu1 %v6418_v21  ;;  %v2784_v25 = vld [vmem:[#allocation14 + $0xd8] sm:$0xff]  ;;  %v6422_v26 = vpack.c.bf16 %v2779_v46, %v2777_v23  ;;  %v2814_v21 = vld [vmem:[#allocation14 + $0x1c8] sm:$0xff]  ;;  %v2813_v46 = vld [vmem:[#allocation14 + $0x1c0] sm:$0xff] }
 0x559   :  { %v1930_v29 = vpop.f32.mrb[118].mxu1  ;;  %v2012_v56 = vmax.f32 %v1927_v28, 0.0  ;;  %v6424_v48 = vpack.c.bf16 %v2784_v25, %v2782_v24  ;;  %v2783_v28 = vld [vmem:[#allocation14 + $0xd0] sm:$0xff]  ;;  %v2818_v25 = vld [vmem:[#allocation14 + $0x1e8] sm:$0xff] }
 0x55a   :  { %v1931_v30 = vadd.f32 %v1930_v29, %v8514_v15  ;;  %v1932_v31 = vpop.f32.mrb[119].mxu1  ;;  %v2786_v29 = vld [vmem:[#allocation14 + $0xe8] sm:$0xff]  ;;  %v2815_v24 = vld [vmem:[#allocation14 + $0x1d0] sm:$0xff] }
 0x55b   :  { %v1933_v57 = vadd.f32 %v1932_v31, %v8517_v16  ;;  %2324 = vmatprep.mubr.f32.mxu0 %v2012_v56  ;;  %v2788_v56 = vld [vmem:[#allocation14 + $0xf8] sm:$0xff]  ;;  %v6426_v31 = vpack.c.bf16 %v2783_v28, %v2781_v27  ;;  %v6458_v27 = vpack.c.bf16 %v2815_v24, %v2813_v46 }
 0x55c   :  { %2325 = vmatmul.mubr.f32.gmra.mrb[180].mxu0 %v2011_v32  ;;  %v2013_v44 = vmax.f32 %v1931_v30, 0.0  ;;  %v7009_v30 = vld [vmem:[%s9817_s22] sm:$0xff]  ;;  %v6428_v32 = vpack.c.bf16 %v2788_v56, %v2786_v29  ;;  %v2819_v56 = vld [vmem:[#allocation14 + $0x1f0] sm:$0xff] }
 0x55d   :  { %v1936_v36 = vpop.f32.mrb[120].mxu1  ;;  %v2014_v38 = vmax.f32 %v1933_v57, 0.0  ;;  %v2785_v57 = vld [vmem:[#allocation14 + $0xe0] sm:$0xff] }
 0x55e   :  { %v1937_v42 = vadd.f32 %v1936_v36, %v8514_v15  ;;  %v1938_v43 = vpop.f32.mrb[121].mxu1  ;;  %v7010_v36 = vld [vmem:[%s9817_s22 + $0x8] sm:$0xff] }
 0x55f   :  { %v1939_v49 = vadd.f32 %v1938_v43, %v8517_v16  ;;  %2330 = vmatprep.mubr.f32.mxu0 %v2014_v38  ;;  %v6430_v38 = vpack.c.bf16 %v2787_v33, %v2785_v57  ;;  %v2794_v43 = vld [vmem:[#allocation14 + $0x128] sm:$0xff]  ;;  %v2817_v29 = vld [vmem:[#allocation14 + $0x1e0] sm:$0xff]  ;;  %v7020_v57 = vld [vmem:[%s9817_s22 + $0x58] sm:$0xff] }
 0x560   :  { %2331 = vmatmul.mubr.f32.gmra.mrb[182].mxu0 %v2013_v44  ;;  %v2015_v55 = vmax.f32 %v1937_v42, 0.0  ;;  %v2791_v42 = vld [vmem:[#allocation14 + $0x110] sm:$0xff]  ;;  %v2796_v44 = vld [vmem:[#allocation14 + $0x138] sm:$0xff] }
 0x561   :  { %v1942_v50 = vpop.f32.mrb[122].mxu1  ;;  %v2016_v52 = vmax.f32 %v1939_v49, 0.0  ;;  %v6434_v49 = vpack.c.bf16 %v2791_v42, %v2789_v41  ;;  %v7021_v33 = vld [vmem:[%s9817_s22 + $0x60] sm:$0xff]  ;;  %v7027_v41 = vld [vmem:[%s9817_s22 + $0x90] sm:$0xff]  ;;  %v7028_v42 = vld [vmem:[%s9817_s22 + $0x98] sm:$0xff] }
 0x562   :  { %v1943_v53 = vadd.f32 %v1942_v50, %v8514_v15  ;;  %v1944_v54 = vpop.f32.mrb[123].mxu1  ;;  %v6436_v50 = vpack.c.bf16 %v2796_v44, %v2794_v43  ;;  %v7029_v43 = vld [vmem:[%s9817_s22 + $0xa0] sm:$0xff]  ;;  %v7030_v44 = vld [vmem:[%s9817_s22 + $0xa8] sm:$0xff] }
 0x563   :  { %v1945_v58 = vadd.f32 %v1944_v54, %v8517_v16  ;;  %2336 = vmatprep.mubr.f32.mxu0 %v2016_v52  ;;  %v2793_v52 = vld [vmem:[#allocation14 + $0x120] sm:$0xff]  ;;  %v2798_v54 = vld [vmem:[#allocation14 + $0x148] sm:$0xff] }
 0x564   :  { %2337 = vmatmul.mubr.f32.gmra.mrb[184].mxu0 %v2015_v55  ;;  %v2017_v5 = vmax.f32 %v1943_v53, 0.0  ;;  %v2795_v53 = vld [vmem:[#allocation14 + $0x130] sm:$0xff]  ;;  %v2800_v55 = vld [vmem:[#allocation14 + $0x158] sm:$0xff] }
 0x565   :  { %v1948_v62 = vpop.f32.mrb[124].mxu1  ;;  %v2018_v63 = vmax.f32 %v1945_v58, 0.0  ;;  %v7012_v58 = vld [vmem:[%s9817_s22 + $0x18] sm:$0xff]  ;;  %v6438_v59 = vpack.c.bf16 %v2795_v53, %v2793_v52  ;;  %v6440_v60 = vpack.c.bf16 %v2800_v55, %v2798_v54  ;;  %v7034_v52 = vld [vmem:[%s9817_s22 + $0xc8] sm:$0xff]  ;;  %v7035_v53 = vld [vmem:[%s9817_s22 + $0xd0] sm:$0xff] }
 0x566   :  { %v1949_v3 = vadd.f32 %v1948_v62, %v8514_v15  ;;  %v1950_v4 = vpop.f32.mrb[125].mxu1  ;;  %v2799_v62 = vld [vmem:[#allocation14 + $0x150] sm:$0xff]  ;;  %v7037_v55 = vld [vmem:[%s9817_s22 + $0xe0] sm:$0xff] }
 0x567   :  { %v1951_v7 = vadd.f32 %v1950_v4, %v8517_v16  ;;  %2342 = vmatprep.mubr.f32.mxu0 %v2018_v63  ;;  %v2802_v63 = vld [vmem:[#allocation14 + $0x168] sm:$0xff]  ;;  %v7036_v54 = vld [vmem:[%s9817_s22 + $0xd8] sm:$0xff] }
 0x568   :  { %2343 = vmatmul.mubr.f32.gmra.mrb[186].mxu0 %v2017_v5  ;;  %v2019_v12 = vmax.f32 %v1949_v3, 0.0  ;;  %v6442_v3 = vpack.c.bf16 %v2799_v62, %v2797_v61  ;;  %v6444_v4 = vpack.c.bf16 %v2804_v1, %v2802_v63  ;;  %v2801_v5 = vld [vmem:[#allocation14 + $0x160] sm:$0xff]  ;;  %v3155_v61 = vld [vmem:[#allocation17 + $0x8] sm:$0xff]  ;;  %v2103_v1 = vld [vmem:[#allocation13] sm:$0x3] }
 0x569   :  { %v1954_v8 = vpop.f32.mrb[126].mxu1  ;;  %v2020_v9 = vmax.f32 %v1951_v7, 0.0  ;;  %v2806_v7 = vld [vmem:[#allocation14 + $0x188] sm:$0xff]  ;;  %v3157_v62 = vld [vmem:[#allocation17 + $0x18] sm:$0xff] }
 0x56a   :  { %v1955_v10 = vadd.f32 %v1954_v8, %v8514_v15  ;;  %v1956_v11 = vpop.f32.mrb[127].mxu1  ;;  %v2780_v15 = vld [vmem:[#allocation14 + $0xb8] sm:$0xff]  ;;  %v6464_v63 = vpack.c.bf16 %v3157_v62, %v3155_v61 }
 0x56b   :  { %v1957_v13 = vadd.f32 %v1956_v11, %v8517_v16  ;;  %2348 = vmatprep.mubr.f32.mxu0 %v2020_v9  ;;  %v6420_v16 = vpack.c.bf16 %v2780_v15, %v2778_v22  ;;  %v2808_v8 = vld [vmem:[#allocation14 + $0x198] sm:$0xff]  ;;  %v7014_v9 = vld [vmem:[%s9817_s22 + $0x28] sm:$0xff] }
 0x56c   :  { %2349 = vmatmul.mubr.f32.gmra.mrb[188].mxu0 %v2019_v12  ;;  %v2021_v39 = vmax.f32 %v1955_v10, 0.0  ;;  %v6446_v10 = vpack.c.bf16 %v2803_v6, %v2801_v5  ;;  %v6448_v11 = vpack.c.bf16 %v2808_v8, %v2806_v7  ;;  %v2805_v12 = vld [vmem:[#allocation14 + $0x180] sm:$0xff]  ;;  %v2816_v22 = vld [vmem:[#allocation14 + $0x1d8] sm:$0xff] }
 0x56d   :  { %v2022_v37 = vmax.f32 %v1957_v13, 0.0  ;;  %6421 = vmatprep.subr.bf16.mxu1 %v6420_v16  ;;  %v2807_v13 = vld [vmem:[#allocation14 + $0x190] sm:$0xff]  ;;  %v6456_v16 = vpack.c.bf16 %v2816_v22, %v2814_v21  ;;  %v3154_v6 = vld [vmem:[#allocation17] sm:$0xff]  ;;  %v3165_v22 = vld [vmem:[#allocation17 + $0x58] sm:$0xff] }
 0x56e   :  { %6423 = vmatpush1.bf16.msra.mxu1 %v6422_v26  ;;  %v7016_v15 = vld [vmem:[%s9817_s22 + $0x38] sm:$0xff]  ;;  %v3163_v21 = vld [vmem:[#allocation17 + $0x48] sm:$0xff] }
 0x56f   :  { %2354 = vmatprep.mubr.f32.mxu0 %v2022_v37  ;;  %6425 = vmatprep.subr.bf16.mxu1 %v6424_v48  ;;  %v6450_v37 = vpack.c.bf16 %v2807_v13, %v2805_v12  ;;  %v2820_v26 = vld [vmem:[#allocation14 + $0x1f8] sm:$0xff] }
 0x570   :  { %2355 = vmatmul.mubr.f32.gmra.mrb[190].mxu0 %v2021_v39  ;;  %v2811_v39 = vld [vmem:[#allocation14 + $0x1b0] sm:$0xff]  ;;  %v7017_v48 = vld [vmem:[%s9817_s22 + $0x40] sm:$0xff]  ;;  %v6460_v28 = vpack.c.bf16 %v2820_v26, %v2818_v25  ;;  %v6472_v26 = vpack.c.bf16 %v3165_v22, %v3163_v21 }
 0x571   :  { %2425 = vmatprep.mubr.f32.mxu0 %v7503_v0  ;;  %v6454_v23 = vpack.c.bf16 %v2811_v39, %v2809_v20  ;;  %v3156_v7 = vld [vmem:[#allocation17 + $0x10] sm:$0xff]  ;;  %v3183_v21 = vld [vmem:[#allocation17 + $0xe8] sm:$0xff]  ;;  %v3185_v22 = vld [vmem:[#allocation17 + $0xf8] sm:$0xff] }
 0x572   :  { %6427 = vmatpush1.bf16.msra.mxu1 %v6426_v31  ;;  %v6462_v31 = vpack.c.bf16 %v2819_v56, %v2817_v29  ;;  %v6466_v13 = vpack.c.bf16 %v3156_v7, %v3154_v6  ;;  %v3160_v20 = vld [vmem:[#allocation17 + $0x30] sm:$0xff]  ;;  %v3167_v29 = vld [vmem:[#allocation17 + $0x68] sm:$0xff]  ;;  %v3169_v56 = vld [vmem:[#allocation17 + $0x78] sm:$0xff] }
 0x573   :  { %6429 = vmatprep.subr.bf16.mxu1 %v6428_v32  ;;  %v7019_v32 = vld [vmem:[%s9817_s22 + $0x50] sm:$0xff]  ;;  %v3174_v6 = vld [vmem:[#allocation17 + $0xa0] sm:$0xff] }
 0x574   :  { %5793 = vmatmul.mubr.msk.f32.vlgmr.msra.gmra.mrb[128].mxu0 %vm414_vm0, %v7009_v30  ;;  %v7018_v30 = vld [vmem:[%s9817_s22 + $0x48] sm:$0xff]  ;;  %v3176_v7 = vld [vmem:[#allocation17 + $0xb0] sm:$0xff] }
 0x575   :  { %2431 = vmatprep.mubr.f32.mxu0 %v7503_v0 }
 0x576   :  { %6431 = vmatpush1.bf16.msra.mxu1 %v6430_v38  ;;  %v7025_v38 = vld [vmem:[%s9817_s22 + $0x80] sm:$0xff] }
 0x577   :  { %6433 = vmatprep.subr.bf16.mxu1 %v6432_v40  ;;  %v7026_v40 = vld [vmem:[%s9817_s22 + $0x88] sm:$0xff] }
 0x578   :  { %5794 = vmatmul.mubr.msk.f32.gmra.mrb[130].mxu0 %vm414_vm0, %v7010_v36  ;;  %v7024_v36 = vld [vmem:[%s9817_s22 + $0x78] sm:$0xff] }
 0x579   :  { %2437 = vmatprep.mubr.f32.mxu0 %v7503_v0 }
 0x57a   :  { %6435 = vmatpush1.bf16.msra.mxu1 %v6434_v49  ;;  %v7032_v49 = vld [vmem:[%s9817_s22 + $0xb8] sm:$0xff] }
 0x57b   :  { %6437 = vmatprep.subr.bf16.mxu1 %v6436_v50  ;;  %v7033_v50 = vld [vmem:[%s9817_s22 + $0xc0] sm:$0xff] }
 0x57c   :  { %5795 = vmatmul.mubr.msk.f32.gmra.mrb[132].mxu0 %vm414_vm0, %v7011_v45  ;;  %v7031_v45 = vld [vmem:[%s9817_s22 + $0xb0] sm:$0xff] }
 0x57d   :  { %2443 = vmatprep.mubr.f32.mxu0 %v7503_v0 }
 0x57e   :  { %6439 = vmatpush1.bf16.msra.mxu1 %v6438_v59  ;;  %v7039_v59 = vld [vmem:[%s9817_s22 + $0xf0] sm:$0xff] }
 0x57f   :  { %6441 = vmatprep.subr.bf16.mxu1 %v6440_v60  ;;  %v7040_v60 = vld [vmem:[%s9817_s22 + $0xf8] sm:$0xff] }
 0x580   :  { %5796 = vmatmul.mubr.msk.f32.gmra.mrb[134].mxu0 %vm414_vm0, %v7012_v58  ;;  %v7038_v58 = vld [vmem:[%s9817_s22 + $0xe8] sm:$0xff] }
 0x581   :  { %2449 = vmatprep.mubr.f32.mxu0 %v7503_v0 }
 0x582   :  { %6443 = vmatpush1.bf16.msra.mxu1 %v6442_v3  ;;  %v8747_v3 = vrot.slane %v2103_v1, %v8295_v51 }
 0x583   :  { %6445 = vmatprep.subr.bf16.mxu1 %v6444_v4 }
 0x584   :  { %5797 = vmatmul.mubr.msk.f32.gmra.mrb[136].mxu0 %vm414_vm0, %v7013_v2  ;;  %v8744_v2 = vrot.slane %v2103_v1, %v8290_v47 }
 0x585   :  { %2455 = vmatprep.mubr.f32.mxu0 %v7503_v0 }
 0x586   :  { %6447 = vmatpush1.bf16.msra.mxu1 %v6446_v10  ;;  %v3161_v10 = vld [vmem:[#allocation17 + $0x38] sm:$0xff] }
 0x587   :  { %6449 = vmatprep.subr.bf16.mxu1 %v6448_v11 }
 0x588   :  { %5798 = vmatmul.mubr.msk.f32.gmra.mrb[138].mxu0 %vm414_vm0, %v7014_v9  ;;  %v3159_v9 = vld [vmem:[#allocation17 + $0x28] sm:$0xff] }
 0x589   :  { %2461 = vmatprep.mubr.f32.mxu0 %v7503_v0 }
 0x58a   :  { %6451 = vmatpush1.bf16.msra.mxu1 %v6450_v37  ;;  %v6468_v37 = vpack.c.bf16 %v3161_v10, %v3159_v9  ;;  %v3179_v9 = vld [vmem:[#allocation17 + $0xc8] sm:$0xff]  ;;  %v3181_v10 = vld [vmem:[#allocation17 + $0xd8] sm:$0xff] }
 0x58b   :  { %6453 = vmatprep.subr.bf16.mxu1 %v6452_v19  ;;  %v3158_v19 = vld [vmem:[#allocation17 + $0x20] sm:$0xff] }
 0x58c   :  { %5799 = vmatmul.mubr.msk.f32.gmra.mrb[140].mxu0 %vm414_vm0, %v7015_v18 }
 0x58d   :  { %2467 = vmatprep.mubr.f32.mxu0 %v7503_v0 }
 0x58e   :  { %6455 = vmatpush1.bf16.msra.mxu1 %v6454_v23 }
 0x58f   :  { %6457 = vmatprep.subr.bf16.mxu1 %v6456_v16  ;;  %v6470_v16 = vpack.c.bf16 %v3160_v20, %v3158_v19  ;;  %v3178_v19 = vld [vmem:[#allocation17 + $0xc0] sm:$0xff]  ;;  %v3180_v20 = vld [vmem:[#allocation17 + $0xd0] sm:$0xff] }
 0x590   :  { %5800 = vmatmul.mubr.msk.f32.gmra.mrb[142].mxu0 %vm414_vm0, %v7016_v15 }
 0x591   :  { %2473 = vmatprep.mubr.f32.mxu0 %v7503_v0 }
 0x592   :  { %6459 = vmatpush1.bf16.msra.mxu1 %v6458_v27  ;;  %v3164_v27 = vld [vmem:[#allocation17 + $0x50] sm:$0xff] }
 0x593   :  { %6461 = vmatprep.subr.bf16.mxu1 %v6460_v28 }
 0x594   :  { %5801 = vmatmul.mubr.msk.f32.gmra.mrb[144].mxu0 %vm414_vm0, %v7017_v48  ;;  %v3162_v48 = vld [vmem:[#allocation17 + $0x40] sm:$0xff] }
 0x595   :  { %2479 = vmatprep.mubr.f32.mxu0 %v7503_v0 }
 0x596   :  { %6463 = vmatpush1.bf16.msra.mxu1 %v6462_v31 }
 0x597   :  { %6465 = vmatprep.subr.bf16.mxu1 %v6464_v63 }
 0x598   :  { %5802 = vmatmul.mubr.msk.f32.gmra.mrb[146].mxu0 %vm414_vm0, %v7018_v30 }
 0x599   :  { %2485 = vmatprep.mubr.f32.mxu0 %v7503_v0 }
 0x59c   :  { %5803 = vmatmul.mubr.msk.f32.gmra.mrb[148].mxu0 %vm414_vm0, %v7019_v32  ;;  %v6474_v32 = vpack.c.bf16 %v3164_v27, %v3162_v48  ;;  %v3182_v48 = vld [vmem:[#allocation17 + $0xe0] sm:$0xff]  ;;  %v3184_v27 = vld [vmem:[#allocation17 + $0xf0] sm:$0xff] }
 0x59d   :  { %2491 = vmatprep.mubr.f32.mxu0 %v7503_v0 }
 0x5a0   :  { %5804 = vmatmul.mubr.msk.f32.gmra.mrb[150].mxu0 %vm414_vm0, %v7020_v57 }
 0x5a1   :  { %2497 = vmatprep.mubr.f32.mxu0 %v7503_v0 }
 0x5a4   :  { %5805 = vmatmul.mubr.msk.f32.gmra.mrb[152].mxu0 %vm414_vm0, %v7021_v33 }
 0x5a5   :  { %2503 = vmatprep.mubr.f32.mxu0 %v7503_v0 }
 0x5a8   :  { %5806 = vmatmul.mubr.msk.f32.gmra.mrb[154].mxu0 %vm414_vm0, %v7022_v34 }
 0x5a9   :  { %2509 = vmatprep.mubr.f32.mxu0 %v7503_v0 }
 0x5ac   :  { %5807 = vmatmul.mubr.msk.f32.gmra.mrb[156].mxu0 %vm414_vm0, %v7023_v35  ;;  %v6476_v35 = vpack.c.bf16 %v3169_v56, %v3167_v29  ;;  %v3187_v29 = vld [vmem:[#allocation17 + $0x108] sm:$0xff]  ;;  %v3189_v56 = vld [vmem:[#allocation17 + $0x118] sm:$0xff] }
 0x5ad   :  { %2515 = vmatprep.mubr.f32.mxu0 %v7503_v0 }
 0x5b0   :  { %5808 = vmatmul.mubr.msk.f32.gmra.mrb[158].mxu0 %vm414_vm0, %v7024_v36  ;;  %v3166_v36 = vld [vmem:[#allocation17 + $0x60] sm:$0xff] }
 0x5b1   :  { %2521 = vmatprep.mubr.f32.mxu0 %v7503_v0 }
 0x5b4   :  { %5809 = vmatmul.mubr.msk.f32.gmra.mrb[160].mxu0 %vm414_vm0, %v7025_v38  ;;  %v3168_v38 = vld [vmem:[#allocation17 + $0x70] sm:$0xff] }
 0x5b5   :  { %2527 = vmatprep.mubr.f32.mxu0 %v7503_v0 }
 0x5b8   :  { %5810 = vmatmul.mubr.msk.f32.gmra.mrb[162].mxu0 %vm414_vm0, %v7026_v40 }
 0x5b9   :  { %2533 = vmatprep.mubr.f32.mxu0 %v7503_v0 }
 0x5bc   :  { %5811 = vmatmul.mubr.msk.f32.gmra.mrb[164].mxu0 %vm414_vm0, %v7027_v41  ;;  %v3171_v41 = vld [vmem:[#allocation17 + $0x88] sm:$0xff] }
 0x5bd   :  { %2539 = vmatprep.mubr.f32.mxu0 %v7503_v0 }
 0x5c0   :  { %5812 = vmatmul.mubr.msk.f32.gmra.mrb[166].mxu0 %vm414_vm0, %v7028_v42  ;;  %v3173_v42 = vld [vmem:[#allocation17 + $0x98] sm:$0xff] }
 0x5c1   :  { %2545 = vmatprep.mubr.f32.mxu0 %v7503_v0 }
 0x5c4   :  { %5813 = vmatmul.mubr.msk.f32.gmra.mrb[168].mxu0 %vm414_vm0, %v7029_v43 }
 0x5c5   :  { %2551 = vmatprep.mubr.f32.mxu0 %v7503_v0 }
 0x5c8   :  { %5814 = vmatmul.mubr.msk.f32.gmra.mrb[170].mxu0 %vm414_vm0, %v7030_v44 }
 0x5c9   :  { %2557 = vmatprep.mubr.f32.mxu0 %v7503_v0 }
 0x5cc   :  { %5815 = vmatmul.mubr.msk.f32.gmra.mrb[172].mxu0 %vm414_vm0, %v7031_v45  ;;  %v6478_v45 = vpack.c.bf16 %v3168_v38, %v3166_v36  ;;  %v3186_v36 = vld [vmem:[#allocation17 + $0x100] sm:$0xff]  ;;  %v3188_v38 = vld [vmem:[#allocation17 + $0x110] sm:$0xff] }
 0x5cd   :  { %2563 = vmatprep.mubr.f32.mxu0 %v7503_v0 }
 0x5d0   :  { %5816 = vmatmul.mubr.msk.f32.gmra.mrb[174].mxu0 %vm414_vm0, %v7032_v49 }
 0x5d1   :  { %2569 = vmatprep.mubr.f32.mxu0 %v7503_v0 }
 0x5d4   :  { %5817 = vmatmul.mubr.msk.f32.gmra.mrb[176].mxu0 %vm414_vm0, %v7033_v50 }
 0x5d5   :  { %2575 = vmatprep.mubr.f32.mxu0 %v7503_v0 }
 0x5d8   :  { %5818 = vmatmul.mubr.msk.f32.gmra.mrb[178].mxu0 %vm414_vm0, %v7034_v52 }
 0x5d9   :  { %2581 = vmatprep.mubr.f32.mxu0 %v7503_v0 }
 0x5dc   :  { %5819 = vmatmul.mubr.msk.f32.gmra.mrb[180].mxu0 %vm414_vm0, %v7035_v53  ;;  %v6480_v53 = vpack.c.bf16 %v3173_v42, %v3171_v41  ;;  %v3191_v41 = vld [vmem:[#allocation17 + $0x128] sm:$0xff]  ;;  %v3193_v42 = vld [vmem:[#allocation17 + $0x138] sm:$0xff] }
 0x5dd   :  { %2587 = vmatprep.mubr.f32.mxu0 %v7503_v0 }
 0x5e0   :  { %5820 = vmatmul.mubr.msk.f32.gmra.mrb[182].mxu0 %vm414_vm0, %v7036_v54  ;;  %v3170_v54 = vld [vmem:[#allocation17 + $0x80] sm:$0xff] }
 0x5e1   :  { %2593 = vmatprep.mubr.f32.mxu0 %v7503_v0 }
 0x5e4   :  { %5821 = vmatmul.mubr.msk.f32.gmra.mrb[184].mxu0 %vm414_vm0, %v7037_v55  ;;  %v3172_v55 = vld [vmem:[#allocation17 + $0x90] sm:$0xff] }
 0x5e5   :  { %2599 = vmatprep.mubr.f32.mxu0 %v7503_v0  ;;  %v6482_v63 = vpack.c.bf16 %v3172_v55, %v3170_v54  ;;  %v3190_v54 = vld [vmem:[#allocation17 + $0x120] sm:$0xff]  ;;  %v3192_v55 = vld [vmem:[#allocation17 + $0x130] sm:$0xff] }
 0x5e8   :  { %5822 = vmatmul.mubr.msk.f32.gmra.mrb[186].mxu0 %vm414_vm0, %v7038_v58 }
 0x5e9   :  { %2605 = vmatprep.mubr.f32.mxu0 %v7503_v0 }
 0x5ec   :  { %5823 = vmatmul.mubr.msk.f32.gmra.mrb[188].mxu0 %vm414_vm0, %v7039_v59  ;;  %v3175_v59 = vld [vmem:[#allocation17 + $0xa8] sm:$0xff] }
 0x5ed   :  { %2611 = vmatprep.mubr.f32.mxu0 %v7503_v0 }
 0x5f0   :  { %5824 = vmatmul.mubr.msk.f32.gmra.mrb[190].mxu0 %vm414_vm0, %v7040_v60  ;;  %v3177_v60 = vld [vmem:[#allocation17 + $0xb8] sm:$0xff] }
 0x647   :  { %v2427_v4 = vpop.f32.mrb[128].mxu0 }
 0x648   :  { %v2629_v0 = vadd.f32 %v8744_v2, %v2427_v4  ;;  %v2429_v5 = vpop.f32.mrb[129].mxu0 }
 0x649   :  { %v2630_v8 = vadd.f32 %v8747_v3, %v2429_v5  ;;  %v6484_v5 = vpack.c.bf16 %v3177_v60, %v3175_v59  ;;  %v3195_v59 = vld [vmem:[#allocation17 + $0x148] sm:$0xff]  ;;  %v3197_v60 = vld [vmem:[#allocation17 + $0x158] sm:$0xff] }
 0x64a   :  { %v2693_v14 = vmax.f32 %v2629_v0, 0.0 }
 0x64b   :  { %v2694_v11 = vmax.f32 %v2630_v8, 0.0  ;;  %v2433_v12 = vpop.f32.mrb[130].mxu0 }
 0x64c   :  { %v2631_v17 = vadd.f32 %v8744_v2, %v2433_v12  ;;  %v2435_v18 = vpop.f32.mrb[131].mxu0 }
 0x64d   :  { %v2632_v39 = vadd.f32 %v8747_v3, %v2435_v18  ;;  %2897 = vmatprep.mubr.f32.mxu1 %v2694_v11 }
 0x64e   :  { %2898 = vmatmul.mubr.f32.vlgmr.msra.gmra.mrb[128].mxu1 %v2693_v14  ;;  %v2695_v46 = vmax.f32 %v2631_v17, 0.0 }
 0x64f   :  { %v2696_v15 = vmax.f32 %v2632_v39, 0.0  ;;  %v2439_v23 = vpop.f32.mrb[132].mxu0  ;;  %6467 = vmatpush1.bf16.msra.mxu1 %v6466_v13  ;;  %v6486_v13 = vpack.c.bf16 %v3176_v7, %v3174_v6  ;;  %v3194_v6 = vld [vmem:[#allocation17 + $0x140] sm:$0xff]  ;;  %v3196_v7 = vld [vmem:[#allocation17 + $0x150] sm:$0xff] }
 0x650   :  { %v2633_v24 = vadd.f32 %v8744_v2, %v2439_v23  ;;  %v2441_v25 = vpop.f32.mrb[133].mxu0  ;;  %6469 = vmatprep.subr.bf16.mxu1 %v6468_v37  ;;  %v6488_v37 = vpack.c.bf16 %v3181_v10, %v3179_v9  ;;  %v3199_v9 = vld [vmem:[#allocation17 + $0x168] sm:$0xff]  ;;  %v3201_v10 = vld [vmem:[#allocation17 + $0x178] sm:$0xff] }
 0x651   :  { %v2634_v28 = vadd.f32 %v8747_v3, %v2441_v25  ;;  %2903 = vmatprep.mubr.f32.mxu1 %v2696_v15 }
 0x652   :  { %2904 = vmatmul.mubr.f32.gmra.mrb[130].mxu1 %v2695_v46  ;;  %v2697_v57 = vmax.f32 %v2633_v24, 0.0 }
 0x653   :  { %v2698_v30 = vmax.f32 %v2634_v28, 0.0  ;;  %v2445_v31 = vpop.f32.mrb[134].mxu0  ;;  %6471 = vmatpush1.bf16.msra.mxu1 %v6470_v16  ;;  %v6490_v16 = vpack.c.bf16 %v3180_v20, %v3178_v19  ;;  %v3198_v19 = vld [vmem:[#allocation17 + $0x160] sm:$0xff]  ;;  %v3200_v20 = vld [vmem:[#allocation17 + $0x170] sm:$0xff] }
 0x654   :  { %v2635_v33 = vadd.f32 %v8744_v2, %v2445_v31  ;;  %v2447_v34 = vpop.f32.mrb[135].mxu0  ;;  %6473 = vmatprep.subr.bf16.mxu1 %v6472_v26  ;;  %v6492_v26 = vpack.c.bf16 %v3185_v22, %v3183_v21  ;;  %v3203_v21 = vld [vmem:[#allocation17 + $0x188] sm:$0xff]  ;;  %v3205_v22 = vld [vmem:[#allocation17 + $0x198] sm:$0xff] }
 0x655   :  { %v2636_v40 = vadd.f32 %v8747_v3, %v2447_v34  ;;  %2909 = vmatprep.mubr.f32.mxu1 %v2698_v30 }
 0x656   :  { %2910 = vmatmul.mubr.f32.gmra.mrb[132].mxu1 %v2697_v57  ;;  %v2699_v49 = vmax.f32 %v2635_v33, 0.0 }
 0x657   :  { %v2700_v43 = vmax.f32 %v2636_v40, 0.0  ;;  %v2451_v44 = vpop.f32.mrb[136].mxu0  ;;  %6475 = vmatpush1.bf16.msra.mxu1 %v6474_v32  ;;  %v6494_v32 = vpack.c.bf16 %v3184_v27, %v3182_v48  ;;  %v3202_v48 = vld [vmem:[#allocation17 + $0x180] sm:$0xff]  ;;  %v3204_v27 = vld [vmem:[#allocation17 + $0x190] sm:$0xff] }
 0x658   :  { %v2637_v50 = vadd.f32 %v8744_v2, %v2451_v44  ;;  %v2453_v52 = vpop.f32.mrb[137].mxu0  ;;  %6477 = vmatprep.subr.bf16.mxu1 %v6476_v35  ;;  %v6496_v35 = vpack.c.bf16 %v3189_v56, %v3187_v29  ;;  %v3207_v29 = vld [vmem:[#allocation17 + $0x1a8] sm:$0xff]  ;;  %v3209_v56 = vld [vmem:[#allocation17 + $0x1b8] sm:$0xff] }
 0x659   :  { %v2638_v58 = vadd.f32 %v8747_v3, %v2453_v52  ;;  %2915 = vmatprep.mubr.f32.mxu1 %v2700_v43 }
 0x65a   :  { %2916 = vmatmul.mubr.f32.gmra.mrb[134].mxu1 %v2699_v49  ;;  %v2701_v1 = vmax.f32 %v2637_v50, 0.0 }
 0x65b   :  { %v2702_v61 = vmax.f32 %v2638_v58, 0.0  ;;  %v2457_v62 = vpop.f32.mrb[138].mxu0  ;;  %6479 = vmatpush1.bf16.msra.mxu1 %v6478_v45  ;;  %v6498_v45 = vpack.c.bf16 %v3188_v38, %v3186_v36  ;;  %v3206_v36 = vld [vmem:[#allocation17 + $0x1a0] sm:$0xff]  ;;  %v3208_v38 = vld [vmem:[#allocation17 + $0x1b0] sm:$0xff] }
 0x65c   :  { %v2639_v4 = vadd.f32 %v8744_v2, %v2457_v62  ;;  %v2459_v0 = vpop.f32.mrb[139].mxu0  ;;  %6481 = vmatprep.subr.bf16.mxu1 %v6480_v53  ;;  %v6500_v53 = vpack.c.bf16 %v3193_v42, %v3191_v41  ;;  %v3211_v41 = vld [vmem:[#allocation17 + $0x1c8] sm:$0xff]  ;;  %v3213_v42 = vld [vmem:[#allocation17 + $0x1d8] sm:$0xff] }
 0x65d   :  { %v2640_v8 = vadd.f32 %v8747_v3, %v2459_v0  ;;  %2921 = vmatprep.mubr.f32.mxu1 %v2702_v61 }
 0x65e   :  { %2922 = vmatmul.mubr.f32.gmra.mrb[136].mxu1 %v2701_v1  ;;  %v2703_v14 = vmax.f32 %v2639_v4, 0.0 }
 0x65f   :  { %v2704_v11 = vmax.f32 %v2640_v8, 0.0  ;;  %v2463_v12 = vpop.f32.mrb[140].mxu0  ;;  %6483 = vmatpush1.bf16.msra.mxu1 %v6482_v63  ;;  %v6502_v63 = vpack.c.bf16 %v3192_v55, %v3190_v54  ;;  %v3210_v54 = vld [vmem:[#allocation17 + $0x1c0] sm:$0xff]  ;;  %v3212_v55 = vld [vmem:[#allocation17 + $0x1d0] sm:$0xff] }
 0x660   :  { %v2641_v17 = vadd.f32 %v8744_v2, %v2463_v12  ;;  %v2465_v18 = vpop.f32.mrb[141].mxu0  ;;  %6485 = vmatprep.subr.bf16.mxu1 %v6484_v5  ;;  %v6504_v5 = vpack.c.bf16 %v3197_v60, %v3195_v59  ;;  %v3215_v59 = vld [vmem:[#allocation17 + $0x1e8] sm:$0xff]  ;;  %v3217_v60 = vld [vmem:[#allocation17 + $0x1f8] sm:$0xff] }
 0x661   :  { %v2642_v39 = vadd.f32 %v8747_v3, %v2465_v18  ;;  %2927 = vmatprep.mubr.f32.mxu1 %v2704_v11 }
 0x662   :  { %2928 = vmatmul.mubr.f32.gmra.mrb[138].mxu1 %v2703_v14  ;;  %v2705_v46 = vmax.f32 %v2641_v17, 0.0 }
 0x663   :  { %v2706_v15 = vmax.f32 %v2642_v39, 0.0  ;;  %v2469_v23 = vpop.f32.mrb[142].mxu0  ;;  %6487 = vmatpush1.bf16.msra.mxu1 %v6486_v13  ;;  %v6506_v13 = vpack.c.bf16 %v3196_v7, %v3194_v6  ;;  %v3214_v6 = vld [vmem:[#allocation17 + $0x1e0] sm:$0xff]  ;;  %v3216_v7 = vld [vmem:[#allocation17 + $0x1f0] sm:$0xff] }
 0x664   :  { %v2643_v24 = vadd.f32 %v8744_v2, %v2469_v23  ;;  %v2471_v25 = vpop.f32.mrb[143].mxu0  ;;  %6489 = vmatprep.subr.bf16.mxu1 %v6488_v37  ;;  %v6508_v37 = vpack.c.bf16 %v3201_v10, %v3199_v9 }
 0x665   :  { %v2644_v28 = vadd.f32 %v8747_v3, %v2471_v25  ;;  %2933 = vmatprep.mubr.f32.mxu1 %v2706_v15 }
 0x666   :  { %2934 = vmatmul.mubr.f32.gmra.mrb[140].mxu1 %v2705_v46  ;;  %v2707_v57 = vmax.f32 %v2643_v24, 0.0 }
 0x667   :  { %v2708_v30 = vmax.f32 %v2644_v28, 0.0  ;;  %v2475_v31 = vpop.f32.mrb[144].mxu0  ;;  %6491 = vmatpush1.bf16.msra.mxu1 %v6490_v16  ;;  %v6510_v16 = vpack.c.bf16 %v3200_v20, %v3198_v19 }
 0x668   :  { %v2645_v33 = vadd.f32 %v8744_v2, %v2475_v31  ;;  %v2477_v34 = vpop.f32.mrb[145].mxu0  ;;  %6493 = vmatprep.subr.bf16.mxu1 %v6492_v26  ;;  %v6512_v26 = vpack.c.bf16 %v3205_v22, %v3203_v21 }
 0x669   :  { %v2646_v40 = vadd.f32 %v8747_v3, %v2477_v34  ;;  %2939 = vmatprep.mubr.f32.mxu1 %v2708_v30 }
 0x66a   :  { %2940 = vmatmul.mubr.f32.gmra.mrb[142].mxu1 %v2707_v57  ;;  %v2709_v49 = vmax.f32 %v2645_v33, 0.0 }
 0x66b   :  { %v2710_v43 = vmax.f32 %v2646_v40, 0.0  ;;  %v2481_v44 = vpop.f32.mrb[146].mxu0  ;;  %6495 = vmatpush1.bf16.msra.mxu1 %v6494_v32  ;;  %v6514_v32 = vpack.c.bf16 %v3204_v27, %v3202_v48 }
 0x66c   :  { %v2647_v50 = vadd.f32 %v8744_v2, %v2481_v44  ;;  %v2483_v52 = vpop.f32.mrb[147].mxu0  ;;  %6497 = vmatprep.subr.bf16.mxu1 %v6496_v35  ;;  %v6516_v35 = vpack.c.bf16 %v3209_v56, %v3207_v29 }
 0x66d   :  { %v2648_v58 = vadd.f32 %v8747_v3, %v2483_v52  ;;  %2945 = vmatprep.mubr.f32.mxu1 %v2710_v43 }
 0x66e   :  { %2946 = vmatmul.mubr.f32.gmra.mrb[144].mxu1 %v2709_v49  ;;  %v2711_v1 = vmax.f32 %v2647_v50, 0.0 }
 0x66f   :  { %v2712_v61 = vmax.f32 %v2648_v58, 0.0  ;;  %v2487_v62 = vpop.f32.mrb[148].mxu0  ;;  %6499 = vmatpush1.bf16.msra.mxu1 %v6498_v45  ;;  %v6518_v45 = vpack.c.bf16 %v3208_v38, %v3206_v36 }
 0x670   :  { %v2649_v4 = vadd.f32 %v8744_v2, %v2487_v62  ;;  %v2489_v0 = vpop.f32.mrb[149].mxu0  ;;  %6501 = vmatprep.subr.bf16.mxu1 %v6500_v53  ;;  %v6520_v53 = vpack.c.bf16 %v3213_v42, %v3211_v41 }
 0x671   :  { %v2650_v8 = vadd.f32 %v8747_v3, %v2489_v0  ;;  %2951 = vmatprep.mubr.f32.mxu1 %v2712_v61 }
 0x672   :  { %2952 = vmatmul.mubr.f32.gmra.mrb[146].mxu1 %v2711_v1  ;;  %v2713_v14 = vmax.f32 %v2649_v4, 0.0 }
 0x673   :  { %v2714_v11 = vmax.f32 %v2650_v8, 0.0  ;;  %v2493_v12 = vpop.f32.mrb[150].mxu0  ;;  %6503 = vmatpush1.bf16.msra.mxu1 %v6502_v63  ;;  %v6522_v63 = vpack.c.bf16 %v3212_v55, %v3210_v54 }
 0x674   :  { %v2651_v17 = vadd.f32 %v8744_v2, %v2493_v12  ;;  %v2495_v18 = vpop.f32.mrb[151].mxu0  ;;  %6505 = vmatprep.subr.bf16.mxu1 %v6504_v5  ;;  %v6524_v5 = vpack.c.bf16 %v3217_v60, %v3215_v59 }
 0x675   :  { %v2652_v39 = vadd.f32 %v8747_v3, %v2495_v18  ;;  %2957 = vmatprep.mubr.f32.mxu1 %v2714_v11  ;;  %v6526_v11 = vpack.c.bf16 %v3216_v7, %v3214_v6 }
 0x676   :  { %2958 = vmatmul.mubr.f32.gmra.mrb[148].mxu1 %v2713_v14  ;;  %v2715_v46 = vmax.f32 %v2651_v17, 0.0 }
 0x677   :  { %v2716_v15 = vmax.f32 %v2652_v39, 0.0  ;;  %v2499_v23 = vpop.f32.mrb[152].mxu0  ;;  %6507 = vmatpush1.bf16.msra.mxu1 %v6506_v13 }
 0x678   :  { %v2653_v24 = vadd.f32 %v8744_v2, %v2499_v23  ;;  %v2501_v25 = vpop.f32.mrb[153].mxu0  ;;  %6509 = vmatprep.subr.bf16.mxu1 %v6508_v37 }
 0x679   :  { %v2654_v28 = vadd.f32 %v8747_v3, %v2501_v25  ;;  %2963 = vmatprep.mubr.f32.mxu1 %v2716_v15 }
 0x67a   :  { %2964 = vmatmul.mubr.f32.gmra.mrb[150].mxu1 %v2715_v46  ;;  %v2717_v57 = vmax.f32 %v2653_v24, 0.0 }
 0x67b   :  { %v2718_v30 = vmax.f32 %v2654_v28, 0.0  ;;  %v2505_v31 = vpop.f32.mrb[154].mxu0  ;;  %6511 = vmatpush1.bf16.msra.mxu1 %v6510_v16 }
 0x67c   :  { %v2655_v33 = vadd.f32 %v8744_v2, %v2505_v31  ;;  %v2507_v34 = vpop.f32.mrb[155].mxu0  ;;  %6513 = vmatprep.subr.bf16.mxu1 %v6512_v26 }
 0x67d   :  { %v2656_v40 = vadd.f32 %v8747_v3, %v2507_v34  ;;  %2969 = vmatprep.mubr.f32.mxu1 %v2718_v30 }
 0x67e   :  { %2970 = vmatmul.mubr.f32.gmra.mrb[152].mxu1 %v2717_v57  ;;  %v2719_v49 = vmax.f32 %v2655_v33, 0.0 }
 0x67f   :  { %v2720_v43 = vmax.f32 %v2656_v40, 0.0  ;;  %v2511_v44 = vpop.f32.mrb[156].mxu0  ;;  %6515 = vmatpush1.bf16.msra.mxu1 %v6514_v32 }
 0x680   :  { %v2657_v50 = vadd.f32 %v8744_v2, %v2511_v44  ;;  %v2513_v52 = vpop.f32.mrb[157].mxu0  ;;  %6517 = vmatprep.subr.bf16.mxu1 %v6516_v35 }
 0x681   :  { %v2658_v58 = vadd.f32 %v8747_v3, %v2513_v52  ;;  %2975 = vmatprep.mubr.f32.mxu1 %v2720_v43 }
 0x682   :  { %2976 = vmatmul.mubr.f32.gmra.mrb[154].mxu1 %v2719_v49  ;;  %v2721_v1 = vmax.f32 %v2657_v50, 0.0 }
 0x683   :  { %v2722_v61 = vmax.f32 %v2658_v58, 0.0  ;;  %v2517_v62 = vpop.f32.mrb[158].mxu0  ;;  %6519 = vmatpush1.bf16.msra.mxu1 %v6518_v45 }
 0x684   :  { %v2659_v4 = vadd.f32 %v8744_v2, %v2517_v62  ;;  %v2519_v0 = vpop.f32.mrb[159].mxu0  ;;  %6521 = vmatprep.subr.bf16.mxu1 %v6520_v53 }
 0x685   :  { %v2660_v8 = vadd.f32 %v8747_v3, %v2519_v0  ;;  %2981 = vmatprep.mubr.f32.mxu1 %v2722_v61 }
 0x686   :  { %2982 = vmatmul.mubr.f32.gmra.mrb[156].mxu1 %v2721_v1  ;;  %v2723_v12 = vmax.f32 %v2659_v4, 0.0 }
 0x687   :  { %v2724_v9 = vmax.f32 %v2660_v8, 0.0  ;;  %v2523_v10 = vpop.f32.mrb[160].mxu0  ;;  %6523 = vmatpush1.bf16.msra.mxu1 %v6522_v63 }
 0x688   :  { %v2661_v13 = vadd.f32 %v8744_v2, %v2523_v10  ;;  %v2525_v14 = vpop.f32.mrb[161].mxu0  ;;  %6525 = vmatprep.subr.bf16.mxu1 %v6524_v5 }
 0x689   :  { %v2662_v17 = vadd.f32 %v8747_v3, %v2525_v14  ;;  %2987 = vmatprep.mubr.f32.mxu1 %v2724_v9 }
 0x68a   :  { %2988 = vmatmul.mubr.f32.gmra.mrb[158].mxu1 %v2723_v12  ;;  %v2725_v19 = vmax.f32 %v2661_v13, 0.0 }
 0x68b   :  { %v2726_v18 = vmax.f32 %v2662_v17, 0.0  ;;  %v2529_v37 = vpop.f32.mrb[162].mxu0  ;;  %6527 = vmatpush1.bf16.msra.mxu1 %v6526_v11 }
 0x68c   :  { %v2663_v20 = vadd.f32 %v8744_v2, %v2529_v37  ;;  %v2531_v39 = vpop.f32.mrb[163].mxu0 }
 0x68d   :  { %v2664_v21 = vadd.f32 %v8747_v3, %v2531_v39  ;;  %2993 = vmatprep.mubr.f32.mxu1 %v2726_v18 }
 0x68e   :  { %2994 = vmatmul.mubr.f32.gmra.mrb[160].mxu1 %v2725_v19  ;;  %v2727_v23 = vmax.f32 %v2663_v20, 0.0 }
 0x68f   :  { %v2728_v22 = vmax.f32 %v2664_v21, 0.0  ;;  %v2535_v15 = vpop.f32.mrb[164].mxu0 }
 0x690   :  { %v2665_v16 = vadd.f32 %v8744_v2, %v2535_v15  ;;  %v2537_v46 = vpop.f32.mrb[165].mxu0 }
 0x691   :  { %v2666_v24 = vadd.f32 %v8747_v3, %v2537_v46  ;;  %2999 = vmatprep.mubr.f32.mxu1 %v2728_v22 }
 0x692   :  { %3000 = vmatmul.mubr.f32.gmra.mrb[162].mxu1 %v2727_v23  ;;  %v2729_v48 = vmax.f32 %v2665_v16, 0.0 }
 0x693   :  { %v2730_v25 = vmax.f32 %v2666_v24, 0.0  ;;  %v2541_v26 = vpop.f32.mrb[166].mxu0 }
 0x694   :  { %v2667_v27 = vadd.f32 %v8744_v2, %v2541_v26  ;;  %v2543_v28 = vpop.f32.mrb[167].mxu0 }
 0x695   :  { %v2668_v29 = vadd.f32 %v8747_v3, %v2543_v28  ;;  %3005 = vmatprep.mubr.f32.mxu1 %v2730_v25 }
 0x696   :  { %3006 = vmatmul.mubr.f32.gmra.mrb[164].mxu1 %v2729_v48  ;;  %v2731_v31 = vmax.f32 %v2667_v27, 0.0 }
 0x697   :  { %v2732_v56 = vmax.f32 %v2668_v29, 0.0  ;;  %v2547_v30 = vpop.f32.mrb[168].mxu0 }
 0x698   :  { %v2669_v32 = vadd.f32 %v8744_v2, %v2547_v30  ;;  %v2549_v57 = vpop.f32.mrb[169].mxu0 }
 0x699   :  { %v2670_v33 = vadd.f32 %v8747_v3, %v2549_v57  ;;  %3011 = vmatprep.mubr.f32.mxu1 %v2732_v56 }
 0x69a   :  { %3012 = vmatmul.mubr.f32.gmra.mrb[166].mxu1 %v2731_v31  ;;  %v2733_v36 = vmax.f32 %v2669_v32, 0.0 }
 0x69b   :  { %v2734_v34 = vmax.f32 %v2670_v33, 0.0  ;;  %v2553_v35 = vpop.f32.mrb[170].mxu0 }
 0x69c   :  { %v2671_v38 = vadd.f32 %v8744_v2, %v2553_v35  ;;  %v2555_v40 = vpop.f32.mrb[171].mxu0 }
 0x69d   :  { %v2672_v41 = vadd.f32 %v8747_v3, %v2555_v40  ;;  %3017 = vmatprep.mubr.f32.mxu1 %v2734_v34 }
 0x69e   :  { %3018 = vmatmul.mubr.f32.gmra.mrb[168].mxu1 %v2733_v36  ;;  %v2735_v44 = vmax.f32 %v2671_v38, 0.0 }
 0x69f   :  { %v2736_v42 = vmax.f32 %v2672_v41, 0.0  ;;  %v2559_v43 = vpop.f32.mrb[172].mxu0 }
 0x6a0   :  { %v2673_v45 = vadd.f32 %v8744_v2, %v2559_v43  ;;  %v2561_v49 = vpop.f32.mrb[173].mxu0 }
 0x6a1   :  { %v2674_v50 = vadd.f32 %v8747_v3, %v2561_v49  ;;  %3023 = vmatprep.mubr.f32.mxu1 %v2736_v42 }
 0x6a2   :  { %3024 = vmatmul.mubr.f32.gmra.mrb[170].mxu1 %v2735_v44  ;;  %v2737_v54 = vmax.f32 %v2673_v45, 0.0  ;;  %v3552_v44 = vld [vmem:[#allocation20 + $0x8] sm:$0xff]  ;;  %v3554_v45 = vld [vmem:[#allocation20 + $0x18] sm:$0xff] }
 0x6a3   :  { %v2738_v52 = vmax.f32 %v2674_v50, 0.0  ;;  %v2565_v53 = vpop.f32.mrb[174].mxu0  ;;  %v6528_v49 = vpack.c.bf16 %v3554_v45, %v3552_v44  ;;  %v3551_v50 = vld [vmem:[#allocation20] sm:$0xff] }
 0x6a4   :  { %v2675_v55 = vadd.f32 %v8744_v2, %v2565_v53  ;;  %v2567_v58 = vpop.f32.mrb[175].mxu0  ;;  %v3579_v45 = vld [vmem:[#allocation20 + $0xe0] sm:$0xff] }
 0x6a5   :  { %v2676_v59 = vadd.f32 %v8747_v3, %v2567_v58  ;;  %3029 = vmatprep.mubr.f32.mxu1 %v2738_v52  ;;  %v3553_v52 = vld [vmem:[#allocation20 + $0x10] sm:$0xff]  ;;  %6529 = vmatprep.subr.bf16.mxu0 %v6528_v49  ;;  %v3555_v58 = vld [vmem:[#allocation20 + $0x20] sm:$0xff] }
 0x6a6   :  { %3030 = vmatmul.mubr.f32.gmra.mrb[172].mxu1 %v2737_v54  ;;  %v2739_v62 = vmax.f32 %v2675_v55, 0.0  ;;  %v6530_v53 = vpack.c.bf16 %v3553_v52, %v3551_v50  ;;  %v3556_v54 = vld [vmem:[#allocation20 + $0x28] sm:$0xff]  ;;  %v3558_v55 = vld [vmem:[#allocation20 + $0x38] sm:$0xff]  ;;  %v3581_v49 = vld [vmem:[#allocation20 + $0xf0] sm:$0xff] }
 0x6a7   :  { %v2740_v60 = vmax.f32 %v2676_v59, 0.0  ;;  %v2571_v61 = vpop.f32.mrb[176].mxu0  ;;  %v3557_v59 = vld [vmem:[#allocation20 + $0x30] sm:$0xff]  ;;  %v3584_v52 = vld [vmem:[#allocation20 + $0x108] sm:$0xff] }
 0x6a8   :  { %v2677_v63 = vadd.f32 %v8744_v2, %v2571_v61  ;;  %v2573_v1 = vpop.f32.mrb[177].mxu0  ;;  %6531 = vmatpush1.bf16.msra.mxu0 %v6530_v53  ;;  %v3562_v61 = vld [vmem:[#allocation20 + $0x58] sm:$0xff] }
 0x6a9   :  { %v2678_v4 = vadd.f32 %v8747_v3, %v2573_v1  ;;  %3035 = vmatprep.mubr.f32.mxu1 %v2740_v60  ;;  %v3560_v60 = vld [vmem:[#allocation20 + $0x48] sm:$0xff]  ;;  %v3561_v1 = vld [vmem:[#allocation20 + $0x50] sm:$0xff]  ;;  %v3586_v53 = vld [vmem:[#allocation20 + $0x118] sm:$0xff] }
 0x6aa   :  { %3036 = vmatmul.mubr.f32.gmra.mrb[174].mxu1 %v2739_v62  ;;  %v2741_v6 = vmax.f32 %v2677_v63, 0.0  ;;  %v6536_v62 = vpack.c.bf16 %v3562_v61, %v3560_v60  ;;  %v3559_v63 = vld [vmem:[#allocation20 + $0x40] sm:$0xff]  ;;  %v6560_v60 = vpack.c.bf16 %v3586_v53, %v3584_v52  ;;  %v3604_v52 = vld [vmem:[#allocation20 + $0x1a8] sm:$0xff]  ;;  %v3606_v53 = vld [vmem:[#allocation20 + $0x1b8] sm:$0xff] }
 0x6ab   :  { %v2742_v0 = vmax.f32 %v2678_v4, 0.0  ;;  %v2577_v5 = vpop.f32.mrb[178].mxu0  ;;  %v6538_v4 = vpack.c.bf16 %v3561_v1, %v3559_v63  ;;  %v3583_v61 = vld [vmem:[#allocation20 + $0x100] sm:$0xff]  ;;  %v3588_v1 = vld [vmem:[#allocation20 + $0x128] sm:$0xff] }
 0x6ac   :  { %v2679_v7 = vadd.f32 %v8744_v2, %v2577_v5  ;;  %v2579_v8 = vpop.f32.mrb[179].mxu0  ;;  %v3564_v5 = vld [vmem:[#allocation20 + $0x68] sm:$0xff] }
 0x6ad   :  { %v2680_v9 = vadd.f32 %v8747_v3, %v2579_v8  ;;  %3041 = vmatprep.mubr.f32.mxu1 %v2742_v0  ;;  %v2821_v0 = vld [vmem:[#allocation16] sm:$0x3]  ;;  %v3563_v8 = vld [vmem:[#allocation20 + $0x60] sm:$0xff] }
 0x6ae   :  { %3042 = vmatmul.mubr.f32.gmra.mrb[176].mxu1 %v2741_v6  ;;  %v2743_v12 = vmax.f32 %v2679_v7, 0.0  ;;  %v3566_v6 = vld [vmem:[#allocation20 + $0x78] sm:$0xff] }
 0x6af   :  { %v2744_v10 = vmax.f32 %v2680_v9, 0.0  ;;  %v2583_v11 = vpop.f32.mrb[180].mxu0  ;;  %v6540_v7 = vpack.c.bf16 %v3566_v6, %v3564_v5  ;;  %v3565_v9 = vld [vmem:[#allocation20 + $0x70] sm:$0xff] }
 0x6b0   :  { %v2681_v13 = vadd.f32 %v8744_v2, %v2583_v11  ;;  %v2585_v14 = vpop.f32.mrb[181].mxu0  ;;  %v6542_v11 = vpack.c.bf16 %v3565_v9, %v3563_v8 }
 0x6b1   :  { %v2682_v17 = vadd.f32 %v8747_v3, %v2585_v14  ;;  %3047 = vmatprep.mubr.f32.mxu1 %v2744_v10  ;;  %v8814_v10 = vrot.slane %v2821_v0, %v8290_v47  ;;  %v3568_v14 = vld [vmem:[#allocation20 + $0x88] sm:$0xff] }
 0x6b2   :  { %3048 = vmatmul.mubr.f32.gmra.mrb[178].mxu1 %v2743_v12  ;;  %v2745_v19 = vmax.f32 %v2681_v13, 0.0  ;;  %v8817_v12 = vrot.slane %v2821_v0, %v8295_v51 }
 0x6b3   :  { %v2746_v18 = vmax.f32 %v2682_v17, 0.0  ;;  %v2589_v37 = vpop.f32.mrb[182].mxu0  ;;  %v3570_v17 = vld [vmem:[#allocation20 + $0x98] sm:$0xff] }
 0x6b4   :  { %v2683_v20 = vadd.f32 %v8744_v2, %v2589_v37  ;;  %v2591_v39 = vpop.f32.mrb[183].mxu0 }
 0x6b5   :  { %v2684_v21 = vadd.f32 %v8747_v3, %v2591_v39  ;;  %3053 = vmatprep.mubr.f32.mxu1 %v2746_v18  ;;  %v3567_v18 = vld [vmem:[#allocation20 + $0x80] sm:$0xff]  ;;  %v3569_v39 = vld [vmem:[#allocation20 + $0x90] sm:$0xff] }
 0x6b6   :  { %3054 = vmatmul.mubr.f32.gmra.mrb[180].mxu1 %v2745_v19  ;;  %v2747_v23 = vmax.f32 %v2683_v20, 0.0  ;;  %v6544_v20 = vpack.c.bf16 %v3570_v17, %v3568_v14  ;;  %v3589_v14 = vld [vmem:[#allocation20 + $0x130] sm:$0xff] }
 0x6b7   :  { %v2748_v22 = vmax.f32 %v2684_v21, 0.0  ;;  %v2595_v15 = vpop.f32.mrb[184].mxu0 }
 0x6b8   :  { %v2685_v16 = vadd.f32 %v8744_v2, %v2595_v15  ;;  %v2597_v46 = vpop.f32.mrb[185].mxu0  ;;  %v3572_v15 = vld [vmem:[#allocation20 + $0xa8] sm:$0xff] }
 0x6b9   :  { %v2686_v24 = vadd.f32 %v8747_v3, %v2597_v46  ;;  %3059 = vmatprep.mubr.f32.mxu1 %v2748_v22  ;;  %v6546_v22 = vpack.c.bf16 %v3569_v39, %v3567_v18  ;;  %v3592_v18 = vld [vmem:[#allocation20 + $0x148] sm:$0xff] }
 0x6ba   :  { %3060 = vmatmul.mubr.f32.gmra.mrb[182].mxu1 %v2747_v23  ;;  %v2749_v48 = vmax.f32 %v2685_v16, 0.0  ;;  %v3574_v23 = vld [vmem:[#allocation20 + $0xb8] sm:$0xff]  ;;  %v3571_v16 = vld [vmem:[#allocation20 + $0xa0] sm:$0xff] }
 0x6bb   :  { %v2750_v25 = vmax.f32 %v2686_v24, 0.0  ;;  %v2601_v26 = vpop.f32.mrb[186].mxu0 }
 0x6bc   :  { %v2687_v27 = vadd.f32 %v8744_v2, %v2601_v26  ;;  %v2603_v28 = vpop.f32.mrb[187].mxu0  ;;  %v3573_v26 = vld [vmem:[#allocation20 + $0xb0] sm:$0xff] }
 0x6bd   :  { %v2688_v29 = vadd.f32 %v8747_v3, %v2603_v28  ;;  %3065 = vmatprep.mubr.f32.mxu1 %v2750_v25  ;;  %v6548_v25 = vpack.c.bf16 %v3574_v23, %v3572_v15 }
 0x6be   :  { %3066 = vmatmul.mubr.f32.gmra.mrb[184].mxu1 %v2749_v48  ;;  %v2751_v31 = vmax.f32 %v2687_v27, 0.0  ;;  %v3576_v48 = vld [vmem:[#allocation20 + $0xc8] sm:$0xff]  ;;  %v3578_v27 = vld [vmem:[#allocation20 + $0xd8] sm:$0xff] }
 0x6bf   :  { %v2752_v56 = vmax.f32 %v2688_v29, 0.0  ;;  %v2607_v30 = vpop.f32.mrb[188].mxu0 }
 0x6c0   :  { %v2689_v32 = vadd.f32 %v8744_v2, %v2607_v30  ;;  %v2609_v57 = vpop.f32.mrb[189].mxu0  ;;  %v6550_v30 = vpack.c.bf16 %v3573_v26, %v3571_v16  ;;  %v3591_v16 = vld [vmem:[#allocation20 + $0x140] sm:$0xff]  ;;  %v3598_v26 = vld [vmem:[#allocation20 + $0x178] sm:$0xff] }
 0x6c1   :  { %v2690_v33 = vadd.f32 %v8747_v3, %v2609_v57  ;;  %3071 = vmatprep.mubr.f32.mxu1 %v2752_v56  ;;  %v3577_v57 = vld [vmem:[#allocation20 + $0xd0] sm:$0xff] }
 0x6c2   :  { %3072 = vmatmul.mubr.f32.gmra.mrb[186].mxu1 %v2751_v31  ;;  %v2753_v36 = vmax.f32 %v2689_v32, 0.0  ;;  %v6552_v31 = vpack.c.bf16 %v3578_v27, %v3576_v48  ;;  %v3575_v32 = vld [vmem:[#allocation20 + $0xc0] sm:$0xff] }
 0x6c3   :  { %v2754_v34 = vmax.f32 %v2690_v33, 0.0  ;;  %v2613_v35 = vpop.f32.mrb[190].mxu0 }
 0x6c4   :  { %v2691_v38 = vadd.f32 %v8744_v2, %v2613_v35  ;;  %v2615_v40 = vpop.f32.mrb[191].mxu0  ;;  %v6532_v2 = vpack.c.bf16 %v3558_v55, %v3556_v54  ;;  %v3582_v35 = vld [vmem:[#allocation20 + $0xf8] sm:$0xff] }
 0x6c5   :  { %v2692_v41 = vadd.f32 %v8747_v3, %v2615_v40  ;;  %3077 = vmatprep.mubr.f32.mxu1 %v2754_v34  ;;  %v6534_v3 = vpack.c.bf16 %v3557_v59, %v3555_v58  ;;  %v3580_v34 = vld [vmem:[#allocation20 + $0xe8] sm:$0xff]  ;;  %v6554_v40 = vpack.c.bf16 %v3577_v57, %v3575_v32  ;;  %v3595_v32 = vld [vmem:[#allocation20 + $0x160] sm:$0xff]  ;;  %v3597_v57 = vld [vmem:[#allocation20 + $0x170] sm:$0xff] }
 0x6c6   :  { %3078 = vmatmul.mubr.f32.gmra.mrb[188].mxu1 %v2753_v36  ;;  %v2755_v43 = vmax.f32 %v2691_v38, 0.0  ;;  %6533 = vmatprep.subr.bf16.mxu0 %v6532_v2  ;;  %v6556_v44 = vpack.c.bf16 %v3582_v35, %v3580_v34  ;;  %v6558_v2 = vpack.c.bf16 %v3581_v49, %v3579_v45  ;;  %v3600_v34 = vld [vmem:[#allocation20 + $0x188] sm:$0xff]  ;;  %v3602_v35 = vld [vmem:[#allocation20 + $0x198] sm:$0xff]  ;;  %v3599_v45 = vld [vmem:[#allocation20 + $0x180] sm:$0xff] }
 0x6c7   :  { %v2756_v42 = vmax.f32 %v2692_v41, 0.0  ;;  %6535 = vmatpush1.bf16.msra.mxu0 %v6534_v3  ;;  %v3601_v49 = vld [vmem:[#allocation20 + $0x190] sm:$0xff] }
 0x6c8   :  { %6537 = vmatprep.subr.bf16.mxu0 %v6536_v62  ;;  %v3585_v62 = vld [vmem:[#allocation20 + $0x110] sm:$0xff] }
 0x6c9   :  { %3083 = vmatprep.mubr.f32.mxu1 %v2756_v42  ;;  %v6562_v6 = vpack.c.bf16 %v3585_v62, %v3583_v61  ;;  %v3603_v61 = vld [vmem:[#allocation20 + $0x1a0] sm:$0xff]  ;;  %v3605_v62 = vld [vmem:[#allocation20 + $0x1b0] sm:$0xff] }
 0x6ca   :  { %3084 = vmatmul.mubr.f32.gmra.mrb[190].mxu1 %v2755_v43 }
 0x6cb   :  { %6539 = vmatpush1.bf16.msra.mxu0 %v6538_v4  ;;  %v3590_v4 = vld [vmem:[#allocation20 + $0x138] sm:$0xff] }
 0x6cc   :  { %6541 = vmatprep.subr.bf16.mxu0 %v6540_v7 }
 0x6cf   :  { %6543 = vmatpush1.bf16.msra.mxu0 %v6542_v11  ;;  %v6564_v11 = vpack.c.bf16 %v3590_v4, %v3588_v1  ;;  %v3608_v1 = vld [vmem:[#allocation20 + $0x1c8] sm:$0xff]  ;;  %v3610_v4 = vld [vmem:[#allocation20 + $0x1d8] sm:$0xff] }
 0x6d0   :  { %6545 = vmatprep.subr.bf16.mxu0 %v6544_v20 }
 0x6d3   :  { %6547 = vmatpush1.bf16.msra.mxu0 %v6546_v22 }
 0x6d4   :  { %6549 = vmatprep.subr.bf16.mxu0 %v6548_v25  ;;  %v3596_v25 = vld [vmem:[#allocation20 + $0x168] sm:$0xff] }
 0x6d7   :  { %6551 = vmatpush1.bf16.msra.mxu0 %v6550_v30 }
 0x6d8   :  { %6553 = vmatprep.subr.bf16.mxu0 %v6552_v31  ;;  %v6572_v31 = vpack.c.bf16 %v3598_v26, %v3596_v25 }
 0x6db   :  { %6555 = vmatpush1.bf16.msra.mxu0 %v6554_v40  ;;  %v6574_v40 = vpack.c.bf16 %v3597_v57, %v3595_v32 }
 0x6dc   :  { %6557 = vmatprep.subr.bf16.mxu0 %v6556_v44  ;;  %v6576_v44 = vpack.c.bf16 %v3602_v35, %v3600_v34 }
 0x6df   :  { %6559 = vmatpush1.bf16.msra.mxu0 %v6558_v2  ;;  %v6578_v2 = vpack.c.bf16 %v3601_v49, %v3599_v45 }
 0x6e0   :  { %6561 = vmatprep.subr.bf16.mxu0 %v6560_v60  ;;  %v6580_v60 = vpack.c.bf16 %v3606_v53, %v3604_v52 }
 0x6e3   :  { %6563 = vmatpush1.bf16.msra.mxu0 %v6562_v6  ;;  %v6582_v6 = vpack.c.bf16 %v3605_v62, %v3603_v61 }
 0x6e4   :  { %6565 = vmatprep.subr.bf16.mxu0 %v6564_v11  ;;  %v6584_v11 = vpack.c.bf16 %v3610_v4, %v3608_v1 }
 0x721   :  { %v2899_v13 = vpop.f32.mrb[128].mxu1 }
 0x722   :  { %v2900_v37 = vadd.f32 %v2899_v13, %v8814_v10  ;;  %v2901_v19 = vpop.f32.mrb[129].mxu1  ;;  %v3587_v13 = vld [vmem:[#allocation20 + $0x120] sm:$0xff] }
 0x723   :  { %v2902_v21 = vadd.f32 %v2901_v19, %v8817_v12  ;;  %v6566_v39 = vpack.c.bf16 %v3589_v14, %v3587_v13  ;;  %v3607_v13 = vld [vmem:[#allocation20 + $0x1c0] sm:$0xff]  ;;  %v3609_v14 = vld [vmem:[#allocation20 + $0x1d0] sm:$0xff] }
 0x724   :  { %v3090_v28 = vmax.f32 %v2900_v37, 0.0  ;;  %v3594_v37 = vld [vmem:[#allocation20 + $0x158] sm:$0xff] }
 0x725   :  { %v2905_v46 = vpop.f32.mrb[130].mxu1  ;;  %v3091_v24 = vmax.f32 %v2902_v21, 0.0  ;;  %v6568_v23 = vpack.c.bf16 %v3594_v37, %v3592_v18  ;;  %6567 = vmatpush1.bf16.msra.mxu0 %v6566_v39  ;;  %v3612_v18 = vld [vmem:[#allocation20 + $0x1e8] sm:$0xff]  ;;  %v3614_v37 = vld [vmem:[#allocation20 + $0x1f8] sm:$0xff]  ;;  %v6586_v39 = vpack.c.bf16 %v3609_v14, %v3607_v13 }
 0x726   :  { %v2906_v29 = vadd.f32 %v2905_v46, %v8814_v10  ;;  %v2907_v56 = vpop.f32.mrb[131].mxu1  ;;  %v3593_v46 = vld [vmem:[#allocation20 + $0x150] sm:$0xff] }
 0x727   :  { %v2908_v33 = vadd.f32 %v2907_v56, %v8817_v12  ;;  %3294 = vmatprep.mubr.f32.mxu1 %v3091_v24  ;;  %6569 = vmatprep.subr.bf16.mxu0 %v6568_v23  ;;  %v6588_v23 = vpack.c.bf16 %v3614_v37, %v3612_v18 }
 0x728   :  { %3295 = vmatmul.mubr.f32.vlgmr.msra.gmra.mrb[192].mxu1 %v3090_v28  ;;  %v3092_v43 = vmax.f32 %v2906_v29, 0.0  ;;  %v6570_v28 = vpack.c.bf16 %v3593_v46, %v3591_v16  ;;  %v3611_v16 = vld [vmem:[#allocation20 + $0x1e0] sm:$0xff]  ;;  %v3613_v46 = vld [vmem:[#allocation20 + $0x1f0] sm:$0xff] }
 0x729   :  { %v2911_v36 = vpop.f32.mrb[132].mxu1  ;;  %v3093_v38 = vmax.f32 %v2908_v33, 0.0 }
 0x72a   :  { %v2912_v41 = vadd.f32 %v2911_v36, %v8814_v10  ;;  %v2913_v42 = vpop.f32.mrb[133].mxu1  ;;  %6571 = vmatpush1.bf16.msra.mxu0 %v6570_v28 }
 0x72b   :  { %v2914_v50 = vadd.f32 %v2913_v42, %v8817_v12  ;;  %3300 = vmatprep.mubr.f32.mxu1 %v3093_v38  ;;  %6573 = vmatprep.subr.bf16.mxu0 %v6572_v31 }
 0x72c   :  { %3301 = vmatmul.mubr.f32.gmra.mrb[194].mxu1 %v3092_v43  ;;  %v3094_v3 = vmax.f32 %v2912_v41, 0.0 }
 0x72d   :  { %v2917_v54 = vpop.f32.mrb[134].mxu1  ;;  %v3095_v55 = vmax.f32 %v2914_v50, 0.0 }
 0x72e   :  { %v2918_v58 = vadd.f32 %v2917_v54, %v8814_v10  ;;  %v2919_v59 = vpop.f32.mrb[135].mxu1  ;;  %6575 = vmatpush1.bf16.msra.mxu0 %v6574_v40 }
 0x72f   :  { %v2920_v63 = vadd.f32 %v2919_v59, %v8817_v12  ;;  %3306 = vmatprep.mubr.f32.mxu1 %v3095_v55  ;;  %6577 = vmatprep.subr.bf16.mxu0 %v6576_v44 }
 0x730   :  { %3307 = vmatmul.mubr.f32.gmra.mrb[196].mxu1 %v3094_v3  ;;  %v3096_v9 = vmax.f32 %v2918_v58, 0.0 }
 0x731   :  { %v2923_v0 = vpop.f32.mrb[136].mxu1  ;;  %v3097_v5 = vmax.f32 %v2920_v63, 0.0 }
 0x732   :  { %v2924_v7 = vadd.f32 %v2923_v0, %v8814_v10  ;;  %v2925_v8 = vpop.f32.mrb[137].mxu1  ;;  %6579 = vmatpush1.bf16.msra.mxu0 %v6578_v2 }
 0x733   :  { %v2926_v17 = vadd.f32 %v2925_v8, %v8817_v12  ;;  %3312 = vmatprep.mubr.f32.mxu1 %v3097_v5  ;;  %6581 = vmatprep.subr.bf16.mxu0 %v6580_v60 }
 0x734   :  { %3313 = vmatmul.mubr.f32.gmra.mrb[198].mxu1 %v3096_v9  ;;  %v3098_v15 = vmax.f32 %v2924_v7, 0.0 }
 0x735   :  { %v2929_v19 = vpop.f32.mrb[138].mxu1  ;;  %v3099_v20 = vmax.f32 %v2926_v17, 0.0 }
 0x736   :  { %v2930_v21 = vadd.f32 %v2929_v19, %v8814_v10  ;;  %v2931_v22 = vpop.f32.mrb[139].mxu1  ;;  %6583 = vmatpush1.bf16.msra.mxu0 %v6582_v6 }
 0x737   :  { %v2932_v24 = vadd.f32 %v2931_v22, %v8817_v12  ;;  %3318 = vmatprep.mubr.f32.mxu1 %v3099_v20  ;;  %6585 = vmatprep.subr.bf16.mxu0 %v6584_v11 }
 0x738   :  { %3319 = vmatmul.mubr.f32.gmra.mrb[200].mxu1 %v3098_v15  ;;  %v3100_v30 = vmax.f32 %v2930_v21, 0.0 }
 0x739   :  { %v2935_v48 = vpop.f32.mrb[140].mxu1  ;;  %v3101_v27 = vmax.f32 %v2932_v24, 0.0 }
 0x73a   :  { %v2936_v29 = vadd.f32 %v2935_v48, %v8814_v10  ;;  %v2937_v56 = vpop.f32.mrb[141].mxu1  ;;  %6587 = vmatpush1.bf16.msra.mxu0 %v6586_v39  ;;  %v6590_v48 = vpack.c.bf16 %v3613_v46, %v3611_v16 }
 0x73b   :  { %v2938_v33 = vadd.f32 %v2937_v56, %v8817_v12  ;;  %3324 = vmatprep.mubr.f32.mxu1 %v3101_v27  ;;  %6589 = vmatprep.subr.bf16.mxu0 %v6588_v23 }
 0x73c   :  { %3325 = vmatmul.mubr.f32.gmra.mrb[202].mxu1 %v3100_v30  ;;  %v3102_v43 = vmax.f32 %v2936_v29, 0.0 }
 0x73d   :  { %v2941_v36 = vpop.f32.mrb[142].mxu1  ;;  %v3103_v38 = vmax.f32 %v2938_v33, 0.0 }
 0x73e   :  { %v2942_v41 = vadd.f32 %v2941_v36, %v8814_v10  ;;  %v2943_v42 = vpop.f32.mrb[143].mxu1  ;;  %6591 = vmatpush1.bf16.msra.mxu0 %v6590_v48 }
 0x73f   :  { %v2944_v50 = vadd.f32 %v2943_v42, %v8817_v12  ;;  %3330 = vmatprep.mubr.f32.mxu1 %v3103_v38 }
 0x740   :  { %3331 = vmatmul.mubr.f32.gmra.mrb[204].mxu1 %v3102_v43  ;;  %v3104_v3 = vmax.f32 %v2942_v41, 0.0 }
 0x741   :  { %v2947_v54 = vpop.f32.mrb[144].mxu1  ;;  %v3105_v55 = vmax.f32 %v2944_v50, 0.0 }
 0x742   :  { %v2948_v58 = vadd.f32 %v2947_v54, %v8814_v10  ;;  %v2949_v59 = vpop.f32.mrb[145].mxu1 }
 0x743   :  { %v2950_v63 = vadd.f32 %v2949_v59, %v8817_v12  ;;  %3336 = vmatprep.mubr.f32.mxu1 %v3105_v55 }
 0x744   :  { %3337 = vmatmul.mubr.f32.gmra.mrb[206].mxu1 %v3104_v3  ;;  %v3106_v9 = vmax.f32 %v2948_v58, 0.0 }
 0x745   :  { %v2953_v0 = vpop.f32.mrb[146].mxu1  ;;  %v3107_v5 = vmax.f32 %v2950_v63, 0.0 }
 0x746   :  { %v2954_v7 = vadd.f32 %v2953_v0, %v8814_v10  ;;  %v2955_v8 = vpop.f32.mrb[147].mxu1 }
 0x747   :  { %v2956_v17 = vadd.f32 %v2955_v8, %v8817_v12  ;;  %3342 = vmatprep.mubr.f32.mxu1 %v3107_v5 }
 0x748   :  { %3343 = vmatmul.mubr.f32.gmra.mrb[208].mxu1 %v3106_v9  ;;  %v3108_v15 = vmax.f32 %v2954_v7, 0.0 }
 0x749   :  { %v2959_v19 = vpop.f32.mrb[148].mxu1  ;;  %v3109_v20 = vmax.f32 %v2956_v17, 0.0 }
 0x74a   :  { %v2960_v21 = vadd.f32 %v2959_v19, %v8814_v10  ;;  %v2961_v22 = vpop.f32.mrb[149].mxu1 }
 0x74b   :  { %v2962_v24 = vadd.f32 %v2961_v22, %v8817_v12  ;;  %3348 = vmatprep.mubr.f32.mxu1 %v3109_v20 }
 0x74c   :  { %3349 = vmatmul.mubr.f32.gmra.mrb[210].mxu1 %v3108_v15  ;;  %v3110_v29 = vmax.f32 %v2960_v21, 0.0 }
 0x74d   :  { %v2965_v25 = vpop.f32.mrb[150].mxu1  ;;  %v3111_v26 = vmax.f32 %v2962_v24, 0.0 }
 0x74e   :  { %v2966_v27 = vadd.f32 %v2965_v25, %v8814_v10  ;;  %v2967_v28 = vpop.f32.mrb[151].mxu1 }
 0x74f   :  { %v2968_v56 = vadd.f32 %v2967_v28, %v8817_v12  ;;  %3354 = vmatprep.mubr.f32.mxu1 %v3111_v26 }
 0x750   :  { %3355 = vmatmul.mubr.f32.gmra.mrb[212].mxu1 %v3110_v29  ;;  %v3112_v33 = vmax.f32 %v2966_v27, 0.0 }
 0x751   :  { %v2971_v30 = vpop.f32.mrb[152].mxu1  ;;  %v3113_v31 = vmax.f32 %v2968_v56, 0.0 }
 0x752   :  { %v2972_v32 = vadd.f32 %v2971_v30, %v8814_v10  ;;  %v2973_v57 = vpop.f32.mrb[153].mxu1 }
 0x753   :  { %v2974_v34 = vadd.f32 %v2973_v57, %v8817_v12  ;;  %3360 = vmatprep.mubr.f32.mxu1 %v3113_v31 }
 0x754   :  { %3361 = vmatmul.mubr.f32.gmra.mrb[214].mxu1 %v3112_v33  ;;  %v3114_v41 = vmax.f32 %v2972_v32, 0.0 }
 0x755   :  { %v2977_v35 = vpop.f32.mrb[154].mxu1  ;;  %v3115_v36 = vmax.f32 %v2974_v34, 0.0 }
 0x756   :  { %v2978_v38 = vadd.f32 %v2977_v35, %v8814_v10  ;;  %v2979_v40 = vpop.f32.mrb[155].mxu1 }
 0x757   :  { %v2980_v42 = vadd.f32 %v2979_v40, %v8817_v12  ;;  %3366 = vmatprep.mubr.f32.mxu1 %v3115_v36 }
 0x758   :  { %3367 = vmatmul.mubr.f32.gmra.mrb[216].mxu1 %v3114_v41  ;;  %v3116_v50 = vmax.f32 %v2978_v38, 0.0 }
 0x759   :  { %v2983_v43 = vpop.f32.mrb[156].mxu1  ;;  %v3117_v44 = vmax.f32 %v2980_v42, 0.0 }
 0x75a   :  { %v2984_v45 = vadd.f32 %v2983_v43, %v8814_v10  ;;  %v2985_v49 = vpop.f32.mrb[157].mxu1 }
 0x75b   :  { %v2986_v52 = vadd.f32 %v2985_v49, %v8817_v12  ;;  %3372 = vmatprep.mubr.f32.mxu1 %v3117_v44 }
 0x75c   :  { %3373 = vmatmul.mubr.f32.gmra.mrb[218].mxu1 %v3116_v50  ;;  %v3118_v58 = vmax.f32 %v2984_v45, 0.0 }
 0x75d   :  { %v2989_v53 = vpop.f32.mrb[158].mxu1  ;;  %v3119_v54 = vmax.f32 %v2986_v52, 0.0 }
 0x75e   :  { %v2990_v55 = vadd.f32 %v2989_v53, %v8814_v10  ;;  %v2991_v2 = vpop.f32.mrb[159].mxu1 }
 0x75f   :  { %v2992_v59 = vadd.f32 %v2991_v2, %v8817_v12  ;;  %3378 = vmatprep.mubr.f32.mxu1 %v3119_v54 }
 0x760   :  { %3379 = vmatmul.mubr.f32.gmra.mrb[220].mxu1 %v3118_v58  ;;  %v3120_v63 = vmax.f32 %v2990_v55, 0.0 }
 0x761   :  { %v2995_v3 = vpop.f32.mrb[160].mxu1  ;;  %v3121_v60 = vmax.f32 %v2992_v59, 0.0 }
 0x762   :  { %v2996_v61 = vadd.f32 %v2995_v3, %v8814_v10  ;;  %v2997_v62 = vpop.f32.mrb[161].mxu1 }
 0x763   :  { %v2998_v1 = vadd.f32 %v2997_v62, %v8817_v12  ;;  %3384 = vmatprep.mubr.f32.mxu1 %v3121_v60 }
 0x764   :  { %3385 = vmatmul.mubr.f32.gmra.mrb[222].mxu1 %v3120_v63  ;;  %v3122_v5 = vmax.f32 %v2996_v61, 0.0 }
 0x765   :  { %v3123_v4 = vmax.f32 %v2998_v1, 0.0  ;;  %v3001_v0 = vpop.f32.mrb[162].mxu1 }
 0x766   :  { %v3002_v6 = vadd.f32 %v3001_v0, %v8814_v10  ;;  %v3003_v7 = vpop.f32.mrb[163].mxu1 }
 0x767   :  { %v3004_v8 = vadd.f32 %v3003_v7, %v8817_v12  ;;  %3390 = vmatprep.mubr.f32.mxu1 %v3123_v4 }
 0x768   :  { %3391 = vmatmul.mubr.f32.gmra.mrb[224].mxu1 %v3122_v5  ;;  %v3124_v13 = vmax.f32 %v3002_v6, 0.0 }
 0x769   :  { %v3125_v9 = vmax.f32 %v3004_v8, 0.0  ;;  %v3007_v11 = vpop.f32.mrb[164].mxu1 }
 0x76a   :  { %v3008_v14 = vadd.f32 %v3007_v11, %v8814_v10  ;;  %v3009_v17 = vpop.f32.mrb[165].mxu1 }
 0x76b   :  { %v3010_v18 = vadd.f32 %v3009_v17, %v8817_v12  ;;  %3396 = vmatprep.mubr.f32.mxu1 %v3125_v9 }
 0x76c   :  { %3397 = vmatmul.mubr.f32.gmra.mrb[226].mxu1 %v3124_v13  ;;  %v3126_v20 = vmax.f32 %v3008_v14, 0.0 }
 0x76d   :  { %v3127_v37 = vmax.f32 %v3010_v18, 0.0  ;;  %v3013_v19 = vpop.f32.mrb[166].mxu1 }
 0x76e   :  { %v3014_v39 = vadd.f32 %v3013_v19, %v8814_v10  ;;  %v3015_v21 = vpop.f32.mrb[167].mxu1 }
 0x76f   :  { %v3016_v22 = vadd.f32 %v3015_v21, %v8817_v12  ;;  %3402 = vmatprep.mubr.f32.mxu1 %v3127_v37 }
 0x770   :  { %3403 = vmatmul.mubr.f32.gmra.mrb[228].mxu1 %v3126_v20  ;;  %v3128_v16 = vmax.f32 %v3014_v39, 0.0 }
 0x771   :  { %v3129_v15 = vmax.f32 %v3016_v22, 0.0  ;;  %v3019_v23 = vpop.f32.mrb[168].mxu1 }
 0x772   :  { %v3020_v46 = vadd.f32 %v3019_v23, %v8814_v10  ;;  %v3021_v24 = vpop.f32.mrb[169].mxu1 }
 0x773   :  { %v3022_v25 = vadd.f32 %v3021_v24, %v8817_v12  ;;  %3408 = vmatprep.mubr.f32.mxu1 %v3129_v15 }
 0x774   :  { %3409 = vmatmul.mubr.f32.gmra.mrb[230].mxu1 %v3128_v16  ;;  %v3130_v27 = vmax.f32 %v3020_v46, 0.0 }
 0x775   :  { %v3131_v26 = vmax.f32 %v3022_v25, 0.0  ;;  %v3025_v48 = vpop.f32.mrb[170].mxu1 }
 0x776   :  { %v3026_v28 = vadd.f32 %v3025_v48, %v8814_v10  ;;  %v3027_v29 = vpop.f32.mrb[171].mxu1 }
 0x777   :  { %v3028_v56 = vadd.f32 %v3027_v29, %v8817_v12  ;;  %3414 = vmatprep.mubr.f32.mxu1 %v3131_v26 }
 0x778   :  { %3415 = vmatmul.mubr.f32.gmra.mrb[232].mxu1 %v3130_v27  ;;  %v3132_v32 = vmax.f32 %v3026_v28, 0.0 }
 0x779   :  { %v3133_v30 = vmax.f32 %v3028_v56, 0.0  ;;  %v3031_v31 = vpop.f32.mrb[172].mxu1 }
 0x77a   :  { %v3032_v57 = vadd.f32 %v3031_v31, %v8814_v10  ;;  %v3033_v33 = vpop.f32.mrb[173].mxu1 }
 0x77b   :  { %v3034_v34 = vadd.f32 %v3033_v33, %v8817_v12  ;;  %3420 = vmatprep.mubr.f32.mxu1 %v3133_v30 }
 0x77c   :  { %3421 = vmatmul.mubr.f32.gmra.mrb[234].mxu1 %v3132_v32  ;;  %v3134_v38 = vmax.f32 %v3032_v57, 0.0  ;;  %v3949_v32 = vld [vmem:[#allocation23 + $0x8] sm:$0xff]  ;;  %v3951_v57 = vld [vmem:[#allocation23 + $0x18] sm:$0xff] }
 0x77d   :  { %v3135_v35 = vmax.f32 %v3034_v34, 0.0  ;;  %v3037_v36 = vpop.f32.mrb[174].mxu1  ;;  %v6640_v33 = vpack.c.bf16 %v3951_v57, %v3949_v32  ;;  %v3218_v34 = vld [vmem:[#allocation19] sm:$0x3]  ;;  %v3962_v32 = vld [vmem:[#allocation23 + $0x70] sm:$0xff] }
 0x77e   :  { %v3038_v40 = vadd.f32 %v3037_v36, %v8814_v10  ;;  %v3039_v41 = vpop.f32.mrb[175].mxu1  ;;  %v4050_v36 = vld [vmem:[#allocation28] sm:$0xff]  ;;  %v4060_v57 = vld [vmem:[#allocation28 + $0x50] sm:$0xff] }
 0x77f   :  { %v3040_v42 = vadd.f32 %v3039_v41, %v8817_v12  ;;  %3426 = vmatprep.mubr.f32.mxu1 %v3135_v35  ;;  %6641 = vmatprep.subr.bf16.mxu0 %v6640_v33  ;;  %v7504_v35 = vmov 0.0|0.0   ;;  %v4061_v33 = vld [vmem:[#allocation28 + $0x58] sm:$0xff] }
 0x780   :  { %3427 = vmatmul.mubr.f32.gmra.mrb[236].mxu1 %v3134_v38  ;;  %v3136_v45 = vmax.f32 %v3038_v40, 0.0  ;;  %6592 = vmatprep.subr.bf16.mxu1 %v7504_v35  ;;  %v4051_v38 = vld [vmem:[#allocation28 + $0x8] sm:$0xff]  ;;  %v8888_v40 = vrot.slane %v3218_v34, %v8295_v51 }
 0x781   :  { %v3137_v43 = vmax.f32 %v3040_v42, 0.0  ;;  %v3043_v44 = vpop.f32.mrb[176].mxu1  ;;  %v4052_v42 = vld [vmem:[#allocation28 + $0x10] sm:$0xff] }
 0x782   :  { %v3044_v49 = vadd.f32 %v3043_v44, %v8814_v10  ;;  %v3045_v50 = vpop.f32.mrb[177].mxu1 }
 0x783   :  { %v3046_v52 = vadd.f32 %v3045_v50, %v8817_v12  ;;  %3432 = vmatprep.mubr.f32.mxu1 %v3137_v43  ;;  %v4053_v50 = vld [vmem:[#allocation28 + $0x18] sm:$0xff] }
 0x784   :  { %3433 = vmatmul.mubr.f32.gmra.mrb[238].mxu1 %v3136_v45  ;;  %v3138_v55 = vmax.f32 %v3044_v49, 0.0  ;;  %v3948_v45 = vld [vmem:[#allocation23] sm:$0xff]  ;;  %v3950_v49 = vld [vmem:[#allocation23 + $0x10] sm:$0xff] }
 0x785   :  { %v3139_v53 = vmax.f32 %v3046_v52, 0.0  ;;  %v3049_v54 = vpop.f32.mrb[178].mxu1 }
 0x786   :  { %v3050_v2 = vadd.f32 %v3049_v54, %v8814_v10  ;;  %v3051_v58 = vpop.f32.mrb[179].mxu1  ;;  %v3955_v54 = vld [vmem:[#allocation23 + $0x38] sm:$0xff] }
 0x787   :  { %v3052_v59 = vadd.f32 %v3051_v58, %v8817_v12  ;;  %3438 = vmatprep.mubr.f32.mxu1 %v3139_v53  ;;  %v3953_v53 = vld [vmem:[#allocation23 + $0x28] sm:$0xff] }
 0x788   :  { %3439 = vmatmul.mubr.f32.gmra.mrb[240].mxu1 %v3138_v55  ;;  %v3140_v61 = vmax.f32 %v3050_v2, 0.0  ;;  %v6596_v55 = vpack.c.bf16 %v4053_v50, %v4052_v42  ;;  %v4054_v2 = vld [vmem:[#allocation28 + $0x20] sm:$0xff] }
 0x789   :  { %v3141_v3 = vmax.f32 %v3052_v59, 0.0  ;;  %v3055_v60 = vpop.f32.mrb[180].mxu1 }
 0x78a   :  { %v3056_v62 = vadd.f32 %v3055_v60, %v8814_v10  ;;  %v3057_v63 = vpop.f32.mrb[181].mxu1  ;;  %v4055_v60 = vld [vmem:[#allocation28 + $0x28] sm:$0xff] }
 0x78b   :  { %v3058_v1 = vadd.f32 %v3057_v63, %v8817_v12  ;;  %3444 = vmatprep.mubr.f32.mxu1 %v3141_v3  ;;  %v6642_v3 = vpack.c.bf16 %v3950_v49, %v3948_v45 }
 0x78c   :  { %3445 = vmatmul.mubr.f32.gmra.mrb[242].mxu1 %v3140_v61  ;;  %v3142_v5 = vmax.f32 %v3056_v62, 0.0 }
 0x78d   :  { %v3143_v4 = vmax.f32 %v3058_v1, 0.0  ;;  %v3061_v0 = vpop.f32.mrb[182].mxu1  ;;  %v6644_v1 = vpack.c.bf16 %v3955_v54, %v3953_v53  ;;  %v3966_v53 = vld [vmem:[#allocation23 + $0x90] sm:$0xff]  ;;  %v4062_v54 = vld [vmem:[#allocation28 + $0x60] sm:$0xff] }
 0x78e   :  { %v3062_v6 = vadd.f32 %v3061_v0, %v8814_v10  ;;  %v3063_v7 = vpop.f32.mrb[183].mxu1  ;;  %v3954_v0 = vld [vmem:[#allocation23 + $0x30] sm:$0xff] }
 0x78f   :  { %v3064_v8 = vadd.f32 %v3063_v7, %v8817_v12  ;;  %3450 = vmatprep.mubr.f32.mxu1 %v3143_v4  ;;  %v3952_v4 = vld [vmem:[#allocation23 + $0x20] sm:$0xff] }
 0x790   :  { %3451 = vmatmul.mubr.f32.gmra.mrb[244].mxu1 %v3142_v5  ;;  %v3144_v13 = vmax.f32 %v3062_v6, 0.0  ;;  %v6599_v5 = vpack.c.bf16 %v4055_v60, %v4054_v2  ;;  %v4056_v6 = vld [vmem:[#allocation28 + $0x30] sm:$0xff] }
 0x791   :  { %v3145_v9 = vmax.f32 %v3064_v8, 0.0  ;;  %v3067_v11 = vpop.f32.mrb[184].mxu1  ;;  %v3957_v8 = vld [vmem:[#allocation23 + $0x48] sm:$0xff] }
 0x792   :  { %v3068_v14 = vadd.f32 %v3067_v11, %v8814_v10  ;;  %v3069_v17 = vpop.f32.mrb[185].mxu1  ;;  %v4057_v11 = vld [vmem:[#allocation28 + $0x38] sm:$0xff] }
 0x793   :  { %v3070_v18 = vadd.f32 %v3069_v17, %v8817_v12  ;;  %3456 = vmatprep.mubr.f32.mxu1 %v3145_v9  ;;  %v3959_v9 = vld [vmem:[#allocation23 + $0x58] sm:$0xff]  ;;  %v6646_v17 = vpack.c.bf16 %v3954_v0, %v3952_v4 }
 0x794   :  { %3457 = vmatmul.mubr.f32.gmra.mrb[246].mxu1 %v3144_v13  ;;  %v3146_v20 = vmax.f32 %v3068_v14, 0.0 }
 0x795   :  { %v3147_v37 = vmax.f32 %v3070_v18, 0.0  ;;  %v3073_v19 = vpop.f32.mrb[186].mxu1  ;;  %v3956_v18 = vld [vmem:[#allocation23 + $0x40] sm:$0xff] }
 0x796   :  { %v3074_v39 = vadd.f32 %v3073_v19, %v8814_v10  ;;  %v3075_v21 = vpop.f32.mrb[187].mxu1 }
 0x797   :  { %v3076_v22 = vadd.f32 %v3075_v21, %v8817_v12  ;;  %3462 = vmatprep.mubr.f32.mxu1 %v3147_v37  ;;  %v6602_v37 = vpack.c.bf16 %v4057_v11, %v4056_v6  ;;  %v6648_v21 = vpack.c.bf16 %v3959_v9, %v3957_v8  ;;  %v3970_v6 = vld [vmem:[#allocation23 + $0xb0] sm:$0xff]  ;;  %v4065_v8 = vld [vmem:[#allocation28 + $0x78] sm:$0xff]  ;;  %v3973_v11 = vld [vmem:[#allocation23 + $0xc8] sm:$0xff] }
 0x798   :  { %3463 = vmatmul.mubr.f32.gmra.mrb[248].mxu1 %v3146_v20  ;;  %v3148_v16 = vmax.f32 %v3074_v39, 0.0 }
 0x799   :  { %v3149_v15 = vmax.f32 %v3076_v22, 0.0  ;;  %v3079_v23 = vpop.f32.mrb[188].mxu1  ;;  %v3958_v22 = vld [vmem:[#allocation23 + $0x50] sm:$0xff] }
 0x79a   :  { %v3080_v46 = vadd.f32 %v3079_v23, %v8814_v10  ;;  %v3081_v24 = vpop.f32.mrb[189].mxu1  ;;  %v4059_v23 = vld [vmem:[#allocation28 + $0x48] sm:$0xff] }
 0x79b   :  { %v3082_v25 = vadd.f32 %v3081_v24, %v8817_v12  ;;  %3468 = vmatprep.mubr.f32.mxu1 %v3149_v15  ;;  %v4058_v15 = vld [vmem:[#allocation28 + $0x40] sm:$0xff]  ;;  %v3963_v24 = vld [vmem:[#allocation23 + $0x78] sm:$0xff] }
 0x79c   :  { %3469 = vmatmul.mubr.f32.gmra.mrb[250].mxu1 %v3148_v16  ;;  %v3150_v27 = vmax.f32 %v3080_v46, 0.0  ;;  %v3961_v46 = vld [vmem:[#allocation23 + $0x68] sm:$0xff] }
 0x79d   :  { %v3151_v26 = vmax.f32 %v3082_v25, 0.0  ;;  %v3085_v48 = vpop.f32.mrb[190].mxu1 }
 0x79e   :  { %v3086_v28 = vadd.f32 %v3085_v48, %v8814_v10  ;;  %v3087_v29 = vpop.f32.mrb[191].mxu1  ;;  %v8885_v10 = vrot.slane %v3218_v34, %v8290_v47  ;;  %v6650_v48 = vpack.c.bf16 %v3958_v22, %v3956_v18 }
 0x79f   :  { %v3088_v56 = vadd.f32 %v3087_v29, %v8817_v12  ;;  %3474 = vmatprep.mubr.f32.mxu1 %v3151_v26  ;;  %v6593_v12 = vpack.c.bf16 %v4051_v38, %v4050_v36  ;;  %v3965_v36 = vld [vmem:[#allocation23 + $0x88] sm:$0xff]  ;;  %v3967_v38 = vld [vmem:[#allocation23 + $0x98] sm:$0xff] }
 0x7a0   :  { %3475 = vmatmul.mubr.f32.gmra.mrb[252].mxu1 %v3150_v27  ;;  %v3152_v31 = vmax.f32 %v3086_v28, 0.0  ;;  %v3960_v27 = vld [vmem:[#allocation23 + $0x60] sm:$0xff]  ;;  %v6605_v28 = vpack.c.bf16 %v4059_v23, %v4058_v15  ;;  %v3974_v15 = vld [vmem:[#allocation23 + $0xd0] sm:$0xff] }
 0x7a1   :  { %v3153_v30 = vmax.f32 %v3088_v56, 0.0  ;;  %6594 = vmatpush1.bf16.msra.mxu1 %v6593_v12  ;;  %v6654_v42 = vpack.c.bf16 %v3962_v32, %v3960_v27  ;;  %v4066_v23 = vld [vmem:[#allocation28 + $0x80] sm:$0xff] }
 0x7a2   :  { %6595 = vmatprep.subr.bf16.mxu1 %v7504_v35 }
 0x7a3   :  { %3480 = vmatprep.mubr.f32.mxu1 %v3153_v30 }
 0x7a4   :  { %3481 = vmatmul.mubr.f32.gmra.mrb[254].mxu1 %v3152_v31  ;;  %v6652_v31 = vpack.c.bf16 %v3963_v24, %v3961_v46  ;;  %v3977_v24 = vld [vmem:[#allocation23 + $0xe8] sm:$0xff] }
 0x7a5   :  { %6597 = vmatpush1.bf16.msra.mxu1 %v6596_v55  ;;  %v4063_v55 = vld [vmem:[#allocation28 + $0x68] sm:$0xff] }
 0x7a6   :  { %6598 = vmatprep.subr.bf16.mxu1 %v7504_v35 }
 0x7a9   :  { %6600 = vmatpush1.bf16.msra.mxu1 %v6599_v5 }
 0x7aa   :  { %6601 = vmatprep.subr.bf16.mxu1 %v7504_v35 }
 0x7ad   :  { %6603 = vmatpush1.bf16.msra.mxu1 %v6602_v37  ;;  %v3972_v37 = vld [vmem:[#allocation23 + $0xc0] sm:$0xff] }
 0x7ae   :  { %6604 = vmatprep.subr.bf16.mxu1 %v7504_v35  ;;  %v6666_v27 = vpack.c.bf16 %v3974_v15, %v3972_v37 }
 0x7b1   :  { %6606 = vmatpush1.bf16.msra.mxu1 %v6605_v28  ;;  %v3976_v28 = vld [vmem:[#allocation23 + $0xe0] sm:$0xff] }
 0x7b2   :  { %6607 = vmatprep.subr.bf16.mxu1 %v7504_v35 }
 0x7fb   :  { %v3296_v41 = vpop.f32.mrb[192].mxu1 }
 0x7fc   :  { %v3297_v43 = vadd.f32 %v3296_v41, %v8885_v10  ;;  %v3298_v44 = vpop.f32.mrb[193].mxu1 }
 0x7fd   :  { %v3299_v52 = vadd.f32 %v3298_v44, %v8888_v40  ;;  %v6608_v44 = vpack.c.bf16 %v4061_v33, %v4060_v57  ;;  %v3978_v57 = vld [vmem:[#allocation23 + $0xf0] sm:$0xff] }
 0x7fe   :  { %v3487_v61 = vmax.f32 %v3297_v43, 0.0  ;;  %v3964_v43 = vld [vmem:[#allocation23 + $0x80] sm:$0xff]  ;;  %v4068_v33 = vld [vmem:[#allocation28 + $0x90] sm:$0xff] }
 0x7ff   :  { %v3488_v58 = vmax.f32 %v3299_v52, 0.0  ;;  %v3302_v59 = vpop.f32.mrb[194].mxu1  ;;  %v6656_v52 = vpack.c.bf16 %v3967_v38, %v3965_v36  ;;  %6609 = vmatpush1.bf16.msra.mxu1 %v6608_v44  ;;  %v3981_v38 = vld [vmem:[#allocation23 + $0x108] sm:$0xff]  ;;  %v3980_v44 = vld [vmem:[#allocation23 + $0x100] sm:$0xff] }
 0x800   :  { %v3303_v62 = vadd.f32 %v3302_v59, %v8885_v10  ;;  %v3304_v63 = vpop.f32.mrb[195].mxu1  ;;  %v3971_v59 = vld [vmem:[#allocation23 + $0xb8] sm:$0xff]  ;;  %6610 = vmatprep.subr.bf16.mxu1 %v7504_v35 }
 0x801   :  { %v3305_v7 = vadd.f32 %v3304_v63, %v8888_v40  ;;  %3691 = vmatprep.mubr.f32.mxu0 %v3488_v58  ;;  %v3969_v58 = vld [vmem:[#allocation23 + $0xa8] sm:$0xff]  ;;  %v6611_v63 = vpack.c.bf16 %v4063_v55, %v4062_v54  ;;  %v3982_v54 = vld [vmem:[#allocation23 + $0x110] sm:$0xff] }
 0x802   :  { %3692 = vmatmul.mubr.f32.vlgmr.msra.gmra.mrb[192].mxu0 %v3487_v61  ;;  %v3489_v19 = vmax.f32 %v3303_v62, 0.0  ;;  %v6658_v61 = vpack.c.bf16 %v3966_v53, %v3964_v43  ;;  %v3968_v62 = vld [vmem:[#allocation23 + $0xa0] sm:$0xff]  ;;  %v6660_v5 = vpack.c.bf16 %v3971_v59, %v3969_v58  ;;  %v6670_v43 = vpack.c.bf16 %v3978_v57, %v3976_v28  ;;  %v3985_v59 = vld [vmem:[#allocation23 + $0x128] sm:$0xff] }
 0x803   :  { %v3490_v13 = vmax.f32 %v3305_v7, 0.0  ;;  %v3308_v14 = vpop.f32.mrb[196].mxu1  ;;  %6643 = vmatpush1.bf16.msra.mxu0 %v6642_v3  ;;  %v4064_v7 = vld [vmem:[#allocation28 + $0x70] sm:$0xff]  ;;  %v6662_v18 = vpack.c.bf16 %v3970_v6, %v3968_v62  ;;  %6612 = vmatpush1.bf16.msra.mxu1 %v6611_v63  ;;  %v4070_v55 = vld [vmem:[#allocation28 + $0xa0] sm:$0xff]  ;;  %v6674_v62 = vpack.c.bf16 %v3982_v54, %v3980_v44 }
 0x804   :  { %v3309_v20 = vadd.f32 %v3308_v14, %v8885_v10  ;;  %v3310_v39 = vpop.f32.mrb[197].mxu1  ;;  %6645 = vmatprep.subr.bf16.mxu0 %v6644_v1  ;;  %6613 = vmatprep.subr.bf16.mxu1 %v7504_v35  ;;  %v3984_v63 = vld [vmem:[#allocation23 + $0x120] sm:$0xff] }
 0x805   :  { %v3311_v16 = vadd.f32 %v3310_v39, %v8888_v40  ;;  %3697 = vmatprep.mubr.f32.mxu0 %v3490_v13  ;;  %v3975_v13 = vld [vmem:[#allocation23 + $0xd8] sm:$0xff]  ;;  %v3996_v54 = vld [vmem:[#allocation23 + $0x180] sm:$0xff] }
 0x806   :  { %3698 = vmatmul.mubr.f32.gmra.mrb[194].mxu0 %v3489_v19  ;;  %v3491_v29 = vmax.f32 %v3309_v20, 0.0  ;;  %v6614_v19 = vpack.c.bf16 %v4065_v8, %v4064_v7  ;;  %v6664_v22 = vpack.c.bf16 %v3975_v13, %v3973_v11  ;;  %v3986_v7 = vld [vmem:[#allocation23 + $0x130] sm:$0xff]  ;;  %v3989_v13 = vld [vmem:[#allocation23 + $0x148] sm:$0xff] }
 0x807   :  { %v3492_v25 = vmax.f32 %v3311_v16, 0.0  ;;  %v3314_v26 = vpop.f32.mrb[198].mxu1  ;;  %6647 = vmatpush1.bf16.msra.mxu0 %v6646_v17  ;;  %v4067_v16 = vld [vmem:[#allocation28 + $0x88] sm:$0xff]  ;;  %v4072_v8 = vld [vmem:[#allocation28 + $0xb0] sm:$0xff]  ;;  %v6678_v37 = vpack.c.bf16 %v3986_v7, %v3984_v63 }
 0x808   :  { %v3315_v56 = vadd.f32 %v3314_v26, %v8885_v10  ;;  %v3316_v30 = vpop.f32.mrb[199].mxu1  ;;  %6649 = vmatprep.subr.bf16.mxu0 %v6648_v21  ;;  %6615 = vmatpush1.bf16.msra.mxu1 %v6614_v19  ;;  %v3988_v19 = vld [vmem:[#allocation23 + $0x140] sm:$0xff]  ;;  %v4005_v7 = vld [vmem:[#allocation23 + $0x1c8] sm:$0xff] }
 0x809   :  { %v3317_v34 = vadd.f32 %v3316_v30, %v8888_v40  ;;  %3703 = vmatprep.mubr.f32.mxu0 %v3492_v25  ;;  %v3979_v25 = vld [vmem:[#allocation23 + $0xf8] sm:$0xff]  ;;  %6616 = vmatprep.subr.bf16.mxu1 %v7504_v35 }
 0x80a   :  { %3704 = vmatmul.mubr.f32.gmra.mrb[196].mxu0 %v3491_v29  ;;  %v3493_v45 = vmax.f32 %v3315_v56, 0.0  ;;  %v6617_v29 = vpack.c.bf16 %v4067_v16, %v4066_v23  ;;  %v6668_v32 = vpack.c.bf16 %v3979_v25, %v3977_v24  ;;  %v3990_v23 = vld [vmem:[#allocation23 + $0x150] sm:$0xff]  ;;  %v4074_v16 = vld [vmem:[#allocation28 + $0xc0] sm:$0xff] }
 0x80b   :  { %v3494_v12 = vmax.f32 %v3317_v34, 0.0  ;;  %v3320_v41 = vpop.f32.mrb[200].mxu1  ;;  %6651 = vmatpush1.bf16.msra.mxu0 %v6650_v48  ;;  %v4069_v34 = vld [vmem:[#allocation28 + $0x98] sm:$0xff]  ;;  %v3993_v25 = vld [vmem:[#allocation23 + $0x168] sm:$0xff]  ;;  %v6682_v28 = vpack.c.bf16 %v3990_v23, %v3988_v19 }
 0x80c   :  { %v3321_v49 = vadd.f32 %v3320_v41, %v8885_v10  ;;  %v3322_v50 = vpop.f32.mrb[201].mxu1  ;;  %6653 = vmatprep.subr.bf16.mxu0 %v6652_v31  ;;  %6618 = vmatpush1.bf16.msra.mxu1 %v6617_v29  ;;  %v3992_v29 = vld [vmem:[#allocation23 + $0x160] sm:$0xff] }
 0x80d   :  { %v3323_v2 = vadd.f32 %v3322_v50, %v8888_v40  ;;  %3709 = vmatprep.mubr.f32.mxu0 %v3494_v12  ;;  %v3983_v12 = vld [vmem:[#allocation23 + $0x118] sm:$0xff]  ;;  %6619 = vmatprep.subr.bf16.mxu1 %v7504_v35  ;;  %v4004_v19 = vld [vmem:[#allocation23 + $0x1c0] sm:$0xff] }
 0x80e   :  { %3710 = vmatmul.mubr.f32.gmra.mrb[198].mxu0 %v3493_v45  ;;  %v3495_v1 = vmax.f32 %v3321_v49, 0.0  ;;  %v6620_v45 = vpack.c.bf16 %v4069_v34, %v4068_v33  ;;  %v6672_v53 = vpack.c.bf16 %v3983_v12, %v3981_v38  ;;  %v3994_v33 = vld [vmem:[#allocation23 + $0x170] sm:$0xff]  ;;  %v3997_v12 = vld [vmem:[#allocation23 + $0x188] sm:$0xff] }
 0x80f   :  { %v3496_v3 = vmax.f32 %v3323_v2, 0.0  ;;  %v3326_v60 = vpop.f32.mrb[202].mxu1  ;;  %6655 = vmatpush1.bf16.msra.mxu0 %v6654_v42  ;;  %v4071_v2 = vld [vmem:[#allocation28 + $0xa8] sm:$0xff]  ;;  %v4076_v34 = vld [vmem:[#allocation28 + $0xd0] sm:$0xff]  ;;  %v6686_v44 = vpack.c.bf16 %v3994_v33, %v3992_v29 }
 0x810   :  { %v3327_v4 = vadd.f32 %v3326_v60, %v8885_v10  ;;  %v3328_v0 = vpop.f32.mrb[203].mxu1  ;;  %6657 = vmatprep.subr.bf16.mxu0 %v6656_v52  ;;  %6621 = vmatpush1.bf16.msra.mxu1 %v6620_v45 }
 0x811   :  { %v3329_v9 = vadd.f32 %v3328_v0, %v8888_v40  ;;  %3715 = vmatprep.mubr.f32.mxu0 %v3496_v3  ;;  %v3987_v3 = vld [vmem:[#allocation23 + $0x138] sm:$0xff]  ;;  %6622 = vmatprep.subr.bf16.mxu1 %v7504_v35 }
 0x812   :  { %3716 = vmatmul.mubr.f32.gmra.mrb[200].mxu0 %v3495_v1  ;;  %v3497_v20 = vmax.f32 %v3327_v4, 0.0  ;;  %v6623_v1 = vpack.c.bf16 %v4071_v2, %v4070_v55  ;;  %v6676_v6 = vpack.c.bf16 %v3987_v3, %v3985_v59  ;;  %v3998_v55 = vld [vmem:[#allocation23 + $0x190] sm:$0xff]  ;;  %v4003_v59 = vld [vmem:[#allocation23 + $0x1b8] sm:$0xff] }
 0x813   :  { %v3498_v14 = vmax.f32 %v3329_v9, 0.0  ;;  %v3332_v17 = vpop.f32.mrb[204].mxu1  ;;  %6659 = vmatpush1.bf16.msra.mxu0 %v6658_v61  ;;  %v4073_v9 = vld [vmem:[#allocation28 + $0xb8] sm:$0xff] }
 0x814   :  { %v3333_v39 = vadd.f32 %v3332_v17, %v8885_v10  ;;  %v3334_v21 = vpop.f32.mrb[205].mxu1  ;;  %6661 = vmatprep.subr.bf16.mxu0 %v6660_v5  ;;  %6624 = vmatpush1.bf16.msra.mxu1 %v6623_v1 }
 0x815   :  { %v3335_v46 = vadd.f32 %v3334_v21, %v8888_v40  ;;  %3721 = vmatprep.mubr.f32.mxu0 %v3498_v14  ;;  %v3991_v14 = vld [vmem:[#allocation23 + $0x158] sm:$0xff]  ;;  %6625 = vmatprep.subr.bf16.mxu1 %v7504_v35 }
 0x816   :  { %3722 = vmatmul.mubr.f32.gmra.mrb[202].mxu0 %v3497_v20  ;;  %v3499_v56 = vmax.f32 %v3333_v39, 0.0  ;;  %v6626_v20 = vpack.c.bf16 %v4073_v9, %v4072_v8  ;;  %v6680_v15 = vpack.c.bf16 %v3991_v14, %v3989_v13  ;;  %v4007_v8 = vld [vmem:[#allocation23 + $0x1d8] sm:$0xff] }
 0x817   :  { %v3500_v26 = vmax.f32 %v3335_v46, 0.0  ;;  %v3338_v48 = vpop.f32.mrb[206].mxu1  ;;  %6663 = vmatpush1.bf16.msra.mxu0 %v6662_v18  ;;  %v4075_v46 = vld [vmem:[#allocation28 + $0xc8] sm:$0xff] }
 0x818   :  { %v3339_v30 = vadd.f32 %v3338_v48, %v8885_v10  ;;  %v3340_v31 = vpop.f32.mrb[207].mxu1  ;;  %6665 = vmatprep.subr.bf16.mxu0 %v6664_v22  ;;  %6627 = vmatpush1.bf16.msra.mxu1 %v6626_v20  ;;  %v4006_v20 = vld [vmem:[#allocation23 + $0x1d0] sm:$0xff] }
 0x819   :  { %v3341_v36 = vadd.f32 %v3340_v31, %v8888_v40  ;;  %3727 = vmatprep.mubr.f32.mxu0 %v3500_v26  ;;  %v3995_v26 = vld [vmem:[#allocation23 + $0x178] sm:$0xff]  ;;  %6628 = vmatprep.subr.bf16.mxu1 %v7504_v35 }
 0x81a   :  { %3728 = vmatmul.mubr.f32.gmra.mrb[204].mxu0 %v3499_v56  ;;  %v3501_v49 = vmax.f32 %v3339_v30, 0.0  ;;  %v6629_v56 = vpack.c.bf16 %v4075_v46, %v4074_v16  ;;  %v6684_v57 = vpack.c.bf16 %v3995_v26, %v3993_v25  ;;  %v6698_v16 = vpack.c.bf16 %v4006_v20, %v4004_v19 }
 0x81b   :  { %v3502_v41 = vmax.f32 %v3341_v36, 0.0  ;;  %v3344_v42 = vpop.f32.mrb[208].mxu1  ;;  %6667 = vmatpush1.bf16.msra.mxu0 %v6666_v27  ;;  %v4077_v36 = vld [vmem:[#allocation28 + $0xd8] sm:$0xff] }
 0x81c   :  { %v3345_v50 = vadd.f32 %v3344_v42, %v8885_v10  ;;  %v3346_v52 = vpop.f32.mrb[209].mxu1  ;;  %6669 = vmatprep.subr.bf16.mxu0 %v6668_v32  ;;  %6630 = vmatpush1.bf16.msra.mxu1 %v6629_v56  ;;  %v6632_v45 = vpack.c.bf16 %v4077_v36, %v4076_v34 }
 0x81d   :  { %v3347_v58 = vadd.f32 %v3346_v52, %v8888_v40  ;;  %3733 = vmatprep.mubr.f32.mxu0 %v3502_v41  ;;  %v3999_v41 = vld [vmem:[#allocation23 + $0x198] sm:$0xff]  ;;  %6631 = vmatprep.subr.bf16.mxu1 %v7504_v35 }
 0x81e   :  { %3734 = vmatmul.mubr.f32.gmra.mrb[206].mxu0 %v3501_v49  ;;  %v3503_v4 = vmax.f32 %v3345_v50, 0.0 }
 0x81f   :  { %v3504_v60 = vmax.f32 %v3347_v58, 0.0  ;;  %v3350_v61 = vpop.f32.mrb[210].mxu1  ;;  %6671 = vmatpush1.bf16.msra.mxu0 %v6670_v43  ;;  %v4001_v58 = vld [vmem:[#allocation23 + $0x1a8] sm:$0xff] }
 0x820   :  { %v3351_v0 = vadd.f32 %v3350_v61, %v8885_v10  ;;  %v3352_v5 = vpop.f32.mrb[211].mxu1  ;;  %6673 = vmatprep.subr.bf16.mxu0 %v6672_v53  ;;  %v6688_v53 = vpack.c.bf16 %v3999_v41, %v3997_v12  ;;  %v6690_v61 = vpack.c.bf16 %v3998_v55, %v3996_v54  ;;  %6633 = vmatpush1.bf16.msra.mxu1 %v6632_v45 }
 0x821   :  { %v3353_v11 = vadd.f32 %v3352_v5, %v8888_v40  ;;  %3739 = vmatprep.mubr.f32.mxu0 %v3504_v60  ;;  %v4002_v5 = vld [vmem:[#allocation23 + $0x1b0] sm:$0xff]  ;;  %6634 = vmatprep.subr.bf16.mxu1 %v7504_v35 }
 0x822   :  { %3740 = vmatmul.mubr.f32.gmra.mrb[208].mxu0 %v3503_v4  ;;  %v3505_v39 = vmax.f32 %v3351_v0, 0.0  ;;  %v6692_v4 = vpack.c.bf16 %v4003_v59, %v4001_v58  ;;  %v4000_v0 = vld [vmem:[#allocation23 + $0x1a0] sm:$0xff] }
 0x823   :  { %v3506_v17 = vmax.f32 %v3353_v11, 0.0  ;;  %v3356_v18 = vpop.f32.mrb[212].mxu1  ;;  %6675 = vmatpush1.bf16.msra.mxu0 %v6674_v62  ;;  %v6694_v13 = vpack.c.bf16 %v4002_v5, %v4000_v0 }
 0x824   :  { %v3357_v21 = vadd.f32 %v3356_v18, %v8885_v10  ;;  %v3358_v22 = vpop.f32.mrb[213].mxu1  ;;  %6677 = vmatprep.subr.bf16.mxu0 %v6676_v6 }
 0x825   :  { %v3359_v24 = vadd.f32 %v3358_v22, %v8888_v40  ;;  %3745 = vmatprep.mubr.f32.mxu0 %v3506_v17  ;;  %v4011_v22 = vld [vmem:[#allocation23 + $0x1f8] sm:$0xff] }
 0x826   :  { %3746 = vmatmul.mubr.f32.gmra.mrb[210].mxu0 %v3505_v39  ;;  %v3507_v30 = vmax.f32 %v3357_v21, 0.0  ;;  %v4009_v21 = vld [vmem:[#allocation23 + $0x1e8] sm:$0xff] }
 0x827   :  { %v3508_v48 = vmax.f32 %v3359_v24, 0.0  ;;  %v3362_v27 = vpop.f32.mrb[214].mxu1  ;;  %6679 = vmatpush1.bf16.msra.mxu0 %v6678_v37  ;;  %v6696_v37 = vpack.c.bf16 %v4007_v8, %v4005_v7  ;;  %v6700_v26 = vpack.c.bf16 %v4011_v22, %v4009_v21  ;;  %v4081_v21 = vld [vmem:[#allocation28 + $0xf8] sm:$0xff] }
 0x828   :  { %v3363_v31 = vadd.f32 %v3362_v27, %v8885_v10  ;;  %v3364_v32 = vpop.f32.mrb[215].mxu1  ;;  %6681 = vmatprep.subr.bf16.mxu0 %v6680_v15  ;;  %v4010_v27 = vld [vmem:[#allocation23 + $0x1f0] sm:$0xff] }
 0x829   :  { %v3365_v38 = vadd.f32 %v3364_v32, %v8888_v40  ;;  %3751 = vmatprep.mubr.f32.mxu0 %v3508_v48  ;;  %v4008_v48 = vld [vmem:[#allocation23 + $0x1e0] sm:$0xff] }
 0x82a   :  { %3752 = vmatmul.mubr.f32.gmra.mrb[212].mxu0 %v3507_v30  ;;  %v3509_v49 = vmax.f32 %v3363_v31, 0.0  ;;  %v6702_v30 = vpack.c.bf16 %v4010_v27, %v4008_v48 }
 0x82b   :  { %v3510_v42 = vmax.f32 %v3365_v38, 0.0  ;;  %v3368_v43 = vpop.f32.mrb[216].mxu1  ;;  %6683 = vmatpush1.bf16.msra.mxu0 %v6682_v28 }
 0x82c   :  { %v3369_v50 = vadd.f32 %v3368_v43, %v8885_v10  ;;  %v3370_v52 = vpop.f32.mrb[217].mxu1  ;;  %6685 = vmatprep.subr.bf16.mxu0 %v6684_v57 }
 0x82d   :  { %v3371_v2 = vadd.f32 %v3370_v52, %v8888_v40  ;;  %3757 = vmatprep.mubr.f32.mxu0 %v3510_v42 }
 0x82e   :  { %3758 = vmatmul.mubr.f32.gmra.mrb[214].mxu0 %v3509_v49  ;;  %v3511_v62 = vmax.f32 %v3369_v50, 0.0 }
 0x82f   :  { %v3512_v3 = vmax.f32 %v3371_v2, 0.0  ;;  %v3374_v60 = vpop.f32.mrb[218].mxu1  ;;  %6687 = vmatpush1.bf16.msra.mxu0 %v6686_v44 }
 0x830   :  { %v3375_v63 = vadd.f32 %v3374_v60, %v8885_v10  ;;  %v3376_v1 = vpop.f32.mrb[219].mxu1  ;;  %6689 = vmatprep.subr.bf16.mxu0 %v6688_v53 }
 0x831   :  { %v3377_v6 = vadd.f32 %v3376_v1, %v8888_v40  ;;  %3763 = vmatprep.mubr.f32.mxu0 %v3512_v3 }
 0x832   :  { %3764 = vmatmul.mubr.f32.gmra.mrb[216].mxu0 %v3511_v62  ;;  %v3513_v14 = vmax.f32 %v3375_v63, 0.0 }
 0x833   :  { %v3514_v9 = vmax.f32 %v3377_v6, 0.0  ;;  %v3380_v11 = vpop.f32.mrb[220].mxu1  ;;  %6691 = vmatpush1.bf16.msra.mxu0 %v6690_v61 }
 0x834   :  { %v3381_v17 = vadd.f32 %v3380_v11, %v8885_v10  ;;  %v3382_v18 = vpop.f32.mrb[221].mxu1  ;;  %6693 = vmatprep.subr.bf16.mxu0 %v6692_v4  ;;  %v4079_v11 = vld [vmem:[#allocation28 + $0xe8] sm:$0xff] }
 0x835   :  { %v3383_v39 = vadd.f32 %v3382_v18, %v8888_v40  ;;  %3769 = vmatprep.mubr.f32.mxu0 %v3514_v9  ;;  %v4078_v9 = vld [vmem:[#allocation28 + $0xe0] sm:$0xff] }
 0x836   :  { %3770 = vmatmul.mubr.f32.gmra.mrb[218].mxu0 %v3513_v14  ;;  %v3515_v46 = vmax.f32 %v3381_v17, 0.0  ;;  %v6635_v17 = vpack.c.bf16 %v4079_v11, %v4078_v9  ;;  %v4045_v11 = vld [vmem:[#allocation26] sm:$0xff] }
 0x837   :  { %v3516_v15 = vmax.f32 %v3383_v39, 0.0  ;;  %v3386_v23 = vpop.f32.mrb[222].mxu1  ;;  %6695 = vmatpush1.bf16.msra.mxu0 %v6694_v13  ;;  %v4080_v39 = vld [vmem:[#allocation28 + $0xf0] sm:$0xff] }
 0x838   :  { %v3387_v24 = vadd.f32 %v3386_v23, %v8885_v10  ;;  %v3388_v25 = vpop.f32.mrb[223].mxu1  ;;  %6697 = vmatprep.subr.bf16.mxu0 %v6696_v37  ;;  %6636 = vmatpush1.bf16.msra.mxu1 %v6635_v17  ;;  %v6638_v23 = vpack.c.bf16 %v4081_v21, %v4080_v39 }
 0x839   :  { %v3389_v28 = vadd.f32 %v3388_v25, %v8888_v40  ;;  %3775 = vmatprep.mubr.f32.mxu0 %v3516_v15  ;;  %6637 = vmatprep.subr.bf16.mxu1 %v7504_v35 }
 0x83a   :  { %3776 = vmatmul.mubr.f32.gmra.mrb[220].mxu0 %v3515_v46  ;;  %v3517_v31 = vmax.f32 %v3387_v24, 0.0 }
 0x83b   :  { %v3518_v29 = vmax.f32 %v3389_v28, 0.0  ;;  %v3392_v56 = vpop.f32.mrb[224].mxu1  ;;  %6699 = vmatpush1.bf16.msra.mxu0 %v6698_v16 }
 0x83c   :  { %v3393_v32 = vadd.f32 %v3392_v56, %v8885_v10  ;;  %v3394_v57 = vpop.f32.mrb[225].mxu1  ;;  %6701 = vmatprep.subr.bf16.mxu0 %v6700_v26  ;;  %6639 = vmatpush1.bf16.msra.mxu1 %v6638_v23 }
 0x83d   :  { %v3395_v33 = vadd.f32 %v3394_v57, %v8888_v40  ;;  %3781 = vmatprep.mubr.f32.mxu0 %v3518_v29 }
 0x83e   :  { %3782 = vmatmul.mubr.f32.gmra.mrb[222].mxu0 %v3517_v31  ;;  %v3519_v38 = vmax.f32 %v3393_v32, 0.0 }
 0x83f   :  { %v3520_v34 = vmax.f32 %v3395_v33, 0.0  ;;  %v3398_v36 = vpop.f32.mrb[226].mxu1  ;;  %6703 = vmatpush1.bf16.msra.mxu0 %v6702_v30 }
 0x840   :  { %v3399_v12 = vadd.f32 %v3398_v36, %v8885_v10  ;;  %v3400_v41 = vpop.f32.mrb[227].mxu1 }
 0x841   :  { %v3401_v42 = vadd.f32 %v3400_v41, %v8888_v40  ;;  %3787 = vmatprep.mubr.f32.mxu0 %v3520_v34 }
 0x842   :  { %3788 = vmatmul.mubr.f32.gmra.mrb[224].mxu0 %v3519_v38  ;;  %v3521_v45 = vmax.f32 %v3399_v12, 0.0 }
 0x843   :  { %v3522_v43 = vmax.f32 %v3401_v42, 0.0  ;;  %v3404_v44 = vpop.f32.mrb[228].mxu1 }
 0x844   :  { %v3405_v49 = vadd.f32 %v3404_v44, %v8885_v10  ;;  %v3406_v50 = vpop.f32.mrb[229].mxu1 }
 0x845   :  { %v3407_v52 = vadd.f32 %v3406_v50, %v8888_v40  ;;  %3793 = vmatprep.mubr.f32.mxu0 %v3522_v43 }
 0x846   :  { %3794 = vmatmul.mubr.f32.gmra.mrb[226].mxu0 %v3521_v45  ;;  %v3523_v55 = vmax.f32 %v3405_v49, 0.0 }
 0x847   :  { %v3524_v53 = vmax.f32 %v3407_v52, 0.0  ;;  %v3410_v54 = vpop.f32.mrb[230].mxu1 }
 0x848   :  { %v3411_v2 = vadd.f32 %v3410_v54, %v8885_v10  ;;  %v3412_v58 = vpop.f32.mrb[231].mxu1 }
 0x849   :  { %v3413_v59 = vadd.f32 %v3412_v58, %v8888_v40  ;;  %3799 = vmatprep.mubr.f32.mxu0 %v3524_v53 }
 0x84a   :  { %3800 = vmatmul.mubr.f32.gmra.mrb[228].mxu0 %v3523_v55  ;;  %v3525_v61 = vmax.f32 %v3411_v2, 0.0 }
 0x84b   :  { %v3526_v3 = vmax.f32 %v3413_v59, 0.0  ;;  %v3416_v60 = vpop.f32.mrb[232].mxu1 }
 0x84c   :  { %v3417_v62 = vadd.f32 %v3416_v60, %v8885_v10  ;;  %v3418_v63 = vpop.f32.mrb[233].mxu1 }
 0x84d   :  { %v3419_v1 = vadd.f32 %v3418_v63, %v8888_v40  ;;  %3805 = vmatprep.mubr.f32.mxu0 %v3526_v3 }
 0x84e   :  { %3806 = vmatmul.mubr.f32.gmra.mrb[230].mxu0 %v3525_v61  ;;  %v3527_v5 = vmax.f32 %v3417_v62, 0.0 }
 0x84f   :  { %v3528_v4 = vmax.f32 %v3419_v1, 0.0  ;;  %v3422_v0 = vpop.f32.mrb[234].mxu1 }
 0x850   :  { %v3423_v6 = vadd.f32 %v3422_v0, %v8885_v10  ;;  %v3424_v7 = vpop.f32.mrb[235].mxu1 }
 0x851   :  { %v3425_v8 = vadd.f32 %v3424_v7, %v8888_v40  ;;  %3811 = vmatprep.mubr.f32.mxu0 %v3528_v4 }
 0x852   :  { %3812 = vmatmul.mubr.f32.gmra.mrb[232].mxu0 %v3527_v5  ;;  %v3529_v18 = vmax.f32 %v3423_v6, 0.0 }
 0x853   :  { %v3530_v13 = vmax.f32 %v3425_v8, 0.0  ;;  %v3428_v14 = vpop.f32.mrb[236].mxu1 }
 0x854   :  { %v3429_v37 = vadd.f32 %v3428_v14, %v8885_v10  ;;  %v3430_v19 = vpop.f32.mrb[237].mxu1 }
 0x855   :  { %v3431_v20 = vadd.f32 %v3430_v19, %v8888_v40  ;;  %3817 = vmatprep.mubr.f32.mxu0 %v3530_v13  ;;  %v4046_v13 = vld [vmem:[#allocation26 + $0x8] sm:$0xff] }
 0x856   :  { %3818 = vmatmul.mubr.f32.gmra.mrb[234].mxu0 %v3529_v18  ;;  %v3531_v16 = vmax.f32 %v3429_v37, 0.0  ;;  %v6704_v14 = vpack.c.bf16 %v4046_v13, %v4045_v11 }
 0x857   :  { %v3532_v22 = vmax.f32 %v3431_v20, 0.0  ;;  %v3434_v15 = vpop.f32.mrb[238].mxu1 }
 0x858   :  { %v3435_v46 = vadd.f32 %v3434_v15, %v8885_v10  ;;  %v3436_v24 = vpop.f32.mrb[239].mxu1  ;;  %6705 = vmatprep.subr.bf16.mxu1 %v6704_v14  ;;  %v3615_v15 = vld [vmem:[#allocation22] sm:$0x3] }
 0x859   :  { %v3437_v25 = vadd.f32 %v3436_v24, %v8888_v40  ;;  %3823 = vmatprep.mubr.f32.mxu0 %v3532_v22  ;;  %v8970_v23 = vrot.slane %v3615_v15, %v8290_v47 }
 0x85a   :  { %3824 = vmatmul.mubr.f32.gmra.mrb[236].mxu0 %v3531_v16  ;;  %v3533_v27 = vmax.f32 %v3435_v46, 0.0  ;;  %v8973_v16 = vrot.slane %v3615_v15, %v8295_v51 }
 0x85b   :  { %v3534_v26 = vmax.f32 %v3437_v25, 0.0  ;;  %v3440_v48 = vpop.f32.mrb[240].mxu1 }
 0x85c   :  { %v3441_v28 = vadd.f32 %v3440_v48, %v8885_v10  ;;  %v3442_v29 = vpop.f32.mrb[241].mxu1 }
 0x85d   :  { %v3443_v56 = vadd.f32 %v3442_v29, %v8888_v40  ;;  %3829 = vmatprep.mubr.f32.mxu0 %v3534_v26  ;;  %v4048_v26 = vld [vmem:[#allocation26 + $0x18] sm:$0xff] }
 0x85e   :  { %3830 = vmatmul.mubr.f32.gmra.mrb[238].mxu0 %v3533_v27  ;;  %v3535_v32 = vmax.f32 %v3441_v28, 0.0 }
 0x85f   :  { %v3536_v30 = vmax.f32 %v3443_v56, 0.0  ;;  %v3446_v31 = vpop.f32.mrb[242].mxu1 }
 0x860   :  { %v3447_v57 = vadd.f32 %v3446_v31, %v8885_v10  ;;  %v3448_v33 = vpop.f32.mrb[243].mxu1 }
 0x861   :  { %v3449_v34 = vadd.f32 %v3448_v33, %v8888_v40  ;;  %3835 = vmatprep.mubr.f32.mxu0 %v3536_v30 }
 0x862   :  { %3836 = vmatmul.mubr.f32.gmra.mrb[240].mxu0 %v3535_v32  ;;  %v3537_v12 = vmax.f32 %v3447_v57, 0.0 }
 0x863   :  { %v3538_v36 = vmax.f32 %v3449_v34, 0.0  ;;  %v3452_v38 = vpop.f32.mrb[244].mxu1 }
 0x864   :  { %v3453_v41 = vadd.f32 %v3452_v38, %v8885_v10  ;;  %v3454_v42 = vpop.f32.mrb[245].mxu1 }
 0x865   :  { %v3455_v43 = vadd.f32 %v3454_v42, %v8888_v40  ;;  %3841 = vmatprep.mubr.f32.mxu0 %v3538_v36 }
 0x866   :  { %3842 = vmatmul.mubr.f32.gmra.mrb[242].mxu0 %v3537_v12  ;;  %v3539_v49 = vmax.f32 %v3453_v41, 0.0 }
 0x867   :  { %v3540_v44 = vmax.f32 %v3455_v43, 0.0  ;;  %v3458_v45 = vpop.f32.mrb[246].mxu1 }
 0x868   :  { %v3459_v50 = vadd.f32 %v3458_v45, %v8885_v10  ;;  %v3460_v52 = vpop.f32.mrb[247].mxu1 }
 0x869   :  { %v3461_v53 = vadd.f32 %v3460_v52, %v8888_v40  ;;  %3847 = vmatprep.mubr.f32.mxu0 %v3540_v44 }
 0x86a   :  { %3848 = vmatmul.mubr.f32.gmra.mrb[244].mxu0 %v3539_v49  ;;  %v3541_v2 = vmax.f32 %v3459_v50, 0.0 }
 0x86b   :  { %v3542_v54 = vmax.f32 %v3461_v53, 0.0  ;;  %v3464_v55 = vpop.f32.mrb[248].mxu1 }
 0x86c   :  { %v3465_v58 = vadd.f32 %v3464_v55, %v8885_v10  ;;  %v3466_v59 = vpop.f32.mrb[249].mxu1 }
 0x86d   :  { %v3467_v3 = vadd.f32 %v3466_v59, %v8888_v40  ;;  %3853 = vmatprep.mubr.f32.mxu0 %v3542_v54 }
 0x86e   :  { %3854 = vmatmul.mubr.f32.gmra.mrb[246].mxu0 %v3541_v2  ;;  %v3543_v62 = vmax.f32 %v3465_v58, 0.0 }
 0x86f   :  { %v3544_v60 = vmax.f32 %v3467_v3, 0.0  ;;  %v3470_v61 = vpop.f32.mrb[250].mxu1 }
 0x870   :  { %v3471_v63 = vadd.f32 %v3470_v61, %v8885_v10  ;;  %v3472_v1 = vpop.f32.mrb[251].mxu1 }
 0x871   :  { %v3473_v4 = vadd.f32 %v3472_v1, %v8888_v40  ;;  %3859 = vmatprep.mubr.f32.mxu0 %v3544_v60 }
 0x872   :  { %3860 = vmatmul.mubr.f32.gmra.mrb[248].mxu0 %v3543_v62  ;;  %v3545_v6 = vmax.f32 %v3471_v63, 0.0 }
 0x873   :  { %v3546_v0 = vmax.f32 %v3473_v4, 0.0  ;;  %v3476_v5 = vpop.f32.mrb[252].mxu1 }
 0x874   :  { %v3477_v7 = vadd.f32 %v3476_v5, %v8885_v10  ;;  %v3478_v8 = vpop.f32.mrb[253].mxu1 }
 0x875   :  { %v3479_v9 = vadd.f32 %v3478_v8, %v8888_v40  ;;  %3865 = vmatprep.mubr.f32.mxu0 %v3546_v0 }
 0x876   :  { %3866 = vmatmul.mubr.f32.gmra.mrb[250].mxu0 %v3545_v6  ;;  %v3547_v37 = vmax.f32 %v3477_v7, 0.0 }
 0x877   :  { %v3548_v17 = vmax.f32 %v3479_v9, 0.0  ;;  %v3482_v18 = vpop.f32.mrb[254].mxu1 }
 0x878   :  { %v3483_v19 = vadd.f32 %v3482_v18, %v8885_v10  ;;  %v3484_v20 = vpop.f32.mrb[255].mxu1 }
 0x879   :  { %v3485_v39 = vadd.f32 %v3484_v20, %v8888_v40  ;;  %3871 = vmatprep.mubr.f32.mxu0 %v3548_v17  ;;  %v4047_v40 = vld [vmem:[#allocation26 + $0x10] sm:$0xff] }
 0x87a   :  { %3872 = vmatmul.mubr.f32.gmra.mrb[252].mxu0 %v3547_v37  ;;  %v3549_v22 = vmax.f32 %v3483_v19, 0.0  ;;  %v6708_v30 = vpack.c.bf16 %v4048_v26, %v4047_v40 }
 0x87b   :  { %v3550_v21 = vmax.f32 %v3485_v39, 0.0 }
 0x87d   :  { %3877 = vmatprep.mubr.f32.mxu0 %v3550_v21 }
 0x87e   :  { %3878 = vmatmul.mubr.f32.gmra.mrb[254].mxu0 %v3549_v22 }
 0x8d5   :  { %v3693_v46 = vpop.f32.mrb[192].mxu0 }
 0x8d6   :  { %v3694_v10 = vadd.f32 %v3693_v46, %v8970_v23  ;;  %v3695_v24 = vpop.f32.mrb[193].mxu0 }
 0x8d7   :  { %v3696_v25 = vadd.f32 %v3695_v24, %v8973_v16 }
 0x8d8   :  { %v3884_v28 = vmax.f32 %v3694_v10, 0.0 }
 0x8d9   :  { %v3885_v48 = vmax.f32 %v3696_v25, 0.0  ;;  %v3699_v27 = vpop.f32.mrb[194].mxu0 }
 0x8da   :  { %v3700_v29 = vadd.f32 %v3699_v27, %v8970_v23  ;;  %v3701_v56 = vpop.f32.mrb[195].mxu0 }
 0x8db   :  { %v3702_v31 = vadd.f32 %v3701_v56, %v8973_v16  ;;  %4170 = vmatprep.mubr.f32.mxu1 %v3885_v48  ;;  %4406 = vmatprep.mubr.f32.mxu0 %v3885_v48 }
 0x8dc   :  { %4171 = vmatmul.mubr.f32.vlgmr.msra.gmra.mrb[0].mxu1 %v3884_v28  ;;  %4407 = vmatmul.mubr.f32.vlgmr.msra.gmra.mrb[0].mxu0 %v3884_v28  ;;  %v3886_v33 = vmax.f32 %v3700_v29, 0.0 }
 0x8dd   :  { %v3887_v32 = vmax.f32 %v3702_v31, 0.0  ;;  %v3705_v57 = vpop.f32.mrb[196].mxu0  ;;  %6707 = vmatpush3.bf16.msra.mxu1 %v6704_v14 }
 0x8de   :  { %v3706_v34 = vadd.f32 %v3705_v57, %v8970_v23  ;;  %v3707_v36 = vpop.f32.mrb[197].mxu0  ;;  %6709 = vmatprep.subr.bf16.mxu1 %v6708_v30 }
 0x8df   :  { %v3708_v38 = vadd.f32 %v3707_v36, %v8973_v16  ;;  %4175 = vmatprep.mubr.f32.mxu1 %v3887_v32  ;;  %4412 = vmatprep.mubr.f32.mxu0 %v3887_v32 }
 0x8e0   :  { %4176 = vmatmul.mubr.f32.gmra.mrb[2].mxu1 %v3886_v33  ;;  %4413 = vmatmul.mubr.f32.gmra.mrb[2].mxu0 %v3886_v33  ;;  %v3888_v42 = vmax.f32 %v3706_v34, 0.0 }
 0x8e1   :  { %v3889_v12 = vmax.f32 %v3708_v38, 0.0  ;;  %v3711_v41 = vpop.f32.mrb[198].mxu0  ;;  %6711 = vmatpush3.bf16.msra.mxu1 %v6708_v30 }
 0x8e2   :  { %v3712_v43 = vadd.f32 %v3711_v41, %v8970_v23  ;;  %v3713_v44 = vpop.f32.mrb[199].mxu0  ;;  %6712 = vmatprep.subr.bf16.mxu1 %v7504_v35 }
 0x8e3   :  { %v3714_v45 = vadd.f32 %v3713_v44, %v8973_v16  ;;  %4180 = vmatprep.mubr.f32.mxu1 %v3889_v12  ;;  %4418 = vmatprep.mubr.f32.mxu0 %v3889_v12 }
 0x8e4   :  { %4181 = vmatmul.mubr.f32.gmra.mrb[4].mxu1 %v3888_v42  ;;  %4419 = vmatmul.mubr.f32.gmra.mrb[4].mxu0 %v3888_v42  ;;  %v3890_v52 = vmax.f32 %v3712_v43, 0.0 }
 0x8e5   :  { %v3891_v49 = vmax.f32 %v3714_v45, 0.0  ;;  %v3717_v50 = vpop.f32.mrb[200].mxu0 }
 0x8e6   :  { %v3718_v53 = vadd.f32 %v3717_v50, %v8970_v23  ;;  %v3719_v54 = vpop.f32.mrb[201].mxu0 }
 0x8e7   :  { %v3720_v55 = vadd.f32 %v3719_v54, %v8973_v16  ;;  %4185 = vmatprep.mubr.f32.mxu1 %v3891_v49  ;;  %4424 = vmatprep.mubr.f32.mxu0 %v3891_v49 }
 0x8e8   :  { %4186 = vmatmul.mubr.f32.gmra.mrb[6].mxu1 %v3890_v52  ;;  %4425 = vmatmul.mubr.f32.gmra.mrb[6].mxu0 %v3890_v52  ;;  %v3892_v59 = vmax.f32 %v3718_v53, 0.0 }
 0x8e9   :  { %v3893_v2 = vmax.f32 %v3720_v55, 0.0  ;;  %v3723_v58 = vpop.f32.mrb[202].mxu0 }
 0x8ea   :  { %v3724_v3 = vadd.f32 %v3723_v58, %v8970_v23  ;;  %v3725_v60 = vpop.f32.mrb[203].mxu0 }
 0x8eb   :  { %v3726_v61 = vadd.f32 %v3725_v60, %v8973_v16  ;;  %4190 = vmatprep.mubr.f32.mxu1 %v3893_v2  ;;  %4430 = vmatprep.mubr.f32.mxu0 %v3893_v2 }
 0x8ec   :  { %4191 = vmatmul.mubr.f32.gmra.mrb[8].mxu1 %v3892_v59  ;;  %4431 = vmatmul.mubr.f32.gmra.mrb[8].mxu0 %v3892_v59  ;;  %v3894_v1 = vmax.f32 %v3724_v3, 0.0 }
 0x8ed   :  { %v3895_v62 = vmax.f32 %v3726_v61, 0.0  ;;  %v3729_v63 = vpop.f32.mrb[204].mxu0 }
 0x8ee   :  { %v3730_v4 = vadd.f32 %v3729_v63, %v8970_v23  ;;  %v3731_v0 = vpop.f32.mrb[205].mxu0 }
 0x8ef   :  { %v3732_v5 = vadd.f32 %v3731_v0, %v8973_v16  ;;  %4195 = vmatprep.mubr.f32.mxu1 %v3895_v62  ;;  %4436 = vmatprep.mubr.f32.mxu0 %v3895_v62 }
 0x8f0   :  { %4196 = vmatmul.mubr.f32.gmra.mrb[10].mxu1 %v3894_v1  ;;  %4437 = vmatmul.mubr.f32.gmra.mrb[10].mxu0 %v3894_v1  ;;  %v3896_v8 = vmax.f32 %v3730_v4, 0.0 }
 0x8f1   :  { %v3897_v6 = vmax.f32 %v3732_v5, 0.0  ;;  %v3735_v7 = vpop.f32.mrb[206].mxu0 }
 0x8f2   :  { %v3736_v9 = vadd.f32 %v3735_v7, %v8970_v23  ;;  %v3737_v11 = vpop.f32.mrb[207].mxu0 }
 0x8f3   :  { %v3738_v13 = vadd.f32 %v3737_v11, %v8973_v16  ;;  %4200 = vmatprep.mubr.f32.mxu1 %v3897_v6  ;;  %4442 = vmatprep.mubr.f32.mxu0 %v3897_v6 }
 0x8f4   :  { %4201 = vmatmul.mubr.f32.gmra.mrb[12].mxu1 %v3896_v8  ;;  %4443 = vmatmul.mubr.f32.gmra.mrb[12].mxu0 %v3896_v8  ;;  %v3898_v18 = vmax.f32 %v3736_v9, 0.0 }
 0x8f5   :  { %v3899_v14 = vmax.f32 %v3738_v13, 0.0  ;;  %v3741_v17 = vpop.f32.mrb[208].mxu0 }
 0x8f6   :  { %v3742_v37 = vadd.f32 %v3741_v17, %v8970_v23  ;;  %v3743_v19 = vpop.f32.mrb[209].mxu0 }
 0x8f7   :  { %v3744_v20 = vadd.f32 %v3743_v19, %v8973_v16  ;;  %4205 = vmatprep.mubr.f32.mxu1 %v3899_v14  ;;  %4448 = vmatprep.mubr.f32.mxu0 %v3899_v14 }
 0x8f8   :  { %4206 = vmatmul.mubr.f32.gmra.mrb[14].mxu1 %v3898_v18  ;;  %4449 = vmatmul.mubr.f32.gmra.mrb[14].mxu0 %v3898_v18  ;;  %v3900_v22 = vmax.f32 %v3742_v37, 0.0 }
 0x8f9   :  { %v3901_v39 = vmax.f32 %v3744_v20, 0.0  ;;  %v3747_v21 = vpop.f32.mrb[210].mxu0 }
 0x8fa   :  { %v3748_v15 = vadd.f32 %v3747_v21, %v8970_v23  ;;  %v3749_v46 = vpop.f32.mrb[211].mxu0 }
 0x8fb   :  { %v3750_v10 = vadd.f32 %v3749_v46, %v8973_v16  ;;  %4210 = vmatprep.mubr.f32.mxu1 %v3901_v39  ;;  %4454 = vmatprep.mubr.f32.mxu0 %v3901_v39 }
 0x8fc   :  { %4211 = vmatmul.mubr.f32.gmra.mrb[16].mxu1 %v3900_v22  ;;  %4455 = vmatmul.mubr.f32.gmra.mrb[16].mxu0 %v3900_v22  ;;  %v3902_v40 = vmax.f32 %v3748_v15, 0.0 }
 0x8fd   :  { %v3903_v24 = vmax.f32 %v3750_v10, 0.0  ;;  %v3753_v25 = vpop.f32.mrb[212].mxu0 }
 0x8fe   :  { %v3754_v26 = vadd.f32 %v3753_v25, %v8970_v23  ;;  %v3755_v48 = vpop.f32.mrb[213].mxu0 }
 0x8ff   :  { %v3756_v27 = vadd.f32 %v3755_v48, %v8973_v16  ;;  %4215 = vmatprep.mubr.f32.mxu1 %v3903_v24  ;;  %4460 = vmatprep.mubr.f32.mxu0 %v3903_v24 }
 0x900   :  { %4216 = vmatmul.mubr.f32.gmra.mrb[18].mxu1 %v3902_v40  ;;  %4461 = vmatmul.mubr.f32.gmra.mrb[18].mxu0 %v3902_v40  ;;  %v3904_v56 = vmax.f32 %v3754_v26, 0.0 }
 0x901   :  { %v3905_v28 = vmax.f32 %v3756_v27, 0.0  ;;  %v3759_v29 = vpop.f32.mrb[214].mxu0 }
 0x902   :  { %v3760_v30 = vadd.f32 %v3759_v29, %v8970_v23  ;;  %v3761_v31 = vpop.f32.mrb[215].mxu0 }
 0x903   :  { %v3762_v32 = vadd.f32 %v3761_v31, %v8973_v16  ;;  %4220 = vmatprep.mubr.f32.mxu1 %v3905_v28  ;;  %4466 = vmatprep.mubr.f32.mxu0 %v3905_v28 }
 0x904   :  { %4221 = vmatmul.mubr.f32.gmra.mrb[20].mxu1 %v3904_v56  ;;  %4467 = vmatmul.mubr.f32.gmra.mrb[20].mxu0 %v3904_v56  ;;  %v3906_v34 = vmax.f32 %v3760_v30, 0.0 }
 0x905   :  { %v3907_v57 = vmax.f32 %v3762_v32, 0.0  ;;  %v3765_v33 = vpop.f32.mrb[216].mxu0 }
 0x906   :  { %v3766_v36 = vadd.f32 %v3765_v33, %v8970_v23  ;;  %v3767_v38 = vpop.f32.mrb[217].mxu0 }
 0x907   :  { %v3768_v12 = vadd.f32 %v3767_v38, %v8973_v16  ;;  %4225 = vmatprep.mubr.f32.mxu1 %v3907_v57  ;;  %4472 = vmatprep.mubr.f32.mxu0 %v3907_v57 }
 0x908   :  { %4226 = vmatmul.mubr.f32.gmra.mrb[22].mxu1 %v3906_v34  ;;  %4473 = vmatmul.mubr.f32.gmra.mrb[22].mxu0 %v3906_v34  ;;  %v3908_v43 = vmax.f32 %v3766_v36, 0.0 }
 0x909   :  { %v3909_v41 = vmax.f32 %v3768_v12, 0.0  ;;  %v3771_v42 = vpop.f32.mrb[218].mxu0 }
 0x90a   :  { %v3772_v44 = vadd.f32 %v3771_v42, %v8970_v23  ;;  %v3773_v45 = vpop.f32.mrb[219].mxu0 }
 0x90b   :  { %v3774_v49 = vadd.f32 %v3773_v45, %v8973_v16  ;;  %4230 = vmatprep.mubr.f32.mxu1 %v3909_v41  ;;  %4478 = vmatprep.mubr.f32.mxu0 %v3909_v41 }
 0x90c   :  { %4231 = vmatmul.mubr.f32.gmra.mrb[24].mxu1 %v3908_v43  ;;  %4479 = vmatmul.mubr.f32.gmra.mrb[24].mxu0 %v3908_v43  ;;  %v3910_v53 = vmax.f32 %v3772_v44, 0.0 }
 0x90d   :  { %v3911_v50 = vmax.f32 %v3774_v49, 0.0  ;;  %v3777_v52 = vpop.f32.mrb[220].mxu0 }
 0x90e   :  { %v3778_v54 = vadd.f32 %v3777_v52, %v8970_v23  ;;  %v3779_v55 = vpop.f32.mrb[221].mxu0 }
 0x90f   :  { %v3780_v2 = vadd.f32 %v3779_v55, %v8973_v16  ;;  %4235 = vmatprep.mubr.f32.mxu1 %v3911_v50  ;;  %4484 = vmatprep.mubr.f32.mxu0 %v3911_v50 }
 0x910   :  { %4236 = vmatmul.mubr.f32.gmra.mrb[26].mxu1 %v3910_v53  ;;  %4485 = vmatmul.mubr.f32.gmra.mrb[26].mxu0 %v3910_v53  ;;  %v3912_v3 = vmax.f32 %v3778_v54, 0.0 }
 0x911   :  { %v3913_v58 = vmax.f32 %v3780_v2, 0.0  ;;  %v3783_v59 = vpop.f32.mrb[222].mxu0 }
 0x912   :  { %v3784_v60 = vadd.f32 %v3783_v59, %v8970_v23  ;;  %v3785_v61 = vpop.f32.mrb[223].mxu0 }
 0x913   :  { %v3786_v62 = vadd.f32 %v3785_v61, %v8973_v16  ;;  %4240 = vmatprep.mubr.f32.mxu1 %v3913_v58  ;;  %4490 = vmatprep.mubr.f32.mxu0 %v3913_v58 }
 0x914   :  { %4241 = vmatmul.mubr.f32.gmra.mrb[28].mxu1 %v3912_v3  ;;  %4491 = vmatmul.mubr.f32.gmra.mrb[28].mxu0 %v3912_v3  ;;  %v3914_v4 = vmax.f32 %v3784_v60, 0.0 }
 0x915   :  { %v3915_v63 = vmax.f32 %v3786_v62, 0.0  ;;  %v3789_v1 = vpop.f32.mrb[224].mxu0 }
 0x916   :  { %v3790_v0 = vadd.f32 %v3789_v1, %v8970_v23  ;;  %v3791_v5 = vpop.f32.mrb[225].mxu0 }
 0x917   :  { %v3792_v6 = vadd.f32 %v3791_v5, %v8973_v16  ;;  %4245 = vmatprep.mubr.f32.mxu1 %v3915_v63  ;;  %4496 = vmatprep.mubr.f32.mxu0 %v3915_v63 }
 0x918   :  { %4246 = vmatmul.mubr.f32.gmra.mrb[30].mxu1 %v3914_v4  ;;  %4497 = vmatmul.mubr.f32.gmra.mrb[30].mxu0 %v3914_v4  ;;  %v3916_v9 = vmax.f32 %v3790_v0, 0.0 }
 0x919   :  { %v3917_v7 = vmax.f32 %v3792_v6, 0.0  ;;  %v3795_v8 = vpop.f32.mrb[226].mxu0 }
 0x91a   :  { %v3796_v11 = vadd.f32 %v3795_v8, %v8970_v23  ;;  %v3797_v13 = vpop.f32.mrb[227].mxu0 }
 0x91b   :  { %v3798_v14 = vadd.f32 %v3797_v13, %v8973_v16  ;;  %4250 = vmatprep.mubr.f32.mxu1 %v3917_v7  ;;  %4502 = vmatprep.mubr.f32.mxu0 %v3917_v7 }
 0x91c   :  { %4251 = vmatmul.mubr.f32.gmra.mrb[32].mxu1 %v3916_v9  ;;  %4503 = vmatmul.mubr.f32.gmra.mrb[32].mxu0 %v3916_v9  ;;  %v3918_v37 = vmax.f32 %v3796_v11, 0.0 }
 0x91d   :  { %v3919_v17 = vmax.f32 %v3798_v14, 0.0  ;;  %v3801_v18 = vpop.f32.mrb[228].mxu0 }
 0x91e   :  { %v3802_v19 = vadd.f32 %v3801_v18, %v8970_v23  ;;  %v3803_v20 = vpop.f32.mrb[229].mxu0 }
 0x91f   :  { %v3804_v39 = vadd.f32 %v3803_v20, %v8973_v16  ;;  %4255 = vmatprep.mubr.f32.mxu1 %v3919_v17  ;;  %4508 = vmatprep.mubr.f32.mxu0 %v3919_v17 }
 0x920   :  { %4256 = vmatmul.mubr.f32.gmra.mrb[34].mxu1 %v3918_v37  ;;  %4509 = vmatmul.mubr.f32.gmra.mrb[34].mxu0 %v3918_v37  ;;  %v3920_v15 = vmax.f32 %v3802_v19, 0.0 }
 0x921   :  { %v3921_v21 = vmax.f32 %v3804_v39, 0.0  ;;  %v3807_v22 = vpop.f32.mrb[230].mxu0 }
 0x922   :  { %v3808_v46 = vadd.f32 %v3807_v22, %v8970_v23  ;;  %v3809_v10 = vpop.f32.mrb[231].mxu0 }
 0x923   :  { %v3810_v24 = vadd.f32 %v3809_v10, %v8973_v16  ;;  %4260 = vmatprep.mubr.f32.mxu1 %v3921_v21  ;;  %4514 = vmatprep.mubr.f32.mxu0 %v3921_v21 }
 0x924   :  { %4261 = vmatmul.mubr.f32.gmra.mrb[36].mxu1 %v3920_v15  ;;  %4515 = vmatmul.mubr.f32.gmra.mrb[36].mxu0 %v3920_v15  ;;  %v3922_v26 = vmax.f32 %v3808_v46, 0.0 }
 0x925   :  { %v3923_v25 = vmax.f32 %v3810_v24, 0.0  ;;  %v3813_v40 = vpop.f32.mrb[232].mxu0 }
 0x926   :  { %v3814_v48 = vadd.f32 %v3813_v40, %v8970_v23  ;;  %v3815_v27 = vpop.f32.mrb[233].mxu0 }
 0x927   :  { %v3816_v28 = vadd.f32 %v3815_v27, %v8973_v16  ;;  %4265 = vmatprep.mubr.f32.mxu1 %v3923_v25  ;;  %4520 = vmatprep.mubr.f32.mxu0 %v3923_v25 }
 0x928   :  { %4266 = vmatmul.mubr.f32.gmra.mrb[38].mxu1 %v3922_v26  ;;  %4521 = vmatmul.mubr.f32.gmra.mrb[38].mxu0 %v3922_v26  ;;  %v3924_v30 = vmax.f32 %v3814_v48, 0.0 }
 0x929   :  { %v3925_v29 = vmax.f32 %v3816_v28, 0.0  ;;  %v3819_v56 = vpop.f32.mrb[234].mxu0 }
 0x92a   :  { %v3820_v31 = vadd.f32 %v3819_v56, %v8970_v23  ;;  %v3821_v32 = vpop.f32.mrb[235].mxu0 }
 0x92b   :  { %v3822_v57 = vadd.f32 %v3821_v32, %v8973_v16  ;;  %4270 = vmatprep.mubr.f32.mxu1 %v3925_v29  ;;  %4526 = vmatprep.mubr.f32.mxu0 %v3925_v29 }
 0x92c   :  { %4271 = vmatmul.mubr.f32.gmra.mrb[40].mxu1 %v3924_v30  ;;  %4527 = vmatmul.mubr.f32.gmra.mrb[40].mxu0 %v3924_v30  ;;  %v3926_v36 = vmax.f32 %v3820_v31, 0.0 }
 0x92d   :  { %v3927_v33 = vmax.f32 %v3822_v57, 0.0  ;;  %v3825_v34 = vpop.f32.mrb[236].mxu0 }
 0x92e   :  { %v3826_v38 = vadd.f32 %v3825_v34, %v8970_v23  ;;  %v3827_v12 = vpop.f32.mrb[237].mxu0 }
 0x92f   :  { %v3828_v41 = vadd.f32 %v3827_v12, %v8973_v16  ;;  %4275 = vmatprep.mubr.f32.mxu1 %v3927_v33  ;;  %4532 = vmatprep.mubr.f32.mxu0 %v3927_v33  ;;  %v4013_v12 = vld [vmem:[%s9771_s21] sm:$0xff] }
 0x930   :  { %4276 = vmatmul.mubr.f32.gmra.mrb[42].mxu1 %v3926_v36  ;;  %4533 = vmatmul.mubr.f32.gmra.mrb[42].mxu0 %v3926_v36  ;;  %v3928_v44 = vmax.f32 %v3826_v38, 0.0  ;;  %v354_v38 = vld [vmem:[%s9822_s7] sm:$0xff] }
 0x931   :  { %v3929_v42 = vmax.f32 %v3828_v41, 0.0  ;;  %v3831_v43 = vpop.f32.mrb[238].mxu0 }
 0x932   :  { %v3832_v45 = vadd.f32 %v3831_v43, %v8970_v23  ;;  %v3833_v49 = vpop.f32.mrb[239].mxu0  ;;  %v4015_v43 = vld [vmem:[%s9771_s21 + $0x10] sm:$0xff] }
 0x933   :  { %v3834_v50 = vadd.f32 %v3833_v49, %v8973_v16  ;;  %4280 = vmatprep.mubr.f32.mxu1 %v3929_v42  ;;  %4538 = vmatprep.mubr.f32.mxu0 %v3929_v42  ;;  %v356_v42 = vld [vmem:[%s9822_s7 + $0x10] sm:$0xff] }
 0x934   :  { %4281 = vmatmul.mubr.f32.gmra.mrb[44].mxu1 %v3928_v44  ;;  %4539 = vmatmul.mubr.f32.gmra.mrb[44].mxu0 %v3928_v44  ;;  %v3930_v54 = vmax.f32 %v3832_v45, 0.0  ;;  %v4016_v44 = vld [vmem:[%s9771_s21 + $0x18] sm:$0xff] }
 0x935   :  { %v3931_v52 = vmax.f32 %v3834_v50, 0.0  ;;  %v3837_v53 = vpop.f32.mrb[240].mxu0  ;;  %v357_v45 = vld [vmem:[%s9822_s7 + $0x18] sm:$0xff]  ;;  %v6716_v49 = vpack.c.bf16 %v4016_v44, %v4015_v43  ;;  %v358_v50 = vld [vmem:[%s9822_s7 + $0x20] sm:$0xff] }
 0x936   :  { %v3838_v55 = vadd.f32 %v3837_v53, %v8970_v23  ;;  %v3839_v2 = vpop.f32.mrb[241].mxu0  ;;  %v4018_v53 = vld [vmem:[%s9771_s21 + $0x28] sm:$0xff]  ;;  %v4040_v43 = vld [vmem:[%s9771_s21 + $0xd8] sm:$0xff] }
 0x937   :  { %v3840_v58 = vadd.f32 %v3839_v2, %v8973_v16  ;;  %4285 = vmatprep.mubr.f32.mxu1 %v3931_v52  ;;  %4544 = vmatprep.mubr.f32.mxu0 %v3931_v52  ;;  %v4017_v52 = vld [vmem:[%s9771_s21 + $0x20] sm:$0xff]  ;;  %v360_v2 = vld [vmem:[%s9822_s7 + $0x30] sm:$0xff]  ;;  %v381_v44 = vld [vmem:[%s9822_s7 + $0xd8] sm:$0xff] }
 0x938   :  { %4286 = vmatmul.mubr.f32.gmra.mrb[46].mxu1 %v3930_v54  ;;  %4545 = vmatmul.mubr.f32.gmra.mrb[46].mxu0 %v3930_v54  ;;  %v3932_v60 = vmax.f32 %v3838_v55, 0.0  ;;  %v359_v54 = vld [vmem:[%s9822_s7 + $0x28] sm:$0xff]  ;;  %v6719_v55 = vpack.c.bf16 %v4018_v53, %v4017_v52 }
 0x939   :  { %v3933_v59 = vmax.f32 %v3840_v58, 0.0  ;;  %v3843_v3 = vpop.f32.mrb[242].mxu0  ;;  %v4019_v58 = vld [vmem:[%s9771_s21 + $0x30] sm:$0xff]  ;;  %v4042_v52 = vld [vmem:[%s9771_s21 + $0xe8] sm:$0xff] }
 0x93a   :  { %v3844_v61 = vadd.f32 %v3843_v3, %v8970_v23  ;;  %v3845_v62 = vpop.f32.mrb[243].mxu0  ;;  %v361_v3 = vld [vmem:[%s9822_s7 + $0x38] sm:$0xff]  ;;  %v383_v53 = vld [vmem:[%s9822_s7 + $0xe8] sm:$0xff] }
 0x93b   :  { %v3846_v63 = vadd.f32 %v3845_v62, %v8973_v16  ;;  %4290 = vmatprep.mubr.f32.mxu1 %v3933_v59  ;;  %4550 = vmatprep.mubr.f32.mxu0 %v3933_v59  ;;  %v4020_v59 = vld [vmem:[%s9771_s21 + $0x38] sm:$0xff]  ;;  %v4021_v62 = vld [vmem:[%s9771_s21 + $0x40] sm:$0xff] }
 0x93c   :  { %4291 = vmatmul.mubr.f32.gmra.mrb[48].mxu1 %v3932_v60  ;;  %4551 = vmatmul.mubr.f32.gmra.mrb[48].mxu0 %v3932_v60  ;;  %v3934_v0 = vmax.f32 %v3844_v61, 0.0  ;;  %v6722_v60 = vpack.c.bf16 %v4020_v59, %v4019_v58  ;;  %v362_v61 = vld [vmem:[%s9822_s7 + $0x40] sm:$0xff]  ;;  %v4044_v58 = vld [vmem:[%s9771_s21 + $0xf8] sm:$0xff] }
 0x93d   :  { %v3935_v1 = vmax.f32 %v3846_v63, 0.0  ;;  %v3849_v4 = vpop.f32.mrb[244].mxu0  ;;  %v4022_v63 = vld [vmem:[%s9771_s21 + $0x48] sm:$0xff]  ;;  %v385_v59 = vld [vmem:[%s9822_s7 + $0xf8] sm:$0xff] }
 0x93e   :  { %v3850_v5 = vadd.f32 %v3849_v4, %v8970_v23  ;;  %v3851_v6 = vpop.f32.mrb[245].mxu0  ;;  %v6725_v4 = vpack.c.bf16 %v4022_v63, %v4021_v62 }
 0x93f   :  { %v3852_v7 = vadd.f32 %v3851_v6, %v8973_v16  ;;  %4295 = vmatprep.mubr.f32.mxu1 %v3935_v1  ;;  %4556 = vmatprep.mubr.f32.mxu0 %v3935_v1  ;;  %v363_v1 = vld [vmem:[%s9822_s7 + $0x48] sm:$0xff]  ;;  %v4024_v6 = vld [vmem:[%s9771_s21 + $0x58] sm:$0xff] }
 0x940   :  { %4296 = vmatmul.mubr.f32.gmra.mrb[50].mxu1 %v3934_v0  ;;  %4557 = vmatmul.mubr.f32.gmra.mrb[50].mxu0 %v3934_v0  ;;  %v3936_v11 = vmax.f32 %v3850_v5, 0.0  ;;  %v364_v0 = vld [vmem:[%s9822_s7 + $0x50] sm:$0xff] }
 0x941   :  { %v3937_v8 = vmax.f32 %v3852_v7, 0.0  ;;  %v3855_v9 = vpop.f32.mrb[246].mxu0  ;;  %v4023_v5 = vld [vmem:[%s9771_s21 + $0x50] sm:$0xff]  ;;  %v365_v7 = vld [vmem:[%s9822_s7 + $0x58] sm:$0xff] }
 0x942   :  { %v3856_v13 = vadd.f32 %v3855_v9, %v8970_v23  ;;  %v3857_v14 = vpop.f32.mrb[247].mxu0  ;;  %v366_v9 = vld [vmem:[%s9822_s7 + $0x60] sm:$0xff] }
 0x943   :  { %v3858_v17 = vadd.f32 %v3857_v14, %v8973_v16  ;;  %4300 = vmatprep.mubr.f32.mxu1 %v3937_v8  ;;  %4562 = vmatprep.mubr.f32.mxu0 %v3937_v8  ;;  %v6728_v8 = vpack.c.bf16 %v4024_v6, %v4023_v5  ;;  %v367_v14 = vld [vmem:[%s9822_s7 + $0x68] sm:$0xff] }
 0x944   :  { %4301 = vmatmul.mubr.f32.gmra.mrb[52].mxu1 %v3936_v11  ;;  %4563 = vmatmul.mubr.f32.gmra.mrb[52].mxu0 %v3936_v11  ;;  %v3938_v19 = vmax.f32 %v3856_v13, 0.0  ;;  %v4025_v11 = vld [vmem:[%s9771_s21 + $0x60] sm:$0xff]  ;;  %v4026_v13 = vld [vmem:[%s9771_s21 + $0x68] sm:$0xff] }
 0x945   :  { %v3939_v18 = vmax.f32 %v3858_v17, 0.0  ;;  %v3861_v37 = vpop.f32.mrb[248].mxu0  ;;  %v6731_v17 = vpack.c.bf16 %v4026_v13, %v4025_v11  ;;  %v4084_v11 = vld [vmem:[#allocation29 + $0x8] sm:$0xff] }
 0x946   :  { %v3862_v20 = vadd.f32 %v3861_v37, %v8970_v23  ;;  %v3863_v39 = vpop.f32.mrb[249].mxu0  ;;  %v4027_v37 = vld [vmem:[%s9771_s21 + $0x70] sm:$0xff] }
 0x947   :  { %v3864_v21 = vadd.f32 %v3863_v39, %v8973_v16  ;;  %4305 = vmatprep.mubr.f32.mxu1 %v3939_v18  ;;  %4568 = vmatprep.mubr.f32.mxu0 %v3939_v18  ;;  %v368_v18 = vld [vmem:[%s9822_s7 + $0x70] sm:$0xff] }
 0x948   :  { %4306 = vmatmul.mubr.f32.gmra.mrb[54].mxu1 %v3938_v19  ;;  %4569 = vmatmul.mubr.f32.gmra.mrb[54].mxu0 %v3938_v19  ;;  %v3940_v46 = vmax.f32 %v3862_v20, 0.0  ;;  %v4028_v19 = vld [vmem:[%s9771_s21 + $0x78] sm:$0xff] }
 0x949   :  { %v3941_v22 = vmax.f32 %v3864_v21, 0.0  ;;  %v3867_v15 = vpop.f32.mrb[250].mxu0  ;;  %v369_v20 = vld [vmem:[%s9822_s7 + $0x78] sm:$0xff]  ;;  %v6734_v39 = vpack.c.bf16 %v4028_v19, %v4027_v37  ;;  %v370_v21 = vld [vmem:[%s9822_s7 + $0x80] sm:$0xff] }
 0x94a   :  { %v3868_v10 = vadd.f32 %v3867_v15, %v8970_v23  ;;  %v3869_v24 = vpop.f32.mrb[251].mxu0  ;;  %v4030_v15 = vld [vmem:[%s9771_s21 + $0x88] sm:$0xff] }
 0x94b   :  { %v3870_v25 = vadd.f32 %v3869_v24, %v8973_v16  ;;  %4310 = vmatprep.mubr.f32.mxu1 %v3941_v22  ;;  %4574 = vmatprep.mubr.f32.mxu0 %v3941_v22  ;;  %v4029_v22 = vld [vmem:[%s9771_s21 + $0x80] sm:$0xff]  ;;  %v372_v24 = vld [vmem:[%s9822_s7 + $0x90] sm:$0xff] }
 0x94c   :  { %4311 = vmatmul.mubr.f32.gmra.mrb[56].mxu1 %v3940_v46  ;;  %4575 = vmatmul.mubr.f32.gmra.mrb[56].mxu0 %v3940_v46  ;;  %v3942_v48 = vmax.f32 %v3868_v10, 0.0  ;;  %v371_v46 = vld [vmem:[%s9822_s7 + $0x88] sm:$0xff]  ;;  %v6737_v10 = vpack.c.bf16 %v4030_v15, %v4029_v22 }
 0x94d   :  { %v3943_v40 = vmax.f32 %v3870_v25, 0.0  ;;  %v3873_v26 = vpop.f32.mrb[252].mxu0  ;;  %v4031_v25 = vld [vmem:[%s9771_s21 + $0x90] sm:$0xff] }
 0x94e   :  { %v3874_v27 = vadd.f32 %v3873_v26, %v8970_v23  ;;  %v3875_v28 = vpop.f32.mrb[253].mxu0  ;;  %v373_v26 = vld [vmem:[%s9822_s7 + $0x98] sm:$0xff] }
 0x94f   :  { %v3876_v29 = vadd.f32 %v3875_v28, %v8973_v16  ;;  %4315 = vmatprep.mubr.f32.mxu1 %v3943_v40  ;;  %4580 = vmatprep.mubr.f32.mxu0 %v3943_v40  ;;  %v4032_v40 = vld [vmem:[%s9771_s21 + $0x98] sm:$0xff]  ;;  %v4033_v28 = vld [vmem:[%s9771_s21 + $0xa0] sm:$0xff] }
 0x950   :  { %4316 = vmatmul.mubr.f32.gmra.mrb[58].mxu1 %v3942_v48  ;;  %4581 = vmatmul.mubr.f32.gmra.mrb[58].mxu0 %v3942_v48  ;;  %v3944_v31 = vmax.f32 %v3874_v27, 0.0  ;;  %v6740_v48 = vpack.c.bf16 %v4032_v40, %v4031_v25  ;;  %v374_v27 = vld [vmem:[%s9822_s7 + $0xa0] sm:$0xff] }
 0x951   :  { %v3945_v56 = vmax.f32 %v3876_v29, 0.0  ;;  %v3879_v30 = vpop.f32.mrb[254].mxu0  ;;  %v4034_v29 = vld [vmem:[%s9771_s21 + $0xa8] sm:$0xff] }
 0x952   :  { %v3880_v32 = vadd.f32 %v3879_v30, %v8970_v23  ;;  %v3881_v57 = vpop.f32.mrb[255].mxu0  ;;  %v4014_v23 = vld [vmem:[%s9771_s21 + $0x8] sm:$0xff]  ;;  %v6743_v30 = vpack.c.bf16 %v4034_v29, %v4033_v28 }
 0x953   :  { %v3882_v33 = vadd.f32 %v3881_v57, %v8973_v16  ;;  %4320 = vmatprep.mubr.f32.mxu1 %v3945_v56  ;;  %4586 = vmatprep.mubr.f32.mxu0 %v3945_v56  ;;  %v355_v16 = vld [vmem:[%s9822_s7 + $0x8] sm:$0xff]  ;;  %v6713_v41 = vpack.c.bf16 %v4014_v23, %v4013_v12  ;;  %v4036_v57 = vld [vmem:[%s9771_s21 + $0xb8] sm:$0xff] }
 0x954   :  { %4321 = vmatmul.mubr.f32.gmra.mrb[60].mxu1 %v3944_v31  ;;  %4587 = vmatmul.mubr.f32.gmra.mrb[60].mxu0 %v3944_v31  ;;  %v3946_v36 = vmax.f32 %v3880_v32, 0.0  ;;  %v375_v56 = vld [vmem:[%s9822_s7 + $0xa8] sm:$0xff]  ;;  %v376_v31 = vld [vmem:[%s9822_s7 + $0xb0] sm:$0xff] }
 0x955   :  { %v3947_v34 = vmax.f32 %v3882_v33, 0.0  ;;  %v4035_v32 = vld [vmem:[%s9771_s21 + $0xb0] sm:$0xff]  ;;  %v377_v33 = vld [vmem:[%s9822_s7 + $0xb8] sm:$0xff]  ;;  %v4038_v12 = vld [vmem:[%s9771_s21 + $0xc8] sm:$0xff] }
 0x956   :  { %v379_v23 = vld [vmem:[%s9822_s7 + $0xc8] sm:$0xff] }
 0x957   :  { %4325 = vmatprep.mubr.f32.mxu1 %v3947_v34  ;;  %4592 = vmatprep.mubr.f32.mxu0 %v3947_v34  ;;  %v6746_v34 = vpack.c.bf16 %v4036_v57, %v4035_v32  ;;  %v4085_v32 = vld [vmem:[#allocation29 + $0x10] sm:$0xff]  ;;  %v4086_v57 = vld [vmem:[#allocation29 + $0x18] sm:$0xff] }
 0x958   :  { %4326 = vmatmul.mubr.f32.gmra.mrb[62].mxu1 %v3946_v36  ;;  %4593 = vmatmul.mubr.f32.gmra.mrb[62].mxu0 %v3946_v36  ;;  %v378_v36 = vld [vmem:[%s9822_s7 + $0xc0] sm:$0xff] }
 0x959   :  { %5984 = vmatprep.mubr.msk.f32.mxu1 %vm4599_vm1, %v354_v38  ;;  %v4037_v38 = vld [vmem:[%s9771_s21 + $0xc0] sm:$0xff] }
 0x95c   :  { %5985 = vmatmul.mubr.msk.f32.vlgmr.msra.gmra.mrb[64].mxu1 %vm4599_vm1, %v355_v16  ;;  %v6749_v16 = vpack.c.bf16 %v4038_v12, %v4037_v38 }
 0x95d   :  { %6714 = vmatpush1.bf16.msra.mxu1 %v6713_v41  ;;  %5987 = vmatprep.mubr.msk.f32.mxu1 %vm4599_vm1, %v356_v42  ;;  %v380_v41 = vld [vmem:[%s9822_s7 + $0xd0] sm:$0xff] }
 0x95e   :  { %6715 = vmatprep.subr.bf16.mxu1 %v7504_v35  ;;  %v4039_v42 = vld [vmem:[%s9771_s21 + $0xd0] sm:$0xff] }
 0x960   :  { %5988 = vmatmul.mubr.msk.f32.gmra.mrb[66].mxu1 %vm4599_vm1, %v357_v45  ;;  %v6752_v45 = vpack.c.bf16 %v4040_v43, %v4039_v42 }
 0x961   :  { %6717 = vmatpush1.bf16.msra.mxu1 %v6716_v49  ;;  %5990 = vmatprep.mubr.msk.f32.mxu1 %vm4599_vm1, %v358_v50  ;;  %v382_v49 = vld [vmem:[%s9822_s7 + $0xe0] sm:$0xff] }
 0x962   :  { %6718 = vmatprep.subr.bf16.mxu1 %v7504_v35  ;;  %v4041_v50 = vld [vmem:[%s9771_s21 + $0xe0] sm:$0xff] }
 0x964   :  { %5991 = vmatmul.mubr.msk.f32.gmra.mrb[68].mxu1 %vm4599_vm1, %v359_v54  ;;  %v6755_v54 = vpack.c.bf16 %v4042_v52, %v4041_v50 }
 0x965   :  { %6720 = vmatpush1.bf16.msra.mxu1 %v6719_v55  ;;  %5993 = vmatprep.mubr.msk.f32.mxu1 %vm4599_vm1, %v360_v2  ;;  %v384_v55 = vld [vmem:[%s9822_s7 + $0xf0] sm:$0xff] }
 0x966   :  { %6721 = vmatprep.subr.bf16.mxu1 %v7504_v35  ;;  %v4043_v2 = vld [vmem:[%s9771_s21 + $0xf0] sm:$0xff] }
 0x968   :  { %5994 = vmatmul.mubr.msk.f32.gmra.mrb[70].mxu1 %vm4599_vm1, %v361_v3  ;;  %v6758_v3 = vpack.c.bf16 %v4044_v58, %v4043_v2 }
 0x969   :  { %6723 = vmatpush1.bf16.msra.mxu1 %v6722_v60  ;;  %5996 = vmatprep.mubr.msk.f32.mxu1 %vm4599_vm1, %v362_v61  ;;  %v4012_v60 = vld [vmem:[#allocation25] sm:$0x3] }
 0x96a   :  { %6724 = vmatprep.subr.bf16.mxu1 %v7504_v35  ;;  %v9280_v61 = vrot.slane %v4012_v60, %v8295_v51  ;;  %v9283_v62 = vrot.slane %v4012_v60, %v8290_v47  ;;  %v4083_v51 = vld [vmem:[#allocation29] sm:$0xff] }
 0x96b   :  { %v6760_v13 = vpack.c.bf16 %v4084_v11, %v4083_v51 }
 0x96c   :  { %5997 = vmatmul.mubr.msk.f32.gmra.mrb[72].mxu1 %vm4599_vm1, %v363_v1 }
 0x96d   :  { %6726 = vmatpush1.bf16.msra.mxu1 %v6725_v4  ;;  %5999 = vmatprep.mubr.msk.f32.mxu1 %vm4599_vm1, %v364_v0 }
 0x96e   :  { %6727 = vmatprep.subr.bf16.mxu1 %v7504_v35  ;;  %6761 = vmatprep.subr.bf16.mxu0 %v6760_v13 }
 0x96f   :  { %6763 = vmatpush3.bf16.msra.mxu0 %v6760_v13 }
 0x970   :  { %6000 = vmatmul.mubr.msk.f32.gmra.mrb[74].mxu1 %vm4599_vm1, %v365_v7 }
 0x971   :  { %6729 = vmatpush1.bf16.msra.mxu1 %v6728_v8  ;;  %6002 = vmatprep.mubr.msk.f32.mxu1 %vm4599_vm1, %v366_v9 }
 0x972   :  { %6730 = vmatprep.subr.bf16.mxu1 %v7504_v35 }
 0x974   :  { %6003 = vmatmul.mubr.msk.f32.gmra.mrb[76].mxu1 %vm4599_vm1, %v367_v14 }
 0x975   :  { %6732 = vmatpush1.bf16.msra.mxu1 %v6731_v17  ;;  %6005 = vmatprep.mubr.msk.f32.mxu1 %vm4599_vm1, %v368_v18 }
 0x976   :  { %6733 = vmatprep.subr.bf16.mxu1 %v7504_v35 }
 0x978   :  { %6006 = vmatmul.mubr.msk.f32.gmra.mrb[78].mxu1 %vm4599_vm1, %v369_v20 }
 0x979   :  { %6735 = vmatpush1.bf16.msra.mxu1 %v6734_v39  ;;  %6008 = vmatprep.mubr.msk.f32.mxu1 %vm4599_vm1, %v370_v21 }
 0x97a   :  { %6736 = vmatprep.subr.bf16.mxu1 %v7504_v35 }
 0x97c   :  { %6009 = vmatmul.mubr.msk.f32.gmra.mrb[80].mxu1 %vm4599_vm1, %v371_v46 }
 0x97d   :  { %6738 = vmatpush1.bf16.msra.mxu1 %v6737_v10  ;;  %6011 = vmatprep.mubr.msk.f32.mxu1 %vm4599_vm1, %v372_v24 }
 0x97e   :  { %6739 = vmatprep.subr.bf16.mxu1 %v7504_v35 }
 0x980   :  { %6012 = vmatmul.mubr.msk.f32.gmra.mrb[82].mxu1 %vm4599_vm1, %v373_v26 }
 0x981   :  { %6741 = vmatpush1.bf16.msra.mxu1 %v6740_v48  ;;  %6014 = vmatprep.mubr.msk.f32.mxu1 %vm4599_vm1, %v374_v27 }
 0x982   :  { %6742 = vmatprep.subr.bf16.mxu1 %v7504_v35 }
 0x984   :  { %6015 = vmatmul.mubr.msk.f32.gmra.mrb[84].mxu1 %vm4599_vm1, %v375_v56 }
 0x985   :  { %6744 = vmatpush1.bf16.msra.mxu1 %v6743_v30  ;;  %6017 = vmatprep.mubr.msk.f32.mxu1 %vm4599_vm1, %v376_v31 }
 0x986   :  { %6745 = vmatprep.subr.bf16.mxu1 %v7504_v35 }
 0x988   :  { %6018 = vmatmul.mubr.msk.f32.gmra.mrb[86].mxu1 %vm4599_vm1, %v377_v33 }
 0x989   :  { %6747 = vmatpush1.bf16.msra.mxu1 %v6746_v34  ;;  %6020 = vmatprep.mubr.msk.f32.mxu1 %vm4599_vm1, %v378_v36  ;;  %v6764_v34 = vpack.c.bf16 %v4086_v57, %v4085_v32 }
 0x98a   :  { %6748 = vmatprep.subr.bf16.mxu1 %v7504_v35 }
 0x98b   :  { %6765 = vmatprep.subr.bf16.mxu0 %v6764_v34 }
 0x98c   :  { %6021 = vmatmul.mubr.msk.f32.gmra.mrb[88].mxu1 %vm4599_vm1, %v379_v23  ;;  %6767 = vmatpush3.bf16.msra.mxu0 %v6764_v34 }
 0x98d   :  { %6750 = vmatpush1.bf16.msra.mxu1 %v6749_v16  ;;  %6023 = vmatprep.mubr.msk.f32.mxu1 %vm4599_vm1, %v380_v41 }
 0x98e   :  { %6751 = vmatprep.subr.bf16.mxu1 %v7504_v35 }
 0x990   :  { %6024 = vmatmul.mubr.msk.f32.gmra.mrb[90].mxu1 %vm4599_vm1, %v381_v44 }
 0x991   :  { %6753 = vmatpush1.bf16.msra.mxu1 %v6752_v45  ;;  %6026 = vmatprep.mubr.msk.f32.mxu1 %vm4599_vm1, %v382_v49 }
 0x992   :  { %6754 = vmatprep.subr.bf16.mxu1 %v7504_v35 }
 0x994   :  { %6027 = vmatmul.mubr.msk.f32.gmra.mrb[92].mxu1 %vm4599_vm1, %v383_v53 }
 0x995   :  { %6756 = vmatpush1.bf16.msra.mxu1 %v6755_v54  ;;  %6029 = vmatprep.mubr.msk.f32.mxu1 %vm4599_vm1, %v384_v55 }
 0x996   :  { %6757 = vmatprep.subr.bf16.mxu1 %v7504_v35 }
 0x998   :  { %6030 = vmatmul.mubr.msk.f32.gmra.mrb[94].mxu1 %vm4599_vm1, %v385_v59 }
 0x999   :  { %6759 = vmatpush1.bf16.msra.mxu1 %v6758_v3 }
 0x9af   :  { %v9285_v63 = vpop.f32.mrb[0].mxu1  ;;  %v4408_v1 = vpop.f32.mrb[0].mxu0 }
 0x9b0   :  { %v4174_v4 = vpop.f32.mrb[1].mxu1  ;;  %v4410_v0 = vpop.f32.mrb[1].mxu0  ;;  %v4409_v6 = vadd.f32 %v4408_v1, %v9283_v62 }
 0x9b1   :  { %v4411_v5 = vadd.f32 %v4410_v0, %v9280_v61  ;;  %v4087_v0 = vld [vmem:[#allocation29 + $0x20] sm:$0xff] }
 0x9b3   :  { %v9289_v35 = vpop.f32.mrb[2].mxu1  ;;  %v4414_v7 = vpop.f32.mrb[2].mxu0  ;;  %4985 = vmatprep.mubr.f32.mxu1 %v4411_v5  ;;  %v4088_v5 = vld [vmem:[#allocation29 + $0x28] sm:$0xff] }
 0x9b4   :  { %v4179_v8 = vpop.f32.mrb[3].mxu1  ;;  %v4416_v9 = vpop.f32.mrb[3].mxu0  ;;  %4986 = vmatmul.mubr.f32.vlgmr.msra.gmra.mrb[96].mxu1 %v4409_v6  ;;  %v4415_v14 = vadd.f32 %v4414_v7, %v9283_v62  ;;  %v6768_v7 = vpack.c.bf16 %v4088_v5, %v4087_v0 }
 0x9b5   :  { %v4417_v47 = vadd.f32 %v4416_v9, %v9280_v61 }
 0x9b6   :  { %6769 = vmatprep.subr.bf16.mxu0 %v6768_v7 }
 0x9b7   :  { %v9293_v17 = vpop.f32.mrb[4].mxu1  ;;  %v4420_v18 = vpop.f32.mrb[4].mxu0  ;;  %4990 = vmatprep.mubr.f32.mxu1 %v4417_v47  ;;  %6771 = vmatpush3.bf16.msra.mxu0 %v6768_v7 }
 0x9b8   :  { %v4184_v37 = vpop.f32.mrb[5].mxu1  ;;  %v4422_v19 = vpop.f32.mrb[5].mxu0  ;;  %4991 = vmatmul.mubr.f32.gmra.mrb[98].mxu1 %v4415_v14  ;;  %v4421_v39 = vadd.f32 %v4420_v18, %v9283_v62 }
 0x9b9   :  { %v4423_v20 = vadd.f32 %v4422_v19, %v9280_v61 }
 0x9bb   :  { %v9297_v21 = vpop.f32.mrb[6].mxu1  ;;  %v4426_v22 = vpop.f32.mrb[6].mxu0  ;;  %4995 = vmatprep.mubr.f32.mxu1 %v4423_v20 }
 0x9bc   :  { %v4189_v15 = vpop.f32.mrb[7].mxu1  ;;  %v4428_v46 = vpop.f32.mrb[7].mxu0  ;;  %4996 = vmatmul.mubr.f32.gmra.mrb[100].mxu1 %v4421_v39  ;;  %v4427_v24 = vadd.f32 %v4426_v22, %v9283_v62 }
 0x9bd   :  { %v4429_v10 = vadd.f32 %v4428_v46, %v9280_v61 }
 0x9bf   :  { %v9301_v25 = vpop.f32.mrb[8].mxu1  ;;  %v4432_v40 = vpop.f32.mrb[8].mxu0  ;;  %5000 = vmatprep.mubr.f32.mxu1 %v4429_v10 }
 0x9c0   :  { %v4194_v26 = vpop.f32.mrb[9].mxu1  ;;  %v4434_v48 = vpop.f32.mrb[9].mxu0  ;;  %5001 = vmatmul.mubr.f32.gmra.mrb[102].mxu1 %v4427_v24  ;;  %v4433_v28 = vadd.f32 %v4432_v40, %v9283_v62 }
 0x9c1   :  { %v4435_v27 = vadd.f32 %v4434_v48, %v9280_v61 }
 0x9c3   :  { %v9305_v29 = vpop.f32.mrb[10].mxu1  ;;  %v4438_v56 = vpop.f32.mrb[10].mxu0  ;;  %5005 = vmatprep.mubr.f32.mxu1 %v4435_v27 }
 0x9c4   :  { %v4199_v30 = vpop.f32.mrb[11].mxu1  ;;  %v4440_v31 = vpop.f32.mrb[11].mxu0  ;;  %5006 = vmatmul.mubr.f32.gmra.mrb[104].mxu1 %v4433_v28  ;;  %v4439_v36 = vadd.f32 %v4438_v56, %v9283_v62 }
 0x9c5   :  { %v4441_v33 = vadd.f32 %v4440_v31, %v9280_v61  ;;  %v4089_v30 = vld [vmem:[#allocation29 + $0x30] sm:$0xff]  ;;  %v4090_v31 = vld [vmem:[#allocation29 + $0x38] sm:$0xff] }
 0x9c6   :  { %v6772_v57 = vpack.c.bf16 %v4090_v31, %v4089_v30 }
 0x9c7   :  { %v9309_v38 = vpop.f32.mrb[12].mxu1  ;;  %v4444_v12 = vpop.f32.mrb[12].mxu0  ;;  %5010 = vmatprep.mubr.f32.mxu1 %v4441_v33 }
 0x9c8   :  { %v4204_v23 = vpop.f32.mrb[13].mxu1  ;;  %v4446_v16 = vpop.f32.mrb[13].mxu0  ;;  %5011 = vmatmul.mubr.f32.gmra.mrb[106].mxu1 %v4439_v36  ;;  %v4445_v42 = vadd.f32 %v4444_v12, %v9283_v62  ;;  %6773 = vmatprep.subr.bf16.mxu0 %v6772_v57 }
 0x9c9   :  { %v4447_v41 = vadd.f32 %v4446_v16, %v9280_v61  ;;  %6775 = vmatpush3.bf16.msra.mxu0 %v6772_v57 }
 0x9cb   :  { %v9313_v43 = vpop.f32.mrb[14].mxu1  ;;  %v4450_v44 = vpop.f32.mrb[14].mxu0  ;;  %5015 = vmatprep.mubr.f32.mxu1 %v4447_v41 }
 0x9cc   :  { %v4209_v45 = vpop.f32.mrb[15].mxu1  ;;  %v4452_v49 = vpop.f32.mrb[15].mxu0  ;;  %5016 = vmatmul.mubr.f32.gmra.mrb[108].mxu1 %v4445_v42  ;;  %v4451_v52 = vadd.f32 %v4450_v44, %v9283_v62 }
 0x9cd   :  { %v4453_v50 = vadd.f32 %v4452_v49, %v9280_v61  ;;  %v4091_v45 = vld [vmem:[#allocation29 + $0x40] sm:$0xff]  ;;  %v4092_v49 = vld [vmem:[#allocation29 + $0x48] sm:$0xff] }
 0x9cf   :  { %v9317_v53 = vpop.f32.mrb[16].mxu1  ;;  %v4456_v54 = vpop.f32.mrb[16].mxu0  ;;  %5020 = vmatprep.mubr.f32.mxu1 %v4453_v50 }
 0x9d0   :  { %v4214_v55 = vpop.f32.mrb[17].mxu1  ;;  %v4458_v2 = vpop.f32.mrb[17].mxu0  ;;  %5021 = vmatmul.mubr.f32.gmra.mrb[110].mxu1 %v4451_v52  ;;  %v4457_v59 = vadd.f32 %v4456_v54, %v9283_v62  ;;  %v6776_v54 = vpack.c.bf16 %v4092_v49, %v4091_v45 }
 0x9d1   :  { %v4459_v58 = vadd.f32 %v4458_v2, %v9280_v61  ;;  %v4093_v55 = vld [vmem:[#allocation29 + $0x50] sm:$0xff]  ;;  %v4094_v2 = vld [vmem:[#allocation29 + $0x58] sm:$0xff] }
 0x9d2   :  { %6777 = vmatprep.subr.bf16.mxu0 %v6776_v54 }
 0x9d3   :  { %v9321_v3 = vpop.f32.mrb[18].mxu1  ;;  %v4462_v60 = vpop.f32.mrb[18].mxu0  ;;  %5025 = vmatprep.mubr.f32.mxu1 %v4459_v58  ;;  %6779 = vmatpush3.bf16.msra.mxu0 %v6776_v54 }
 0x9d4   :  { %v4219_v1 = vpop.f32.mrb[19].mxu1  ;;  %v4464_v4 = vpop.f32.mrb[19].mxu0  ;;  %5026 = vmatmul.mubr.f32.gmra.mrb[112].mxu1 %v4457_v59  ;;  %v4463_v8 = vadd.f32 %v4462_v60, %v9283_v62  ;;  %v6780_v59 = vpack.c.bf16 %v4094_v2, %v4093_v55 }
 0x9d5   :  { %v4465_v6 = vadd.f32 %v4464_v4, %v9280_v61 }
 0x9d6   :  { %6781 = vmatprep.subr.bf16.mxu0 %v6780_v59 }
 0x9d7   :  { %v9325_v9 = vpop.f32.mrb[20].mxu1  ;;  %v4468_v51 = vpop.f32.mrb[20].mxu0  ;;  %5030 = vmatprep.mubr.f32.mxu1 %v4465_v6  ;;  %6783 = vmatpush3.bf16.msra.mxu0 %v6780_v59 }
 0x9d8   :  { %v4224_v11 = vpop.f32.mrb[21].mxu1  ;;  %v4470_v47 = vpop.f32.mrb[21].mxu0  ;;  %5031 = vmatmul.mubr.f32.gmra.mrb[114].mxu1 %v4463_v8  ;;  %v4469_v14 = vadd.f32 %v4468_v51, %v9283_v62 }
 0x9d9   :  { %v4471_v13 = vadd.f32 %v4470_v47, %v9280_v61 }
 0x9db   :  { %v9329_v18 = vpop.f32.mrb[22].mxu1  ;;  %v4474_v37 = vpop.f32.mrb[22].mxu0  ;;  %5035 = vmatprep.mubr.f32.mxu1 %v4471_v13 }
 0x9dc   :  { %v4229_v19 = vpop.f32.mrb[23].mxu1  ;;  %v4476_v20 = vpop.f32.mrb[23].mxu0  ;;  %5036 = vmatmul.mubr.f32.gmra.mrb[116].mxu1 %v4469_v14  ;;  %v4475_v22 = vadd.f32 %v4474_v37, %v9283_v62 }
 0x9dd   :  { %v4477_v39 = vadd.f32 %v4476_v20, %v9280_v61 }
 0x9df   :  { %v9333_v15 = vpop.f32.mrb[24].mxu1  ;;  %v4480_v46 = vpop.f32.mrb[24].mxu0  ;;  %5040 = vmatprep.mubr.f32.mxu1 %v4477_v39 }
 0x9e0   :  { %v4234_v10 = vpop.f32.mrb[25].mxu1  ;;  %v4482_v24 = vpop.f32.mrb[25].mxu0  ;;  %5041 = vmatmul.mubr.f32.gmra.mrb[118].mxu1 %v4475_v22  ;;  %v4481_v26 = vadd.f32 %v4480_v46, %v9283_v62 }
 0x9e1   :  { %v4483_v40 = vadd.f32 %v4482_v24, %v9280_v61 }
 0x9e3   :  { %v9337_v48 = vpop.f32.mrb[26].mxu1  ;;  %v4486_v27 = vpop.f32.mrb[26].mxu0  ;;  %5045 = vmatprep.mubr.f32.mxu1 %v4483_v40 }
 0x9e4   :  { %v4239_v28 = vpop.f32.mrb[27].mxu1  ;;  %v4488_v56 = vpop.f32.mrb[27].mxu0  ;;  %5046 = vmatmul.mubr.f32.gmra.mrb[120].mxu1 %v4481_v26  ;;  %v4487_v33 = vadd.f32 %v4486_v27, %v9283_v62 }
 0x9e5   :  { %v4489_v32 = vadd.f32 %v4488_v56, %v9280_v61 }
 0x9e7   :  { %v9341_v34 = vpop.f32.mrb[28].mxu1  ;;  %v4492_v36 = vpop.f32.mrb[28].mxu0  ;;  %5050 = vmatprep.mubr.f32.mxu1 %v4489_v32 }
 0x9e8   :  { %9823 = vst [vmem:[#allocation43_spill] sm:$0xff] %v9341_v34  ;;  %v4244_v12 = vpop.f32.mrb[29].mxu1  ;;  %v4494_v23 = vpop.f32.mrb[29].mxu0  ;;  %5051 = vmatmul.mubr.f32.gmra.mrb[122].mxu1 %v4487_v33  ;;  %v4493_v41 = vadd.f32 %v4492_v36, %v9283_v62 }
 0x9e9   :  { %v4495_v16 = vadd.f32 %v4494_v23, %v9280_v61 }
 0x9eb   :  { %v9345_v42 = vpop.f32.mrb[30].mxu1  ;;  %v4498_v44 = vpop.f32.mrb[30].mxu0  ;;  %5055 = vmatprep.mubr.f32.mxu1 %v4495_v16 }
 0x9ec   :  { %v4249_v50 = vpop.f32.mrb[31].mxu1  ;;  %v4500_v52 = vpop.f32.mrb[31].mxu0  ;;  %5056 = vmatmul.mubr.f32.gmra.mrb[124].mxu1 %v4493_v41  ;;  %v4499_v60 = vadd.f32 %v4498_v44, %v9283_v62 }
 0x9ed   :  { %v4501_v58 = vadd.f32 %v4500_v52, %v9280_v61  ;;  %v4095_v50 = vld [vmem:[#allocation29 + $0x60] sm:$0xff]  ;;  %v4096_v52 = vld [vmem:[#allocation29 + $0x68] sm:$0xff] }
 0x9ee   :  { %v6784_v2 = vpack.c.bf16 %v4096_v52, %v4095_v50 }
 0x9ef   :  { %v9349_v1 = vpop.f32.mrb[32].mxu1  ;;  %v4504_v4 = vpop.f32.mrb[32].mxu0  ;;  %5060 = vmatprep.mubr.f32.mxu1 %v4501_v58 }
 0x9f0   :  { %9824 = vst [vmem:[#allocation44_spill] sm:$0xff] %v9349_v1  ;;  %v4254_v0 = vpop.f32.mrb[33].mxu1  ;;  %v4506_v5 = vpop.f32.mrb[33].mxu0  ;;  %5061 = vmatmul.mubr.f32.gmra.mrb[126].mxu1 %v4499_v60  ;;  %v4505_v7 = vadd.f32 %v4504_v4, %v9283_v62  ;;  %6785 = vmatprep.subr.bf16.mxu0 %v6784_v2 }
 0x9f1   :  { %v4507_v6 = vadd.f32 %v4506_v5, %v9280_v61  ;;  %6787 = vmatpush3.bf16.msra.mxu0 %v6784_v2  ;;  %v4097_v0 = vld [vmem:[#allocation29 + $0x70] sm:$0xff]  ;;  %v4098_v5 = vld [vmem:[#allocation29 + $0x78] sm:$0xff] }
 0x9f3   :  { %v9353_v8 = vpop.f32.mrb[34].mxu1  ;;  %v4510_v51 = vpop.f32.mrb[34].mxu0  ;;  %5065 = vmatprep.mubr.f32.mxu1 %v4507_v6 }
 0x9f4   :  { %9825 = vst [vmem:[#allocation45_spill] sm:$0xff] %v9353_v8  ;;  %v4259_v11 = vpop.f32.mrb[35].mxu1  ;;  %v4512_v47 = vpop.f32.mrb[35].mxu0  ;;  %5066 = vmatmul.mubr.f32.gmra.mrb[128].mxu1 %v4505_v7  ;;  %v4511_v14 = vadd.f32 %v4510_v51, %v9283_v62  ;;  %v6788_v51 = vpack.c.bf16 %v4098_v5, %v4097_v0 }
 0x9f5   :  { %v4513_v13 = vadd.f32 %v4512_v47, %v9280_v61 }
 0x9f6   :  { %6789 = vmatprep.subr.bf16.mxu0 %v6788_v51 }
 0x9f7   :  { %v9357_v37 = vpop.f32.mrb[36].mxu1  ;;  %v4516_v19 = vpop.f32.mrb[36].mxu0  ;;  %5070 = vmatprep.mubr.f32.mxu1 %v4513_v13  ;;  %6791 = vmatpush3.bf16.msra.mxu0 %v6788_v51 }
 0x9f8   :  { %9826 = vst [vmem:[#allocation46_spill] sm:$0xff] %v9357_v37  ;;  %v4264_v20 = vpop.f32.mrb[37].mxu1  ;;  %v4518_v39 = vpop.f32.mrb[37].mxu0  ;;  %5071 = vmatmul.mubr.f32.gmra.mrb[130].mxu1 %v4511_v14  ;;  %v4517_v46 = vadd.f32 %v4516_v19, %v9283_v62 }
 0x9f9   :  { %v4519_v22 = vadd.f32 %v4518_v39, %v9280_v61 }
 0x9fb   :  { %v9361_v10 = vpop.f32.mrb[38].mxu1  ;;  %v4522_v24 = vpop.f32.mrb[38].mxu0  ;;  %5075 = vmatprep.mubr.f32.mxu1 %v4519_v22 }
 0x9fc   :  { %9827 = vst [vmem:[#allocation47_spill] sm:$0xff] %v9361_v10  ;;  %v4269_v40 = vpop.f32.mrb[39].mxu1  ;;  %v4524_v26 = vpop.f32.mrb[39].mxu0  ;;  %5076 = vmatmul.mubr.f32.gmra.mrb[132].mxu1 %v4517_v46  ;;  %v4523_v28 = vadd.f32 %v4522_v24, %v9283_v62 }
 0x9fd   :  { %v4525_v27 = vadd.f32 %v4524_v26, %v9280_v61 }
 0x9ff   :  { %v9365_v56 = vpop.f32.mrb[40].mxu1  ;;  %v4528_v30 = vpop.f32.mrb[40].mxu0  ;;  %5080 = vmatprep.mubr.f32.mxu1 %v4525_v27 }
 0xa00   :  { %9828 = vst [vmem:[#allocation48_spill] sm:$0xff] %v9365_v56  ;;  %v4274_v31 = vpop.f32.mrb[41].mxu1  ;;  %v4530_v32 = vpop.f32.mrb[41].mxu0  ;;  %5081 = vmatmul.mubr.f32.gmra.mrb[134].mxu1 %v4523_v28  ;;  %v4529_v33 = vadd.f32 %v4528_v30, %v9283_v62 }
 0xa01   :  { %v4531_v57 = vadd.f32 %v4530_v32, %v9280_v61 }
 0xa03   :  { %v9369_v36 = vpop.f32.mrb[42].mxu1  ;;  %v4534_v12 = vpop.f32.mrb[42].mxu0  ;;  %5085 = vmatprep.mubr.f32.mxu1 %v4531_v57 }
 0xa04   :  { %9829 = vst [vmem:[#allocation49_spill] sm:$0xff] %v9369_v36  ;;  %v4279_v23 = vpop.f32.mrb[43].mxu1  ;;  %v4536_v16 = vpop.f32.mrb[43].mxu0  ;;  %5086 = vmatmul.mubr.f32.gmra.mrb[136].mxu1 %v4529_v33  ;;  %v4535_v44 = vadd.f32 %v4534_v12, %v9283_v62 }
 0xa05   :  { %v4537_v41 = vadd.f32 %v4536_v16, %v9280_v61 }
 0xa07   :  { %v9373_v45 = vpop.f32.mrb[44].mxu1  ;;  %v4540_v49 = vpop.f32.mrb[44].mxu0  ;;  %5090 = vmatprep.mubr.f32.mxu1 %v4537_v41 }
 0xa08   :  { %9830 = vst [vmem:[#allocation50_spill] sm:$0xff] %v9373_v45  ;;  %v4284_v54 = vpop.f32.mrb[45].mxu1  ;;  %v4542_v55 = vpop.f32.mrb[45].mxu0  ;;  %5091 = vmatmul.mubr.f32.gmra.mrb[138].mxu1 %v4535_v44  ;;  %v4541_v59 = vadd.f32 %v4540_v49, %v9283_v62 }
 0xa09   :  { %v4543_v58 = vadd.f32 %v4542_v55, %v9280_v61 }
 0xa0b   :  { %v9377_v60 = vpop.f32.mrb[46].mxu1  ;;  %v4546_v4 = vpop.f32.mrb[46].mxu0  ;;  %5095 = vmatprep.mubr.f32.mxu1 %v4543_v58 }
 0xa0c   :  { %9831 = vst [vmem:[#allocation51_spill] sm:$0xff] %v9377_v60  ;;  %v4289_v6 = vpop.f32.mrb[47].mxu1  ;;  %v4548_v7 = vpop.f32.mrb[47].mxu0  ;;  %5096 = vmatmul.mubr.f32.gmra.mrb[140].mxu1 %v4541_v59  ;;  %v4547_v47 = vadd.f32 %v4546_v4, %v9283_v62 }
 0xa0d   :  { %v4549_v11 = vadd.f32 %v4548_v7, %v9280_v61 }
 0xa0f   :  { %v9381_v13 = vpop.f32.mrb[48].mxu1  ;;  %v4552_v14 = vpop.f32.mrb[48].mxu0  ;;  %5100 = vmatprep.mubr.f32.mxu1 %v4549_v11 }
 0xa10   :  { %9832 = vst [vmem:[#allocation52_spill] sm:$0xff] %v9381_v13  ;;  %v4294_v19 = vpop.f32.mrb[49].mxu1  ;;  %v4554_v20 = vpop.f32.mrb[49].mxu0  ;;  %5101 = vmatmul.mubr.f32.gmra.mrb[142].mxu1 %v4547_v47  ;;  %v4553_v22 = vadd.f32 %v4552_v14, %v9283_v62 }
 0xa11   :  { %v4555_v39 = vadd.f32 %v4554_v20, %v9280_v61 }
 0xa13   :  { %v9385_v46 = vpop.f32.mrb[50].mxu1  ;;  %v4558_v24 = vpop.f32.mrb[50].mxu0  ;;  %5105 = vmatprep.mubr.f32.mxu1 %v4555_v39 }
 0xa14   :  { %9833 = vst [vmem:[#allocation53_spill] sm:$0xff] %v9385_v46  ;;  %v4299_v40 = vpop.f32.mrb[51].mxu1  ;;  %v4560_v26 = vpop.f32.mrb[51].mxu0  ;;  %5106 = vmatmul.mubr.f32.gmra.mrb[144].mxu1 %v4553_v22  ;;  %v4559_v28 = vadd.f32 %v4558_v24, %v9283_v62 }
 0xa15   :  { %v4561_v27 = vadd.f32 %v4560_v26, %v9280_v61 }
 0xa17   :  { %v9389_v30 = vpop.f32.mrb[52].mxu1  ;;  %v4564_v31 = vpop.f32.mrb[52].mxu0  ;;  %5110 = vmatprep.mubr.f32.mxu1 %v4561_v27 }
 0xa18   :  { %9834 = vst [vmem:[#allocation54_spill] sm:$0xff] %v9389_v30  ;;  %v4304_v32 = vpop.f32.mrb[53].mxu1  ;;  %v4566_v57 = vpop.f32.mrb[53].mxu0  ;;  %5111 = vmatmul.mubr.f32.gmra.mrb[146].mxu1 %v4559_v28  ;;  %v4565_v12 = vadd.f32 %v4564_v31, %v9283_v62 }
 0xa19   :  { %v4567_v33 = vadd.f32 %v4566_v57, %v9280_v61 }
 0xa1b   :  { %v9393_v23 = vpop.f32.mrb[54].mxu1  ;;  %v4570_v16 = vpop.f32.mrb[54].mxu0  ;;  %5115 = vmatprep.mubr.f32.mxu1 %v4567_v33 }
 0xa1c   :  { %9835 = vst [vmem:[#allocation55_spill] sm:$0xff] %v9393_v23  ;;  %v4309_v41 = vpop.f32.mrb[55].mxu1  ;;  %v4572_v44 = vpop.f32.mrb[55].mxu0  ;;  %5116 = vmatmul.mubr.f32.gmra.mrb[148].mxu1 %v4565_v12  ;;  %v4571_v50 = vadd.f32 %v4570_v16, %v9283_v62 }
 0xa1d   :  { %v4573_v49 = vadd.f32 %v4572_v44, %v9280_v61 }
 0xa1f   :  { %v9397_v52 = vpop.f32.mrb[56].mxu1  ;;  %v4576_v54 = vpop.f32.mrb[56].mxu0  ;;  %5120 = vmatprep.mubr.f32.mxu1 %v4573_v49 }
 0xa20   :  { %9836 = vst [vmem:[#allocation56_spill] sm:$0xff] %v9397_v52  ;;  %v4314_v55 = vpop.f32.mrb[57].mxu1  ;;  %v4578_v2 = vpop.f32.mrb[57].mxu0  ;;  %5121 = vmatmul.mubr.f32.gmra.mrb[150].mxu1 %v4571_v50  ;;  %v4577_v59 = vadd.f32 %v4576_v54, %v9283_v62 }
 0xa21   :  { %v4579_v58 = vadd.f32 %v4578_v2, %v9280_v61 }
 0xa23   :  { %v9401_v4 = vpop.f32.mrb[58].mxu1  ;;  %v4582_v0 = vpop.f32.mrb[58].mxu0  ;;  %5125 = vmatprep.mubr.f32.mxu1 %v4579_v58 }
 0xa24   :  { %9837 = vst [vmem:[#allocation57_spill] sm:$0xff] %v9401_v4  ;;  %v4319_v5 = vpop.f32.mrb[59].mxu1  ;;  %v4584_v6 = vpop.f32.mrb[59].mxu0  ;;  %5126 = vmatmul.mubr.f32.gmra.mrb[152].mxu1 %v4577_v59  ;;  %v4583_v51 = vadd.f32 %v4582_v0, %v9283_v62 }
 0xa25   :  { %v4585_v7 = vadd.f32 %v4584_v6, %v9280_v61 }
 0xa27   :  { %v9405_v11 = vpop.f32.mrb[60].mxu1  ;;  %v4588_v47 = vpop.f32.mrb[60].mxu0  ;;  %5130 = vmatprep.mubr.f32.mxu1 %v4585_v7 }
 0xa28   :  { %9838 = vst [vmem:[#allocation58_spill] sm:$0xff] %v9405_v11  ;;  %v4324_v14 = vpop.f32.mrb[61].mxu1  ;;  %v4590_v19 = vpop.f32.mrb[61].mxu0  ;;  %5131 = vmatmul.mubr.f32.gmra.mrb[154].mxu1 %v4583_v51  ;;  %v4589_v39 = vadd.f32 %v4588_v47, %v9283_v62  ;;  %v9466_v11 = vld [vmem:[%s9773_s23] ss:$0 sm:$0xff] }
 0xa29   :  { %v4591_v20 = vadd.f32 %v4590_v19, %v9280_v61 }
 0xa2b   :  { %v9409_v22 = vpop.f32.mrb[62].mxu1  ;;  %v4594_v24 = vpop.f32.mrb[62].mxu0  ;;  %5135 = vmatprep.mubr.f32.mxu1 %v4591_v20 }
 0xa2c   :  { %9839 = vst [vmem:[#allocation59_spill] sm:$0xff] %v9409_v22  ;;  %v4329_v40 = vpop.f32.mrb[63].mxu1  ;;  %v4596_v26 = vpop.f32.mrb[63].mxu0  ;;  %5136 = vmatmul.mubr.f32.gmra.mrb[156].mxu1 %v4589_v39  ;;  %v4595_v28 = vadd.f32 %v4594_v24, %v9283_v62 }
 0xa2d   :  { %v4597_v27 = vadd.f32 %v4596_v26, %v9280_v61 }
 0xa2f   :  { %5140 = vmatprep.mubr.f32.mxu1 %v4597_v27  ;;  %v5986_v31 = vpop.f32.mrb[64].mxu1 }
 0xa30   :  { %5141 = vmatmul.mubr.f32.gmra.mrb[158].mxu1 %v4595_v28  ;;  %v4762_v32 = vpop.f32.mrb[65].mxu1 }
 0xa33   :  { %v5989_v57 = vpop.f32.mrb[66].mxu1 }
 0xa34   :  { %v4772_v33 = vpop.f32.mrb[67].mxu1 }
 0xa37   :  { %v5992_v12 = vpop.f32.mrb[68].mxu1 }
 0xa38   :  { %v4782_v16 = vpop.f32.mrb[69].mxu1 }
 0xa3b   :  { %v9413_v41 = vpop.f32.mrb[70].mxu1 }
 0xa3c   :  { %v4792_v44 = vpop.f32.mrb[71].mxu1 }
 0xa3f   :  { %v9415_v49 = vpop.f32.mrb[72].mxu1 }
 0xa40   :  { %v9417_v50 = vpop.f32.mrb[73].mxu1 }
 0xa43   :  { %v9419_v54 = vpop.f32.mrb[74].mxu1 }
 0xa44   :  { %v9421_v61 = vpop.f32.mrb[75].mxu1 }
 0xa47   :  { %v9423_v62 = vpop.f32.mrb[76].mxu1 }
 0xa48   :  { %v9425_v55 = vpop.f32.mrb[77].mxu1 }
 0xa4b   :  { %v9427_v2 = vpop.f32.mrb[78].mxu1 }
 0xa4c   :  { %v9429_v58 = vpop.f32.mrb[79].mxu1 }
 0xa4f   :  { %v9431_v59 = vpop.f32.mrb[80].mxu1 }
 0xa50   :  { %v9433_v0 = vpop.f32.mrb[81].mxu1 }
 0xa53   :  { %v9435_v5 = vpop.f32.mrb[82].mxu1 }
 0xa54   :  { %v9437_v6 = vpop.f32.mrb[83].mxu1 }
 0xa57   :  { %v9439_v7 = vpop.f32.mrb[84].mxu1 }
 0xa58   :  { %v9441_v51 = vpop.f32.mrb[85].mxu1 }
 0xa5b   :  { %v9443_v47 = vpop.f32.mrb[86].mxu1 }
 0xa5c   :  { %v9445_v14 = vpop.f32.mrb[87].mxu1 }
 0xa5f   :  { %v9447_v19 = vpop.f32.mrb[88].mxu1 }
 0xa60   :  { %v9449_v20 = vpop.f32.mrb[89].mxu1 }
 0xa63   :  { %v9451_v39 = vpop.f32.mrb[90].mxu1 }
 0xa64   :  { %v9453_v24 = vpop.f32.mrb[91].mxu1 }
 0xa67   :  { %v9455_v40 = vpop.f32.mrb[92].mxu1 }
 0xa68   :  { %v9457_v26 = vpop.f32.mrb[93].mxu1 }
 0xa6b   :  { %v9459_v27 = vpop.f32.mrb[94].mxu1 }
 0xa6c   :  { %v9461_v28 = vpop.f32.mrb[95].mxu1 }
 0xa87   :  { %v4987_v22 = vpop.f32.mrb[96].mxu1 }
 0xa88   :  { %v4988_v52 = vadd.f32 %v4987_v22, %v4762_v32  ;;  %v4989_v4 = vpop.f32.mrb[97].mxu1 }
 0xa8a   :  { %v5152_v30 = vadd.f32 %v9466_v11, %v4988_v52 }
 0xa8b   :  { %v4992_v23 = vpop.f32.mrb[98].mxu1 }
 0xa8c   :  { %v5184_v13 = vmax.f32 %v5152_v30, 0.0  ;;  %v4993_v46 = vadd.f32 %v5986_v31, %v4992_v23  ;;  %v4994_v45 = vpop.f32.mrb[99].mxu1 }
 0xa8e   :  { %v5153_v60 = vadd.f32 %v9466_v11, %v4993_v46  ;;  %6064 = vmatprep.mubr.f32.mxu0 %v5184_v13 }
 0xa8f   :  { %v4997_v56 = vpop.f32.mrb[100].mxu1 }
 0xa90   :  { %v5185_v36 = vmax.f32 %v5153_v60, 0.0  ;;  %v4998_v37 = vadd.f32 %v4997_v56, %v4772_v33  ;;  %v4999_v10 = vpop.f32.mrb[101].mxu1 }
 0xa92   :  { %v5154_v1 = vadd.f32 %v9466_v11, %v4998_v37  ;;  %6065 = vmatmul.mubr.f32.vlgmr.msra.gmra.mrb[64].mxu0 %v5185_v36 }
 0xa93   :  { %v5002_v8 = vpop.f32.mrb[102].mxu1 }
 0xa94   :  { %v5186_v34 = vmax.f32 %v5154_v1, 0.0  ;;  %v5003_v22 = vadd.f32 %v5989_v57, %v5002_v8  ;;  %v5004_v4 = vpop.f32.mrb[103].mxu1 }
 0xa96   :  { %v5155_v52 = vadd.f32 %v9466_v11, %v5003_v22  ;;  %6067 = vmatprep.mubr.f32.mxu0 %v5186_v34 }
 0xa97   :  { %v5007_v30 = vpop.f32.mrb[104].mxu1 }
 0xa98   :  { %v5187_v23 = vmax.f32 %v5155_v52, 0.0  ;;  %v5008_v45 = vadd.f32 %v5007_v30, %v4782_v16  ;;  %v5009_v31 = vpop.f32.mrb[105].mxu1 }
 0xa9a   :  { %v5156_v13 = vadd.f32 %v9466_v11, %v5008_v45  ;;  %6068 = vmatmul.mubr.f32.gmra.mrb[66].mxu0 %v5187_v23 }
 0xa9b   :  { %v5012_v60 = vpop.f32.mrb[106].mxu1 }
 0xa9c   :  { %v5188_v56 = vmax.f32 %v5156_v13, 0.0  ;;  %v5013_v10 = vadd.f32 %v5992_v12, %v5012_v60  ;;  %v5014_v46 = vpop.f32.mrb[107].mxu1 }
 0xa9e   :  { %v5157_v37 = vadd.f32 %v9466_v11, %v5013_v10  ;;  %6070 = vmatprep.mubr.f32.mxu0 %v5188_v56 }
 0xa9f   :  { %v5017_v1 = vpop.f32.mrb[108].mxu1 }
 0xaa0   :  { %v5189_v8 = vmax.f32 %v5157_v37, 0.0  ;;  %v5018_v36 = vadd.f32 %v5017_v1, %v4792_v44  ;;  %v5019_v32 = vpop.f32.mrb[109].mxu1 }
 0xaa2   :  { %v5158_v34 = vadd.f32 %v9466_v11, %v5018_v36  ;;  %6071 = vmatmul.mubr.f32.gmra.mrb[68].mxu0 %v5189_v8 }
 0xaa3   :  { %v5022_v57 = vpop.f32.mrb[110].mxu1 }
 0xaa4   :  { %v5190_v33 = vmax.f32 %v5158_v34, 0.0  ;;  %v5023_v16 = vadd.f32 %v9413_v41, %v5022_v57  ;;  %v5024_v22 = vpop.f32.mrb[111].mxu1 }
 0xaa6   :  { %v5159_v4 = vadd.f32 %v9466_v11, %v5023_v16  ;;  %6073 = vmatprep.mubr.f32.mxu0 %v5190_v33 }
 0xaa7   :  { %v5027_v12 = vpop.f32.mrb[112].mxu1 }
 0xaa8   :  { %v5191_v52 = vmax.f32 %v5159_v4, 0.0  ;;  %v5028_v30 = vadd.f32 %v5027_v12, %v9417_v50  ;;  %v5029_v23 = vpop.f32.mrb[113].mxu1 }
 0xaaa   :  { %v5160_v45 = vadd.f32 %v9466_v11, %v5028_v30  ;;  %6074 = vmatmul.mubr.f32.gmra.mrb[70].mxu0 %v5191_v52 }
 0xaab   :  { %v5032_v44 = vpop.f32.mrb[114].mxu1 }
 0xaac   :  { %v5192_v31 = vmax.f32 %v5160_v45, 0.0  ;;  %v5033_v13 = vadd.f32 %v9415_v49, %v5032_v44  ;;  %v5034_v60 = vpop.f32.mrb[115].mxu1 }
 0xaae   :  { %v5161_v56 = vadd.f32 %v9466_v11, %v5033_v13  ;;  %6076 = vmatprep.mubr.f32.mxu0 %v5192_v31 }
 0xaaf   :  { %v5037_v41 = vpop.f32.mrb[116].mxu1 }
 0xab0   :  { %v5193_v10 = vmax.f32 %v5161_v56, 0.0  ;;  %v5038_v46 = vadd.f32 %v5037_v41, %v9421_v61  ;;  %v5039_v37 = vpop.f32.mrb[117].mxu1 }
 0xab2   :  { %v5162_v1 = vadd.f32 %v9466_v11, %v5038_v46  ;;  %6077 = vmatmul.mubr.f32.gmra.mrb[72].mxu0 %v5193_v10 }
 0xab3   :  { %v5042_v50 = vpop.f32.mrb[118].mxu1 }
 0xab4   :  { %v5194_v8 = vmax.f32 %v5162_v1, 0.0  ;;  %v5043_v36 = vadd.f32 %v9419_v54, %v5042_v50  ;;  %v5044_v32 = vpop.f32.mrb[119].mxu1 }
 0xab6   :  { %v5163_v34 = vadd.f32 %v9466_v11, %v5043_v36  ;;  %6079 = vmatprep.mubr.f32.mxu0 %v5194_v8 }
 0xab7   :  { %v5047_v49 = vpop.f32.mrb[120].mxu1 }
 0xab8   :  { %v5195_v57 = vmax.f32 %v5163_v34, 0.0  ;;  %v5048_v33 = vadd.f32 %v5047_v49, %v9425_v55  ;;  %v5049_v16 = vpop.f32.mrb[121].mxu1 }
 0xaba   :  { %v5164_v22 = vadd.f32 %v9466_v11, %v5048_v33  ;;  %6080 = vmatmul.mubr.f32.gmra.mrb[74].mxu0 %v5195_v57 }
 0xabb   :  { %v5052_v61 = vpop.f32.mrb[122].mxu1 }
 0xabc   :  { %v5196_v4 = vmax.f32 %v5164_v22, 0.0  ;;  %v5053_v12 = vadd.f32 %v9423_v62, %v5052_v61  ;;  %v5054_v52 = vpop.f32.mrb[123].mxu1 }
 0xabe   :  { %v5165_v30 = vadd.f32 %v9466_v11, %v5053_v12  ;;  %6082 = vmatprep.mubr.f32.mxu0 %v5196_v4 }
 0xabf   :  { %v5057_v54 = vpop.f32.mrb[124].mxu1 }
 0xac0   :  { %v5197_v23 = vmax.f32 %v5165_v30, 0.0  ;;  %v5058_v45 = vadd.f32 %v5057_v54, %v9429_v58  ;;  %v5059_v44 = vpop.f32.mrb[125].mxu1 }
 0xac2   :  { %v5166_v31 = vadd.f32 %v9466_v11, %v5058_v45  ;;  %6083 = vmatmul.mubr.f32.gmra.mrb[76].mxu0 %v5197_v23 }
 0xac3   :  { %v5062_v55 = vpop.f32.mrb[126].mxu1 }
 0xac4   :  { %v5198_v13 = vmax.f32 %v5166_v31, 0.0  ;;  %v5063_v60 = vadd.f32 %v9427_v2, %v5062_v55  ;;  %v5064_v56 = vpop.f32.mrb[127].mxu1 }
 0xac6   :  { %v5167_v41 = vadd.f32 %v9466_v11, %v5063_v60  ;;  %6085 = vmatprep.mubr.f32.mxu0 %v5198_v13 }
 0xac7   :  { %v5067_v62 = vpop.f32.mrb[128].mxu1 }
 0xac8   :  { %v5199_v10 = vmax.f32 %v5167_v41, 0.0  ;;  %v5068_v46 = vadd.f32 %v5067_v62, %v9433_v0  ;;  %v5069_v37 = vpop.f32.mrb[129].mxu1 }
 0xaca   :  { %v5168_v1 = vadd.f32 %v9466_v11, %v5068_v46  ;;  %6086 = vmatmul.mubr.f32.gmra.mrb[78].mxu0 %v5199_v10 }
 0xacb   :  { %v5072_v58 = vpop.f32.mrb[130].mxu1 }
 0xacc   :  { %v5200_v50 = vmax.f32 %v5168_v1, 0.0  ;;  %v5073_v8 = vadd.f32 %v9431_v59, %v5072_v58  ;;  %v5074_v36 = vpop.f32.mrb[131].mxu1 }
 0xace   :  { %v5169_v32 = vadd.f32 %v9466_v11, %v5073_v8  ;;  %6088 = vmatprep.mubr.f32.mxu0 %v5200_v50 }
 0xacf   :  { %v5077_v2 = vpop.f32.mrb[132].mxu1 }
 0xad0   :  { %v5201_v34 = vmax.f32 %v5169_v32, 0.0  ;;  %v5078_v49 = vadd.f32 %v5077_v2, %v9437_v6  ;;  %v5079_v57 = vpop.f32.mrb[133].mxu1 }
 0xad2   :  { %v5170_v33 = vadd.f32 %v9466_v11, %v5078_v49  ;;  %6089 = vmatmul.mubr.f32.gmra.mrb[80].mxu0 %v5201_v34 }
 0xad3   :  { %v5082_v0 = vpop.f32.mrb[134].mxu1 }
 0xad4   :  { %v5202_v16 = vmax.f32 %v5170_v33, 0.0  ;;  %v5083_v22 = vadd.f32 %v9435_v5, %v5082_v0  ;;  %v5084_v61 = vpop.f32.mrb[135].mxu1 }
 0xad6   :  { %v5171_v4 = vadd.f32 %v9466_v11, %v5083_v22  ;;  %6091 = vmatprep.mubr.f32.mxu0 %v5202_v16 }
 0xad7   :  { %v5087_v59 = vpop.f32.mrb[136].mxu1 }
 0xad8   :  { %v5203_v12 = vmax.f32 %v5171_v4, 0.0  ;;  %v5088_v52 = vadd.f32 %v5087_v59, %v9441_v51  ;;  %v5089_v30 = vpop.f32.mrb[137].mxu1 }
 0xada   :  { %v5172_v54 = vadd.f32 %v9466_v11, %v5088_v52  ;;  %6092 = vmatmul.mubr.f32.gmra.mrb[82].mxu0 %v5203_v12 }
 0xadb   :  { %v5092_v6 = vpop.f32.mrb[138].mxu1 }
 0xadc   :  { %v5204_v23 = vmax.f32 %v5172_v54, 0.0  ;;  %v5093_v45 = vadd.f32 %v9439_v7, %v5092_v6  ;;  %v5094_v44 = vpop.f32.mrb[139].mxu1 }
 0xade   :  { %v5173_v31 = vadd.f32 %v9466_v11, %v5093_v45  ;;  %6094 = vmatprep.mubr.f32.mxu0 %v5204_v23 }
 0xadf   :  { %v5097_v5 = vpop.f32.mrb[140].mxu1 }
 0xae0   :  { %v5205_v55 = vmax.f32 %v5173_v31, 0.0  ;;  %v5098_v13 = vadd.f32 %v5097_v5, %v9445_v14  ;;  %v5099_v60 = vpop.f32.mrb[141].mxu1 }
 0xae2   :  { %v5174_v56 = vadd.f32 %v9466_v11, %v5098_v13  ;;  %6095 = vmatmul.mubr.f32.gmra.mrb[84].mxu0 %v5205_v55 }
 0xae3   :  { %v5102_v51 = vpop.f32.mrb[142].mxu1 }
 0xae4   :  { %v5206_v41 = vmax.f32 %v5174_v56, 0.0  ;;  %v5103_v62 = vadd.f32 %v9443_v47, %v5102_v51  ;;  %v5104_v10 = vpop.f32.mrb[143].mxu1  ;;  %v9528_v51 = vld [vmem:[%s9777_s27] ss:$0 sm:$0xff] }
 0xae6   :  { %v5175_v46 = vadd.f32 %v9466_v11, %v5103_v62  ;;  %6097 = vmatprep.mubr.f32.mxu0 %v5206_v41 }
 0xae7   :  { %v5107_v7 = vpop.f32.mrb[144].mxu1 }
 0xae8   :  { %v5207_v37 = vmax.f32 %v5175_v46, 0.0  ;;  %v5108_v1 = vadd.f32 %v5107_v7, %v9449_v20  ;;  %v5109_v58 = vpop.f32.mrb[145].mxu1 }
 0xaea   :  { %v5176_v50 = vadd.f32 %v9466_v11, %v5108_v1  ;;  %6098 = vmatmul.mubr.f32.gmra.mrb[86].mxu0 %v5207_v37 }
 0xaeb   :  { %v5112_v14 = vpop.f32.mrb[146].mxu1 }
 0xaec   :  { %v5208_v8 = vmax.f32 %v5176_v50, 0.0  ;;  %v5113_v36 = vadd.f32 %v9447_v19, %v5112_v14  ;;  %v5114_v32 = vpop.f32.mrb[147].mxu1 }
 0xaee   :  { %v5177_v2 = vadd.f32 %v9466_v11, %v5113_v36  ;;  %6100 = vmatprep.mubr.f32.mxu0 %v5208_v8 }
 0xaef   :  { %v5117_v47 = vpop.f32.mrb[148].mxu1 }
 0xaf0   :  { %v5209_v34 = vmax.f32 %v5177_v2, 0.0  ;;  %v5118_v49 = vadd.f32 %v5117_v47, %v9453_v24  ;;  %v5119_v57 = vpop.f32.mrb[149].mxu1 }
 0xaf2   :  { %v5178_v33 = vadd.f32 %v9466_v11, %v5118_v49  ;;  %6101 = vmatmul.mubr.f32.gmra.mrb[88].mxu0 %v5209_v34 }
 0xaf3   :  { %v5122_v20 = vpop.f32.mrb[150].mxu1 }
 0xaf4   :  { %v5210_v0 = vmax.f32 %v5178_v33, 0.0  ;;  %v5123_v16 = vadd.f32 %v9451_v39, %v5122_v20  ;;  %v5124_v22 = vpop.f32.mrb[151].mxu1 }
 0xaf6   :  { %v5179_v61 = vadd.f32 %v9466_v11, %v5123_v16  ;;  %6103 = vmatprep.mubr.f32.mxu0 %v5210_v0 }
 0xaf7   :  { %v5127_v19 = vpop.f32.mrb[152].mxu1 }
 0xaf8   :  { %v5211_v4 = vmax.f32 %v5179_v61, 0.0  ;;  %v5128_v59 = vadd.f32 %v5127_v19, %v9457_v26  ;;  %v5129_v12 = vpop.f32.mrb[153].mxu1 }
 0xaf9   :  { %v9551_v12 = vld [vmem:[%s9775_s25] ss:$0 sm:$0xff]  ;;  %s7505_s25 = smov [#allocation31]  }
 0xafa   :  { %v5180_v52 = vadd.f32 %v9466_v11, %v5128_v59  ;;  %6104 = vmatmul.mubr.f32.gmra.mrb[90].mxu0 %v5211_v4  ;;  %s5740_s14 = sshll.u32 %s7505_s25, 4  ;;  %s5741_s14 = int_to_ptr.vmem [resolvable:$true] %s5740_s14 }
 0xafb   :  { %v5132_v24 = vpop.f32.mrb[154].mxu1  ;;  %s7437_s11 = scalar_lea.vmem %s5741_s14, 4096  ;;  %p7442_p5 = scmp.lt.s32.totalorder %s5741_s14, %s5741_s14 }
 0xafc   :  { %v5212_v30 = vmax.f32 %v5180_v52, 0.0  ;;  %v5133_v54 = vadd.f32 %v9455_v40, %v5132_v24  ;;  %v5134_v6 = vpop.f32.mrb[155].mxu1  ;;  %p7438_p4 = scmp.ne.s32.totalorder %s5741_s14, %s7437_s11  ;;  %p7443_p6 = scmp.lt.s32.totalorder %s7437_s11, %s7437_s11 }
 0xafd   :  { %v4178_v6 = vadd.f32 %v9551_v12, %v9289_v35 }
 0xafe   :  { %v5181_v23 = vadd.f32 %v9466_v11, %v5133_v54  ;;  %6106 = vmatprep.mubr.f32.mxu0 %v5212_v30  ;;  %p7444_p7 = por %p7443_p6, %p7442_p5 }
 0xaff   :  { %v5137_v39 = vpop.f32.mrb[156].mxu1 }
 0xb00   :  { %v5213_v45 = vmax.f32 %v5181_v23, 0.0  ;;  %v5138_v44 = vadd.f32 %v5137_v39, %v9461_v28  ;;  %v5139_v31 = vpop.f32.mrb[157].mxu1  ;;  %v4173_v39 = vadd.f32 %v9551_v12, %v9285_v63  ;;  %p7445_p8 = pnand %p7444_p7, %p7438_p4 }
 0xb02   :  { %v5182_v5 = vadd.f32 %v9466_v11, %v5138_v44  ;;  %6107 = vmatmul.mubr.f32.gmra.mrb[92].mxu0 %v5213_v45 }
 0xb03   :  { %v5142_v26 = vpop.f32.mrb[158].mxu1 }
 0xb04   :  { %v5214_v55 = vmax.f32 %v5182_v5, 0.0  ;;  %v5143_v13 = vadd.f32 %v9459_v27, %v5142_v26  ;;  %v5144_v60 = vpop.f32.mrb[159].mxu1 }
 0xb06   :  { %v5183_v56 = vadd.f32 %v9466_v11, %v5143_v13  ;;  %6109 = vmatprep.mubr.f32.mxu0 %v5214_v55 }
 0xb08   :  { %v5215_v40 = vmax.f32 %v5183_v56, 0.0 }
 0xb0a   :  { %6110 = vmatmul.mubr.f32.gmra.mrb[94].mxu0 %v5215_v40 }
 0xb65   :  { %v6066_v28 = vpop.f32.mrb[64].mxu0 }
 0xb66   :  { %v5294_v41 = vadd.f32 %v6066_v28, %v9528_v51  ;;  %v5288_v62 = vpop.f32.mrb[65].mxu0 }
 0xb67   :  { %v5289_v10 = vadd.f32 %v9528_v51, %v5288_v62 }
 0xb68   :  { %v5861_v46 = vmul.f32 -1.442695, %v5294_v41 }
 0xb69   :  { %v5860_v7 = vmul.f32 -1.442695, %v5289_v10 }
 0xb6a   :  { %6881 = vpow2.f32 %v5861_v46 }
 0xb6b   :  { %6883 = vpow2.f32 %v5860_v7  ;;  %v4183_v7 = vadd.f32 %v9551_v12, %v9293_v17 }
 0xb6d   :  { %v6069_v27 = vpop.f32.mrb[66].mxu0 }
 0xb6e   :  { %v5304_v11 = vadd.f32 %v6069_v27, %v9528_v51  ;;  %v5298_v37 = vpop.f32.mrb[67].mxu0 }
 0xb6f   :  { %v5299_v1 = vadd.f32 %v9528_v51, %v5298_v37 }
 0xb70   :  { %v5863_v58 = vmul.f32 -1.442695, %v5304_v11 }
 0xb71   :  { %v5862_v50 = vmul.f32 -1.442695, %v5299_v1 }
 0xb72   :  { %6885 = vpow2.f32 %v5863_v58 }
 0xb73   :  { %6887 = vpow2.f32 %v5862_v50 }
 0xb74   :  { %v6882_v14 = vpop.eup %6881 }
 0xb75   :  { %v6884_v8 = vpop.eup %6883  ;;  %v5544_v36 = vadd.f32 1.0, %v6882_v14  ;;  %v6072_v32 = vpop.f32.mrb[68].mxu0 }
 0xb76   :  { %v5543_v2 = vadd.f32 1.0, %v6884_v8  ;;  %v9535_v47 = vadd.f32 %v6072_v32, %v9528_v51  ;;  %v5308_v34 = vpop.f32.mrb[69].mxu0 }
 0xb77   :  { %6889 = vrcp.f32 %v5544_v36  ;;  %v9538_v49 = vadd.f32 %v9528_v51, %v5308_v34 }
 0xb78   :  { %6891 = vrcp.f32 %v5543_v2  ;;  %v5865_v57 = vmul.f32 -1.442695, %v9535_v47 }
 0xb79   :  { %v5864_v33 = vmul.f32 -1.442695, %v9538_v49 }
 0xb7a   :  { %6893 = vpow2.f32 %v5865_v57 }
 0xb7b   :  { %6895 = vpow2.f32 %v5864_v33  ;;  %v4198_v33 = vadd.f32 %v9551_v12, %v9305_v29 }
 0xb7c   :  { %v6886_v20 = vpop.eup %6885 }
 0xb7d   :  { %v6888_v0 = vpop.eup %6887  ;;  %v5546_v16 = vadd.f32 1.0, %v6886_v20  ;;  %v6075_v22 = vpop.f32.mrb[70].mxu0 }
 0xb7e   :  { %v5545_v61 = vadd.f32 1.0, %v6888_v0  ;;  %v9543_v19 = vadd.f32 %v6075_v22, %v9528_v51  ;;  %v5318_v4 = vpop.f32.mrb[71].mxu0  ;;  %v4193_v0 = vadd.f32 %v9551_v12, %v9301_v25 }
 0xb7f   :  { %6897 = vrcp.f32 %v5546_v16  ;;  %v9546_v59 = vadd.f32 %v9528_v51, %v5318_v4 }
 0xb80   :  { %6899 = vrcp.f32 %v5545_v61  ;;  %v5867_v52 = vmul.f32 -1.442695, %v9543_v19 }
 0xb81   :  { %v6890_v24 = vpop.eup %6889  ;;  %v5866_v30 = vmul.f32 -1.442695, %v9546_v59 }
 0xb82   :  { %v6892_v54 = vpop.eup %6891  ;;  %v5640_v23 = vmul.f32 %v6890_v24, %v5294_v41  ;;  %6901 = vpow2.f32 %v5867_v52 }
 0xb83   :  { %v5639_v45 = vmul.f32 %v6892_v54, %v5289_v10  ;;  %6903 = vpow2.f32 %v5866_v30  ;;  %v4188_v10 = vadd.f32 %v9551_v12, %v9297_v21 }
 0xb84   :  { %v6894_v44 = vpop.eup %6893  ;;  %v5672_v31 = vadd.f32 %v5640_v23, %v4178_v6 }
 0xb85   :  { %v6896_v5 = vpop.eup %6895  ;;  %v5671_v26 = vadd.f32 %v5639_v45, %v4173_v39  ;;  %v5548_v55 = vadd.f32 1.0, %v6894_v44  ;;  %v6078_v13 = vpop.f32.mrb[72].mxu0  ;;  %v4208_v45 = vadd.f32 %v9551_v12, %v9313_v43 }
 0xb86   :  { %5704 = vst [vmem:[#allocation31 + $0x8] sm:$0xff] %v5672_v31  ;;  %v5547_v60 = vadd.f32 1.0, %v6896_v5  ;;  %v9560_v56 = vadd.f32 %v6078_v13, %v9528_v51  ;;  %v5328_v40 = vpop.f32.mrb[73].mxu0  ;;  %v4203_v31 = vadd.f32 %v9551_v12, %v9309_v38 }
 0xb87   :  { %5703 = vst [vmem:[#allocation31] sm:$0xff] %v5671_v26  ;;  %6905 = vrcp.f32 %v5548_v55  ;;  %v9563_v35 = vadd.f32 %v9528_v51, %v5328_v40 }
 0xb88   :  { %6907 = vrcp.f32 %v5547_v60  ;;  %v5869_v63 = vmul.f32 -1.442695, %v9560_v56 }
 0xb89   :  { %v6898_v28 = vpop.eup %6897  ;;  %v5868_v41 = vmul.f32 -1.442695, %v9563_v35 }
 0xb8a   :  { %v6900_v62 = vpop.eup %6899  ;;  %v5642_v46 = vmul.f32 %v6898_v28, %v5304_v11  ;;  %6909 = vpow2.f32 %v5869_v63 }
 0xb8b   :  { %v5641_v27 = vmul.f32 %v6900_v62, %v5299_v1  ;;  %6911 = vpow2.f32 %v5868_v41 }
 0xb8c   :  { %v6902_v37 = vpop.eup %6901  ;;  %v5674_v58 = vadd.f32 %v5642_v46, %v4188_v10  ;;  %v4218_v46 = vadd.f32 %v9551_v12, %v9321_v3 }
 0xb8d   :  { %v6904_v50 = vpop.eup %6903  ;;  %v5673_v14 = vadd.f32 %v5641_v27, %v4183_v7  ;;  %v5550_v8 = vadd.f32 1.0, %v6902_v37  ;;  %v6081_v36 = vpop.f32.mrb[74].mxu0  ;;  %v4213_v27 = vadd.f32 %v9551_v12, %v9317_v53 }
 0xb8e   :  { %5706 = vst [vmem:[#allocation31 + $0x18] sm:$0xff] %v5674_v58  ;;  %v5549_v32 = vadd.f32 1.0, %v6904_v50  ;;  %v9572_v2 = vadd.f32 %v6081_v36, %v9528_v51  ;;  %v5338_v34 = vpop.f32.mrb[75].mxu0 }
 0xb8f   :  { %5705 = vst [vmem:[#allocation31 + $0x10] sm:$0xff] %v5673_v14  ;;  %6913 = vrcp.f32 %v5550_v8  ;;  %v9575_v21 = vadd.f32 %v9528_v51, %v5338_v34 }
 0xb90   :  { %6915 = vrcp.f32 %v5549_v32  ;;  %v5871_v17 = vmul.f32 -1.442695, %v9572_v2 }
 0xb91   :  { %v6906_v11 = vpop.eup %6905  ;;  %v5870_v1 = vmul.f32 -1.442695, %v9575_v21 }
 0xb92   :  { %v6908_v57 = vpop.eup %6907  ;;  %v5644_v20 = vmul.f32 %v6906_v11, %v9535_v47  ;;  %6917 = vpow2.f32 %v5871_v17 }
 0xb93   :  { %v5643_v16 = vmul.f32 %v6908_v57, %v9538_v49  ;;  %6919 = vpow2.f32 %v5870_v1  ;;  %v4228_v57 = vadd.f32 %v9551_v12, %v9329_v18 }
 0xb94   :  { %v6910_v22 = vpop.eup %6909  ;;  %v5676_v61 = vadd.f32 %v5644_v20, %v4198_v33  ;;  %v4223_v20 = vadd.f32 %v9551_v12, %v9325_v9 }
 0xb95   :  { %v6912_v4 = vpop.eup %6911  ;;  %v5675_v52 = vadd.f32 %v5643_v16, %v4193_v0  ;;  %v5552_v24 = vadd.f32 1.0, %v6910_v22  ;;  %v6084_v30 = vpop.f32.mrb[76].mxu0 }
 0xb96   :  { %5708 = vst [vmem:[#allocation31 + $0x28] sm:$0xff] %v5676_v61  ;;  %v5551_v54 = vadd.f32 1.0, %v6912_v4  ;;  %v9586_v6 = vadd.f32 %v6084_v30, %v9528_v51  ;;  %v5348_v29 = vpop.f32.mrb[77].mxu0 }
 0xb97   :  { %5707 = vst [vmem:[#allocation31 + $0x20] sm:$0xff] %v5675_v52  ;;  %6921 = vrcp.f32 %v5552_v24  ;;  %v9589_v47 = vadd.f32 %v9528_v51, %v5348_v29 }
 0xb98   :  { %6923 = vrcp.f32 %v5551_v54  ;;  %v5873_v25 = vmul.f32 -1.442695, %v9586_v6 }
 0xb99   :  { %v6914_v49 = vpop.eup %6913  ;;  %v5872_v23 = vmul.f32 -1.442695, %v9589_v47 }
 0xb9a   :  { %v6916_v39 = vpop.eup %6915  ;;  %v5646_v44 = vmul.f32 %v6914_v49, %v9543_v19  ;;  %6925 = vpow2.f32 %v5873_v25  ;;  %v4238_v49 = vadd.f32 %v9551_v12, %v9337_v48 }
 0xb9b   :  { %v5645_v5 = vmul.f32 %v6916_v39, %v9546_v59  ;;  %6927 = vpow2.f32 %v5872_v23  ;;  %v4233_v39 = vadd.f32 %v9551_v12, %v9333_v15 }
 0xb9c   :  { %v6918_v26 = vpop.eup %6917  ;;  %v5678_v55 = vadd.f32 %v5646_v44, %v4208_v45 }
 0xb9d   :  { %v6920_v13 = vpop.eup %6919  ;;  %v5677_v60 = vadd.f32 %v5645_v5, %v4203_v31  ;;  %v5554_v40 = vadd.f32 1.0, %v6918_v26  ;;  %v6087_v63 = vpop.f32.mrb[78].mxu0 }
 0xb9e   :  { %5710 = vst [vmem:[#allocation31 + $0x38] sm:$0xff] %v5678_v55  ;;  %v5553_v28 = vadd.f32 1.0, %v6920_v13  ;;  %v9600_v41 = vadd.f32 %v6087_v63, %v9528_v51  ;;  %v5358_v43 = vpop.f32.mrb[79].mxu0 }
 0xb9f   :  { %5709 = vst [vmem:[#allocation31 + $0x30] sm:$0xff] %v5677_v60  ;;  %6929 = vrcp.f32 %v5554_v40  ;;  %v9603_v19 = vadd.f32 %v9528_v51, %v5358_v43  ;;  %v4248_v43 = vadd.f32 %v9551_v12, %v9345_v42 }
 0xba0   :  { %6931 = vrcp.f32 %v5553_v28  ;;  %v5875_v38 = vmul.f32 -1.442695, %v9600_v41 }
 0xba1   :  { %v6922_v59 = vpop.eup %6921  ;;  %v5874_v62 = vmul.f32 -1.442695, %v9603_v19 }
 0xba2   :  { %v6924_v10 = vpop.eup %6923  ;;  %v5648_v7 = vmul.f32 %v6922_v59, %v9560_v56  ;;  %6933 = vpow2.f32 %v5875_v38  ;;  %v9840_v59 = vld [vmem:[#allocation43_spill] sm:$0xff] }
 0xba3   :  { %v5647_v37 = vmul.f32 %v6924_v10, %v9563_v35  ;;  %6935 = vpow2.f32 %v5874_v62  ;;  %v4243_v62 = vadd.f32 %v9551_v12, %v9840_v59  ;;  %v9846_v59 = vld [vmem:[#allocation48_spill] sm:$0xff] }
 0xba4   :  { %v6926_v58 = vpop.eup %6925  ;;  %v5680_v50 = vadd.f32 %v5648_v7, %v4218_v46 }
 0xba5   :  { %v6928_v14 = vpop.eup %6927  ;;  %v5679_v8 = vadd.f32 %v5647_v37, %v4213_v27  ;;  %v5556_v36 = vadd.f32 1.0, %v6926_v58  ;;  %v6090_v32 = vpop.f32.mrb[80].mxu0 }
 0xba6   :  { %5712 = vst [vmem:[#allocation31 + $0x48] sm:$0xff] %v5680_v50  ;;  %v5555_v34 = vadd.f32 1.0, %v6928_v14  ;;  %v9614_v17 = vadd.f32 %v6090_v32, %v9528_v51  ;;  %v5368_v3 = vpop.f32.mrb[81].mxu0 }
 0xba7   :  { %5711 = vst [vmem:[#allocation31 + $0x40] sm:$0xff] %v5679_v8  ;;  %6937 = vrcp.f32 %v5556_v36  ;;  %v9617_v56 = vadd.f32 %v9528_v51, %v5368_v3  ;;  %v9841_v3 = vld [vmem:[#allocation45_spill] sm:$0xff] }
 0xba8   :  { %6939 = vrcp.f32 %v5555_v34  ;;  %v5877_v53 = vmul.f32 -1.442695, %v9614_v17 }
 0xba9   :  { %v6930_v35 = vpop.eup %6929  ;;  %v5876_v11 = vmul.f32 -1.442695, %v9617_v56 }
 0xbaa   :  { %v6932_v1 = vpop.eup %6931  ;;  %v5650_v33 = vmul.f32 %v6930_v35, %v9572_v2  ;;  %6941 = vpow2.f32 %v5877_v53  ;;  %v4258_v53 = vadd.f32 %v9551_v12, %v9841_v3  ;;  %v9847_v3 = vld [vmem:[#allocation51_spill] sm:$0xff] }
 0xbab   :  { %v5649_v0 = vmul.f32 %v6932_v1, %v9575_v21  ;;  %6943 = vpow2.f32 %v5876_v11  ;;  %v9842_v11 = vld [vmem:[#allocation44_spill] sm:$0xff] }
 0xbac   :  { %v6934_v16 = vpop.eup %6933  ;;  %v5682_v22 = vadd.f32 %v5650_v33, %v4228_v57  ;;  %v4253_v1 = vadd.f32 %v9551_v12, %v9842_v11  ;;  %v9848_v11 = vld [vmem:[#allocation50_spill] sm:$0xff] }
 0xbad   :  { %v6936_v61 = vpop.eup %6935  ;;  %v5681_v4 = vadd.f32 %v5649_v0, %v4223_v20  ;;  %v5558_v52 = vadd.f32 1.0, %v6934_v16  ;;  %v6093_v24 = vpop.f32.mrb[82].mxu0 }
 0xbae   :  { %5714 = vst [vmem:[#allocation31 + $0x58] sm:$0xff] %v5682_v22  ;;  %v5557_v30 = vadd.f32 1.0, %v6936_v61  ;;  %v9628_v54 = vadd.f32 %v6093_v24, %v9528_v51  ;;  %v5378_v18 = vpop.f32.mrb[83].mxu0 }
 0xbaf   :  { %5713 = vst [vmem:[#allocation31 + $0x50] sm:$0xff] %v5681_v4  ;;  %6945 = vrcp.f32 %v5558_v52  ;;  %v9631_v2 = vadd.f32 %v9528_v51, %v5378_v18 }
 0xbb0   :  { %6947 = vrcp.f32 %v5557_v30  ;;  %v5879_v9 = vmul.f32 -1.442695, %v9628_v54 }
 0xbb1   :  { %v6938_v21 = vpop.eup %6937  ;;  %v5878_v29 = vmul.f32 -1.442695, %v9631_v2 }
 0xbb2   :  { %v6940_v25 = vpop.eup %6939  ;;  %v5652_v23 = vmul.f32 %v6938_v21, %v9586_v6  ;;  %6949 = vpow2.f32 %v5879_v9  ;;  %v9843_v21 = vld [vmem:[#allocation47_spill] sm:$0xff] }
 0xbb3   :  { %v5651_v45 = vmul.f32 %v6940_v25, %v9589_v47  ;;  %6951 = vpow2.f32 %v5878_v29  ;;  %v4268_v29 = vadd.f32 %v9551_v12, %v9843_v21  ;;  %v9849_v21 = vld [vmem:[#allocation53_spill] sm:$0xff] }
 0xbb4   :  { %v6942_v44 = vpop.eup %6941  ;;  %v5684_v31 = vadd.f32 %v5652_v23, %v4238_v49  ;;  %v9844_v49 = vld [vmem:[#allocation46_spill] sm:$0xff] }
 0xbb5   :  { %v6944_v5 = vpop.eup %6943  ;;  %v5683_v26 = vadd.f32 %v5651_v45, %v4233_v39  ;;  %v5560_v55 = vadd.f32 1.0, %v6942_v44  ;;  %v6096_v13 = vpop.f32.mrb[84].mxu0  ;;  %v4263_v23 = vadd.f32 %v9551_v12, %v9844_v49  ;;  %v9850_v49 = vld [vmem:[#allocation52_spill] sm:$0xff] }
 0xbb6   :  { %5716 = vst [vmem:[#allocation31 + $0x68] sm:$0xff] %v5684_v31  ;;  %v5559_v60 = vadd.f32 1.0, %v6944_v5  ;;  %v9642_v40 = vadd.f32 %v6096_v13, %v9528_v51  ;;  %v5388_v48 = vpop.f32.mrb[85].mxu0 }
 0xbb7   :  { %5715 = vst [vmem:[#allocation31 + $0x60] sm:$0xff] %v5683_v26  ;;  %6953 = vrcp.f32 %v5560_v55  ;;  %v9645_v6 = vadd.f32 %v9528_v51, %v5388_v48 }
 0xbb8   :  { %6955 = vrcp.f32 %v5559_v60  ;;  %v5881_v15 = vmul.f32 -1.442695, %v9642_v40 }
 0xbb9   :  { %v6946_v47 = vpop.eup %6945  ;;  %v5880_v63 = vmul.f32 -1.442695, %v9645_v6 }
 0xbba   :  { %v6948_v28 = vpop.eup %6947  ;;  %v5654_v38 = vmul.f32 %v6946_v47, %v9600_v41  ;;  %6957 = vpow2.f32 %v5881_v15 }
 0xbbb   :  { %v5653_v10 = vmul.f32 %v6948_v28, %v9603_v19  ;;  %6959 = vpow2.f32 %v5880_v63  ;;  %v9845_v28 = vld [vmem:[#allocation49_spill] sm:$0xff] }
 0xbbc   :  { %v6950_v46 = vpop.eup %6949  ;;  %v5686_v7 = vadd.f32 %v5654_v38, %v4248_v43  ;;  %v4278_v43 = vadd.f32 %v9551_v12, %v9845_v28 }
 0xbbd   :  { %v6952_v27 = vpop.eup %6951  ;;  %v5685_v37 = vadd.f32 %v5653_v10, %v4243_v62  ;;  %v5562_v58 = vadd.f32 1.0, %v6950_v46  ;;  %v6099_v50 = vpop.f32.mrb[86].mxu0  ;;  %v4273_v62 = vadd.f32 %v9551_v12, %v9846_v59 }
 0xbbe   :  { %5718 = vst [vmem:[#allocation31 + $0x78] sm:$0xff] %v5686_v7  ;;  %v5561_v14 = vadd.f32 1.0, %v6952_v27  ;;  %v9656_v8 = vadd.f32 %v6099_v50, %v9528_v51  ;;  %v5398_v42 = vpop.f32.mrb[87].mxu0 }
 0xbbf   :  { %5717 = vst [vmem:[#allocation31 + $0x70] sm:$0xff] %v5685_v37  ;;  %6961 = vrcp.f32 %v5562_v58  ;;  %v9659_v41 = vadd.f32 %v9528_v51, %v5398_v42 }
 0xbc0   :  { %6963 = vrcp.f32 %v5561_v14  ;;  %v5883_v19 = vmul.f32 -1.442695, %v9656_v8 }
 0xbc1   :  { %v6954_v36 = vpop.eup %6953  ;;  %v5882_v32 = vmul.f32 -1.442695, %v9659_v41 }
 0xbc2   :  { %v6956_v34 = vpop.eup %6955  ;;  %v5656_v35 = vmul.f32 %v6954_v36, %v9614_v17  ;;  %6965 = vpow2.f32 %v5883_v19 }
 0xbc3   :  { %v5655_v57 = vmul.f32 %v6956_v34, %v9617_v56  ;;  %6967 = vpow2.f32 %v5882_v32 }
 0xbc4   :  { %v6958_v33 = vpop.eup %6957  ;;  %v5688_v20 = vadd.f32 %v5656_v35, %v4258_v53  ;;  %v4288_v53 = vadd.f32 %v9551_v12, %v9847_v3  ;;  %v9856_v3 = vld [vmem:[#allocation58_spill] sm:$0xff] }
 0xbc5   :  { %v6960_v0 = vpop.eup %6959  ;;  %v5687_v16 = vadd.f32 %v5655_v57, %v4253_v1  ;;  %v5564_v22 = vadd.f32 1.0, %v6958_v33  ;;  %v6102_v61 = vpop.f32.mrb[88].mxu0  ;;  %v4283_v1 = vadd.f32 %v9551_v12, %v9848_v11 }
 0xbc6   :  { %5720 = vst [vmem:[#allocation31 + $0x88] sm:$0xff] %v5688_v20  ;;  %v5563_v4 = vadd.f32 1.0, %v6960_v0  ;;  %v9670_v52 = vadd.f32 %v6102_v61, %v9528_v51  ;;  %v5408_v24 = vpop.f32.mrb[89].mxu0 }
 0xbc7   :  { %5719 = vst [vmem:[#allocation31 + $0x80] sm:$0xff] %v5687_v16  ;;  %6969 = vrcp.f32 %v5564_v22  ;;  %v9673_v17 = vadd.f32 %v9528_v51, %v5408_v24 }
 0xbc8   :  { %6971 = vrcp.f32 %v5563_v4  ;;  %v5885_v56 = vmul.f32 -1.442695, %v9670_v52 }
 0xbc9   :  { %v6962_v30 = vpop.eup %6961  ;;  %v5884_v18 = vmul.f32 -1.442695, %v9673_v17 }
 0xbca   :  { %v6964_v9 = vpop.eup %6963  ;;  %v5658_v25 = vmul.f32 %v6962_v30, %v9628_v54  ;;  %6973 = vpow2.f32 %v5885_v56 }
 0xbcb   :  { %v5657_v39 = vmul.f32 %v6964_v9, %v9631_v2  ;;  %6975 = vpow2.f32 %v5884_v18 }
 0xbcc   :  { %v6966_v45 = vpop.eup %6965  ;;  %v5690_v44 = vadd.f32 %v5658_v25, %v4268_v29  ;;  %v4298_v29 = vadd.f32 %v9551_v12, %v9849_v21 }
 0xbcd   :  { %v6968_v31 = vpop.eup %6967  ;;  %v5689_v5 = vadd.f32 %v5657_v39, %v4263_v23  ;;  %v5566_v26 = vadd.f32 1.0, %v6966_v45  ;;  %v6105_v55 = vpop.f32.mrb[90].mxu0  ;;  %v4293_v23 = vadd.f32 %v9551_v12, %v9850_v49 }
 0xbce   :  { %5722 = vst [vmem:[#allocation31 + $0x98] sm:$0xff] %v5690_v44  ;;  %v5565_v13 = vadd.f32 1.0, %v6968_v31  ;;  %v9684_v60 = vadd.f32 %v6105_v55, %v9528_v51  ;;  %v5418_v48 = vpop.f32.mrb[91].mxu0 }
 0xbcf   :  { %5721 = vst [vmem:[#allocation31 + $0x90] sm:$0xff] %v5689_v5  ;;  %6977 = vrcp.f32 %v5566_v26  ;;  %v9687_v54 = vadd.f32 %v9528_v51, %v5418_v48 }
 0xbd0   :  { %6979 = vrcp.f32 %v5565_v13  ;;  %v5887_v2 = vmul.f32 -1.442695, %v9684_v60 }
 0xbd1   :  { %v6970_v15 = vpop.eup %6969  ;;  %v5886_v47 = vmul.f32 -1.442695, %v9687_v54 }
 0xbd2   :  { %v6972_v63 = vpop.eup %6971  ;;  %v5660_v38 = vmul.f32 %v6970_v15, %v9642_v40  ;;  %6981 = vpow2.f32 %v5887_v2  ;;  %v9852_v15 = vld [vmem:[#allocation54_spill] sm:$0xff] }
 0xbd3   :  { %v5659_v10 = vmul.f32 %v6972_v63, %v9645_v6  ;;  %6983 = vpow2.f32 %v5886_v47 }
 0xbd4   :  { %v6974_v46 = vpop.eup %6973  ;;  %v5692_v7 = vadd.f32 %v5660_v38, %v4278_v43 }
 0xbd5   :  { %v6976_v27 = vpop.eup %6975  ;;  %v5691_v37 = vadd.f32 %v5659_v10, %v4273_v62  ;;  %v5568_v58 = vadd.f32 1.0, %v6974_v46  ;;  %v6108_v50 = vpop.f32.mrb[92].mxu0 }
 0xbd6   :  { %5724 = vst [vmem:[#allocation31 + $0xa8] sm:$0xff] %v5692_v7  ;;  %v5567_v14 = vadd.f32 1.0, %v6976_v27  ;;  %v9698_v42 = vadd.f32 %v6108_v50, %v9528_v51  ;;  %v5428_v19 = vpop.f32.mrb[93].mxu0  ;;  %v9853_v7 = vld [vmem:[#allocation57_spill] sm:$0xff] }
 0xbd7   :  { %5723 = vst [vmem:[#allocation31 + $0xa0] sm:$0xff] %v5691_v37  ;;  %6985 = vrcp.f32 %v5568_v58  ;;  %v9701_v40 = vadd.f32 %v9528_v51, %v5428_v19  ;;  %v9854_v37 = vld [vmem:[#allocation56_spill] sm:$0xff] }
 0xbd8   :  { %6987 = vrcp.f32 %v5567_v14  ;;  %v5889_v6 = vmul.f32 -1.442695, %v9698_v42 }
 0xbd9   :  { %v6978_v36 = vpop.eup %6977  ;;  %v5888_v32 = vmul.f32 -1.442695, %v9701_v40 }
 0xbda   :  { %v6980_v34 = vpop.eup %6979  ;;  %v5662_v35 = vmul.f32 %v6978_v36, %v9656_v8  ;;  %6989 = vpow2.f32 %v5889_v6  ;;  %v9855_v36 = vld [vmem:[#allocation59_spill] sm:$0xff] }
 0xbdb   :  { %v5661_v57 = vmul.f32 %v6980_v34, %v9659_v41  ;;  %6991 = vpow2.f32 %v5888_v32  ;;  %v4328_v32 = vadd.f32 %v9551_v12, %v9855_v36 }
 0xbdc   :  { %v6982_v33 = vpop.eup %6981  ;;  %v5694_v20 = vadd.f32 %v5662_v35, %v4288_v53 }
 0xbdd   :  { %v6984_v0 = vpop.eup %6983  ;;  %v5693_v16 = vadd.f32 %v5661_v57, %v4283_v1  ;;  %v5570_v22 = vadd.f32 1.0, %v6982_v33  ;;  %v6111_v61 = vpop.f32.mrb[94].mxu0 }
 0xbde   :  { %5726 = vst [vmem:[#allocation31 + $0xb8] sm:$0xff] %v5694_v20  ;;  %v5569_v4 = vadd.f32 1.0, %v6984_v0  ;;  %v5444_v24 = vadd.f32 %v6111_v61, %v9528_v51  ;;  %v5438_v56 = vpop.f32.mrb[95].mxu0 }
 0xbdf   :  { %5725 = vst [vmem:[#allocation31 + $0xb0] sm:$0xff] %v5693_v16  ;;  %6993 = vrcp.f32 %v5570_v22  ;;  %v5439_v8 = vadd.f32 %v9528_v51, %v5438_v56 }
 0xbe0   :  { %6995 = vrcp.f32 %v5569_v4  ;;  %v5891_v30 = vmul.f32 -1.442695, %v5444_v24 }
 0xbe1   :  { %v6986_v18 = vpop.eup %6985  ;;  %v5890_v41 = vmul.f32 -1.442695, %v5439_v8 }
 0xbe2   :  { %v6988_v9 = vpop.eup %6987  ;;  %v5664_v25 = vmul.f32 %v6986_v18, %v9670_v52  ;;  %6997 = vpow2.f32 %v5891_v30  ;;  %v9851_v52 = vld [vmem:[#allocation55_spill] sm:$0xff] }
 0xbe3   :  { %v5663_v39 = vmul.f32 %v6988_v9, %v9673_v17  ;;  %6999 = vpow2.f32 %v5890_v41  ;;  %v4308_v48 = vadd.f32 %v9551_v12, %v9851_v52  ;;  %v4303_v17 = vadd.f32 %v9551_v12, %v9852_v15 }
 0xbe4   :  { %v6990_v45 = vpop.eup %6989  ;;  %v5696_v44 = vadd.f32 %v5664_v25, %v4298_v29 }
 0xbe5   :  { %v6992_v51 = vpop.eup %6991  ;;  %v5695_v31 = vadd.f32 %v5663_v39, %v4293_v23  ;;  %v5572_v5 = vadd.f32 1.0, %v6990_v45 }
 0xbe6   :  { %5728 = vst [vmem:[#allocation31 + $0xc8] sm:$0xff] %v5696_v44  ;;  %v5571_v26 = vadd.f32 1.0, %v6992_v51 }
 0xbe7   :  { %5727 = vst [vmem:[#allocation31 + $0xc0] sm:$0xff] %v5695_v31  ;;  %7001 = vrcp.f32 %v5572_v5 }
 0xbe8   :  { %7003 = vrcp.f32 %v5571_v26 }
 0xbe9   :  { %v6994_v55 = vpop.eup %6993 }
 0xbea   :  { %v6996_v13 = vpop.eup %6995  ;;  %v5666_v2 = vmul.f32 %v6994_v55, %v9684_v60  ;;  %v4318_v60 = vadd.f32 %v9551_v12, %v9853_v7 }
 0xbeb   :  { %v5665_v47 = vmul.f32 %v6996_v13, %v9687_v54  ;;  %v4313_v54 = vadd.f32 %v9551_v12, %v9854_v37 }
 0xbec   :  { %v6998_v63 = vpop.eup %6997  ;;  %v5698_v28 = vadd.f32 %v5666_v2, %v4308_v48 }
 0xbed   :  { %v7000_v43 = vpop.eup %6999  ;;  %v5697_v38 = vadd.f32 %v5665_v47, %v4303_v17  ;;  %v5574_v59 = vadd.f32 1.0, %v6998_v63 }
 0xbee   :  { %5730 = vst [vmem:[#allocation31 + $0xd8] sm:$0xff] %v5698_v28  ;;  %v5573_v62 = vadd.f32 1.0, %v7000_v43 }
 0xbef   :  { %5729 = vst [vmem:[#allocation31 + $0xd0] sm:$0xff] %v5697_v38  ;;  %7005 = vrcp.f32 %v5574_v59 }
 0xbf0   :  { %7007 = vrcp.f32 %v5573_v62 }
 0xbf1   :  { %v7002_v10 = vpop.eup %7001 }
 0xbf2   :  { %v7004_v46 = vpop.eup %7003  ;;  %v5668_v27 = vmul.f32 %v7002_v10, %v9698_v42  ;;  %v4323_v42 = vadd.f32 %v9551_v12, %v9856_v3 }
 0xbf3   :  { %v5667_v58 = vmul.f32 %v7004_v46, %v9701_v40 }
 0xbf4   :  { %v5700_v50 = vadd.f32 %v5668_v27, %v4318_v60 }
 0xbf5   :  { %v5699_v14 = vadd.f32 %v5667_v58, %v4313_v54 }
 0xbf6   :  { %5732 = vst [vmem:[#allocation31 + $0xe8] sm:$0xff] %v5700_v50 }
 0xbf7   :  { %5731 = vst [vmem:[#allocation31 + $0xe0] sm:$0xff] %v5699_v14 }
 0xbf9   :  { %v7006_v19 = vpop.eup %7005 }
 0xbfa   :  { %v7008_v6 = vpop.eup %7007  ;;  %v5670_v34 = vmul.f32 %v7006_v19, %v5444_v24 }
 0xbfb   :  { %v5669_v53 = vmul.f32 %v7008_v6, %v5439_v8 }
 0xbfc   :  { %v5702_v35 = vadd.f32 %v5670_v34, %v4328_v32 }
 0xbfd   :  { %v5701_v11 = vadd.f32 %v5669_v53, %v4323_v42 }
 0xbfe   :  { %5734 = vst [vmem:[#allocation31 + $0xf8] sm:$0xff] %v5702_v35 }
 0xbff   :  { %5733 = vst [vmem:[#allocation31 + $0xf0] sm:$0xff] %v5701_v11 }
 0xc00   :  { %7448 = shalt.err (!%p7445_p8)
}
 0xc01   :  { %s9857_s24 = sld [smem:[#allocation73_spill]] }
 0xc07   :  { %s7449_s13 = scalar_lea.hbm %s9857_s24, 4096 }
 0xc08   :  { %p7450_p9 = scmp.ne.s32.totalorder %s9857_s24, %s7449_s13  ;;  %p7453_p10 = scmp.lt.u32.totalorder %s7449_s13, %s9857_s24 }
 0xc0a   :  { %p7455_p11 = pnand %p7453_p10, %p7450_p9 }
 0xc0c   :  { %7458 = shalt.err (!%p7455_p11)
}
 0xc0d   :  { %5746 = dma.vmem_to_hbm [thread:$0]  %s5741_s14, 4096, %s9857_s24, [#allocation4], %s7491_s19, %s7491_s19, %s7492_s28  }
 0xc0e   :  { %7479 = dma.done.wait [#allocation4], 4096  }
 0xc0f   :  { %7480 = vsyncadd [#allocation4], 4294963200 }
 0xc10   :  { %5750 = vsyncpa [#allocation3], 1 }
 0xc11   :  { %5751 = vsyncpa [#allocation6], 1 }
 0xc12   :  { %5752 = vsyncpa [#allocation9], 1 }
 0xc13   :  { %5753 = vsyncpa [#allocation12], 1 }
 0xc14   :  { %5754 = vsyncpa [#allocation15], 1 }
 0xc15   :  { %5755 = vsyncpa [#allocation18], 1 }
 0xc16   :  { %5756 = vsyncpa [#allocation21], 1 }
 0xc17   :  { %5757 = vsyncpa [#allocation24], 1 }
 0xc18   :  { %5758 = vsyncpa [#allocation27], 1 }
 0xc19   :  { %5759 = vsyncpa [#allocation30], 1 }
 0xc1a   :  { %5760 = vsyncpa [#allocation4], 1 }

</bundles_post_ra>
